<compile_context>
chip_gen: v5e
topology: v5e:2x2
jax: 0.10.0
libtpu: 0.0.40
codegen_flags: <defaults>
</compile_context>

<pallas_src>
import functools

import jax
import jax.numpy as jnp
from jax.experimental import pallas as pl
from jax.experimental.pallas import tpu as pltpu

BN_EPS = 1e-5

CONV_CFG = [  # (cin, cout, kernel, pad) — matches the PyTorch module
    (1, 32, 5, 2),
    (32, 32, 5, 2),
    (32, 64, 3, 1),
    (64, 128, 3, 1),
]

_VMEM_LIMIT = 32 * 1024 * 1024  # safe on v5e / v6e / v7x


# ---------------------------------------------------------------------------
# Fused Conv2d + BatchNorm(eval) + ReLU + MaxPool(2,2) kernel
# ---------------------------------------------------------------------------
def _conv_pool_kernel(x_ref, w_ref, shift_ref, o_ref, tmp_ref, *, kh, kw):
    """One halo'd row strip -> pooled output rows.

    x_ref:     (1, TH + kh-1, W + kw-1, Cin)   bf16 (padded input strip)
    w_ref:     (kh*kw, Cin, Cout)              bf16 (BN scale folded in)
    shift_ref: (1, 1, Cout)                    f32  (folded conv bias + BN shift)
    o_ref:     (1, TH//2, W//2, Cout)          bf16
    tmp_ref:   (TH//2, W, Cout)                f32 scratch (vertically pooled rows)
    """
    cout = w_ref.shape[2]
    tho = o_ref.shape[1]
    wo = o_ref.shape[2]
    w_full = tmp_ref.shape[1]  # un-pooled output width

    def row_pair(hh, carry):
        rows = []
        for rr in range(2):                       # the two conv rows of one pooled row
            h = 2 * hh + rr
            r = jnp.zeros((w_full, cout), jnp.float32)
            for di in range(kh):
                for dj in range(kw):
                    lhs = x_ref[0, h + di, pl.ds(dj, w_full), :]       # (W, Cin)
                    r = r + jnp.dot(lhs, w_ref[di * kw + dj],
                                    preferred_element_type=jnp.float32)
            rows.append(r)
        tmp_ref[hh] = jnp.maximum(rows[0], rows[1])                    # vertical 2-max
        return carry

    jax.lax.fori_loop(0, tho, row_pair, 0)

    # horizontal 2-max via sublane-strided reads, then shift + ReLU (they commute
    # with max because the shift is constant per channel and ReLU is monotone).
    left = tmp_ref[:, pl.ds(0, wo, 2), :]
    right = tmp_ref[:, pl.ds(1, wo, 2), :]
    y = jnp.maximum(jnp.maximum(left, right) + shift_ref[...], 0.0)
    o_ref[0] = y.astype(o_ref.dtype)


def _pick_even_divisor(n, cap):
    """Largest even divisor of n that is <= cap (n is always even here)."""
    best = 2
    d = 2
    while d <= min(n, cap):
        if n % d == 0:
            best = d
        d += 2
    return best


def _make_strips(x, pad, th):
    """(B,H,W,C) NHWC -> (B*NT, th+2p, W+2p, C) overlapping halo'd row strips."""
    b, h, w, c = x.shape
    nt = h // th
    xp = jnp.pad(x, ((0, 0), (pad, pad), (pad, pad), (0, 0)))
    strips = [xp[:, i * th:i * th + th + 2 * pad] for i in range(nt)]
    xs = jnp.stack(strips, axis=1)
    return xs.reshape(b * nt, th + 2 * pad, w + 2 * pad, c)


def conv_bn_relu_pool(x, w_taps, shift, kernel_size, pad):
    """NHWC bf16 in -> NHWC bf16 out (H/2, W/2), conv+BN+ReLU+pool fused."""
    b, h, w, cin = x.shape
    kk, cin_w, cout = w_taps.shape
    assert cin_w == cin and kk == kernel_size * kernel_size
    assert h % 2 == 0 and w % 2 == 0

    th = _pick_even_divisor(h, 32)
    nt = h // th
    xs = _make_strips(x, pad, th)
    tho, wo = th // 2, w // 2
    wp = w + 2 * pad

    kern = functools.partial(_conv_pool_kernel, kh=kernel_size, kw=kernel_size)
    out = pl.pallas_call(
        kern,
        out_shape=jax.ShapeDtypeStruct((b * nt, tho, wo, cout), jnp.bfloat16),
        grid_spec=pltpu.PrefetchScalarGridSpec(
            num_scalar_prefetch=0,
            grid=(b * nt,),
            in_specs=[
                pl.BlockSpec((1, th + 2 * pad, wp, cin), lambda i: (i, 0, 0, 0)),
                pl.BlockSpec((kk, cin, cout), lambda i: (0, 0, 0)),
                pl.BlockSpec((1, 1, cout), lambda i: (0, 0, 0)),
            ],
            out_specs=pl.BlockSpec((1, tho, wo, cout), lambda i: (i, 0, 0, 0)),
            scratch_shapes=[pltpu.VMEM((tho, w, cout), jnp.float32)],
        ),
        compiler_params=pltpu.CompilerParams(
            dimension_semantics=("parallel",),
            vmem_limit_bytes=_VMEM_LIMIT,
        ),
    )(xs, w_taps, shift)
    return out.reshape(b, nt * tho, wo, cout)


# ---------------------------------------------------------------------------
# Tiled fused matmul (Linear + bias + optional ReLU) kernel
# ---------------------------------------------------------------------------
def _fc_kernel(a_ref, w_ref, b_ref, o_ref, acc_ref, *, relu):
    @pl.when(pl.program_id(2) == 0)
    def _init():
        acc_ref[...] = jnp.zeros_like(acc_ref)

    acc_ref[...] += jnp.dot(a_ref[...], w_ref[...],
                            preferred_element_type=jnp.float32)

    @pl.when(pl.program_id(2) == pl.num_programs(2) - 1)
    def _finalize():
        y = acc_ref[...] + b_ref[...]
        if relu:
            y = jnp.maximum(y, 0.0)
        o_ref[...] = y.astype(o_ref.dtype)


def fc_layer(x, w_io, bias, relu, out_dtype):
    """y = act(x @ w_io + bias), w_io is (in, out); bf16 in, f32 accumulation."""
    m, k = x.shape
    k2, n = w_io.shape
    assert k == k2

    tm = m if (m <= 256 or m % 256) else 256
    tn = n if (n <= 512 or n % 512) else 512
    tk = k
    for cand in (512, 256, 128):
        if k > cand and k % cand == 0:
            tk = cand
            break

    kern = functools.partial(_fc_kernel, relu=relu)
    return pl.pallas_call(
        kern,
        out_shape=jax.ShapeDtypeStruct((m, n), out_dtype),
        grid_spec=pltpu.PrefetchScalarGridSpec(
            num_scalar_prefetch=0,
            grid=(m // tm, n // tn, k // tk),
            in_specs=[
                pl.BlockSpec((tm, tk), lambda i, j, kk: (i, kk)),
                pl.BlockSpec((tk, tn), lambda i, j, kk: (kk, j)),
                pl.BlockSpec((1, tn), lambda i, j, kk: (0, j)),
            ],
            out_specs=pl.BlockSpec((tm, tn), lambda i, j, kk: (i, j)),
            scratch_shapes=[pltpu.VMEM((tm, tn), jnp.float32)],
        ),
        compiler_params=pltpu.CompilerParams(
            dimension_semantics=("parallel", "parallel", "arbitrary"),
            vmem_limit_bytes=_VMEM_LIMIT,
        ),
    )(x, w_io, bias)


# ---------------------------------------------------------------------------
# Parameters
# ---------------------------------------------------------------------------
def init_params(key, img_size):
    """PyTorch-layout parameters (synthetic BatchNorm running stats)."""
    params = {}
    keys = iter(jax.random.split(key, 32))
    for i, (cin, cout, k, _pad) in enumerate(CONV_CFG, start=1):
        fan_in = cin * k * k
        bound = 1.0 / float(fan_in) ** 0.5
        params[f"conv{i}"] = dict(
            w=jax.random.uniform(next(keys), (cout, cin, k, k), jnp.float32, -bound, bound),
            b=jax.random.uniform(next(keys), (cout,), jnp.float32, -bound, bound),
            gamma=jax.random.uniform(next(keys), (cout,), jnp.float32, 0.5, 1.5),
            beta=jax.random.uniform(next(keys), (cout,), jnp.float32, -0.1, 0.1),
            mean=0.1 * jax.random.normal(next(keys), (cout,), jnp.float32),
            var=jax.random.uniform(next(keys), (cout,), jnp.float32, 0.5, 1.5),
        )
    map_size = img_size // 2 ** 4
    fc_in = 128 * map_size * map_size
    for i, (fin, fout) in enumerate([(fc_in, 512), (512, 256), (256, 136)], start=1):
        bound = 1.0 / float(fin) ** 0.5
        params[f"fc{i}"] = dict(
            w=jax.random.uniform(next(keys), (fout, fin), jnp.float32, -bound, bound),
            b=jax.random.uniform(next(keys), (fout,), jnp.float32, -bound, bound),
        )
    return params


def prepare_params(params, img_size):
    """One-time layout / folding transforms (free at runtime)."""
    prep = {}
    for i, (cin, cout, k, _pad) in enumerate(CONV_CFG, start=1):
        p = params[f"conv{i}"]
        scale = p["gamma"] / jnp.sqrt(p["var"] + BN_EPS)              # (cout,)
        shift = p["beta"] + scale * (p["b"] - p["mean"])              # (cout,)
        w = p["w"] * scale[:, None, None, None]                       # fold BN scale into weights
        cin_pad = max(cin, 8)                                         # avoid degenerate 1-lane blocks
        if cin_pad != cin:
            w = jnp.pad(w, ((0, 0), (0, cin_pad - cin), (0, 0), (0, 0)))
        # OIHW -> (kh*kw, Cin, Cout); tap index t = di*kw + dj
        w_taps = jnp.transpose(w, (2, 3, 1, 0)).reshape(k * k, cin_pad, cout)
        prep[f"conv{i}"] = dict(
            w=w_taps.astype(jnp.bfloat16),
            shift=shift.reshape(1, 1, cout).astype(jnp.float32),
        )
    # fc1: permute input features from NCHW-flat to NHWC-flat order, transpose to (in, out)
    m = img_size // 2 ** 4
    w1 = params["fc1"]["w"].reshape(512, 128, m, m)
    w1 = jnp.transpose(w1, (0, 2, 3, 1)).reshape(512, m * m * 128)
    prep["fc1"] = dict(w=jnp.transpose(w1).astype(jnp.bfloat16),
                       b=params["fc1"]["b"].reshape(1, -1).astype(jnp.float32))
    for name in ("fc2", "fc3"):
        prep[name] = dict(w=jnp.transpose(params[name]["w"]).astype(jnp.bfloat16),
                          b=params[name]["b"].reshape(1, -1).astype(jnp.float32))
    return prep


# ---------------------------------------------------------------------------
# Forward
# ---------------------------------------------------------------------------
def net_forward(prep, x_nchw):
    x = jnp.transpose(x_nchw, (0, 2, 3, 1)).astype(jnp.bfloat16)      # NCHW -> NHWC, bf16
    cin1 = prep["conv1"]["w"].shape[1]
    if x.shape[-1] < cin1:                                            # zero-pad conv1 channels (1 -> 8)
        x = jnp.pad(x, ((0, 0), (0, 0), (0, 0), (0, cin1 - x.shape[-1])))
    for i, (_cin, _cout, k, pad) in enumerate(CONV_CFG, start=1):
        p = prep[f"conv{i}"]
        x = conv_bn_relu_pool(x, p["w"], p["shift"], k, pad)
    b = x.shape[0]
    x = x.reshape(b, -1)       # free NHWC flatten; fc1 columns pre-permuted to match NCHW view()
    x = fc_layer(x, prep["fc1"]["w"], prep["fc1"]["b"], relu=True, out_dtype=jnp.bfloat16)
    # Dropout(p=0.1): identity at inference time.
    x = fc_layer(x, prep["fc2"]["w"], prep["fc2"]["b"], relu=True, out_dtype=jnp.bfloat16)
    x = fc_layer(x, prep["fc3"]["w"], prep["fc3"]["b"], relu=False, out_dtype=jnp.float32)
    return x


def _reference_forward(params, x_nchw):
    """Pure-JAX f32 reference with exact PyTorch semantics (eval mode)."""
    x = x_nchw
    for i, (_cin, _cout, _k, pad) in enumerate(CONV_CFG, start=1):
        p = params[f"conv{i}"]
        x = jax.lax.conv_general_dilated(
            x, p["w"], window_strides=(1, 1), padding=[(pad, pad), (pad, pad)],
            dimension_numbers=("NCHW", "OIHW", "NCHW"))
        x = x + p["b"][None, :, None, None]
        scale = p["gamma"] / jnp.sqrt(p["var"] + BN_EPS)
        x = (scale[None, :, None, None] * (x - p["mean"][None, :, None, None])
             + p["beta"][None, :, None, None])
        x = jnp.maximum(x, 0.0)
        x = jax.lax.reduce_window(x, -jnp.inf, jax.lax.max,
                                  (1, 1, 2, 2), (1, 1, 2, 2), "VALID")
    b = x.shape[0]
    x = x.reshape(b, -1)
    for name, relu in (("fc1", True), ("fc2", True), ("fc3", False)):
        w, bias = params[name]["w"], params[name]["b"]
        x = x @ w.T + bias
        if relu:
            x = jnp.maximum(x, 0.0)
    return x


if __name__ == "__main__":
    IMG = 32  # small analogue of the 224x224 input; map_size = 32 // 2**4 = 2
    key = jax.random.PRNGKey(0)
    pkey, xkey = jax.random.split(key)
    params = init_params(pkey, IMG)
    prep = prepare_params(params, IMG)
    x = jax.random.normal(xkey, (2, 1, IMG, IMG), jnp.float32)  # NCHW like PyTorch

    out = jax.jit(net_forward)(prep, x)
    out = jax.block_until_ready(out)
    assert out.shape == (2, 136), out.shape
    assert bool(jnp.all(jnp.isfinite(out)))

    # Loose numerical check against a pure-JAX f32 reference (bf16 tolerance).
    ref = jax.block_until_ready(_reference_forward(params, x))
    err = float(jnp.max(jnp.abs(out.astype(jnp.float32) - ref)))
    scale = float(jnp.max(jnp.abs(ref)))
    assert err <= 0.15 + 0.05 * scale, (err, scale)

    print("KERNEL_OK")
</pallas_src>

<mosaic_0001>
module attributes {stable_mosaic.version = 11 : i64} {
  func.func @_conv_pool_kernel(%arg0: i32, %arg1: memref<1x36x36x8xbf16, #tpu.memory_space<vmem>>, %arg2: memref<25x8x32xbf16, #tpu.memory_space<vmem>>, %arg3: memref<1x1x32xf32, #tpu.memory_space<vmem>>, %arg4: memref<1x16x16x32xbf16, #tpu.memory_space<vmem>>, %arg5: memref<16x32x32xf32, #tpu.memory_space<vmem>>) attributes {dimension_semantics = [#tpu.dimension_semantics<parallel>], iteration_bounds = array<i64: 2>, scalar_prefetch = 0 : i64, scratch_operands = 1 : i64, tpu.core_type = #tpu.core_type<tc>, window_params = [{transform_indices = @transform_0, window_bounds = array<i64: 1, 36, 36, 8>}, {pipeline_mode = #tpu.pipeline_mode<synchronous>, transform_indices = @transform_1, window_bounds = array<i64: 25, 8, 32>}, {pipeline_mode = #tpu.pipeline_mode<synchronous>, transform_indices = @transform_2, window_bounds = array<i64: 1, 1, 32>}, {transform_indices = @transform_3, window_bounds = array<i64: 1, 16, 16, 32>}]} {
    %c0_i32 = arith.constant 0 : i32
    %c16_i32 = arith.constant 16 : i32
    %0 = arith.addi %c0_i32, %c16_i32 : i32
    %c1_i32 = arith.constant 1 : i32
    scf.for %arg6 = %c0_i32 to %0 step %c1_i32  : i32 {
      %c2_i32 = arith.constant 2 : i32
      %13 = arith.muli %c2_i32, %arg6 : i32
      %c0_i32_12 = arith.constant 0 : i32
      %14 = arith.addi %13, %c0_i32_12 : i32
      %cst_13 = arith.constant 0.000000e+00 : f32
      %15 = vector.broadcast %cst_13 : f32 to vector<32x32xf32>
      %c0_i32_14 = arith.constant 0 : i32
      %16 = arith.addi %14, %c0_i32_14 : i32
      %c0_15 = arith.constant 0 : index
      %17 = arith.index_cast %16 : i32 to index
      %c0_16 = arith.constant 0 : index
      %c0_17 = arith.constant 0 : index
      %18 = vector.load %arg1[%c0_15, %17, %c0_16, %c0_17] : memref<1x36x36x8xbf16, #tpu.memory_space<vmem>>, vector<1x1x32x8xbf16>
      %19 = vector.shape_cast %18 : vector<1x1x32x8xbf16> to vector<32x8xbf16>
      %c0_18 = arith.constant 0 : index
      %c0_19 = arith.constant 0 : index
      %c0_20 = arith.constant 0 : index
      %20 = vector.load %arg2[%c0_18, %c0_19, %c0_20] : memref<25x8x32xbf16, #tpu.memory_space<vmem>>, vector<1x8x32xbf16>
      %21 = vector.shape_cast %20 : vector<1x8x32xbf16> to vector<8x32xbf16>
      %cst_21 = arith.constant dense<0.000000e+00> : vector<32x32xf32>
      %22 = tpu.matmul %19, %21, %cst_21 {dimension_numbers = #tpu.dot_dimension_numbers<[1], [0], [0], [1], [0, 0, 1, 1], [], []>} : vector<32x8xbf16>, vector<8x32xbf16>, vector<32x32xf32> -> vector<32x32xf32>
      %23 = arith.addf %15, %22 : vector<32x32xf32>
      %c0_i32_22 = arith.constant 0 : i32
      %24 = arith.addi %14, %c0_i32_22 : i32
      %c0_23 = arith.constant 0 : index
      %25 = arith.index_cast %24 : i32 to index
      %c1_24 = arith.constant 1 : index
      %c0_25 = arith.constant 0 : index
      %26 = vector.load %arg1[%c0_23, %25, %c1_24, %c0_25] : memref<1x36x36x8xbf16, #tpu.memory_space<vmem>>, vector<1x1x32x8xbf16>
      %27 = vector.shape_cast %26 : vector<1x1x32x8xbf16> to vector<32x8xbf16>
      %c1_26 = arith.constant 1 : index
      %c0_27 = arith.constant 0 : index
      %c0_28 = arith.constant 0 : index
      %28 = vector.load %arg2[%c1_26, %c0_27, %c0_28] : memref<25x8x32xbf16, #tpu.memory_space<vmem>>, vector<1x8x32xbf16>
      %29 = vector.shape_cast %28 : vector<1x8x32xbf16> to vector<8x32xbf16>
      %cst_29 = arith.constant dense<0.000000e+00> : vector<32x32xf32>
      %30 = tpu.matmul %27, %29, %cst_29 {dimension_numbers = #tpu.dot_dimension_numbers<[1], [0], [0], [1], [0, 0, 1, 1], [], []>} : vector<32x8xbf16>, vector<8x32xbf16>, vector<32x32xf32> -> vector<32x32xf32>
      %31 = arith.addf %23, %30 : vector<32x32xf32>
      %c0_i32_30 = arith.constant 0 : i32
      %32 = arith.addi %14, %c0_i32_30 : i32
      %c0_31 = arith.constant 0 : index
      %33 = arith.index_cast %32 : i32 to index
      %c2 = arith.constant 2 : index
      %c0_32 = arith.constant 0 : index
      %34 = vector.load %arg1[%c0_31, %33, %c2, %c0_32] : memref<1x36x36x8xbf16, #tpu.memory_space<vmem>>, vector<1x1x32x8xbf16>
      %35 = vector.shape_cast %34 : vector<1x1x32x8xbf16> to vector<32x8xbf16>
      %c2_33 = arith.constant 2 : index
      %c0_34 = arith.constant 0 : index
      %c0_35 = arith.constant 0 : index
      %36 = vector.load %arg2[%c2_33, %c0_34, %c0_35] : memref<25x8x32xbf16, #tpu.memory_space<vmem>>, vector<1x8x32xbf16>
      %37 = vector.shape_cast %36 : vector<1x8x32xbf16> to vector<8x32xbf16>
      %cst_36 = arith.constant dense<0.000000e+00> : vector<32x32xf32>
      %38 = tpu.matmul %35, %37, %cst_36 {dimension_numbers = #tpu.dot_dimension_numbers<[1], [0], [0], [1], [0, 0, 1, 1], [], []>} : vector<32x8xbf16>, vector<8x32xbf16>, vector<32x32xf32> -> vector<32x32xf32>
      %39 = arith.addf %31, %38 : vector<32x32xf32>
      %c0_i32_37 = arith.constant 0 : i32
      %40 = arith.addi %14, %c0_i32_37 : i32
      %c0_38 = arith.constant 0 : index
      %41 = arith.index_cast %40 : i32 to index
      %c3 = arith.constant 3 : index
      %c0_39 = arith.constant 0 : index
      %42 = vector.load %arg1[%c0_38, %41, %c3, %c0_39] : memref<1x36x36x8xbf16, #tpu.memory_space<vmem>>, vector<1x1x32x8xbf16>
      %43 = vector.shape_cast %42 : vector<1x1x32x8xbf16> to vector<32x8xbf16>
      %c3_40 = arith.constant 3 : index
      %c0_41 = arith.constant 0 : index
      %c0_42 = arith.constant 0 : index
      %44 = vector.load %arg2[%c3_40, %c0_41, %c0_42] : memref<25x8x32xbf16, #tpu.memory_space<vmem>>, vector<1x8x32xbf16>
      %45 = vector.shape_cast %44 : vector<1x8x32xbf16> to vector<8x32xbf16>
      %cst_43 = arith.constant dense<0.000000e+00> : vector<32x32xf32>
      %46 = tpu.matmul %43, %45, %cst_43 {dimension_numbers = #tpu.dot_dimension_numbers<[1], [0], [0], [1], [0, 0, 1, 1], [], []>} : vector<32x8xbf16>, vector<8x32xbf16>, vector<32x32xf32> -> vector<32x32xf32>
      %47 = arith.addf %39, %46 : vector<32x32xf32>
      %c0_i32_44 = arith.constant 0 : i32
      %48 = arith.addi %14, %c0_i32_44 : i32
      %c0_45 = arith.constant 0 : index
      %49 = arith.index_cast %48 : i32 to index
      %c4 = arith.constant 4 : index
      %c0_46 = arith.constant 0 : index
      %50 = vector.load %arg1[%c0_45, %49, %c4, %c0_46] : memref<1x36x36x8xbf16, #tpu.memory_space<vmem>>, vector<1x1x32x8xbf16>
      %51 = vector.shape_cast %50 : vector<1x1x32x8xbf16> to vector<32x8xbf16>
      %c4_47 = arith.constant 4 : index
      %c0_48 = arith.constant 0 : index
      %c0_49 = arith.constant 0 : index
      %52 = vector.load %arg2[%c4_47, %c0_48, %c0_49] : memref<25x8x32xbf16, #tpu.memory_space<vmem>>, vector<1x8x32xbf16>
      %53 = vector.shape_cast %52 : vector<1x8x32xbf16> to vector<8x32xbf16>
      %cst_50 = arith.constant dense<0.000000e+00> : vector<32x32xf32>
      %54 = tpu.matmul %51, %53, %cst_50 {dimension_numbers = #tpu.dot_dimension_numbers<[1], [0], [0], [1], [0, 0, 1, 1], [], []>} : vector<32x8xbf16>, vector<8x32xbf16>, vector<32x32xf32> -> vector<32x32xf32>
      %55 = arith.addf %47, %54 : vector<32x32xf32>
      %c1_i32_51 = arith.constant 1 : i32
      %56 = arith.addi %14, %c1_i32_51 : i32
      %c0_52 = arith.constant 0 : index
      %57 = arith.index_cast %56 : i32 to index
      %c0_53 = arith.constant 0 : index
      %c0_54 = arith.constant 0 : index
      %58 = vector.load %arg1[%c0_52, %57, %c0_53, %c0_54] : memref<1x36x36x8xbf16, #tpu.memory_space<vmem>>, vector<1x1x32x8xbf16>
      %59 = vector.shape_cast %58 : vector<1x1x32x8xbf16> to vector<32x8xbf16>
      %c5 = arith.constant 5 : index
      %c0_55 = arith.constant 0 : index
      %c0_56 = arith.constant 0 : index
      %60 = vector.load %arg2[%c5, %c0_55, %c0_56] : memref<25x8x32xbf16, #tpu.memory_space<vmem>>, vector<1x8x32xbf16>
      %61 = vector.shape_cast %60 : vector<1x8x32xbf16> to vector<8x32xbf16>
      %cst_57 = arith.constant dense<0.000000e+00> : vector<32x32xf32>
      %62 = tpu.matmul %59, %61, %cst_57 {dimension_numbers = #tpu.dot_dimension_numbers<[1], [0], [0], [1], [0, 0, 1, 1], [], []>} : vector<32x8xbf16>, vector<8x32xbf16>, vector<32x32xf32> -> vector<32x32xf32>
      %63 = arith.addf %55, %62 : vector<32x32xf32>
      %c1_i32_58 = arith.constant 1 : i32
      %64 = arith.addi %14, %c1_i32_58 : i32
      %c0_59 = arith.constant 0 : index
      %65 = arith.index_cast %64 : i32 to index
      %c1_60 = arith.constant 1 : index
      %c0_61 = arith.constant 0 : index
      %66 = vector.load %arg1[%c0_59, %65, %c1_60, %c0_61] : memref<1x36x36x8xbf16, #tpu.memory_space<vmem>>, vector<1x1x32x8xbf16>
      %67 = vector.shape_cast %66 : vector<1x1x32x8xbf16> to vector<32x8xbf16>
      %c6 = arith.constant 6 : index
      %c0_62 = arith.constant 0 : index
      %c0_63 = arith.constant 0 : index
      %68 = vector.load %arg2[%c6, %c0_62, %c0_63] : memref<25x8x32xbf16, #tpu.memory_space<vmem>>, vector<1x8x32xbf16>
      %69 = vector.shape_cast %68 : vector<1x8x32xbf16> to vector<8x32xbf16>
      %cst_64 = arith.constant dense<0.000000e+00> : vector<32x32xf32>
      %70 = tpu.matmul %67, %69, %cst_64 {dimension_numbers = #tpu.dot_dimension_numbers<[1], [0], [0], [1], [0, 0, 1, 1], [], []>} : vector<32x8xbf16>, vector<8x32xbf16>, vector<32x32xf32> -> vector<32x32xf32>
      %71 = arith.addf %63, %70 : vector<32x32xf32>
      %c1_i32_65 = arith.constant 1 : i32
      %72 = arith.addi %14, %c1_i32_65 : i32
      %c0_66 = arith.constant 0 : index
      %73 = arith.index_cast %72 : i32 to index
      %c2_67 = arith.constant 2 : index
      %c0_68 = arith.constant 0 : index
      %74 = vector.load %arg1[%c0_66, %73, %c2_67, %c0_68] : memref<1x36x36x8xbf16, #tpu.memory_space<vmem>>, vector<1x1x32x8xbf16>
      %75 = vector.shape_cast %74 : vector<1x1x32x8xbf16> to vector<32x8xbf16>
      %c7 = arith.constant 7 : index
      %c0_69 = arith.constant 0 : index
      %c0_70 = arith.constant 0 : index
      %76 = vector.load %arg2[%c7, %c0_69, %c0_70] : memref<25x8x32xbf16, #tpu.memory_space<vmem>>, vector<1x8x32xbf16>
      %77 = vector.shape_cast %76 : vector<1x8x32xbf16> to vector<8x32xbf16>
      %cst_71 = arith.constant dense<0.000000e+00> : vector<32x32xf32>
      %78 = tpu.matmul %75, %77, %cst_71 {dimension_numbers = #tpu.dot_dimension_numbers<[1], [0], [0], [1], [0, 0, 1, 1], [], []>} : vector<32x8xbf16>, vector<8x32xbf16>, vector<32x32xf32> -> vector<32x32xf32>
      %79 = arith.addf %71, %78 : vector<32x32xf32>
      %c1_i32_72 = arith.constant 1 : i32
      %80 = arith.addi %14, %c1_i32_72 : i32
      %c0_73 = arith.constant 0 : index
      %81 = arith.index_cast %80 : i32 to index
      %c3_74 = arith.constant 3 : index
      %c0_75 = arith.constant 0 : index
      %82 = vector.load %arg1[%c0_73, %81, %c3_74, %c0_75] : memref<1x36x36x8xbf16, #tpu.memory_space<vmem>>, vector<1x1x32x8xbf16>
      %83 = vector.shape_cast %82 : vector<1x1x32x8xbf16> to vector<32x8xbf16>
      %c8 = arith.constant 8 : index
      %c0_76 = arith.constant 0 : index
      %c0_77 = arith.constant 0 : index
      %84 = vector.load %arg2[%c8, %c0_76, %c0_77] : memref<25x8x32xbf16, #tpu.memory_space<vmem>>, vector<1x8x32xbf16>
      %85 = vector.shape_cast %84 : vector<1x8x32xbf16> to vector<8x32xbf16>
      %cst_78 = arith.constant dense<0.000000e+00> : vector<32x32xf32>
      %86 = tpu.matmul %83, %85, %cst_78 {dimension_numbers = #tpu.dot_dimension_numbers<[1], [0], [0], [1], [0, 0, 1, 1], [], []>} : vector<32x8xbf16>, vector<8x32xbf16>, vector<32x32xf32> -> vector<32x32xf32>
      %87 = arith.addf %79, %86 : vector<32x32xf32>
      %c1_i32_79 = arith.constant 1 : i32
      %88 = arith.addi %14, %c1_i32_79 : i32
      %c0_80 = arith.constant 0 : index
      %89 = arith.index_cast %88 : i32 to index
      %c4_81 = arith.constant 4 : index
      %c0_82 = arith.constant 0 : index
      %90 = vector.load %arg1[%c0_80, %89, %c4_81, %c0_82] : memref<1x36x36x8xbf16, #tpu.memory_space<vmem>>, vector<1x1x32x8xbf16>
      %91 = vector.shape_cast %90 : vector<1x1x32x8xbf16> to vector<32x8xbf16>
      %c9 = arith.constant 9 : index
      %c0_83 = arith.constant 0 : index
      %c0_84 = arith.constant 0 : index
      %92 = vector.load %arg2[%c9, %c0_83, %c0_84] : memref<25x8x32xbf16, #tpu.memory_space<vmem>>, vector<1x8x32xbf16>
      %93 = vector.shape_cast %92 : vector<1x8x32xbf16> to vector<8x32xbf16>
      %cst_85 = arith.constant dense<0.000000e+00> : vector<32x32xf32>
      %94 = tpu.matmul %91, %93, %cst_85 {dimension_numbers = #tpu.dot_dimension_numbers<[1], [0], [0], [1], [0, 0, 1, 1], [], []>} : vector<32x8xbf16>, vector<8x32xbf16>, vector<32x32xf32> -> vector<32x32xf32>
      %95 = arith.addf %87, %94 : vector<32x32xf32>
      %c2_i32_86 = arith.constant 2 : i32
      %96 = arith.addi %14, %c2_i32_86 : i32
      %c0_87 = arith.constant 0 : index
      %97 = arith.index_cast %96 : i32 to index
      %c0_88 = arith.constant 0 : index
      %c0_89 = arith.constant 0 : index
      %98 = vector.load %arg1[%c0_87, %97, %c0_88, %c0_89] : memref<1x36x36x8xbf16, #tpu.memory_space<vmem>>, vector<1x1x32x8xbf16>
      %99 = vector.shape_cast %98 : vector<1x1x32x8xbf16> to vector<32x8xbf16>
      %c10 = arith.constant 10 : index
      %c0_90 = arith.constant 0 : index
      %c0_91 = arith.constant 0 : index
      %100 = vector.load %arg2[%c10, %c0_90, %c0_91] : memref<25x8x32xbf16, #tpu.memory_space<vmem>>, vector<1x8x32xbf16>
      %101 = vector.shape_cast %100 : vector<1x8x32xbf16> to vector<8x32xbf16>
      %cst_92 = arith.constant dense<0.000000e+00> : vector<32x32xf32>
      %102 = tpu.matmul %99, %101, %cst_92 {dimension_numbers = #tpu.dot_dimension_numbers<[1], [0], [0], [1], [0, 0, 1, 1], [], []>} : vector<32x8xbf16>, vector<8x32xbf16>, vector<32x32xf32> -> vector<32x32xf32>
      %103 = arith.addf %95, %102 : vector<32x32xf32>
      %c2_i32_93 = arith.constant 2 : i32
      %104 = arith.addi %14, %c2_i32_93 : i32
      %c0_94 = arith.constant 0 : index
      %105 = arith.index_cast %104 : i32 to index
      %c1_95 = arith.constant 1 : index
      %c0_96 = arith.constant 0 : index
      %106 = vector.load %arg1[%c0_94, %105, %c1_95, %c0_96] : memref<1x36x36x8xbf16, #tpu.memory_space<vmem>>, vector<1x1x32x8xbf16>
      %107 = vector.shape_cast %106 : vector<1x1x32x8xbf16> to vector<32x8xbf16>
      %c11 = arith.constant 11 : index
      %c0_97 = arith.constant 0 : index
      %c0_98 = arith.constant 0 : index
      %108 = vector.load %arg2[%c11, %c0_97, %c0_98] : memref<25x8x32xbf16, #tpu.memory_space<vmem>>, vector<1x8x32xbf16>
      %109 = vector.shape_cast %108 : vector<1x8x32xbf16> to vector<8x32xbf16>
      %cst_99 = arith.constant dense<0.000000e+00> : vector<32x32xf32>
      %110 = tpu.matmul %107, %109, %cst_99 {dimension_numbers = #tpu.dot_dimension_numbers<[1], [0], [0], [1], [0, 0, 1, 1], [], []>} : vector<32x8xbf16>, vector<8x32xbf16>, vector<32x32xf32> -> vector<32x32xf32>
      %111 = arith.addf %103, %110 : vector<32x32xf32>
      %c2_i32_100 = arith.constant 2 : i32
      %112 = arith.addi %14, %c2_i32_100 : i32
      %c0_101 = arith.constant 0 : index
      %113 = arith.index_cast %112 : i32 to index
      %c2_102 = arith.constant 2 : index
      %c0_103 = arith.constant 0 : index
      %114 = vector.load %arg1[%c0_101, %113, %c2_102, %c0_103] : memref<1x36x36x8xbf16, #tpu.memory_space<vmem>>, vector<1x1x32x8xbf16>
      %115 = vector.shape_cast %114 : vector<1x1x32x8xbf16> to vector<32x8xbf16>
      %c12 = arith.constant 12 : index
      %c0_104 = arith.constant 0 : index
      %c0_105 = arith.constant 0 : index
      %116 = vector.load %arg2[%c12, %c0_104, %c0_105] : memref<25x8x32xbf16, #tpu.memory_space<vmem>>, vector<1x8x32xbf16>
      %117 = vector.shape_cast %116 : vector<1x8x32xbf16> to vector<8x32xbf16>
      %cst_106 = arith.constant dense<0.000000e+00> : vector<32x32xf32>
      %118 = tpu.matmul %115, %117, %cst_106 {dimension_numbers = #tpu.dot_dimension_numbers<[1], [0], [0], [1], [0, 0, 1, 1], [], []>} : vector<32x8xbf16>, vector<8x32xbf16>, vector<32x32xf32> -> vector<32x32xf32>
      %119 = arith.addf %111, %118 : vector<32x32xf32>
      %c2_i32_107 = arith.constant 2 : i32
      %120 = arith.addi %14, %c2_i32_107 : i32
      %c0_108 = arith.constant 0 : index
      %121 = arith.index_cast %120 : i32 to index
      %c3_109 = arith.constant 3 : index
      %c0_110 = arith.constant 0 : index
      %122 = vector.load %arg1[%c0_108, %121, %c3_109, %c0_110] : memref<1x36x36x8xbf16, #tpu.memory_space<vmem>>, vector<1x1x32x8xbf16>
      %123 = vector.shape_cast %122 : vector<1x1x32x8xbf16> to vector<32x8xbf16>
      %c13 = arith.constant 13 : index
      %c0_111 = arith.constant 0 : index
      %c0_112 = arith.constant 0 : index
      %124 = vector.load %arg2[%c13, %c0_111, %c0_112] : memref<25x8x32xbf16, #tpu.memory_space<vmem>>, vector<1x8x32xbf16>
      %125 = vector.shape_cast %124 : vector<1x8x32xbf16> to vector<8x32xbf16>
      %cst_113 = arith.constant dense<0.000000e+00> : vector<32x32xf32>
      %126 = tpu.matmul %123, %125, %cst_113 {dimension_numbers = #tpu.dot_dimension_numbers<[1], [0], [0], [1], [0, 0, 1, 1], [], []>} : vector<32x8xbf16>, vector<8x32xbf16>, vector<32x32xf32> -> vector<32x32xf32>
      %127 = arith.addf %119, %126 : vector<32x32xf32>
      %c2_i32_114 = arith.constant 2 : i32
      %128 = arith.addi %14, %c2_i32_114 : i32
      %c0_115 = arith.constant 0 : index
      %129 = arith.index_cast %128 : i32 to index
      %c4_116 = arith.constant 4 : index
      %c0_117 = arith.constant 0 : index
      %130 = vector.load %arg1[%c0_115, %129, %c4_116, %c0_117] : memref<1x36x36x8xbf16, #tpu.memory_space<vmem>>, vector<1x1x32x8xbf16>
      %131 = vector.shape_cast %130 : vector<1x1x32x8xbf16> to vector<32x8xbf16>
      %c14 = arith.constant 14 : index
      %c0_118 = arith.constant 0 : index
      %c0_119 = arith.constant 0 : index
      %132 = vector.load %arg2[%c14, %c0_118, %c0_119] : memref<25x8x32xbf16, #tpu.memory_space<vmem>>, vector<1x8x32xbf16>
      %133 = vector.shape_cast %132 : vector<1x8x32xbf16> to vector<8x32xbf16>
      %cst_120 = arith.constant dense<0.000000e+00> : vector<32x32xf32>
      %134 = tpu.matmul %131, %133, %cst_120 {dimension_numbers = #tpu.dot_dimension_numbers<[1], [0], [0], [1], [0, 0, 1, 1], [], []>} : vector<32x8xbf16>, vector<8x32xbf16>, vector<32x32xf32> -> vector<32x32xf32>
      %135 = arith.addf %127, %134 : vector<32x32xf32>
      %c3_i32 = arith.constant 3 : i32
      %136 = arith.addi %14, %c3_i32 : i32
      %c0_121 = arith.constant 0 : index
      %137 = arith.index_cast %136 : i32 to index
      %c0_122 = arith.constant 0 : index
      %c0_123 = arith.constant 0 : index
      %138 = vector.load %arg1[%c0_121, %137, %c0_122, %c0_123] : memref<1x36x36x8xbf16, #tpu.memory_space<vmem>>, vector<1x1x32x8xbf16>
      %139 = vector.shape_cast %138 : vector<1x1x32x8xbf16> to vector<32x8xbf16>
      %c15 = arith.constant 15 : index
      %c0_124 = arith.constant 0 : index
      %c0_125 = arith.constant 0 : index
      %140 = vector.load %arg2[%c15, %c0_124, %c0_125] : memref<25x8x32xbf16, #tpu.memory_space<vmem>>, vector<1x8x32xbf16>
      %141 = vector.shape_cast %140 : vector<1x8x32xbf16> to vector<8x32xbf16>
      %cst_126 = arith.constant dense<0.000000e+00> : vector<32x32xf32>
      %142 = tpu.matmul %139, %141, %cst_126 {dimension_numbers = #tpu.dot_dimension_numbers<[1], [0], [0], [1], [0, 0, 1, 1], [], []>} : vector<32x8xbf16>, vector<8x32xbf16>, vector<32x32xf32> -> vector<32x32xf32>
      %143 = arith.addf %135, %142 : vector<32x32xf32>
      %c3_i32_127 = arith.constant 3 : i32
      %144 = arith.addi %14, %c3_i32_127 : i32
      %c0_128 = arith.constant 0 : index
      %145 = arith.index_cast %144 : i32 to index
      %c1_129 = arith.constant 1 : index
      %c0_130 = arith.constant 0 : index
      %146 = vector.load %arg1[%c0_128, %145, %c1_129, %c0_130] : memref<1x36x36x8xbf16, #tpu.memory_space<vmem>>, vector<1x1x32x8xbf16>
      %147 = vector.shape_cast %146 : vector<1x1x32x8xbf16> to vector<32x8xbf16>
      %c16 = arith.constant 16 : index
      %c0_131 = arith.constant 0 : index
      %c0_132 = arith.constant 0 : index
      %148 = vector.load %arg2[%c16, %c0_131, %c0_132] : memref<25x8x32xbf16, #tpu.memory_space<vmem>>, vector<1x8x32xbf16>
      %149 = vector.shape_cast %148 : vector<1x8x32xbf16> to vector<8x32xbf16>
      %cst_133 = arith.constant dense<0.000000e+00> : vector<32x32xf32>
      %150 = tpu.matmul %147, %149, %cst_133 {dimension_numbers = #tpu.dot_dimension_numbers<[1], [0], [0], [1], [0, 0, 1, 1], [], []>} : vector<32x8xbf16>, vector<8x32xbf16>, vector<32x32xf32> -> vector<32x32xf32>
      %151 = arith.addf %143, %150 : vector<32x32xf32>
      %c3_i32_134 = arith.constant 3 : i32
      %152 = arith.addi %14, %c3_i32_134 : i32
      %c0_135 = arith.constant 0 : index
      %153 = arith.index_cast %152 : i32 to index
      %c2_136 = arith.constant 2 : index
      %c0_137 = arith.constant 0 : index
      %154 = vector.load %arg1[%c0_135, %153, %c2_136, %c0_137] : memref<1x36x36x8xbf16, #tpu.memory_space<vmem>>, vector<1x1x32x8xbf16>
      %155 = vector.shape_cast %154 : vector<1x1x32x8xbf16> to vector<32x8xbf16>
      %c17 = arith.constant 17 : index
      %c0_138 = arith.constant 0 : index
      %c0_139 = arith.constant 0 : index
      %156 = vector.load %arg2[%c17, %c0_138, %c0_139] : memref<25x8x32xbf16, #tpu.memory_space<vmem>>, vector<1x8x32xbf16>
      %157 = vector.shape_cast %156 : vector<1x8x32xbf16> to vector<8x32xbf16>
      %cst_140 = arith.constant dense<0.000000e+00> : vector<32x32xf32>
      %158 = tpu.matmul %155, %157, %cst_140 {dimension_numbers = #tpu.dot_dimension_numbers<[1], [0], [0], [1], [0, 0, 1, 1], [], []>} : vector<32x8xbf16>, vector<8x32xbf16>, vector<32x32xf32> -> vector<32x32xf32>
      %159 = arith.addf %151, %158 : vector<32x32xf32>
      %c3_i32_141 = arith.constant 3 : i32
      %160 = arith.addi %14, %c3_i32_141 : i32
      %c0_142 = arith.constant 0 : index
      %161 = arith.index_cast %160 : i32 to index
      %c3_143 = arith.constant 3 : index
      %c0_144 = arith.constant 0 : index
      %162 = vector.load %arg1[%c0_142, %161, %c3_143, %c0_144] : memref<1x36x36x8xbf16, #tpu.memory_space<vmem>>, vector<1x1x32x8xbf16>
      %163 = vector.shape_cast %162 : vector<1x1x32x8xbf16> to vector<32x8xbf16>
      %c18 = arith.constant 18 : index
      %c0_145 = arith.constant 0 : index
      %c0_146 = arith.constant 0 : index
      %164 = vector.load %arg2[%c18, %c0_145, %c0_146] : memref<25x8x32xbf16, #tpu.memory_space<vmem>>, vector<1x8x32xbf16>
      %165 = vector.shape_cast %164 : vector<1x8x32xbf16> to vector<8x32xbf16>
      %cst_147 = arith.constant dense<0.000000e+00> : vector<32x32xf32>
      %166 = tpu.matmul %163, %165, %cst_147 {dimension_numbers = #tpu.dot_dimension_numbers<[1], [0], [0], [1], [0, 0, 1, 1], [], []>} : vector<32x8xbf16>, vector<8x32xbf16>, vector<32x32xf32> -> vector<32x32xf32>
      %167 = arith.addf %159, %166 : vector<32x32xf32>
      %c3_i32_148 = arith.constant 3 : i32
      %168 = arith.addi %14, %c3_i32_148 : i32
      %c0_149 = arith.constant 0 : index
      %169 = arith.index_cast %168 : i32 to index
      %c4_150 = arith.constant 4 : index
      %c0_151 = arith.constant 0 : index
      %170 = vector.load %arg1[%c0_149, %169, %c4_150, %c0_151] : memref<1x36x36x8xbf16, #tpu.memory_space<vmem>>, vector<1x1x32x8xbf16>
      %171 = vector.shape_cast %170 : vector<1x1x32x8xbf16> to vector<32x8xbf16>
      %c19 = arith.constant 19 : index
      %c0_152 = arith.constant 0 : index
      %c0_153 = arith.constant 0 : index
      %172 = vector.load %arg2[%c19, %c0_152, %c0_153] : memref<25x8x32xbf16, #tpu.memory_space<vmem>>, vector<1x8x32xbf16>
      %173 = vector.shape_cast %172 : vector<1x8x32xbf16> to vector<8x32xbf16>
      %cst_154 = arith.constant dense<0.000000e+00> : vector<32x32xf32>
      %174 = tpu.matmul %171, %173, %cst_154 {dimension_numbers = #tpu.dot_dimension_numbers<[1], [0], [0], [1], [0, 0, 1, 1], [], []>} : vector<32x8xbf16>, vector<8x32xbf16>, vector<32x32xf32> -> vector<32x32xf32>
      %175 = arith.addf %167, %174 : vector<32x32xf32>
      %c4_i32 = arith.constant 4 : i32
      %176 = arith.addi %14, %c4_i32 : i32
      %c0_155 = arith.constant 0 : index
      %177 = arith.index_cast %176 : i32 to index
      %c0_156 = arith.constant 0 : index
      %c0_157 = arith.constant 0 : index
      %178 = vector.load %arg1[%c0_155, %177, %c0_156, %c0_157] : memref<1x36x36x8xbf16, #tpu.memory_space<vmem>>, vector<1x1x32x8xbf16>
      %179 = vector.shape_cast %178 : vector<1x1x32x8xbf16> to vector<32x8xbf16>
      %c20 = arith.constant 20 : index
      %c0_158 = arith.constant 0 : index
      %c0_159 = arith.constant 0 : index
      %180 = vector.load %arg2[%c20, %c0_158, %c0_159] : memref<25x8x32xbf16, #tpu.memory_space<vmem>>, vector<1x8x32xbf16>
      %181 = vector.shape_cast %180 : vector<1x8x32xbf16> to vector<8x32xbf16>
      %cst_160 = arith.constant dense<0.000000e+00> : vector<32x32xf32>
      %182 = tpu.matmul %179, %181, %cst_160 {dimension_numbers = #tpu.dot_dimension_numbers<[1], [0], [0], [1], [0, 0, 1, 1], [], []>} : vector<32x8xbf16>, vector<8x32xbf16>, vector<32x32xf32> -> vector<32x32xf32>
      %183 = arith.addf %175, %182 : vector<32x32xf32>
      %c4_i32_161 = arith.constant 4 : i32
      %184 = arith.addi %14, %c4_i32_161 : i32
      %c0_162 = arith.constant 0 : index
      %185 = arith.index_cast %184 : i32 to index
      %c1_163 = arith.constant 1 : index
      %c0_164 = arith.constant 0 : index
      %186 = vector.load %arg1[%c0_162, %185, %c1_163, %c0_164] : memref<1x36x36x8xbf16, #tpu.memory_space<vmem>>, vector<1x1x32x8xbf16>
      %187 = vector.shape_cast %186 : vector<1x1x32x8xbf16> to vector<32x8xbf16>
      %c21 = arith.constant 21 : index
      %c0_165 = arith.constant 0 : index
      %c0_166 = arith.constant 0 : index
      %188 = vector.load %arg2[%c21, %c0_165, %c0_166] : memref<25x8x32xbf16, #tpu.memory_space<vmem>>, vector<1x8x32xbf16>
      %189 = vector.shape_cast %188 : vector<1x8x32xbf16> to vector<8x32xbf16>
      %cst_167 = arith.constant dense<0.000000e+00> : vector<32x32xf32>
      %190 = tpu.matmul %187, %189, %cst_167 {dimension_numbers = #tpu.dot_dimension_numbers<[1], [0], [0], [1], [0, 0, 1, 1], [], []>} : vector<32x8xbf16>, vector<8x32xbf16>, vector<32x32xf32> -> vector<32x32xf32>
      %191 = arith.addf %183, %190 : vector<32x32xf32>
      %c4_i32_168 = arith.constant 4 : i32
      %192 = arith.addi %14, %c4_i32_168 : i32
      %c0_169 = arith.constant 0 : index
      %193 = arith.index_cast %192 : i32 to index
      %c2_170 = arith.constant 2 : index
      %c0_171 = arith.constant 0 : index
      %194 = vector.load %arg1[%c0_169, %193, %c2_170, %c0_171] : memref<1x36x36x8xbf16, #tpu.memory_space<vmem>>, vector<1x1x32x8xbf16>
      %195 = vector.shape_cast %194 : vector<1x1x32x8xbf16> to vector<32x8xbf16>
      %c22 = arith.constant 22 : index
      %c0_172 = arith.constant 0 : index
      %c0_173 = arith.constant 0 : index
      %196 = vector.load %arg2[%c22, %c0_172, %c0_173] : memref<25x8x32xbf16, #tpu.memory_space<vmem>>, vector<1x8x32xbf16>
      %197 = vector.shape_cast %196 : vector<1x8x32xbf16> to vector<8x32xbf16>
      %cst_174 = arith.constant dense<0.000000e+00> : vector<32x32xf32>
      %198 = tpu.matmul %195, %197, %cst_174 {dimension_numbers = #tpu.dot_dimension_numbers<[1], [0], [0], [1], [0, 0, 1, 1], [], []>} : vector<32x8xbf16>, vector<8x32xbf16>, vector<32x32xf32> -> vector<32x32xf32>
      %199 = arith.addf %191, %198 : vector<32x32xf32>
      %c4_i32_175 = arith.constant 4 : i32
      %200 = arith.addi %14, %c4_i32_175 : i32
      %c0_176 = arith.constant 0 : index
      %201 = arith.index_cast %200 : i32 to index
      %c3_177 = arith.constant 3 : index
      %c0_178 = arith.constant 0 : index
      %202 = vector.load %arg1[%c0_176, %201, %c3_177, %c0_178] : memref<1x36x36x8xbf16, #tpu.memory_space<vmem>>, vector<1x1x32x8xbf16>
      %203 = vector.shape_cast %202 : vector<1x1x32x8xbf16> to vector<32x8xbf16>
      %c23 = arith.constant 23 : index
      %c0_179 = arith.constant 0 : index
      %c0_180 = arith.constant 0 : index
      %204 = vector.load %arg2[%c23, %c0_179, %c0_180] : memref<25x8x32xbf16, #tpu.memory_space<vmem>>, vector<1x8x32xbf16>
      %205 = vector.shape_cast %204 : vector<1x8x32xbf16> to vector<8x32xbf16>
      %cst_181 = arith.constant dense<0.000000e+00> : vector<32x32xf32>
      %206 = tpu.matmul %203, %205, %cst_181 {dimension_numbers = #tpu.dot_dimension_numbers<[1], [0], [0], [1], [0, 0, 1, 1], [], []>} : vector<32x8xbf16>, vector<8x32xbf16>, vector<32x32xf32> -> vector<32x32xf32>
      %207 = arith.addf %199, %206 : vector<32x32xf32>
      %c4_i32_182 = arith.constant 4 : i32
      %208 = arith.addi %14, %c4_i32_182 : i32
      %c0_183 = arith.constant 0 : index
      %209 = arith.index_cast %208 : i32 to index
      %c4_184 = arith.constant 4 : index
      %c0_185 = arith.constant 0 : index
      %210 = vector.load %arg1[%c0_183, %209, %c4_184, %c0_185] : memref<1x36x36x8xbf16, #tpu.memory_space<vmem>>, vector<1x1x32x8xbf16>
      %211 = vector.shape_cast %210 : vector<1x1x32x8xbf16> to vector<32x8xbf16>
      %c24 = arith.constant 24 : index
      %c0_186 = arith.constant 0 : index
      %c0_187 = arith.constant 0 : index
      %212 = vector.load %arg2[%c24, %c0_186, %c0_187] : memref<25x8x32xbf16, #tpu.memory_space<vmem>>, vector<1x8x32xbf16>
      %213 = vector.shape_cast %212 : vector<1x8x32xbf16> to vector<8x32xbf16>
      %cst_188 = arith.constant dense<0.000000e+00> : vector<32x32xf32>
      %214 = tpu.matmul %211, %213, %cst_188 {dimension_numbers = #tpu.dot_dimension_numbers<[1], [0], [0], [1], [0, 0, 1, 1], [], []>} : vector<32x8xbf16>, vector<8x32xbf16>, vector<32x32xf32> -> vector<32x32xf32>
      %215 = arith.addf %207, %214 : vector<32x32xf32>
      %c2_i32_189 = arith.constant 2 : i32
      %216 = arith.muli %c2_i32_189, %arg6 : i32
      %c1_i32_190 = arith.constant 1 : i32
      %217 = arith.addi %216, %c1_i32_190 : i32
      %cst_191 = arith.constant 0.000000e+00 : f32
      %218 = vector.broadcast %cst_191 : f32 to vector<32x32xf32>
      %c0_i32_192 = arith.constant 0 : i32
      %219 = arith.addi %217, %c0_i32_192 : i32
      %c0_193 = arith.constant 0 : index
      %220 = arith.index_cast %219 : i32 to index
      %c0_194 = arith.constant 0 : index
      %c0_195 = arith.constant 0 : index
      %221 = vector.load %arg1[%c0_193, %220, %c0_194, %c0_195] : memref<1x36x36x8xbf16, #tpu.memory_space<vmem>>, vector<1x1x32x8xbf16>
      %222 = vector.shape_cast %221 : vector<1x1x32x8xbf16> to vector<32x8xbf16>
      %c0_196 = arith.constant 0 : index
      %c0_197 = arith.constant 0 : index
      %c0_198 = arith.constant 0 : index
      %223 = vector.load %arg2[%c0_196, %c0_197, %c0_198] : memref<25x8x32xbf16, #tpu.memory_space<vmem>>, vector<1x8x32xbf16>
      %224 = vector.shape_cast %223 : vector<1x8x32xbf16> to vector<8x32xbf16>
      %cst_199 = arith.constant dense<0.000000e+00> : vector<32x32xf32>
      %225 = tpu.matmul %222, %224, %cst_199 {dimension_numbers = #tpu.dot_dimension_numbers<[1], [0], [0], [1], [0, 0, 1, 1], [], []>} : vector<32x8xbf16>, vector<8x32xbf16>, vector<32x32xf32> -> vector<32x32xf32>
      %226 = arith.addf %218, %225 : vector<32x32xf32>
      %c0_i32_200 = arith.constant 0 : i32
      %227 = arith.addi %217, %c0_i32_200 : i32
      %c0_201 = arith.constant 0 : index
      %228 = arith.index_cast %227 : i32 to index
      %c1_202 = arith.constant 1 : index
      %c0_203 = arith.constant 0 : index
      %229 = vector.load %arg1[%c0_201, %228, %c1_202, %c0_203] : memref<1x36x36x8xbf16, #tpu.memory_space<vmem>>, vector<1x1x32x8xbf16>
      %230 = vector.shape_cast %229 : vector<1x1x32x8xbf16> to vector<32x8xbf16>
      %c1_204 = arith.constant 1 : index
      %c0_205 = arith.constant 0 : index
      %c0_206 = arith.constant 0 : index
      %231 = vector.load %arg2[%c1_204, %c0_205, %c0_206] : memref<25x8x32xbf16, #tpu.memory_space<vmem>>, vector<1x8x32xbf16>
      %232 = vector.shape_cast %231 : vector<1x8x32xbf16> to vector<8x32xbf16>
      %cst_207 = arith.constant dense<0.000000e+00> : vector<32x32xf32>
      %233 = tpu.matmul %230, %232, %cst_207 {dimension_numbers = #tpu.dot_dimension_numbers<[1], [0], [0], [1], [0, 0, 1, 1], [], []>} : vector<32x8xbf16>, vector<8x32xbf16>, vector<32x32xf32> -> vector<32x32xf32>
      %234 = arith.addf %226, %233 : vector<32x32xf32>
      %c0_i32_208 = arith.constant 0 : i32
      %235 = arith.addi %217, %c0_i32_208 : i32
      %c0_209 = arith.constant 0 : index
      %236 = arith.index_cast %235 : i32 to index
      %c2_210 = arith.constant 2 : index
      %c0_211 = arith.constant 0 : index
      %237 = vector.load %arg1[%c0_209, %236, %c2_210, %c0_211] : memref<1x36x36x8xbf16, #tpu.memory_space<vmem>>, vector<1x1x32x8xbf16>
      %238 = vector.shape_cast %237 : vector<1x1x32x8xbf16> to vector<32x8xbf16>
      %c2_212 = arith.constant 2 : index
      %c0_213 = arith.constant 0 : index
      %c0_214 = arith.constant 0 : index
      %239 = vector.load %arg2[%c2_212, %c0_213, %c0_214] : memref<25x8x32xbf16, #tpu.memory_space<vmem>>, vector<1x8x32xbf16>
      %240 = vector.shape_cast %239 : vector<1x8x32xbf16> to vector<8x32xbf16>
      %cst_215 = arith.constant dense<0.000000e+00> : vector<32x32xf32>
      %241 = tpu.matmul %238, %240, %cst_215 {dimension_numbers = #tpu.dot_dimension_numbers<[1], [0], [0], [1], [0, 0, 1, 1], [], []>} : vector<32x8xbf16>, vector<8x32xbf16>, vector<32x32xf32> -> vector<32x32xf32>
      %242 = arith.addf %234, %241 : vector<32x32xf32>
      %c0_i32_216 = arith.constant 0 : i32
      %243 = arith.addi %217, %c0_i32_216 : i32
      %c0_217 = arith.constant 0 : index
      %244 = arith.index_cast %243 : i32 to index
      %c3_218 = arith.constant 3 : index
      %c0_219 = arith.constant 0 : index
      %245 = vector.load %arg1[%c0_217, %244, %c3_218, %c0_219] : memref<1x36x36x8xbf16, #tpu.memory_space<vmem>>, vector<1x1x32x8xbf16>
      %246 = vector.shape_cast %245 : vector<1x1x32x8xbf16> to vector<32x8xbf16>
      %c3_220 = arith.constant 3 : index
      %c0_221 = arith.constant 0 : index
      %c0_222 = arith.constant 0 : index
      %247 = vector.load %arg2[%c3_220, %c0_221, %c0_222] : memref<25x8x32xbf16, #tpu.memory_space<vmem>>, vector<1x8x32xbf16>
      %248 = vector.shape_cast %247 : vector<1x8x32xbf16> to vector<8x32xbf16>
      %cst_223 = arith.constant dense<0.000000e+00> : vector<32x32xf32>
      %249 = tpu.matmul %246, %248, %cst_223 {dimension_numbers = #tpu.dot_dimension_numbers<[1], [0], [0], [1], [0, 0, 1, 1], [], []>} : vector<32x8xbf16>, vector<8x32xbf16>, vector<32x32xf32> -> vector<32x32xf32>
      %250 = arith.addf %242, %249 : vector<32x32xf32>
      %c0_i32_224 = arith.constant 0 : i32
      %251 = arith.addi %217, %c0_i32_224 : i32
      %c0_225 = arith.constant 0 : index
      %252 = arith.index_cast %251 : i32 to index
      %c4_226 = arith.constant 4 : index
      %c0_227 = arith.constant 0 : index
      %253 = vector.load %arg1[%c0_225, %252, %c4_226, %c0_227] : memref<1x36x36x8xbf16, #tpu.memory_space<vmem>>, vector<1x1x32x8xbf16>
      %254 = vector.shape_cast %253 : vector<1x1x32x8xbf16> to vector<32x8xbf16>
      %c4_228 = arith.constant 4 : index
      %c0_229 = arith.constant 0 : index
      %c0_230 = arith.constant 0 : index
      %255 = vector.load %arg2[%c4_228, %c0_229, %c0_230] : memref<25x8x32xbf16, #tpu.memory_space<vmem>>, vector<1x8x32xbf16>
      %256 = vector.shape_cast %255 : vector<1x8x32xbf16> to vector<8x32xbf16>
      %cst_231 = arith.constant dense<0.000000e+00> : vector<32x32xf32>
      %257 = tpu.matmul %254, %256, %cst_231 {dimension_numbers = #tpu.dot_dimension_numbers<[1], [0], [0], [1], [0, 0, 1, 1], [], []>} : vector<32x8xbf16>, vector<8x32xbf16>, vector<32x32xf32> -> vector<32x32xf32>
      %258 = arith.addf %250, %257 : vector<32x32xf32>
      %c1_i32_232 = arith.constant 1 : i32
      %259 = arith.addi %217, %c1_i32_232 : i32
      %c0_233 = arith.constant 0 : index
      %260 = arith.index_cast %259 : i32 to index
      %c0_234 = arith.constant 0 : index
      %c0_235 = arith.constant 0 : index
      %261 = vector.load %arg1[%c0_233, %260, %c0_234, %c0_235] : memref<1x36x36x8xbf16, #tpu.memory_space<vmem>>, vector<1x1x32x8xbf16>
      %262 = vector.shape_cast %261 : vector<1x1x32x8xbf16> to vector<32x8xbf16>
      %c5_236 = arith.constant 5 : index
      %c0_237 = arith.constant 0 : index
      %c0_238 = arith.constant 0 : index
      %263 = vector.load %arg2[%c5_236, %c0_237, %c0_238] : memref<25x8x32xbf16, #tpu.memory_space<vmem>>, vector<1x8x32xbf16>
      %264 = vector.shape_cast %263 : vector<1x8x32xbf16> to vector<8x32xbf16>
      %cst_239 = arith.constant dense<0.000000e+00> : vector<32x32xf32>
      %265 = tpu.matmul %262, %264, %cst_239 {dimension_numbers = #tpu.dot_dimension_numbers<[1], [0], [0], [1], [0, 0, 1, 1], [], []>} : vector<32x8xbf16>, vector<8x32xbf16>, vector<32x32xf32> -> vector<32x32xf32>
      %266 = arith.addf %258, %265 : vector<32x32xf32>
      %c1_i32_240 = arith.constant 1 : i32
      %267 = arith.addi %217, %c1_i32_240 : i32
      %c0_241 = arith.constant 0 : index
      %268 = arith.index_cast %267 : i32 to index
      %c1_242 = arith.constant 1 : index
      %c0_243 = arith.constant 0 : index
      %269 = vector.load %arg1[%c0_241, %268, %c1_242, %c0_243] : memref<1x36x36x8xbf16, #tpu.memory_space<vmem>>, vector<1x1x32x8xbf16>
      %270 = vector.shape_cast %269 : vector<1x1x32x8xbf16> to vector<32x8xbf16>
      %c6_244 = arith.constant 6 : index
      %c0_245 = arith.constant 0 : index
      %c0_246 = arith.constant 0 : index
      %271 = vector.load %arg2[%c6_244, %c0_245, %c0_246] : memref<25x8x32xbf16, #tpu.memory_space<vmem>>, vector<1x8x32xbf16>
      %272 = vector.shape_cast %271 : vector<1x8x32xbf16> to vector<8x32xbf16>
      %cst_247 = arith.constant dense<0.000000e+00> : vector<32x32xf32>
      %273 = tpu.matmul %270, %272, %cst_247 {dimension_numbers = #tpu.dot_dimension_numbers<[1], [0], [0], [1], [0, 0, 1, 1], [], []>} : vector<32x8xbf16>, vector<8x32xbf16>, vector<32x32xf32> -> vector<32x32xf32>
      %274 = arith.addf %266, %273 : vector<32x32xf32>
      %c1_i32_248 = arith.constant 1 : i32
      %275 = arith.addi %217, %c1_i32_248 : i32
      %c0_249 = arith.constant 0 : index
      %276 = arith.index_cast %275 : i32 to index
      %c2_250 = arith.constant 2 : index
      %c0_251 = arith.constant 0 : index
      %277 = vector.load %arg1[%c0_249, %276, %c2_250, %c0_251] : memref<1x36x36x8xbf16, #tpu.memory_space<vmem>>, vector<1x1x32x8xbf16>
      %278 = vector.shape_cast %277 : vector<1x1x32x8xbf16> to vector<32x8xbf16>
      %c7_252 = arith.constant 7 : index
      %c0_253 = arith.constant 0 : index
      %c0_254 = arith.constant 0 : index
      %279 = vector.load %arg2[%c7_252, %c0_253, %c0_254] : memref<25x8x32xbf16, #tpu.memory_space<vmem>>, vector<1x8x32xbf16>
      %280 = vector.shape_cast %279 : vector<1x8x32xbf16> to vector<8x32xbf16>
      %cst_255 = arith.constant dense<0.000000e+00> : vector<32x32xf32>
      %281 = tpu.matmul %278, %280, %cst_255 {dimension_numbers = #tpu.dot_dimension_numbers<[1], [0], [0], [1], [0, 0, 1, 1], [], []>} : vector<32x8xbf16>, vector<8x32xbf16>, vector<32x32xf32> -> vector<32x32xf32>
      %282 = arith.addf %274, %281 : vector<32x32xf32>
      %c1_i32_256 = arith.constant 1 : i32
      %283 = arith.addi %217, %c1_i32_256 : i32
      %c0_257 = arith.constant 0 : index
      %284 = arith.index_cast %283 : i32 to index
      %c3_258 = arith.constant 3 : index
      %c0_259 = arith.constant 0 : index
      %285 = vector.load %arg1[%c0_257, %284, %c3_258, %c0_259] : memref<1x36x36x8xbf16, #tpu.memory_space<vmem>>, vector<1x1x32x8xbf16>
      %286 = vector.shape_cast %285 : vector<1x1x32x8xbf16> to vector<32x8xbf16>
      %c8_260 = arith.constant 8 : index
      %c0_261 = arith.constant 0 : index
      %c0_262 = arith.constant 0 : index
      %287 = vector.load %arg2[%c8_260, %c0_261, %c0_262] : memref<25x8x32xbf16, #tpu.memory_space<vmem>>, vector<1x8x32xbf16>
      %288 = vector.shape_cast %287 : vector<1x8x32xbf16> to vector<8x32xbf16>
      %cst_263 = arith.constant dense<0.000000e+00> : vector<32x32xf32>
      %289 = tpu.matmul %286, %288, %cst_263 {dimension_numbers = #tpu.dot_dimension_numbers<[1], [0], [0], [1], [0, 0, 1, 1], [], []>} : vector<32x8xbf16>, vector<8x32xbf16>, vector<32x32xf32> -> vector<32x32xf32>
      %290 = arith.addf %282, %289 : vector<32x32xf32>
      %c1_i32_264 = arith.constant 1 : i32
      %291 = arith.addi %217, %c1_i32_264 : i32
      %c0_265 = arith.constant 0 : index
      %292 = arith.index_cast %291 : i32 to index
      %c4_266 = arith.constant 4 : index
      %c0_267 = arith.constant 0 : index
      %293 = vector.load %arg1[%c0_265, %292, %c4_266, %c0_267] : memref<1x36x36x8xbf16, #tpu.memory_space<vmem>>, vector<1x1x32x8xbf16>
      %294 = vector.shape_cast %293 : vector<1x1x32x8xbf16> to vector<32x8xbf16>
      %c9_268 = arith.constant 9 : index
      %c0_269 = arith.constant 0 : index
      %c0_270 = arith.constant 0 : index
      %295 = vector.load %arg2[%c9_268, %c0_269, %c0_270] : memref<25x8x32xbf16, #tpu.memory_space<vmem>>, vector<1x8x32xbf16>
      %296 = vector.shape_cast %295 : vector<1x8x32xbf16> to vector<8x32xbf16>
      %cst_271 = arith.constant dense<0.000000e+00> : vector<32x32xf32>
      %297 = tpu.matmul %294, %296, %cst_271 {dimension_numbers = #tpu.dot_dimension_numbers<[1], [0], [0], [1], [0, 0, 1, 1], [], []>} : vector<32x8xbf16>, vector<8x32xbf16>, vector<32x32xf32> -> vector<32x32xf32>
      %298 = arith.addf %290, %297 : vector<32x32xf32>
      %c2_i32_272 = arith.constant 2 : i32
      %299 = arith.addi %217, %c2_i32_272 : i32
      %c0_273 = arith.constant 0 : index
      %300 = arith.index_cast %299 : i32 to index
      %c0_274 = arith.constant 0 : index
      %c0_275 = arith.constant 0 : index
      %301 = vector.load %arg1[%c0_273, %300, %c0_274, %c0_275] : memref<1x36x36x8xbf16, #tpu.memory_space<vmem>>, vector<1x1x32x8xbf16>
      %302 = vector.shape_cast %301 : vector<1x1x32x8xbf16> to vector<32x8xbf16>
      %c10_276 = arith.constant 10 : index
      %c0_277 = arith.constant 0 : index
      %c0_278 = arith.constant 0 : index
      %303 = vector.load %arg2[%c10_276, %c0_277, %c0_278] : memref<25x8x32xbf16, #tpu.memory_space<vmem>>, vector<1x8x32xbf16>
      %304 = vector.shape_cast %303 : vector<1x8x32xbf16> to vector<8x32xbf16>
      %cst_279 = arith.constant dense<0.000000e+00> : vector<32x32xf32>
      %305 = tpu.matmul %302, %304, %cst_279 {dimension_numbers = #tpu.dot_dimension_numbers<[1], [0], [0], [1], [0, 0, 1, 1], [], []>} : vector<32x8xbf16>, vector<8x32xbf16>, vector<32x32xf32> -> vector<32x32xf32>
      %306 = arith.addf %298, %305 : vector<32x32xf32>
      %c2_i32_280 = arith.constant 2 : i32
      %307 = arith.addi %217, %c2_i32_280 : i32
      %c0_281 = arith.constant 0 : index
      %308 = arith.index_cast %307 : i32 to index
      %c1_282 = arith.constant 1 : index
      %c0_283 = arith.constant 0 : index
      %309 = vector.load %arg1[%c0_281, %308, %c1_282, %c0_283] : memref<1x36x36x8xbf16, #tpu.memory_space<vmem>>, vector<1x1x32x8xbf16>
      %310 = vector.shape_cast %309 : vector<1x1x32x8xbf16> to vector<32x8xbf16>
      %c11_284 = arith.constant 11 : index
      %c0_285 = arith.constant 0 : index
      %c0_286 = arith.constant 0 : index
      %311 = vector.load %arg2[%c11_284, %c0_285, %c0_286] : memref<25x8x32xbf16, #tpu.memory_space<vmem>>, vector<1x8x32xbf16>
      %312 = vector.shape_cast %311 : vector<1x8x32xbf16> to vector<8x32xbf16>
      %cst_287 = arith.constant dense<0.000000e+00> : vector<32x32xf32>
      %313 = tpu.matmul %310, %312, %cst_287 {dimension_numbers = #tpu.dot_dimension_numbers<[1], [0], [0], [1], [0, 0, 1, 1], [], []>} : vector<32x8xbf16>, vector<8x32xbf16>, vector<32x32xf32> -> vector<32x32xf32>
      %314 = arith.addf %306, %313 : vector<32x32xf32>
      %c2_i32_288 = arith.constant 2 : i32
      %315 = arith.addi %217, %c2_i32_288 : i32
      %c0_289 = arith.constant 0 : index
      %316 = arith.index_cast %315 : i32 to index
      %c2_290 = arith.constant 2 : index
      %c0_291 = arith.constant 0 : index
      %317 = vector.load %arg1[%c0_289, %316, %c2_290, %c0_291] : memref<1x36x36x8xbf16, #tpu.memory_space<vmem>>, vector<1x1x32x8xbf16>
      %318 = vector.shape_cast %317 : vector<1x1x32x8xbf16> to vector<32x8xbf16>
      %c12_292 = arith.constant 12 : index
      %c0_293 = arith.constant 0 : index
      %c0_294 = arith.constant 0 : index
      %319 = vector.load %arg2[%c12_292, %c0_293, %c0_294] : memref<25x8x32xbf16, #tpu.memory_space<vmem>>, vector<1x8x32xbf16>
      %320 = vector.shape_cast %319 : vector<1x8x32xbf16> to vector<8x32xbf16>
      %cst_295 = arith.constant dense<0.000000e+00> : vector<32x32xf32>
      %321 = tpu.matmul %318, %320, %cst_295 {dimension_numbers = #tpu.dot_dimension_numbers<[1], [0], [0], [1], [0, 0, 1, 1], [], []>} : vector<32x8xbf16>, vector<8x32xbf16>, vector<32x32xf32> -> vector<32x32xf32>
      %322 = arith.addf %314, %321 : vector<32x32xf32>
      %c2_i32_296 = arith.constant 2 : i32
      %323 = arith.addi %217, %c2_i32_296 : i32
      %c0_297 = arith.constant 0 : index
      %324 = arith.index_cast %323 : i32 to index
      %c3_298 = arith.constant 3 : index
      %c0_299 = arith.constant 0 : index
      %325 = vector.load %arg1[%c0_297, %324, %c3_298, %c0_299] : memref<1x36x36x8xbf16, #tpu.memory_space<vmem>>, vector<1x1x32x8xbf16>
      %326 = vector.shape_cast %325 : vector<1x1x32x8xbf16> to vector<32x8xbf16>
      %c13_300 = arith.constant 13 : index
      %c0_301 = arith.constant 0 : index
      %c0_302 = arith.constant 0 : index
      %327 = vector.load %arg2[%c13_300, %c0_301, %c0_302] : memref<25x8x32xbf16, #tpu.memory_space<vmem>>, vector<1x8x32xbf16>
      %328 = vector.shape_cast %327 : vector<1x8x32xbf16> to vector<8x32xbf16>
      %cst_303 = arith.constant dense<0.000000e+00> : vector<32x32xf32>
      %329 = tpu.matmul %326, %328, %cst_303 {dimension_numbers = #tpu.dot_dimension_numbers<[1], [0], [0], [1], [0, 0, 1, 1], [], []>} : vector<32x8xbf16>, vector<8x32xbf16>, vector<32x32xf32> -> vector<32x32xf32>
      %330 = arith.addf %322, %329 : vector<32x32xf32>
      %c2_i32_304 = arith.constant 2 : i32
      %331 = arith.addi %217, %c2_i32_304 : i32
      %c0_305 = arith.constant 0 : index
      %332 = arith.index_cast %331 : i32 to index
      %c4_306 = arith.constant 4 : index
      %c0_307 = arith.constant 0 : index
      %333 = vector.load %arg1[%c0_305, %332, %c4_306, %c0_307] : memref<1x36x36x8xbf16, #tpu.memory_space<vmem>>, vector<1x1x32x8xbf16>
      %334 = vector.shape_cast %333 : vector<1x1x32x8xbf16> to vector<32x8xbf16>
      %c14_308 = arith.constant 14 : index
      %c0_309 = arith.constant 0 : index
      %c0_310 = arith.constant 0 : index
      %335 = vector.load %arg2[%c14_308, %c0_309, %c0_310] : memref<25x8x32xbf16, #tpu.memory_space<vmem>>, vector<1x8x32xbf16>
      %336 = vector.shape_cast %335 : vector<1x8x32xbf16> to vector<8x32xbf16>
      %cst_311 = arith.constant dense<0.000000e+00> : vector<32x32xf32>
      %337 = tpu.matmul %334, %336, %cst_311 {dimension_numbers = #tpu.dot_dimension_numbers<[1], [0], [0], [1], [0, 0, 1, 1], [], []>} : vector<32x8xbf16>, vector<8x32xbf16>, vector<32x32xf32> -> vector<32x32xf32>
      %338 = arith.addf %330, %337 : vector<32x32xf32>
      %c3_i32_312 = arith.constant 3 : i32
      %339 = arith.addi %217, %c3_i32_312 : i32
      %c0_313 = arith.constant 0 : index
      %340 = arith.index_cast %339 : i32 to index
      %c0_314 = arith.constant 0 : index
      %c0_315 = arith.constant 0 : index
      %341 = vector.load %arg1[%c0_313, %340, %c0_314, %c0_315] : memref<1x36x36x8xbf16, #tpu.memory_space<vmem>>, vector<1x1x32x8xbf16>
      %342 = vector.shape_cast %341 : vector<1x1x32x8xbf16> to vector<32x8xbf16>
      %c15_316 = arith.constant 15 : index
      %c0_317 = arith.constant 0 : index
      %c0_318 = arith.constant 0 : index
      %343 = vector.load %arg2[%c15_316, %c0_317, %c0_318] : memref<25x8x32xbf16, #tpu.memory_space<vmem>>, vector<1x8x32xbf16>
      %344 = vector.shape_cast %343 : vector<1x8x32xbf16> to vector<8x32xbf16>
      %cst_319 = arith.constant dense<0.000000e+00> : vector<32x32xf32>
      %345 = tpu.matmul %342, %344, %cst_319 {dimension_numbers = #tpu.dot_dimension_numbers<[1], [0], [0], [1], [0, 0, 1, 1], [], []>} : vector<32x8xbf16>, vector<8x32xbf16>, vector<32x32xf32> -> vector<32x32xf32>
      %346 = arith.addf %338, %345 : vector<32x32xf32>
      %c3_i32_320 = arith.constant 3 : i32
      %347 = arith.addi %217, %c3_i32_320 : i32
      %c0_321 = arith.constant 0 : index
      %348 = arith.index_cast %347 : i32 to index
      %c1_322 = arith.constant 1 : index
      %c0_323 = arith.constant 0 : index
      %349 = vector.load %arg1[%c0_321, %348, %c1_322, %c0_323] : memref<1x36x36x8xbf16, #tpu.memory_space<vmem>>, vector<1x1x32x8xbf16>
      %350 = vector.shape_cast %349 : vector<1x1x32x8xbf16> to vector<32x8xbf16>
      %c16_324 = arith.constant 16 : index
      %c0_325 = arith.constant 0 : index
      %c0_326 = arith.constant 0 : index
      %351 = vector.load %arg2[%c16_324, %c0_325, %c0_326] : memref<25x8x32xbf16, #tpu.memory_space<vmem>>, vector<1x8x32xbf16>
      %352 = vector.shape_cast %351 : vector<1x8x32xbf16> to vector<8x32xbf16>
      %cst_327 = arith.constant dense<0.000000e+00> : vector<32x32xf32>
      %353 = tpu.matmul %350, %352, %cst_327 {dimension_numbers = #tpu.dot_dimension_numbers<[1], [0], [0], [1], [0, 0, 1, 1], [], []>} : vector<32x8xbf16>, vector<8x32xbf16>, vector<32x32xf32> -> vector<32x32xf32>
      %354 = arith.addf %346, %353 : vector<32x32xf32>
      %c3_i32_328 = arith.constant 3 : i32
      %355 = arith.addi %217, %c3_i32_328 : i32
      %c0_329 = arith.constant 0 : index
      %356 = arith.index_cast %355 : i32 to index
      %c2_330 = arith.constant 2 : index
      %c0_331 = arith.constant 0 : index
      %357 = vector.load %arg1[%c0_329, %356, %c2_330, %c0_331] : memref<1x36x36x8xbf16, #tpu.memory_space<vmem>>, vector<1x1x32x8xbf16>
      %358 = vector.shape_cast %357 : vector<1x1x32x8xbf16> to vector<32x8xbf16>
      %c17_332 = arith.constant 17 : index
      %c0_333 = arith.constant 0 : index
      %c0_334 = arith.constant 0 : index
      %359 = vector.load %arg2[%c17_332, %c0_333, %c0_334] : memref<25x8x32xbf16, #tpu.memory_space<vmem>>, vector<1x8x32xbf16>
      %360 = vector.shape_cast %359 : vector<1x8x32xbf16> to vector<8x32xbf16>
      %cst_335 = arith.constant dense<0.000000e+00> : vector<32x32xf32>
      %361 = tpu.matmul %358, %360, %cst_335 {dimension_numbers = #tpu.dot_dimension_numbers<[1], [0], [0], [1], [0, 0, 1, 1], [], []>} : vector<32x8xbf16>, vector<8x32xbf16>, vector<32x32xf32> -> vector<32x32xf32>
      %362 = arith.addf %354, %361 : vector<32x32xf32>
      %c3_i32_336 = arith.constant 3 : i32
      %363 = arith.addi %217, %c3_i32_336 : i32
      %c0_337 = arith.constant 0 : index
      %364 = arith.index_cast %363 : i32 to index
      %c3_338 = arith.constant 3 : index
      %c0_339 = arith.constant 0 : index
      %365 = vector.load %arg1[%c0_337, %364, %c3_338, %c0_339] : memref<1x36x36x8xbf16, #tpu.memory_space<vmem>>, vector<1x1x32x8xbf16>
      %366 = vector.shape_cast %365 : vector<1x1x32x8xbf16> to vector<32x8xbf16>
      %c18_340 = arith.constant 18 : index
      %c0_341 = arith.constant 0 : index
      %c0_342 = arith.constant 0 : index
      %367 = vector.load %arg2[%c18_340, %c0_341, %c0_342] : memref<25x8x32xbf16, #tpu.memory_space<vmem>>, vector<1x8x32xbf16>
      %368 = vector.shape_cast %367 : vector<1x8x32xbf16> to vector<8x32xbf16>
      %cst_343 = arith.constant dense<0.000000e+00> : vector<32x32xf32>
      %369 = tpu.matmul %366, %368, %cst_343 {dimension_numbers = #tpu.dot_dimension_numbers<[1], [0], [0], [1], [0, 0, 1, 1], [], []>} : vector<32x8xbf16>, vector<8x32xbf16>, vector<32x32xf32> -> vector<32x32xf32>
      %370 = arith.addf %362, %369 : vector<32x32xf32>
      %c3_i32_344 = arith.constant 3 : i32
      %371 = arith.addi %217, %c3_i32_344 : i32
      %c0_345 = arith.constant 0 : index
      %372 = arith.index_cast %371 : i32 to index
      %c4_346 = arith.constant 4 : index
      %c0_347 = arith.constant 0 : index
      %373 = vector.load %arg1[%c0_345, %372, %c4_346, %c0_347] : memref<1x36x36x8xbf16, #tpu.memory_space<vmem>>, vector<1x1x32x8xbf16>
      %374 = vector.shape_cast %373 : vector<1x1x32x8xbf16> to vector<32x8xbf16>
      %c19_348 = arith.constant 19 : index
      %c0_349 = arith.constant 0 : index
      %c0_350 = arith.constant 0 : index
      %375 = vector.load %arg2[%c19_348, %c0_349, %c0_350] : memref<25x8x32xbf16, #tpu.memory_space<vmem>>, vector<1x8x32xbf16>
      %376 = vector.shape_cast %375 : vector<1x8x32xbf16> to vector<8x32xbf16>
      %cst_351 = arith.constant dense<0.000000e+00> : vector<32x32xf32>
      %377 = tpu.matmul %374, %376, %cst_351 {dimension_numbers = #tpu.dot_dimension_numbers<[1], [0], [0], [1], [0, 0, 1, 1], [], []>} : vector<32x8xbf16>, vector<8x32xbf16>, vector<32x32xf32> -> vector<32x32xf32>
      %378 = arith.addf %370, %377 : vector<32x32xf32>
      %c4_i32_352 = arith.constant 4 : i32
      %379 = arith.addi %217, %c4_i32_352 : i32
      %c0_353 = arith.constant 0 : index
      %380 = arith.index_cast %379 : i32 to index
      %c0_354 = arith.constant 0 : index
      %c0_355 = arith.constant 0 : index
      %381 = vector.load %arg1[%c0_353, %380, %c0_354, %c0_355] : memref<1x36x36x8xbf16, #tpu.memory_space<vmem>>, vector<1x1x32x8xbf16>
      %382 = vector.shape_cast %381 : vector<1x1x32x8xbf16> to vector<32x8xbf16>
      %c20_356 = arith.constant 20 : index
      %c0_357 = arith.constant 0 : index
      %c0_358 = arith.constant 0 : index
      %383 = vector.load %arg2[%c20_356, %c0_357, %c0_358] : memref<25x8x32xbf16, #tpu.memory_space<vmem>>, vector<1x8x32xbf16>
      %384 = vector.shape_cast %383 : vector<1x8x32xbf16> to vector<8x32xbf16>
      %cst_359 = arith.constant dense<0.000000e+00> : vector<32x32xf32>
      %385 = tpu.matmul %382, %384, %cst_359 {dimension_numbers = #tpu.dot_dimension_numbers<[1], [0], [0], [1], [0, 0, 1, 1], [], []>} : vector<32x8xbf16>, vector<8x32xbf16>, vector<32x32xf32> -> vector<32x32xf32>
      %386 = arith.addf %378, %385 : vector<32x32xf32>
      %c4_i32_360 = arith.constant 4 : i32
      %387 = arith.addi %217, %c4_i32_360 : i32
      %c0_361 = arith.constant 0 : index
      %388 = arith.index_cast %387 : i32 to index
      %c1_362 = arith.constant 1 : index
      %c0_363 = arith.constant 0 : index
      %389 = vector.load %arg1[%c0_361, %388, %c1_362, %c0_363] : memref<1x36x36x8xbf16, #tpu.memory_space<vmem>>, vector<1x1x32x8xbf16>
      %390 = vector.shape_cast %389 : vector<1x1x32x8xbf16> to vector<32x8xbf16>
      %c21_364 = arith.constant 21 : index
      %c0_365 = arith.constant 0 : index
      %c0_366 = arith.constant 0 : index
      %391 = vector.load %arg2[%c21_364, %c0_365, %c0_366] : memref<25x8x32xbf16, #tpu.memory_space<vmem>>, vector<1x8x32xbf16>
      %392 = vector.shape_cast %391 : vector<1x8x32xbf16> to vector<8x32xbf16>
      %cst_367 = arith.constant dense<0.000000e+00> : vector<32x32xf32>
      %393 = tpu.matmul %390, %392, %cst_367 {dimension_numbers = #tpu.dot_dimension_numbers<[1], [0], [0], [1], [0, 0, 1, 1], [], []>} : vector<32x8xbf16>, vector<8x32xbf16>, vector<32x32xf32> -> vector<32x32xf32>
      %394 = arith.addf %386, %393 : vector<32x32xf32>
      %c4_i32_368 = arith.constant 4 : i32
      %395 = arith.addi %217, %c4_i32_368 : i32
      %c0_369 = arith.constant 0 : index
      %396 = arith.index_cast %395 : i32 to index
      %c2_370 = arith.constant 2 : index
      %c0_371 = arith.constant 0 : index
      %397 = vector.load %arg1[%c0_369, %396, %c2_370, %c0_371] : memref<1x36x36x8xbf16, #tpu.memory_space<vmem>>, vector<1x1x32x8xbf16>
      %398 = vector.shape_cast %397 : vector<1x1x32x8xbf16> to vector<32x8xbf16>
      %c22_372 = arith.constant 22 : index
      %c0_373 = arith.constant 0 : index
      %c0_374 = arith.constant 0 : index
      %399 = vector.load %arg2[%c22_372, %c0_373, %c0_374] : memref<25x8x32xbf16, #tpu.memory_space<vmem>>, vector<1x8x32xbf16>
      %400 = vector.shape_cast %399 : vector<1x8x32xbf16> to vector<8x32xbf16>
      %cst_375 = arith.constant dense<0.000000e+00> : vector<32x32xf32>
      %401 = tpu.matmul %398, %400, %cst_375 {dimension_numbers = #tpu.dot_dimension_numbers<[1], [0], [0], [1], [0, 0, 1, 1], [], []>} : vector<32x8xbf16>, vector<8x32xbf16>, vector<32x32xf32> -> vector<32x32xf32>
      %402 = arith.addf %394, %401 : vector<32x32xf32>
      %c4_i32_376 = arith.constant 4 : i32
      %403 = arith.addi %217, %c4_i32_376 : i32
      %c0_377 = arith.constant 0 : index
      %404 = arith.index_cast %403 : i32 to index
      %c3_378 = arith.constant 3 : index
      %c0_379 = arith.constant 0 : index
      %405 = vector.load %arg1[%c0_377, %404, %c3_378, %c0_379] : memref<1x36x36x8xbf16, #tpu.memory_space<vmem>>, vector<1x1x32x8xbf16>
      %406 = vector.shape_cast %405 : vector<1x1x32x8xbf16> to vector<32x8xbf16>
      %c23_380 = arith.constant 23 : index
      %c0_381 = arith.constant 0 : index
      %c0_382 = arith.constant 0 : index
      %407 = vector.load %arg2[%c23_380, %c0_381, %c0_382] : memref<25x8x32xbf16, #tpu.memory_space<vmem>>, vector<1x8x32xbf16>
      %408 = vector.shape_cast %407 : vector<1x8x32xbf16> to vector<8x32xbf16>
      %cst_383 = arith.constant dense<0.000000e+00> : vector<32x32xf32>
      %409 = tpu.matmul %406, %408, %cst_383 {dimension_numbers = #tpu.dot_dimension_numbers<[1], [0], [0], [1], [0, 0, 1, 1], [], []>} : vector<32x8xbf16>, vector<8x32xbf16>, vector<32x32xf32> -> vector<32x32xf32>
      %410 = arith.addf %402, %409 : vector<32x32xf32>
      %c4_i32_384 = arith.constant 4 : i32
      %411 = arith.addi %217, %c4_i32_384 : i32
      %c0_385 = arith.constant 0 : index
      %412 = arith.index_cast %411 : i32 to index
      %c4_386 = arith.constant 4 : index
      %c0_387 = arith.constant 0 : index
      %413 = vector.load %arg1[%c0_385, %412, %c4_386, %c0_387] : memref<1x36x36x8xbf16, #tpu.memory_space<vmem>>, vector<1x1x32x8xbf16>
      %414 = vector.shape_cast %413 : vector<1x1x32x8xbf16> to vector<32x8xbf16>
      %c24_388 = arith.constant 24 : index
      %c0_389 = arith.constant 0 : index
      %c0_390 = arith.constant 0 : index
      %415 = vector.load %arg2[%c24_388, %c0_389, %c0_390] : memref<25x8x32xbf16, #tpu.memory_space<vmem>>, vector<1x8x32xbf16>
      %416 = vector.shape_cast %415 : vector<1x8x32xbf16> to vector<8x32xbf16>
      %cst_391 = arith.constant dense<0.000000e+00> : vector<32x32xf32>
      %417 = tpu.matmul %414, %416, %cst_391 {dimension_numbers = #tpu.dot_dimension_numbers<[1], [0], [0], [1], [0, 0, 1, 1], [], []>} : vector<32x8xbf16>, vector<8x32xbf16>, vector<32x32xf32> -> vector<32x32xf32>
      %418 = arith.addf %410, %417 : vector<32x32xf32>
      %419 = arith.maximumf %215, %418 : vector<32x32xf32>
      %420 = arith.index_cast %arg6 : i32 to index
      %c0_392 = arith.constant 0 : index
      %c0_393 = arith.constant 0 : index
      %421 = vector.load %arg5[%420, %c0_392, %c0_393] : memref<16x32x32xf32, #tpu.memory_space<vmem>>, vector<1x32x32xf32>
      %422 = vector.shape_cast %421 : vector<1x32x32xf32> to vector<32x32xf32>
      %423 = vector.shape_cast %419 : vector<32x32xf32> to vector<1x32x32xf32>
      tpu.vector_store %arg5[%420, %c0_392, %c0_393], %423 {strides = array<i32>} : memref<16x32x32xf32, #tpu.memory_space<vmem>>, vector<1x32x32xf32>,
    }
    %c16_i32_0 = arith.constant 16 : i32
    %c0 = arith.constant 0 : index
    %c0_1 = arith.constant 0 : index
    %c0_2 = arith.constant 0 : index
    %1 = tpu.strided_load %arg5[%c0, %c0_1, %c0_2] {strides = array<i32: 1, 2, 1>} : memref<16x32x32xf32, #tpu.memory_space<vmem>>, vector<16x16x32xf32>
    %c0_3 = arith.constant 0 : index
    %c1 = arith.constant 1 : index
    %c0_4 = arith.constant 0 : index
    %2 = tpu.strided_load %arg5[%c0_3, %c1, %c0_4] {strides = array<i32: 1, 2, 1>} : memref<16x32x32xf32, #tpu.memory_space<vmem>>, vector<16x16x32xf32>
    %3 = arith.maximumf %1, %2 : vector<16x16x32xf32>
    %c0_5 = arith.constant 0 : index
    %c0_6 = arith.constant 0 : index
    %c0_7 = arith.constant 0 : index
    %4 = vector.load %arg3[%c0_5, %c0_6, %c0_7] : memref<1x1x32xf32, #tpu.memory_space<vmem>>, vector<1x1x32xf32>
    %5 = vector.broadcast %4 : vector<1x1x32xf32> to vector<16x16x32xf32>
    %6 = arith.addf %3, %5 : vector<16x16x32xf32>
    %cst = arith.constant 0.000000e+00 : f32
    %7 = vector.broadcast %cst : f32 to vector<16x16x32xf32>
    %8 = arith.maximumf %6, %7 : vector<16x16x32xf32>
    %9 = arith.truncf %8 : vector<16x16x32xf32> to vector<16x16x32xbf16>
    %c0_8 = arith.constant 0 : index
    %c0_9 = arith.constant 0 : index
    %c0_10 = arith.constant 0 : index
    %c0_11 = arith.constant 0 : index
    %10 = vector.load %arg4[%c0_8, %c0_9, %c0_10, %c0_11] : memref<1x16x16x32xbf16, #tpu.memory_space<vmem>>, vector<1x16x16x32xbf16>
    %11 = vector.shape_cast %10 : vector<1x16x16x32xbf16> to vector<16x16x32xbf16>
    %12 = vector.shape_cast %9 : vector<16x16x32xbf16> to vector<1x16x16x32xbf16>
    tpu.vector_store %arg4[%c0_8, %c0_9, %c0_10, %c0_11], %12 {strides = array<i32>} : memref<1x16x16x32xbf16, #tpu.memory_space<vmem>>, vector<1x16x16x32xbf16>,
    return
  }
  func.func @transform_0(%arg0: i32) -> (i32, i32, i32, i32) {
    %c0_i32 = arith.constant 0 : i32
    %c0_i32_0 = arith.constant 0 : i32
    %c0_i32_1 = arith.constant 0 : i32
    %c0_i32_2 = arith.constant 0 : i32
    return %arg0, %c0_i32, %c0_i32_0, %c0_i32_1 : i32, i32, i32, i32
  }
  func.func @transform_1(%arg0: i32) -> (i32, i32, i32) {
    %c0_i32 = arith.constant 0 : i32
    %c0_i32_0 = arith.constant 0 : i32
    %c0_i32_1 = arith.constant 0 : i32
    %c0_i32_2 = arith.constant 0 : i32
    return %c0_i32, %c0_i32_0, %c0_i32_1 : i32, i32, i32
  }
  func.func @transform_2(%arg0: i32) -> (i32, i32, i32) {
    %c0_i32 = arith.constant 0 : i32
    %c0_i32_0 = arith.constant 0 : i32
    %c0_i32_1 = arith.constant 0 : i32
    %c0_i32_2 = arith.constant 0 : i32
    return %c0_i32, %c0_i32_0, %c0_i32_1 : i32, i32, i32
  }
  func.func @transform_3(%arg0: i32) -> (i32, i32, i32, i32) {
    %c0_i32 = arith.constant 0 : i32
    %c0_i32_0 = arith.constant 0 : i32
    %c0_i32_1 = arith.constant 0 : i32
    %c0_i32_2 = arith.constant 0 : i32
    return %arg0, %c0_i32, %c0_i32_0, %c0_i32_1 : i32, i32, i32, i32
  }
}

module attributes {stable_mosaic.version = 11 : i64} {
  func.func @_conv_pool_kernel(%arg0: i32, %arg1: memref<1x20x20x32xbf16, #tpu.memory_space<vmem>>, %arg2: memref<25x32x32xbf16, #tpu.memory_space<vmem>>, %arg3: memref<1x1x32xf32, #tpu.memory_space<vmem>>, %arg4: memref<1x8x8x32xbf16, #tpu.memory_space<vmem>>, %arg5: memref<8x16x32xf32, #tpu.memory_space<vmem>>) attributes {dimension_semantics = [#tpu.dimension_semantics<parallel>], iteration_bounds = array<i64: 2>, scalar_prefetch = 0 : i64, scratch_operands = 1 : i64, tpu.core_type = #tpu.core_type<tc>, window_params = [{transform_indices = @transform_0, window_bounds = array<i64: 1, 20, 20, 32>}, {pipeline_mode = #tpu.pipeline_mode<synchronous>, transform_indices = @transform_1, window_bounds = array<i64: 25, 32, 32>}, {pipeline_mode = #tpu.pipeline_mode<synchronous>, transform_indices = @transform_2, window_bounds = array<i64: 1, 1, 32>}, {transform_indices = @transform_3, window_bounds = array<i64: 1, 8, 8, 32>}]} {
    %c0_i32 = arith.constant 0 : i32
    %c8_i32 = arith.constant 8 : i32
    %0 = arith.addi %c0_i32, %c8_i32 : i32
    %c1_i32 = arith.constant 1 : i32
    scf.for %arg6 = %c0_i32 to %0 step %c1_i32  : i32 {
      %c2_i32 = arith.constant 2 : i32
      %13 = arith.muli %c2_i32, %arg6 : i32
      %c0_i32_12 = arith.constant 0 : i32
      %14 = arith.addi %13, %c0_i32_12 : i32
      %cst_13 = arith.constant 0.000000e+00 : f32
      %15 = vector.broadcast %cst_13 : f32 to vector<16x32xf32>
      %c0_i32_14 = arith.constant 0 : i32
      %16 = arith.addi %14, %c0_i32_14 : i32
      %c0_15 = arith.constant 0 : index
      %17 = arith.index_cast %16 : i32 to index
      %c0_16 = arith.constant 0 : index
      %c0_17 = arith.constant 0 : index
      %18 = vector.load %arg1[%c0_15, %17, %c0_16, %c0_17] : memref<1x20x20x32xbf16, #tpu.memory_space<vmem>>, vector<1x1x16x32xbf16>
      %19 = vector.shape_cast %18 : vector<1x1x16x32xbf16> to vector<16x32xbf16>
      %c0_18 = arith.constant 0 : index
      %c0_19 = arith.constant 0 : index
      %c0_20 = arith.constant 0 : index
      %20 = vector.load %arg2[%c0_18, %c0_19, %c0_20] : memref<25x32x32xbf16, #tpu.memory_space<vmem>>, vector<1x32x32xbf16>
      %21 = vector.shape_cast %20 : vector<1x32x32xbf16> to vector<32x32xbf16>
      %cst_21 = arith.constant dense<0.000000e+00> : vector<16x32xf32>
      %22 = tpu.matmul %19, %21, %cst_21 {dimension_numbers = #tpu.dot_dimension_numbers<[1], [0], [0], [1], [0, 0, 1, 1], [], []>} : vector<16x32xbf16>, vector<32x32xbf16>, vector<16x32xf32> -> vector<16x32xf32>
      %23 = arith.addf %15, %22 : vector<16x32xf32>
      %c0_i32_22 = arith.constant 0 : i32
      %24 = arith.addi %14, %c0_i32_22 : i32
      %c0_23 = arith.constant 0 : index
      %25 = arith.index_cast %24 : i32 to index
      %c1_24 = arith.constant 1 : index
      %c0_25 = arith.constant 0 : index
      %26 = vector.load %arg1[%c0_23, %25, %c1_24, %c0_25] : memref<1x20x20x32xbf16, #tpu.memory_space<vmem>>, vector<1x1x16x32xbf16>
      %27 = vector.shape_cast %26 : vector<1x1x16x32xbf16> to vector<16x32xbf16>
      %c1_26 = arith.constant 1 : index
      %c0_27 = arith.constant 0 : index
      %c0_28 = arith.constant 0 : index
      %28 = vector.load %arg2[%c1_26, %c0_27, %c0_28] : memref<25x32x32xbf16, #tpu.memory_space<vmem>>, vector<1x32x32xbf16>
      %29 = vector.shape_cast %28 : vector<1x32x32xbf16> to vector<32x32xbf16>
      %cst_29 = arith.constant dense<0.000000e+00> : vector<16x32xf32>
      %30 = tpu.matmul %27, %29, %cst_29 {dimension_numbers = #tpu.dot_dimension_numbers<[1], [0], [0], [1], [0, 0, 1, 1], [], []>} : vector<16x32xbf16>, vector<32x32xbf16>, vector<16x32xf32> -> vector<16x32xf32>
      %31 = arith.addf %23, %30 : vector<16x32xf32>
      %c0_i32_30 = arith.constant 0 : i32
      %32 = arith.addi %14, %c0_i32_30 : i32
      %c0_31 = arith.constant 0 : index
      %33 = arith.index_cast %32 : i32 to index
      %c2 = arith.constant 2 : index
      %c0_32 = arith.constant 0 : index
      %34 = vector.load %arg1[%c0_31, %33, %c2, %c0_32] : memref<1x20x20x32xbf16, #tpu.memory_space<vmem>>, vector<1x1x16x32xbf16>
      %35 = vector.shape_cast %34 : vector<1x1x16x32xbf16> to vector<16x32xbf16>
      %c2_33 = arith.constant 2 : index
      %c0_34 = arith.constant 0 : index
      %c0_35 = arith.constant 0 : index
      %36 = vector.load %arg2[%c2_33, %c0_34, %c0_35] : memref<25x32x32xbf16, #tpu.memory_space<vmem>>, vector<1x32x32xbf16>
      %37 = vector.shape_cast %36 : vector<1x32x32xbf16> to vector<32x32xbf16>
      %cst_36 = arith.constant dense<0.000000e+00> : vector<16x32xf32>
      %38 = tpu.matmul %35, %37, %cst_36 {dimension_numbers = #tpu.dot_dimension_numbers<[1], [0], [0], [1], [0, 0, 1, 1], [], []>} : vector<16x32xbf16>, vector<32x32xbf16>, vector<16x32xf32> -> vector<16x32xf32>
      %39 = arith.addf %31, %38 : vector<16x32xf32>
      %c0_i32_37 = arith.constant 0 : i32
      %40 = arith.addi %14, %c0_i32_37 : i32
      %c0_38 = arith.constant 0 : index
      %41 = arith.index_cast %40 : i32 to index
      %c3 = arith.constant 3 : index
      %c0_39 = arith.constant 0 : index
      %42 = vector.load %arg1[%c0_38, %41, %c3, %c0_39] : memref<1x20x20x32xbf16, #tpu.memory_space<vmem>>, vector<1x1x16x32xbf16>
      %43 = vector.shape_cast %42 : vector<1x1x16x32xbf16> to vector<16x32xbf16>
      %c3_40 = arith.constant 3 : index
      %c0_41 = arith.constant 0 : index
      %c0_42 = arith.constant 0 : index
      %44 = vector.load %arg2[%c3_40, %c0_41, %c0_42] : memref<25x32x32xbf16, #tpu.memory_space<vmem>>, vector<1x32x32xbf16>
      %45 = vector.shape_cast %44 : vector<1x32x32xbf16> to vector<32x32xbf16>
      %cst_43 = arith.constant dense<0.000000e+00> : vector<16x32xf32>
      %46 = tpu.matmul %43, %45, %cst_43 {dimension_numbers = #tpu.dot_dimension_numbers<[1], [0], [0], [1], [0, 0, 1, 1], [], []>} : vector<16x32xbf16>, vector<32x32xbf16>, vector<16x32xf32> -> vector<16x32xf32>
      %47 = arith.addf %39, %46 : vector<16x32xf32>
      %c0_i32_44 = arith.constant 0 : i32
      %48 = arith.addi %14, %c0_i32_44 : i32
      %c0_45 = arith.constant 0 : index
      %49 = arith.index_cast %48 : i32 to index
      %c4 = arith.constant 4 : index
      %c0_46 = arith.constant 0 : index
      %50 = vector.load %arg1[%c0_45, %49, %c4, %c0_46] : memref<1x20x20x32xbf16, #tpu.memory_space<vmem>>, vector<1x1x16x32xbf16>
      %51 = vector.shape_cast %50 : vector<1x1x16x32xbf16> to vector<16x32xbf16>
      %c4_47 = arith.constant 4 : index
      %c0_48 = arith.constant 0 : index
      %c0_49 = arith.constant 0 : index
      %52 = vector.load %arg2[%c4_47, %c0_48, %c0_49] : memref<25x32x32xbf16, #tpu.memory_space<vmem>>, vector<1x32x32xbf16>
      %53 = vector.shape_cast %52 : vector<1x32x32xbf16> to vector<32x32xbf16>
      %cst_50 = arith.constant dense<0.000000e+00> : vector<16x32xf32>
      %54 = tpu.matmul %51, %53, %cst_50 {dimension_numbers = #tpu.dot_dimension_numbers<[1], [0], [0], [1], [0, 0, 1, 1], [], []>} : vector<16x32xbf16>, vector<32x32xbf16>, vector<16x32xf32> -> vector<16x32xf32>
      %55 = arith.addf %47, %54 : vector<16x32xf32>
      %c1_i32_51 = arith.constant 1 : i32
      %56 = arith.addi %14, %c1_i32_51 : i32
      %c0_52 = arith.constant 0 : index
      %57 = arith.index_cast %56 : i32 to index
      %c0_53 = arith.constant 0 : index
      %c0_54 = arith.constant 0 : index
      %58 = vector.load %arg1[%c0_52, %57, %c0_53, %c0_54] : memref<1x20x20x32xbf16, #tpu.memory_space<vmem>>, vector<1x1x16x32xbf16>
      %59 = vector.shape_cast %58 : vector<1x1x16x32xbf16> to vector<16x32xbf16>
      %c5 = arith.constant 5 : index
      %c0_55 = arith.constant 0 : index
      %c0_56 = arith.constant 0 : index
      %60 = vector.load %arg2[%c5, %c0_55, %c0_56] : memref<25x32x32xbf16, #tpu.memory_space<vmem>>, vector<1x32x32xbf16>
      %61 = vector.shape_cast %60 : vector<1x32x32xbf16> to vector<32x32xbf16>
      %cst_57 = arith.constant dense<0.000000e+00> : vector<16x32xf32>
      %62 = tpu.matmul %59, %61, %cst_57 {dimension_numbers = #tpu.dot_dimension_numbers<[1], [0], [0], [1], [0, 0, 1, 1], [], []>} : vector<16x32xbf16>, vector<32x32xbf16>, vector<16x32xf32> -> vector<16x32xf32>
      %63 = arith.addf %55, %62 : vector<16x32xf32>
      %c1_i32_58 = arith.constant 1 : i32
      %64 = arith.addi %14, %c1_i32_58 : i32
      %c0_59 = arith.constant 0 : index
      %65 = arith.index_cast %64 : i32 to index
      %c1_60 = arith.constant 1 : index
      %c0_61 = arith.constant 0 : index
      %66 = vector.load %arg1[%c0_59, %65, %c1_60, %c0_61] : memref<1x20x20x32xbf16, #tpu.memory_space<vmem>>, vector<1x1x16x32xbf16>
      %67 = vector.shape_cast %66 : vector<1x1x16x32xbf16> to vector<16x32xbf16>
      %c6 = arith.constant 6 : index
      %c0_62 = arith.constant 0 : index
      %c0_63 = arith.constant 0 : index
      %68 = vector.load %arg2[%c6, %c0_62, %c0_63] : memref<25x32x32xbf16, #tpu.memory_space<vmem>>, vector<1x32x32xbf16>
      %69 = vector.shape_cast %68 : vector<1x32x32xbf16> to vector<32x32xbf16>
      %cst_64 = arith.constant dense<0.000000e+00> : vector<16x32xf32>
      %70 = tpu.matmul %67, %69, %cst_64 {dimension_numbers = #tpu.dot_dimension_numbers<[1], [0], [0], [1], [0, 0, 1, 1], [], []>} : vector<16x32xbf16>, vector<32x32xbf16>, vector<16x32xf32> -> vector<16x32xf32>
      %71 = arith.addf %63, %70 : vector<16x32xf32>
      %c1_i32_65 = arith.constant 1 : i32
      %72 = arith.addi %14, %c1_i32_65 : i32
      %c0_66 = arith.constant 0 : index
      %73 = arith.index_cast %72 : i32 to index
      %c2_67 = arith.constant 2 : index
      %c0_68 = arith.constant 0 : index
      %74 = vector.load %arg1[%c0_66, %73, %c2_67, %c0_68] : memref<1x20x20x32xbf16, #tpu.memory_space<vmem>>, vector<1x1x16x32xbf16>
      %75 = vector.shape_cast %74 : vector<1x1x16x32xbf16> to vector<16x32xbf16>
      %c7 = arith.constant 7 : index
      %c0_69 = arith.constant 0 : index
      %c0_70 = arith.constant 0 : index
      %76 = vector.load %arg2[%c7, %c0_69, %c0_70] : memref<25x32x32xbf16, #tpu.memory_space<vmem>>, vector<1x32x32xbf16>
      %77 = vector.shape_cast %76 : vector<1x32x32xbf16> to vector<32x32xbf16>
      %cst_71 = arith.constant dense<0.000000e+00> : vector<16x32xf32>
      %78 = tpu.matmul %75, %77, %cst_71 {dimension_numbers = #tpu.dot_dimension_numbers<[1], [0], [0], [1], [0, 0, 1, 1], [], []>} : vector<16x32xbf16>, vector<32x32xbf16>, vector<16x32xf32> -> vector<16x32xf32>
      %79 = arith.addf %71, %78 : vector<16x32xf32>
      %c1_i32_72 = arith.constant 1 : i32
      %80 = arith.addi %14, %c1_i32_72 : i32
      %c0_73 = arith.constant 0 : index
      %81 = arith.index_cast %80 : i32 to index
      %c3_74 = arith.constant 3 : index
      %c0_75 = arith.constant 0 : index
      %82 = vector.load %arg1[%c0_73, %81, %c3_74, %c0_75] : memref<1x20x20x32xbf16, #tpu.memory_space<vmem>>, vector<1x1x16x32xbf16>
      %83 = vector.shape_cast %82 : vector<1x1x16x32xbf16> to vector<16x32xbf16>
      %c8 = arith.constant 8 : index
      %c0_76 = arith.constant 0 : index
      %c0_77 = arith.constant 0 : index
      %84 = vector.load %arg2[%c8, %c0_76, %c0_77] : memref<25x32x32xbf16, #tpu.memory_space<vmem>>, vector<1x32x32xbf16>
      %85 = vector.shape_cast %84 : vector<1x32x32xbf16> to vector<32x32xbf16>
      %cst_78 = arith.constant dense<0.000000e+00> : vector<16x32xf32>
      %86 = tpu.matmul %83, %85, %cst_78 {dimension_numbers = #tpu.dot_dimension_numbers<[1], [0], [0], [1], [0, 0, 1, 1], [], []>} : vector<16x32xbf16>, vector<32x32xbf16>, vector<16x32xf32> -> vector<16x32xf32>
      %87 = arith.addf %79, %86 : vector<16x32xf32>
      %c1_i32_79 = arith.constant 1 : i32
      %88 = arith.addi %14, %c1_i32_79 : i32
      %c0_80 = arith.constant 0 : index
      %89 = arith.index_cast %88 : i32 to index
      %c4_81 = arith.constant 4 : index
      %c0_82 = arith.constant 0 : index
      %90 = vector.load %arg1[%c0_80, %89, %c4_81, %c0_82] : memref<1x20x20x32xbf16, #tpu.memory_space<vmem>>, vector<1x1x16x32xbf16>
      %91 = vector.shape_cast %90 : vector<1x1x16x32xbf16> to vector<16x32xbf16>
      %c9 = arith.constant 9 : index
      %c0_83 = arith.constant 0 : index
      %c0_84 = arith.constant 0 : index
      %92 = vector.load %arg2[%c9, %c0_83, %c0_84] : memref<25x32x32xbf16, #tpu.memory_space<vmem>>, vector<1x32x32xbf16>
      %93 = vector.shape_cast %92 : vector<1x32x32xbf16> to vector<32x32xbf16>
      %cst_85 = arith.constant dense<0.000000e+00> : vector<16x32xf32>
      %94 = tpu.matmul %91, %93, %cst_85 {dimension_numbers = #tpu.dot_dimension_numbers<[1], [0], [0], [1], [0, 0, 1, 1], [], []>} : vector<16x32xbf16>, vector<32x32xbf16>, vector<16x32xf32> -> vector<16x32xf32>
      %95 = arith.addf %87, %94 : vector<16x32xf32>
      %c2_i32_86 = arith.constant 2 : i32
      %96 = arith.addi %14, %c2_i32_86 : i32
      %c0_87 = arith.constant 0 : index
      %97 = arith.index_cast %96 : i32 to index
      %c0_88 = arith.constant 0 : index
      %c0_89 = arith.constant 0 : index
      %98 = vector.load %arg1[%c0_87, %97, %c0_88, %c0_89] : memref<1x20x20x32xbf16, #tpu.memory_space<vmem>>, vector<1x1x16x32xbf16>
      %99 = vector.shape_cast %98 : vector<1x1x16x32xbf16> to vector<16x32xbf16>
      %c10 = arith.constant 10 : index
      %c0_90 = arith.constant 0 : index
      %c0_91 = arith.constant 0 : index
      %100 = vector.load %arg2[%c10, %c0_90, %c0_91] : memref<25x32x32xbf16, #tpu.memory_space<vmem>>, vector<1x32x32xbf16>
      %101 = vector.shape_cast %100 : vector<1x32x32xbf16> to vector<32x32xbf16>
      %cst_92 = arith.constant dense<0.000000e+00> : vector<16x32xf32>
      %102 = tpu.matmul %99, %101, %cst_92 {dimension_numbers = #tpu.dot_dimension_numbers<[1], [0], [0], [1], [0, 0, 1, 1], [], []>} : vector<16x32xbf16>, vector<32x32xbf16>, vector<16x32xf32> -> vector<16x32xf32>
      %103 = arith.addf %95, %102 : vector<16x32xf32>
      %c2_i32_93 = arith.constant 2 : i32
      %104 = arith.addi %14, %c2_i32_93 : i32
      %c0_94 = arith.constant 0 : index
      %105 = arith.index_cast %104 : i32 to index
      %c1_95 = arith.constant 1 : index
      %c0_96 = arith.constant 0 : index
      %106 = vector.load %arg1[%c0_94, %105, %c1_95, %c0_96] : memref<1x20x20x32xbf16, #tpu.memory_space<vmem>>, vector<1x1x16x32xbf16>
      %107 = vector.shape_cast %106 : vector<1x1x16x32xbf16> to vector<16x32xbf16>
      %c11 = arith.constant 11 : index
      %c0_97 = arith.constant 0 : index
      %c0_98 = arith.constant 0 : index
      %108 = vector.load %arg2[%c11, %c0_97, %c0_98] : memref<25x32x32xbf16, #tpu.memory_space<vmem>>, vector<1x32x32xbf16>
      %109 = vector.shape_cast %108 : vector<1x32x32xbf16> to vector<32x32xbf16>
      %cst_99 = arith.constant dense<0.000000e+00> : vector<16x32xf32>
      %110 = tpu.matmul %107, %109, %cst_99 {dimension_numbers = #tpu.dot_dimension_numbers<[1], [0], [0], [1], [0, 0, 1, 1], [], []>} : vector<16x32xbf16>, vector<32x32xbf16>, vector<16x32xf32> -> vector<16x32xf32>
      %111 = arith.addf %103, %110 : vector<16x32xf32>
      %c2_i32_100 = arith.constant 2 : i32
      %112 = arith.addi %14, %c2_i32_100 : i32
      %c0_101 = arith.constant 0 : index
      %113 = arith.index_cast %112 : i32 to index
      %c2_102 = arith.constant 2 : index
      %c0_103 = arith.constant 0 : index
      %114 = vector.load %arg1[%c0_101, %113, %c2_102, %c0_103] : memref<1x20x20x32xbf16, #tpu.memory_space<vmem>>, vector<1x1x16x32xbf16>
      %115 = vector.shape_cast %114 : vector<1x1x16x32xbf16> to vector<16x32xbf16>
      %c12 = arith.constant 12 : index
      %c0_104 = arith.constant 0 : index
      %c0_105 = arith.constant 0 : index
      %116 = vector.load %arg2[%c12, %c0_104, %c0_105] : memref<25x32x32xbf16, #tpu.memory_space<vmem>>, vector<1x32x32xbf16>
      %117 = vector.shape_cast %116 : vector<1x32x32xbf16> to vector<32x32xbf16>
      %cst_106 = arith.constant dense<0.000000e+00> : vector<16x32xf32>
      %118 = tpu.matmul %115, %117, %cst_106 {dimension_numbers = #tpu.dot_dimension_numbers<[1], [0], [0], [1], [0, 0, 1, 1], [], []>} : vector<16x32xbf16>, vector<32x32xbf16>, vector<16x32xf32> -> vector<16x32xf32>
      %119 = arith.addf %111, %118 : vector<16x32xf32>
      %c2_i32_107 = arith.constant 2 : i32
      %120 = arith.addi %14, %c2_i32_107 : i32
      %c0_108 = arith.constant 0 : index
      %121 = arith.index_cast %120 : i32 to index
      %c3_109 = arith.constant 3 : index
      %c0_110 = arith.constant 0 : index
      %122 = vector.load %arg1[%c0_108, %121, %c3_109, %c0_110] : memref<1x20x20x32xbf16, #tpu.memory_space<vmem>>, vector<1x1x16x32xbf16>
      %123 = vector.shape_cast %122 : vector<1x1x16x32xbf16> to vector<16x32xbf16>
      %c13 = arith.constant 13 : index
      %c0_111 = arith.constant 0 : index
      %c0_112 = arith.constant 0 : index
      %124 = vector.load %arg2[%c13, %c0_111, %c0_112] : memref<25x32x32xbf16, #tpu.memory_space<vmem>>, vector<1x32x32xbf16>
      %125 = vector.shape_cast %124 : vector<1x32x32xbf16> to vector<32x32xbf16>
      %cst_113 = arith.constant dense<0.000000e+00> : vector<16x32xf32>
      %126 = tpu.matmul %123, %125, %cst_113 {dimension_numbers = #tpu.dot_dimension_numbers<[1], [0], [0], [1], [0, 0, 1, 1], [], []>} : vector<16x32xbf16>, vector<32x32xbf16>, vector<16x32xf32> -> vector<16x32xf32>
      %127 = arith.addf %119, %126 : vector<16x32xf32>
      %c2_i32_114 = arith.constant 2 : i32
      %128 = arith.addi %14, %c2_i32_114 : i32
      %c0_115 = arith.constant 0 : index
      %129 = arith.index_cast %128 : i32 to index
      %c4_116 = arith.constant 4 : index
      %c0_117 = arith.constant 0 : index
      %130 = vector.load %arg1[%c0_115, %129, %c4_116, %c0_117] : memref<1x20x20x32xbf16, #tpu.memory_space<vmem>>, vector<1x1x16x32xbf16>
      %131 = vector.shape_cast %130 : vector<1x1x16x32xbf16> to vector<16x32xbf16>
      %c14 = arith.constant 14 : index
      %c0_118 = arith.constant 0 : index
      %c0_119 = arith.constant 0 : index
      %132 = vector.load %arg2[%c14, %c0_118, %c0_119] : memref<25x32x32xbf16, #tpu.memory_space<vmem>>, vector<1x32x32xbf16>
      %133 = vector.shape_cast %132 : vector<1x32x32xbf16> to vector<32x32xbf16>
      %cst_120 = arith.constant dense<0.000000e+00> : vector<16x32xf32>
      %134 = tpu.matmul %131, %133, %cst_120 {dimension_numbers = #tpu.dot_dimension_numbers<[1], [0], [0], [1], [0, 0, 1, 1], [], []>} : vector<16x32xbf16>, vector<32x32xbf16>, vector<16x32xf32> -> vector<16x32xf32>
      %135 = arith.addf %127, %134 : vector<16x32xf32>
      %c3_i32 = arith.constant 3 : i32
      %136 = arith.addi %14, %c3_i32 : i32
      %c0_121 = arith.constant 0 : index
      %137 = arith.index_cast %136 : i32 to index
      %c0_122 = arith.constant 0 : index
      %c0_123 = arith.constant 0 : index
      %138 = vector.load %arg1[%c0_121, %137, %c0_122, %c0_123] : memref<1x20x20x32xbf16, #tpu.memory_space<vmem>>, vector<1x1x16x32xbf16>
      %139 = vector.shape_cast %138 : vector<1x1x16x32xbf16> to vector<16x32xbf16>
      %c15 = arith.constant 15 : index
      %c0_124 = arith.constant 0 : index
      %c0_125 = arith.constant 0 : index
      %140 = vector.load %arg2[%c15, %c0_124, %c0_125] : memref<25x32x32xbf16, #tpu.memory_space<vmem>>, vector<1x32x32xbf16>
      %141 = vector.shape_cast %140 : vector<1x32x32xbf16> to vector<32x32xbf16>
      %cst_126 = arith.constant dense<0.000000e+00> : vector<16x32xf32>
      %142 = tpu.matmul %139, %141, %cst_126 {dimension_numbers = #tpu.dot_dimension_numbers<[1], [0], [0], [1], [0, 0, 1, 1], [], []>} : vector<16x32xbf16>, vector<32x32xbf16>, vector<16x32xf32> -> vector<16x32xf32>
      %143 = arith.addf %135, %142 : vector<16x32xf32>
      %c3_i32_127 = arith.constant 3 : i32
      %144 = arith.addi %14, %c3_i32_127 : i32
      %c0_128 = arith.constant 0 : index
      %145 = arith.index_cast %144 : i32 to index
      %c1_129 = arith.constant 1 : index
      %c0_130 = arith.constant 0 : index
      %146 = vector.load %arg1[%c0_128, %145, %c1_129, %c0_130] : memref<1x20x20x32xbf16, #tpu.memory_space<vmem>>, vector<1x1x16x32xbf16>
      %147 = vector.shape_cast %146 : vector<1x1x16x32xbf16> to vector<16x32xbf16>
      %c16 = arith.constant 16 : index
      %c0_131 = arith.constant 0 : index
      %c0_132 = arith.constant 0 : index
      %148 = vector.load %arg2[%c16, %c0_131, %c0_132] : memref<25x32x32xbf16, #tpu.memory_space<vmem>>, vector<1x32x32xbf16>
      %149 = vector.shape_cast %148 : vector<1x32x32xbf16> to vector<32x32xbf16>
      %cst_133 = arith.constant dense<0.000000e+00> : vector<16x32xf32>
      %150 = tpu.matmul %147, %149, %cst_133 {dimension_numbers = #tpu.dot_dimension_numbers<[1], [0], [0], [1], [0, 0, 1, 1], [], []>} : vector<16x32xbf16>, vector<32x32xbf16>, vector<16x32xf32> -> vector<16x32xf32>
      %151 = arith.addf %143, %150 : vector<16x32xf32>
      %c3_i32_134 = arith.constant 3 : i32
      %152 = arith.addi %14, %c3_i32_134 : i32
      %c0_135 = arith.constant 0 : index
      %153 = arith.index_cast %152 : i32 to index
      %c2_136 = arith.constant 2 : index
      %c0_137 = arith.constant 0 : index
      %154 = vector.load %arg1[%c0_135, %153, %c2_136, %c0_137] : memref<1x20x20x32xbf16, #tpu.memory_space<vmem>>, vector<1x1x16x32xbf16>
      %155 = vector.shape_cast %154 : vector<1x1x16x32xbf16> to vector<16x32xbf16>
      %c17 = arith.constant 17 : index
      %c0_138 = arith.constant 0 : index
      %c0_139 = arith.constant 0 : index
      %156 = vector.load %arg2[%c17, %c0_138, %c0_139] : memref<25x32x32xbf16, #tpu.memory_space<vmem>>, vector<1x32x32xbf16>
      %157 = vector.shape_cast %156 : vector<1x32x32xbf16> to vector<32x32xbf16>
      %cst_140 = arith.constant dense<0.000000e+00> : vector<16x32xf32>
      %158 = tpu.matmul %155, %157, %cst_140 {dimension_numbers = #tpu.dot_dimension_numbers<[1], [0], [0], [1], [0, 0, 1, 1], [], []>} : vector<16x32xbf16>, vector<32x32xbf16>, vector<16x32xf32> -> vector<16x32xf32>
      %159 = arith.addf %151, %158 : vector<16x32xf32>
      %c3_i32_141 = arith.constant 3 : i32
      %160 = arith.addi %14, %c3_i32_141 : i32
      %c0_142 = arith.constant 0 : index
      %161 = arith.index_cast %160 : i32 to index
      %c3_143 = arith.constant 3 : index
      %c0_144 = arith.constant 0 : index
      %162 = vector.load %arg1[%c0_142, %161, %c3_143, %c0_144] : memref<1x20x20x32xbf16, #tpu.memory_space<vmem>>, vector<1x1x16x32xbf16>
      %163 = vector.shape_cast %162 : vector<1x1x16x32xbf16> to vector<16x32xbf16>
      %c18 = arith.constant 18 : index
      %c0_145 = arith.constant 0 : index
      %c0_146 = arith.constant 0 : index
      %164 = vector.load %arg2[%c18, %c0_145, %c0_146] : memref<25x32x32xbf16, #tpu.memory_space<vmem>>, vector<1x32x32xbf16>
      %165 = vector.shape_cast %164 : vector<1x32x32xbf16> to vector<32x32xbf16>
      %cst_147 = arith.constant dense<0.000000e+00> : vector<16x32xf32>
      %166 = tpu.matmul %163, %165, %cst_147 {dimension_numbers = #tpu.dot_dimension_numbers<[1], [0], [0], [1], [0, 0, 1, 1], [], []>} : vector<16x32xbf16>, vector<32x32xbf16>, vector<16x32xf32> -> vector<16x32xf32>
      %167 = arith.addf %159, %166 : vector<16x32xf32>
      %c3_i32_148 = arith.constant 3 : i32
      %168 = arith.addi %14, %c3_i32_148 : i32
      %c0_149 = arith.constant 0 : index
      %169 = arith.index_cast %168 : i32 to index
      %c4_150 = arith.constant 4 : index
      %c0_151 = arith.constant 0 : index
      %170 = vector.load %arg1[%c0_149, %169, %c4_150, %c0_151] : memref<1x20x20x32xbf16, #tpu.memory_space<vmem>>, vector<1x1x16x32xbf16>
      %171 = vector.shape_cast %170 : vector<1x1x16x32xbf16> to vector<16x32xbf16>
      %c19 = arith.constant 19 : index
      %c0_152 = arith.constant 0 : index
      %c0_153 = arith.constant 0 : index
      %172 = vector.load %arg2[%c19, %c0_152, %c0_153] : memref<25x32x32xbf16, #tpu.memory_space<vmem>>, vector<1x32x32xbf16>
      %173 = vector.shape_cast %172 : vector<1x32x32xbf16> to vector<32x32xbf16>
      %cst_154 = arith.constant dense<0.000000e+00> : vector<16x32xf32>
      %174 = tpu.matmul %171, %173, %cst_154 {dimension_numbers = #tpu.dot_dimension_numbers<[1], [0], [0], [1], [0, 0, 1, 1], [], []>} : vector<16x32xbf16>, vector<32x32xbf16>, vector<16x32xf32> -> vector<16x32xf32>
      %175 = arith.addf %167, %174 : vector<16x32xf32>
      %c4_i32 = arith.constant 4 : i32
      %176 = arith.addi %14, %c4_i32 : i32
      %c0_155 = arith.constant 0 : index
      %177 = arith.index_cast %176 : i32 to index
      %c0_156 = arith.constant 0 : index
      %c0_157 = arith.constant 0 : index
      %178 = vector.load %arg1[%c0_155, %177, %c0_156, %c0_157] : memref<1x20x20x32xbf16, #tpu.memory_space<vmem>>, vector<1x1x16x32xbf16>
      %179 = vector.shape_cast %178 : vector<1x1x16x32xbf16> to vector<16x32xbf16>
      %c20 = arith.constant 20 : index
      %c0_158 = arith.constant 0 : index
      %c0_159 = arith.constant 0 : index
      %180 = vector.load %arg2[%c20, %c0_158, %c0_159] : memref<25x32x32xbf16, #tpu.memory_space<vmem>>, vector<1x32x32xbf16>
      %181 = vector.shape_cast %180 : vector<1x32x32xbf16> to vector<32x32xbf16>
      %cst_160 = arith.constant dense<0.000000e+00> : vector<16x32xf32>
      %182 = tpu.matmul %179, %181, %cst_160 {dimension_numbers = #tpu.dot_dimension_numbers<[1], [0], [0], [1], [0, 0, 1, 1], [], []>} : vector<16x32xbf16>, vector<32x32xbf16>, vector<16x32xf32> -> vector<16x32xf32>
      %183 = arith.addf %175, %182 : vector<16x32xf32>
      %c4_i32_161 = arith.constant 4 : i32
      %184 = arith.addi %14, %c4_i32_161 : i32
      %c0_162 = arith.constant 0 : index
      %185 = arith.index_cast %184 : i32 to index
      %c1_163 = arith.constant 1 : index
      %c0_164 = arith.constant 0 : index
      %186 = vector.load %arg1[%c0_162, %185, %c1_163, %c0_164] : memref<1x20x20x32xbf16, #tpu.memory_space<vmem>>, vector<1x1x16x32xbf16>
      %187 = vector.shape_cast %186 : vector<1x1x16x32xbf16> to vector<16x32xbf16>
      %c21 = arith.constant 21 : index
      %c0_165 = arith.constant 0 : index
      %c0_166 = arith.constant 0 : index
      %188 = vector.load %arg2[%c21, %c0_165, %c0_166] : memref<25x32x32xbf16, #tpu.memory_space<vmem>>, vector<1x32x32xbf16>
      %189 = vector.shape_cast %188 : vector<1x32x32xbf16> to vector<32x32xbf16>
      %cst_167 = arith.constant dense<0.000000e+00> : vector<16x32xf32>
      %190 = tpu.matmul %187, %189, %cst_167 {dimension_numbers = #tpu.dot_dimension_numbers<[1], [0], [0], [1], [0, 0, 1, 1], [], []>} : vector<16x32xbf16>, vector<32x32xbf16>, vector<16x32xf32> -> vector<16x32xf32>
      %191 = arith.addf %183, %190 : vector<16x32xf32>
      %c4_i32_168 = arith.constant 4 : i32
      %192 = arith.addi %14, %c4_i32_168 : i32
      %c0_169 = arith.constant 0 : index
      %193 = arith.index_cast %192 : i32 to index
      %c2_170 = arith.constant 2 : index
      %c0_171 = arith.constant 0 : index
      %194 = vector.load %arg1[%c0_169, %193, %c2_170, %c0_171] : memref<1x20x20x32xbf16, #tpu.memory_space<vmem>>, vector<1x1x16x32xbf16>
      %195 = vector.shape_cast %194 : vector<1x1x16x32xbf16> to vector<16x32xbf16>
      %c22 = arith.constant 22 : index
      %c0_172 = arith.constant 0 : index
      %c0_173 = arith.constant 0 : index
      %196 = vector.load %arg2[%c22, %c0_172, %c0_173] : memref<25x32x32xbf16, #tpu.memory_space<vmem>>, vector<1x32x32xbf16>
      %197 = vector.shape_cast %196 : vector<1x32x32xbf16> to vector<32x32xbf16>
      %cst_174 = arith.constant dense<0.000000e+00> : vector<16x32xf32>
      %198 = tpu.matmul %195, %197, %cst_174 {dimension_numbers = #tpu.dot_dimension_numbers<[1], [0], [0], [1], [0, 0, 1, 1], [], []>} : vector<16x32xbf16>, vector<32x32xbf16>, vector<16x32xf32> -> vector<16x32xf32>
      %199 = arith.addf %191, %198 : vector<16x32xf32>
      %c4_i32_175 = arith.constant 4 : i32
      %200 = arith.addi %14, %c4_i32_175 : i32
      %c0_176 = arith.constant 0 : index
      %201 = arith.index_cast %200 : i32 to index
      %c3_177 = arith.constant 3 : index
      %c0_178 = arith.constant 0 : index
      %202 = vector.load %arg1[%c0_176, %201, %c3_177, %c0_178] : memref<1x20x20x32xbf16, #tpu.memory_space<vmem>>, vector<1x1x16x32xbf16>
      %203 = vector.shape_cast %202 : vector<1x1x16x32xbf16> to vector<16x32xbf16>
      %c23 = arith.constant 23 : index
      %c0_179 = arith.constant 0 : index
      %c0_180 = arith.constant 0 : index
      %204 = vector.load %arg2[%c23, %c0_179, %c0_180] : memref<25x32x32xbf16, #tpu.memory_space<vmem>>, vector<1x32x32xbf16>
      %205 = vector.shape_cast %204 : vector<1x32x32xbf16> to vector<32x32xbf16>
      %cst_181 = arith.constant dense<0.000000e+00> : vector<16x32xf32>
      %206 = tpu.matmul %203, %205, %cst_181 {dimension_numbers = #tpu.dot_dimension_numbers<[1], [0], [0], [1], [0, 0, 1, 1], [], []>} : vector<16x32xbf16>, vector<32x32xbf16>, vector<16x32xf32> -> vector<16x32xf32>
      %207 = arith.addf %199, %206 : vector<16x32xf32>
      %c4_i32_182 = arith.constant 4 : i32
      %208 = arith.addi %14, %c4_i32_182 : i32
      %c0_183 = arith.constant 0 : index
      %209 = arith.index_cast %208 : i32 to index
      %c4_184 = arith.constant 4 : index
      %c0_185 = arith.constant 0 : index
      %210 = vector.load %arg1[%c0_183, %209, %c4_184, %c0_185] : memref<1x20x20x32xbf16, #tpu.memory_space<vmem>>, vector<1x1x16x32xbf16>
      %211 = vector.shape_cast %210 : vector<1x1x16x32xbf16> to vector<16x32xbf16>
      %c24 = arith.constant 24 : index
      %c0_186 = arith.constant 0 : index
      %c0_187 = arith.constant 0 : index
      %212 = vector.load %arg2[%c24, %c0_186, %c0_187] : memref<25x32x32xbf16, #tpu.memory_space<vmem>>, vector<1x32x32xbf16>
      %213 = vector.shape_cast %212 : vector<1x32x32xbf16> to vector<32x32xbf16>
      %cst_188 = arith.constant dense<0.000000e+00> : vector<16x32xf32>
      %214 = tpu.matmul %211, %213, %cst_188 {dimension_numbers = #tpu.dot_dimension_numbers<[1], [0], [0], [1], [0, 0, 1, 1], [], []>} : vector<16x32xbf16>, vector<32x32xbf16>, vector<16x32xf32> -> vector<16x32xf32>
      %215 = arith.addf %207, %214 : vector<16x32xf32>
      %c2_i32_189 = arith.constant 2 : i32
      %216 = arith.muli %c2_i32_189, %arg6 : i32
      %c1_i32_190 = arith.constant 1 : i32
      %217 = arith.addi %216, %c1_i32_190 : i32
      %cst_191 = arith.constant 0.000000e+00 : f32
      %218 = vector.broadcast %cst_191 : f32 to vector<16x32xf32>
      %c0_i32_192 = arith.constant 0 : i32
      %219 = arith.addi %217, %c0_i32_192 : i32
      %c0_193 = arith.constant 0 : index
      %220 = arith.index_cast %219 : i32 to index
      %c0_194 = arith.constant 0 : index
      %c0_195 = arith.constant 0 : index
      %221 = vector.load %arg1[%c0_193, %220, %c0_194, %c0_195] : memref<1x20x20x32xbf16, #tpu.memory_space<vmem>>, vector<1x1x16x32xbf16>
      %222 = vector.shape_cast %221 : vector<1x1x16x32xbf16> to vector<16x32xbf16>
      %c0_196 = arith.constant 0 : index
      %c0_197 = arith.constant 0 : index
      %c0_198 = arith.constant 0 : index
      %223 = vector.load %arg2[%c0_196, %c0_197, %c0_198] : memref<25x32x32xbf16, #tpu.memory_space<vmem>>, vector<1x32x32xbf16>
      %224 = vector.shape_cast %223 : vector<1x32x32xbf16> to vector<32x32xbf16>
      %cst_199 = arith.constant dense<0.000000e+00> : vector<16x32xf32>
      %225 = tpu.matmul %222, %224, %cst_199 {dimension_numbers = #tpu.dot_dimension_numbers<[1], [0], [0], [1], [0, 0, 1, 1], [], []>} : vector<16x32xbf16>, vector<32x32xbf16>, vector<16x32xf32> -> vector<16x32xf32>
      %226 = arith.addf %218, %225 : vector<16x32xf32>
      %c0_i32_200 = arith.constant 0 : i32
      %227 = arith.addi %217, %c0_i32_200 : i32
      %c0_201 = arith.constant 0 : index
      %228 = arith.index_cast %227 : i32 to index
      %c1_202 = arith.constant 1 : index
      %c0_203 = arith.constant 0 : index
      %229 = vector.load %arg1[%c0_201, %228, %c1_202, %c0_203] : memref<1x20x20x32xbf16, #tpu.memory_space<vmem>>, vector<1x1x16x32xbf16>
      %230 = vector.shape_cast %229 : vector<1x1x16x32xbf16> to vector<16x32xbf16>
      %c1_204 = arith.constant 1 : index
      %c0_205 = arith.constant 0 : index
      %c0_206 = arith.constant 0 : index
      %231 = vector.load %arg2[%c1_204, %c0_205, %c0_206] : memref<25x32x32xbf16, #tpu.memory_space<vmem>>, vector<1x32x32xbf16>
      %232 = vector.shape_cast %231 : vector<1x32x32xbf16> to vector<32x32xbf16>
      %cst_207 = arith.constant dense<0.000000e+00> : vector<16x32xf32>
      %233 = tpu.matmul %230, %232, %cst_207 {dimension_numbers = #tpu.dot_dimension_numbers<[1], [0], [0], [1], [0, 0, 1, 1], [], []>} : vector<16x32xbf16>, vector<32x32xbf16>, vector<16x32xf32> -> vector<16x32xf32>
      %234 = arith.addf %226, %233 : vector<16x32xf32>
      %c0_i32_208 = arith.constant 0 : i32
      %235 = arith.addi %217, %c0_i32_208 : i32
      %c0_209 = arith.constant 0 : index
      %236 = arith.index_cast %235 : i32 to index
      %c2_210 = arith.constant 2 : index
      %c0_211 = arith.constant 0 : index
      %237 = vector.load %arg1[%c0_209, %236, %c2_210, %c0_211] : memref<1x20x20x32xbf16, #tpu.memory_space<vmem>>, vector<1x1x16x32xbf16>
      %238 = vector.shape_cast %237 : vector<1x1x16x32xbf16> to vector<16x32xbf16>
      %c2_212 = arith.constant 2 : index
      %c0_213 = arith.constant 0 : index
      %c0_214 = arith.constant 0 : index
      %239 = vector.load %arg2[%c2_212, %c0_213, %c0_214] : memref<25x32x32xbf16, #tpu.memory_space<vmem>>, vector<1x32x32xbf16>
      %240 = vector.shape_cast %239 : vector<1x32x32xbf16> to vector<32x32xbf16>
      %cst_215 = arith.constant dense<0.000000e+00> : vector<16x32xf32>
      %241 = tpu.matmul %238, %240, %cst_215 {dimension_numbers = #tpu.dot_dimension_numbers<[1], [0], [0], [1], [0, 0, 1, 1], [], []>} : vector<16x32xbf16>, vector<32x32xbf16>, vector<16x32xf32> -> vector<16x32xf32>
      %242 = arith.addf %234, %241 : vector<16x32xf32>
      %c0_i32_216 = arith.constant 0 : i32
      %243 = arith.addi %217, %c0_i32_216 : i32
      %c0_217 = arith.constant 0 : index
      %244 = arith.index_cast %243 : i32 to index
      %c3_218 = arith.constant 3 : index
      %c0_219 = arith.constant 0 : index
      %245 = vector.load %arg1[%c0_217, %244, %c3_218, %c0_219] : memref<1x20x20x32xbf16, #tpu.memory_space<vmem>>, vector<1x1x16x32xbf16>
      %246 = vector.shape_cast %245 : vector<1x1x16x32xbf16> to vector<16x32xbf16>
      %c3_220 = arith.constant 3 : index
      %c0_221 = arith.constant 0 : index
      %c0_222 = arith.constant 0 : index
      %247 = vector.load %arg2[%c3_220, %c0_221, %c0_222] : memref<25x32x32xbf16, #tpu.memory_space<vmem>>, vector<1x32x32xbf16>
      %248 = vector.shape_cast %247 : vector<1x32x32xbf16> to vector<32x32xbf16>
      %cst_223 = arith.constant dense<0.000000e+00> : vector<16x32xf32>
      %249 = tpu.matmul %246, %248, %cst_223 {dimension_numbers = #tpu.dot_dimension_numbers<[1], [0], [0], [1], [0, 0, 1, 1], [], []>} : vector<16x32xbf16>, vector<32x32xbf16>, vector<16x32xf32> -> vector<16x32xf32>
      %250 = arith.addf %242, %249 : vector<16x32xf32>
      %c0_i32_224 = arith.constant 0 : i32
      %251 = arith.addi %217, %c0_i32_224 : i32
      %c0_225 = arith.constant 0 : index
      %252 = arith.index_cast %251 : i32 to index
      %c4_226 = arith.constant 4 : index
      %c0_227 = arith.constant 0 : index
      %253 = vector.load %arg1[%c0_225, %252, %c4_226, %c0_227] : memref<1x20x20x32xbf16, #tpu.memory_space<vmem>>, vector<1x1x16x32xbf16>
      %254 = vector.shape_cast %253 : vector<1x1x16x32xbf16> to vector<16x32xbf16>
      %c4_228 = arith.constant 4 : index
      %c0_229 = arith.constant 0 : index
      %c0_230 = arith.constant 0 : index
      %255 = vector.load %arg2[%c4_228, %c0_229, %c0_230] : memref<25x32x32xbf16, #tpu.memory_space<vmem>>, vector<1x32x32xbf16>
      %256 = vector.shape_cast %255 : vector<1x32x32xbf16> to vector<32x32xbf16>
      %cst_231 = arith.constant dense<0.000000e+00> : vector<16x32xf32>
      %257 = tpu.matmul %254, %256, %cst_231 {dimension_numbers = #tpu.dot_dimension_numbers<[1], [0], [0], [1], [0, 0, 1, 1], [], []>} : vector<16x32xbf16>, vector<32x32xbf16>, vector<16x32xf32> -> vector<16x32xf32>
      %258 = arith.addf %250, %257 : vector<16x32xf32>
      %c1_i32_232 = arith.constant 1 : i32
      %259 = arith.addi %217, %c1_i32_232 : i32
      %c0_233 = arith.constant 0 : index
      %260 = arith.index_cast %259 : i32 to index
      %c0_234 = arith.constant 0 : index
      %c0_235 = arith.constant 0 : index
      %261 = vector.load %arg1[%c0_233, %260, %c0_234, %c0_235] : memref<1x20x20x32xbf16, #tpu.memory_space<vmem>>, vector<1x1x16x32xbf16>
      %262 = vector.shape_cast %261 : vector<1x1x16x32xbf16> to vector<16x32xbf16>
      %c5_236 = arith.constant 5 : index
      %c0_237 = arith.constant 0 : index
      %c0_238 = arith.constant 0 : index
      %263 = vector.load %arg2[%c5_236, %c0_237, %c0_238] : memref<25x32x32xbf16, #tpu.memory_space<vmem>>, vector<1x32x32xbf16>
      %264 = vector.shape_cast %263 : vector<1x32x32xbf16> to vector<32x32xbf16>
      %cst_239 = arith.constant dense<0.000000e+00> : vector<16x32xf32>
      %265 = tpu.matmul %262, %264, %cst_239 {dimension_numbers = #tpu.dot_dimension_numbers<[1], [0], [0], [1], [0, 0, 1, 1], [], []>} : vector<16x32xbf16>, vector<32x32xbf16>, vector<16x32xf32> -> vector<16x32xf32>
      %266 = arith.addf %258, %265 : vector<16x32xf32>
      %c1_i32_240 = arith.constant 1 : i32
      %267 = arith.addi %217, %c1_i32_240 : i32
      %c0_241 = arith.constant 0 : index
      %268 = arith.index_cast %267 : i32 to index
      %c1_242 = arith.constant 1 : index
      %c0_243 = arith.constant 0 : index
      %269 = vector.load %arg1[%c0_241, %268, %c1_242, %c0_243] : memref<1x20x20x32xbf16, #tpu.memory_space<vmem>>, vector<1x1x16x32xbf16>
      %270 = vector.shape_cast %269 : vector<1x1x16x32xbf16> to vector<16x32xbf16>
      %c6_244 = arith.constant 6 : index
      %c0_245 = arith.constant 0 : index
      %c0_246 = arith.constant 0 : index
      %271 = vector.load %arg2[%c6_244, %c0_245, %c0_246] : memref<25x32x32xbf16, #tpu.memory_space<vmem>>, vector<1x32x32xbf16>
      %272 = vector.shape_cast %271 : vector<1x32x32xbf16> to vector<32x32xbf16>
      %cst_247 = arith.constant dense<0.000000e+00> : vector<16x32xf32>
      %273 = tpu.matmul %270, %272, %cst_247 {dimension_numbers = #tpu.dot_dimension_numbers<[1], [0], [0], [1], [0, 0, 1, 1], [], []>} : vector<16x32xbf16>, vector<32x32xbf16>, vector<16x32xf32> -> vector<16x32xf32>
      %274 = arith.addf %266, %273 : vector<16x32xf32>
      %c1_i32_248 = arith.constant 1 : i32
      %275 = arith.addi %217, %c1_i32_248 : i32
      %c0_249 = arith.constant 0 : index
      %276 = arith.index_cast %275 : i32 to index
      %c2_250 = arith.constant 2 : index
      %c0_251 = arith.constant 0 : index
      %277 = vector.load %arg1[%c0_249, %276, %c2_250, %c0_251] : memref<1x20x20x32xbf16, #tpu.memory_space<vmem>>, vector<1x1x16x32xbf16>
      %278 = vector.shape_cast %277 : vector<1x1x16x32xbf16> to vector<16x32xbf16>
      %c7_252 = arith.constant 7 : index
      %c0_253 = arith.constant 0 : index
      %c0_254 = arith.constant 0 : index
      %279 = vector.load %arg2[%c7_252, %c0_253, %c0_254] : memref<25x32x32xbf16, #tpu.memory_space<vmem>>, vector<1x32x32xbf16>
      %280 = vector.shape_cast %279 : vector<1x32x32xbf16> to vector<32x32xbf16>
      %cst_255 = arith.constant dense<0.000000e+00> : vector<16x32xf32>
      %281 = tpu.matmul %278, %280, %cst_255 {dimension_numbers = #tpu.dot_dimension_numbers<[1], [0], [0], [1], [0, 0, 1, 1], [], []>} : vector<16x32xbf16>, vector<32x32xbf16>, vector<16x32xf32> -> vector<16x32xf32>
      %282 = arith.addf %274, %281 : vector<16x32xf32>
      %c1_i32_256 = arith.constant 1 : i32
      %283 = arith.addi %217, %c1_i32_256 : i32
      %c0_257 = arith.constant 0 : index
      %284 = arith.index_cast %283 : i32 to index
      %c3_258 = arith.constant 3 : index
      %c0_259 = arith.constant 0 : index
      %285 = vector.load %arg1[%c0_257, %284, %c3_258, %c0_259] : memref<1x20x20x32xbf16, #tpu.memory_space<vmem>>, vector<1x1x16x32xbf16>
      %286 = vector.shape_cast %285 : vector<1x1x16x32xbf16> to vector<16x32xbf16>
      %c8_260 = arith.constant 8 : index
      %c0_261 = arith.constant 0 : index
      %c0_262 = arith.constant 0 : index
      %287 = vector.load %arg2[%c8_260, %c0_261, %c0_262] : memref<25x32x32xbf16, #tpu.memory_space<vmem>>, vector<1x32x32xbf16>
      %288 = vector.shape_cast %287 : vector<1x32x32xbf16> to vector<32x32xbf16>
      %cst_263 = arith.constant dense<0.000000e+00> : vector<16x32xf32>
      %289 = tpu.matmul %286, %288, %cst_263 {dimension_numbers = #tpu.dot_dimension_numbers<[1], [0], [0], [1], [0, 0, 1, 1], [], []>} : vector<16x32xbf16>, vector<32x32xbf16>, vector<16x32xf32> -> vector<16x32xf32>
      %290 = arith.addf %282, %289 : vector<16x32xf32>
      %c1_i32_264 = arith.constant 1 : i32
      %291 = arith.addi %217, %c1_i32_264 : i32
      %c0_265 = arith.constant 0 : index
      %292 = arith.index_cast %291 : i32 to index
      %c4_266 = arith.constant 4 : index
      %c0_267 = arith.constant 0 : index
      %293 = vector.load %arg1[%c0_265, %292, %c4_266, %c0_267] : memref<1x20x20x32xbf16, #tpu.memory_space<vmem>>, vector<1x1x16x32xbf16>
      %294 = vector.shape_cast %293 : vector<1x1x16x32xbf16> to vector<16x32xbf16>
      %c9_268 = arith.constant 9 : index
      %c0_269 = arith.constant 0 : index
      %c0_270 = arith.constant 0 : index
      %295 = vector.load %arg2[%c9_268, %c0_269, %c0_270] : memref<25x32x32xbf16, #tpu.memory_space<vmem>>, vector<1x32x32xbf16>
      %296 = vector.shape_cast %295 : vector<1x32x32xbf16> to vector<32x32xbf16>
      %cst_271 = arith.constant dense<0.000000e+00> : vector<16x32xf32>
      %297 = tpu.matmul %294, %296, %cst_271 {dimension_numbers = #tpu.dot_dimension_numbers<[1], [0], [0], [1], [0, 0, 1, 1], [], []>} : vector<16x32xbf16>, vector<32x32xbf16>, vector<16x32xf32> -> vector<16x32xf32>
      %298 = arith.addf %290, %297 : vector<16x32xf32>
      %c2_i32_272 = arith.constant 2 : i32
      %299 = arith.addi %217, %c2_i32_272 : i32
      %c0_273 = arith.constant 0 : index
      %300 = arith.index_cast %299 : i32 to index
      %c0_274 = arith.constant 0 : index
      %c0_275 = arith.constant 0 : index
      %301 = vector.load %arg1[%c0_273, %300, %c0_274, %c0_275] : memref<1x20x20x32xbf16, #tpu.memory_space<vmem>>, vector<1x1x16x32xbf16>
      %302 = vector.shape_cast %301 : vector<1x1x16x32xbf16> to vector<16x32xbf16>
      %c10_276 = arith.constant 10 : index
      %c0_277 = arith.constant 0 : index
      %c0_278 = arith.constant 0 : index
      %303 = vector.load %arg2[%c10_276, %c0_277, %c0_278] : memref<25x32x32xbf16, #tpu.memory_space<vmem>>, vector<1x32x32xbf16>
      %304 = vector.shape_cast %303 : vector<1x32x32xbf16> to vector<32x32xbf16>
      %cst_279 = arith.constant dense<0.000000e+00> : vector<16x32xf32>
      %305 = tpu.matmul %302, %304, %cst_279 {dimension_numbers = #tpu.dot_dimension_numbers<[1], [0], [0], [1], [0, 0, 1, 1], [], []>} : vector<16x32xbf16>, vector<32x32xbf16>, vector<16x32xf32> -> vector<16x32xf32>
      %306 = arith.addf %298, %305 : vector<16x32xf32>
      %c2_i32_280 = arith.constant 2 : i32
      %307 = arith.addi %217, %c2_i32_280 : i32
      %c0_281 = arith.constant 0 : index
      %308 = arith.index_cast %307 : i32 to index
      %c1_282 = arith.constant 1 : index
      %c0_283 = arith.constant 0 : index
      %309 = vector.load %arg1[%c0_281, %308, %c1_282, %c0_283] : memref<1x20x20x32xbf16, #tpu.memory_space<vmem>>, vector<1x1x16x32xbf16>
      %310 = vector.shape_cast %309 : vector<1x1x16x32xbf16> to vector<16x32xbf16>
      %c11_284 = arith.constant 11 : index
      %c0_285 = arith.constant 0 : index
      %c0_286 = arith.constant 0 : index
      %311 = vector.load %arg2[%c11_284, %c0_285, %c0_286] : memref<25x32x32xbf16, #tpu.memory_space<vmem>>, vector<1x32x32xbf16>
      %312 = vector.shape_cast %311 : vector<1x32x32xbf16> to vector<32x32xbf16>
      %cst_287 = arith.constant dense<0.000000e+00> : vector<16x32xf32>
      %313 = tpu.matmul %310, %312, %cst_287 {dimension_numbers = #tpu.dot_dimension_numbers<[1], [0], [0], [1], [0, 0, 1, 1], [], []>} : vector<16x32xbf16>, vector<32x32xbf16>, vector<16x32xf32> -> vector<16x32xf32>
      %314 = arith.addf %306, %313 : vector<16x32xf32>
      %c2_i32_288 = arith.constant 2 : i32
      %315 = arith.addi %217, %c2_i32_288 : i32
      %c0_289 = arith.constant 0 : index
      %316 = arith.index_cast %315 : i32 to index
      %c2_290 = arith.constant 2 : index
      %c0_291 = arith.constant 0 : index
      %317 = vector.load %arg1[%c0_289, %316, %c2_290, %c0_291] : memref<1x20x20x32xbf16, #tpu.memory_space<vmem>>, vector<1x1x16x32xbf16>
      %318 = vector.shape_cast %317 : vector<1x1x16x32xbf16> to vector<16x32xbf16>
      %c12_292 = arith.constant 12 : index
      %c0_293 = arith.constant 0 : index
      %c0_294 = arith.constant 0 : index
      %319 = vector.load %arg2[%c12_292, %c0_293, %c0_294] : memref<25x32x32xbf16, #tpu.memory_space<vmem>>, vector<1x32x32xbf16>
      %320 = vector.shape_cast %319 : vector<1x32x32xbf16> to vector<32x32xbf16>
      %cst_295 = arith.constant dense<0.000000e+00> : vector<16x32xf32>
      %321 = tpu.matmul %318, %320, %cst_295 {dimension_numbers = #tpu.dot_dimension_numbers<[1], [0], [0], [1], [0, 0, 1, 1], [], []>} : vector<16x32xbf16>, vector<32x32xbf16>, vector<16x32xf32> -> vector<16x32xf32>
      %322 = arith.addf %314, %321 : vector<16x32xf32>
      %c2_i32_296 = arith.constant 2 : i32
      %323 = arith.addi %217, %c2_i32_296 : i32
      %c0_297 = arith.constant 0 : index
      %324 = arith.index_cast %323 : i32 to index
      %c3_298 = arith.constant 3 : index
      %c0_299 = arith.constant 0 : index
      %325 = vector.load %arg1[%c0_297, %324, %c3_298, %c0_299] : memref<1x20x20x32xbf16, #tpu.memory_space<vmem>>, vector<1x1x16x32xbf16>
      %326 = vector.shape_cast %325 : vector<1x1x16x32xbf16> to vector<16x32xbf16>
      %c13_300 = arith.constant 13 : index
      %c0_301 = arith.constant 0 : index
      %c0_302 = arith.constant 0 : index
      %327 = vector.load %arg2[%c13_300, %c0_301, %c0_302] : memref<25x32x32xbf16, #tpu.memory_space<vmem>>, vector<1x32x32xbf16>
      %328 = vector.shape_cast %327 : vector<1x32x32xbf16> to vector<32x32xbf16>
      %cst_303 = arith.constant dense<0.000000e+00> : vector<16x32xf32>
      %329 = tpu.matmul %326, %328, %cst_303 {dimension_numbers = #tpu.dot_dimension_numbers<[1], [0], [0], [1], [0, 0, 1, 1], [], []>} : vector<16x32xbf16>, vector<32x32xbf16>, vector<16x32xf32> -> vector<16x32xf32>
      %330 = arith.addf %322, %329 : vector<16x32xf32>
      %c2_i32_304 = arith.constant 2 : i32
      %331 = arith.addi %217, %c2_i32_304 : i32
      %c0_305 = arith.constant 0 : index
      %332 = arith.index_cast %331 : i32 to index
      %c4_306 = arith.constant 4 : index
      %c0_307 = arith.constant 0 : index
      %333 = vector.load %arg1[%c0_305, %332, %c4_306, %c0_307] : memref<1x20x20x32xbf16, #tpu.memory_space<vmem>>, vector<1x1x16x32xbf16>
      %334 = vector.shape_cast %333 : vector<1x1x16x32xbf16> to vector<16x32xbf16>
      %c14_308 = arith.constant 14 : index
      %c0_309 = arith.constant 0 : index
      %c0_310 = arith.constant 0 : index
      %335 = vector.load %arg2[%c14_308, %c0_309, %c0_310] : memref<25x32x32xbf16, #tpu.memory_space<vmem>>, vector<1x32x32xbf16>
      %336 = vector.shape_cast %335 : vector<1x32x32xbf16> to vector<32x32xbf16>
      %cst_311 = arith.constant dense<0.000000e+00> : vector<16x32xf32>
      %337 = tpu.matmul %334, %336, %cst_311 {dimension_numbers = #tpu.dot_dimension_numbers<[1], [0], [0], [1], [0, 0, 1, 1], [], []>} : vector<16x32xbf16>, vector<32x32xbf16>, vector<16x32xf32> -> vector<16x32xf32>
      %338 = arith.addf %330, %337 : vector<16x32xf32>
      %c3_i32_312 = arith.constant 3 : i32
      %339 = arith.addi %217, %c3_i32_312 : i32
      %c0_313 = arith.constant 0 : index
      %340 = arith.index_cast %339 : i32 to index
      %c0_314 = arith.constant 0 : index
      %c0_315 = arith.constant 0 : index
      %341 = vector.load %arg1[%c0_313, %340, %c0_314, %c0_315] : memref<1x20x20x32xbf16, #tpu.memory_space<vmem>>, vector<1x1x16x32xbf16>
      %342 = vector.shape_cast %341 : vector<1x1x16x32xbf16> to vector<16x32xbf16>
      %c15_316 = arith.constant 15 : index
      %c0_317 = arith.constant 0 : index
      %c0_318 = arith.constant 0 : index
      %343 = vector.load %arg2[%c15_316, %c0_317, %c0_318] : memref<25x32x32xbf16, #tpu.memory_space<vmem>>, vector<1x32x32xbf16>
      %344 = vector.shape_cast %343 : vector<1x32x32xbf16> to vector<32x32xbf16>
      %cst_319 = arith.constant dense<0.000000e+00> : vector<16x32xf32>
      %345 = tpu.matmul %342, %344, %cst_319 {dimension_numbers = #tpu.dot_dimension_numbers<[1], [0], [0], [1], [0, 0, 1, 1], [], []>} : vector<16x32xbf16>, vector<32x32xbf16>, vector<16x32xf32> -> vector<16x32xf32>
      %346 = arith.addf %338, %345 : vector<16x32xf32>
      %c3_i32_320 = arith.constant 3 : i32
      %347 = arith.addi %217, %c3_i32_320 : i32
      %c0_321 = arith.constant 0 : index
      %348 = arith.index_cast %347 : i32 to index
      %c1_322 = arith.constant 1 : index
      %c0_323 = arith.constant 0 : index
      %349 = vector.load %arg1[%c0_321, %348, %c1_322, %c0_323] : memref<1x20x20x32xbf16, #tpu.memory_space<vmem>>, vector<1x1x16x32xbf16>
      %350 = vector.shape_cast %349 : vector<1x1x16x32xbf16> to vector<16x32xbf16>
      %c16_324 = arith.constant 16 : index
      %c0_325 = arith.constant 0 : index
      %c0_326 = arith.constant 0 : index
      %351 = vector.load %arg2[%c16_324, %c0_325, %c0_326] : memref<25x32x32xbf16, #tpu.memory_space<vmem>>, vector<1x32x32xbf16>
      %352 = vector.shape_cast %351 : vector<1x32x32xbf16> to vector<32x32xbf16>
      %cst_327 = arith.constant dense<0.000000e+00> : vector<16x32xf32>
      %353 = tpu.matmul %350, %352, %cst_327 {dimension_numbers = #tpu.dot_dimension_numbers<[1], [0], [0], [1], [0, 0, 1, 1], [], []>} : vector<16x32xbf16>, vector<32x32xbf16>, vector<16x32xf32> -> vector<16x32xf32>
      %354 = arith.addf %346, %353 : vector<16x32xf32>
      %c3_i32_328 = arith.constant 3 : i32
      %355 = arith.addi %217, %c3_i32_328 : i32
      %c0_329 = arith.constant 0 : index
      %356 = arith.index_cast %355 : i32 to index
      %c2_330 = arith.constant 2 : index
      %c0_331 = arith.constant 0 : index
      %357 = vector.load %arg1[%c0_329, %356, %c2_330, %c0_331] : memref<1x20x20x32xbf16, #tpu.memory_space<vmem>>, vector<1x1x16x32xbf16>
      %358 = vector.shape_cast %357 : vector<1x1x16x32xbf16> to vector<16x32xbf16>
      %c17_332 = arith.constant 17 : index
      %c0_333 = arith.constant 0 : index
      %c0_334 = arith.constant 0 : index
      %359 = vector.load %arg2[%c17_332, %c0_333, %c0_334] : memref<25x32x32xbf16, #tpu.memory_space<vmem>>, vector<1x32x32xbf16>
      %360 = vector.shape_cast %359 : vector<1x32x32xbf16> to vector<32x32xbf16>
      %cst_335 = arith.constant dense<0.000000e+00> : vector<16x32xf32>
      %361 = tpu.matmul %358, %360, %cst_335 {dimension_numbers = #tpu.dot_dimension_numbers<[1], [0], [0], [1], [0, 0, 1, 1], [], []>} : vector<16x32xbf16>, vector<32x32xbf16>, vector<16x32xf32> -> vector<16x32xf32>
      %362 = arith.addf %354, %361 : vector<16x32xf32>
      %c3_i32_336 = arith.constant 3 : i32
      %363 = arith.addi %217, %c3_i32_336 : i32
      %c0_337 = arith.constant 0 : index
      %364 = arith.index_cast %363 : i32 to index
      %c3_338 = arith.constant 3 : index
      %c0_339 = arith.constant 0 : index
      %365 = vector.load %arg1[%c0_337, %364, %c3_338, %c0_339] : memref<1x20x20x32xbf16, #tpu.memory_space<vmem>>, vector<1x1x16x32xbf16>
      %366 = vector.shape_cast %365 : vector<1x1x16x32xbf16> to vector<16x32xbf16>
      %c18_340 = arith.constant 18 : index
      %c0_341 = arith.constant 0 : index
      %c0_342 = arith.constant 0 : index
      %367 = vector.load %arg2[%c18_340, %c0_341, %c0_342] : memref<25x32x32xbf16, #tpu.memory_space<vmem>>, vector<1x32x32xbf16>
      %368 = vector.shape_cast %367 : vector<1x32x32xbf16> to vector<32x32xbf16>
      %cst_343 = arith.constant dense<0.000000e+00> : vector<16x32xf32>
      %369 = tpu.matmul %366, %368, %cst_343 {dimension_numbers = #tpu.dot_dimension_numbers<[1], [0], [0], [1], [0, 0, 1, 1], [], []>} : vector<16x32xbf16>, vector<32x32xbf16>, vector<16x32xf32> -> vector<16x32xf32>
      %370 = arith.addf %362, %369 : vector<16x32xf32>
      %c3_i32_344 = arith.constant 3 : i32
      %371 = arith.addi %217, %c3_i32_344 : i32
      %c0_345 = arith.constant 0 : index
      %372 = arith.index_cast %371 : i32 to index
      %c4_346 = arith.constant 4 : index
      %c0_347 = arith.constant 0 : index
      %373 = vector.load %arg1[%c0_345, %372, %c4_346, %c0_347] : memref<1x20x20x32xbf16, #tpu.memory_space<vmem>>, vector<1x1x16x32xbf16>
      %374 = vector.shape_cast %373 : vector<1x1x16x32xbf16> to vector<16x32xbf16>
      %c19_348 = arith.constant 19 : index
      %c0_349 = arith.constant 0 : index
      %c0_350 = arith.constant 0 : index
      %375 = vector.load %arg2[%c19_348, %c0_349, %c0_350] : memref<25x32x32xbf16, #tpu.memory_space<vmem>>, vector<1x32x32xbf16>
      %376 = vector.shape_cast %375 : vector<1x32x32xbf16> to vector<32x32xbf16>
      %cst_351 = arith.constant dense<0.000000e+00> : vector<16x32xf32>
      %377 = tpu.matmul %374, %376, %cst_351 {dimension_numbers = #tpu.dot_dimension_numbers<[1], [0], [0], [1], [0, 0, 1, 1], [], []>} : vector<16x32xbf16>, vector<32x32xbf16>, vector<16x32xf32> -> vector<16x32xf32>
      %378 = arith.addf %370, %377 : vector<16x32xf32>
      %c4_i32_352 = arith.constant 4 : i32
      %379 = arith.addi %217, %c4_i32_352 : i32
      %c0_353 = arith.constant 0 : index
      %380 = arith.index_cast %379 : i32 to index
      %c0_354 = arith.constant 0 : index
      %c0_355 = arith.constant 0 : index
      %381 = vector.load %arg1[%c0_353, %380, %c0_354, %c0_355] : memref<1x20x20x32xbf16, #tpu.memory_space<vmem>>, vector<1x1x16x32xbf16>
      %382 = vector.shape_cast %381 : vector<1x1x16x32xbf16> to vector<16x32xbf16>
      %c20_356 = arith.constant 20 : index
      %c0_357 = arith.constant 0 : index
      %c0_358 = arith.constant 0 : index
      %383 = vector.load %arg2[%c20_356, %c0_357, %c0_358] : memref<25x32x32xbf16, #tpu.memory_space<vmem>>, vector<1x32x32xbf16>
      %384 = vector.shape_cast %383 : vector<1x32x32xbf16> to vector<32x32xbf16>
      %cst_359 = arith.constant dense<0.000000e+00> : vector<16x32xf32>
      %385 = tpu.matmul %382, %384, %cst_359 {dimension_numbers = #tpu.dot_dimension_numbers<[1], [0], [0], [1], [0, 0, 1, 1], [], []>} : vector<16x32xbf16>, vector<32x32xbf16>, vector<16x32xf32> -> vector<16x32xf32>
      %386 = arith.addf %378, %385 : vector<16x32xf32>
      %c4_i32_360 = arith.constant 4 : i32
      %387 = arith.addi %217, %c4_i32_360 : i32
      %c0_361 = arith.constant 0 : index
      %388 = arith.index_cast %387 : i32 to index
      %c1_362 = arith.constant 1 : index
      %c0_363 = arith.constant 0 : index
      %389 = vector.load %arg1[%c0_361, %388, %c1_362, %c0_363] : memref<1x20x20x32xbf16, #tpu.memory_space<vmem>>, vector<1x1x16x32xbf16>
      %390 = vector.shape_cast %389 : vector<1x1x16x32xbf16> to vector<16x32xbf16>
      %c21_364 = arith.constant 21 : index
      %c0_365 = arith.constant 0 : index
      %c0_366 = arith.constant 0 : index
      %391 = vector.load %arg2[%c21_364, %c0_365, %c0_366] : memref<25x32x32xbf16, #tpu.memory_space<vmem>>, vector<1x32x32xbf16>
      %392 = vector.shape_cast %391 : vector<1x32x32xbf16> to vector<32x32xbf16>
      %cst_367 = arith.constant dense<0.000000e+00> : vector<16x32xf32>
      %393 = tpu.matmul %390, %392, %cst_367 {dimension_numbers = #tpu.dot_dimension_numbers<[1], [0], [0], [1], [0, 0, 1, 1], [], []>} : vector<16x32xbf16>, vector<32x32xbf16>, vector<16x32xf32> -> vector<16x32xf32>
      %394 = arith.addf %386, %393 : vector<16x32xf32>
      %c4_i32_368 = arith.constant 4 : i32
      %395 = arith.addi %217, %c4_i32_368 : i32
      %c0_369 = arith.constant 0 : index
      %396 = arith.index_cast %395 : i32 to index
      %c2_370 = arith.constant 2 : index
      %c0_371 = arith.constant 0 : index
      %397 = vector.load %arg1[%c0_369, %396, %c2_370, %c0_371] : memref<1x20x20x32xbf16, #tpu.memory_space<vmem>>, vector<1x1x16x32xbf16>
      %398 = vector.shape_cast %397 : vector<1x1x16x32xbf16> to vector<16x32xbf16>
      %c22_372 = arith.constant 22 : index
      %c0_373 = arith.constant 0 : index
      %c0_374 = arith.constant 0 : index
      %399 = vector.load %arg2[%c22_372, %c0_373, %c0_374] : memref<25x32x32xbf16, #tpu.memory_space<vmem>>, vector<1x32x32xbf16>
      %400 = vector.shape_cast %399 : vector<1x32x32xbf16> to vector<32x32xbf16>
      %cst_375 = arith.constant dense<0.000000e+00> : vector<16x32xf32>
      %401 = tpu.matmul %398, %400, %cst_375 {dimension_numbers = #tpu.dot_dimension_numbers<[1], [0], [0], [1], [0, 0, 1, 1], [], []>} : vector<16x32xbf16>, vector<32x32xbf16>, vector<16x32xf32> -> vector<16x32xf32>
      %402 = arith.addf %394, %401 : vector<16x32xf32>
      %c4_i32_376 = arith.constant 4 : i32
      %403 = arith.addi %217, %c4_i32_376 : i32
      %c0_377 = arith.constant 0 : index
      %404 = arith.index_cast %403 : i32 to index
      %c3_378 = arith.constant 3 : index
      %c0_379 = arith.constant 0 : index
      %405 = vector.load %arg1[%c0_377, %404, %c3_378, %c0_379] : memref<1x20x20x32xbf16, #tpu.memory_space<vmem>>, vector<1x1x16x32xbf16>
      %406 = vector.shape_cast %405 : vector<1x1x16x32xbf16> to vector<16x32xbf16>
      %c23_380 = arith.constant 23 : index
      %c0_381 = arith.constant 0 : index
      %c0_382 = arith.constant 0 : index
      %407 = vector.load %arg2[%c23_380, %c0_381, %c0_382] : memref<25x32x32xbf16, #tpu.memory_space<vmem>>, vector<1x32x32xbf16>
      %408 = vector.shape_cast %407 : vector<1x32x32xbf16> to vector<32x32xbf16>
      %cst_383 = arith.constant dense<0.000000e+00> : vector<16x32xf32>
      %409 = tpu.matmul %406, %408, %cst_383 {dimension_numbers = #tpu.dot_dimension_numbers<[1], [0], [0], [1], [0, 0, 1, 1], [], []>} : vector<16x32xbf16>, vector<32x32xbf16>, vector<16x32xf32> -> vector<16x32xf32>
      %410 = arith.addf %402, %409 : vector<16x32xf32>
      %c4_i32_384 = arith.constant 4 : i32
      %411 = arith.addi %217, %c4_i32_384 : i32
      %c0_385 = arith.constant 0 : index
      %412 = arith.index_cast %411 : i32 to index
      %c4_386 = arith.constant 4 : index
      %c0_387 = arith.constant 0 : index
      %413 = vector.load %arg1[%c0_385, %412, %c4_386, %c0_387] : memref<1x20x20x32xbf16, #tpu.memory_space<vmem>>, vector<1x1x16x32xbf16>
      %414 = vector.shape_cast %413 : vector<1x1x16x32xbf16> to vector<16x32xbf16>
      %c24_388 = arith.constant 24 : index
      %c0_389 = arith.constant 0 : index
      %c0_390 = arith.constant 0 : index
      %415 = vector.load %arg2[%c24_388, %c0_389, %c0_390] : memref<25x32x32xbf16, #tpu.memory_space<vmem>>, vector<1x32x32xbf16>
      %416 = vector.shape_cast %415 : vector<1x32x32xbf16> to vector<32x32xbf16>
      %cst_391 = arith.constant dense<0.000000e+00> : vector<16x32xf32>
      %417 = tpu.matmul %414, %416, %cst_391 {dimension_numbers = #tpu.dot_dimension_numbers<[1], [0], [0], [1], [0, 0, 1, 1], [], []>} : vector<16x32xbf16>, vector<32x32xbf16>, vector<16x32xf32> -> vector<16x32xf32>
      %418 = arith.addf %410, %417 : vector<16x32xf32>
      %419 = arith.maximumf %215, %418 : vector<16x32xf32>
      %420 = arith.index_cast %arg6 : i32 to index
      %c0_392 = arith.constant 0 : index
      %c0_393 = arith.constant 0 : index
      %421 = vector.load %arg5[%420, %c0_392, %c0_393] : memref<8x16x32xf32, #tpu.memory_space<vmem>>, vector<1x16x32xf32>
      %422 = vector.shape_cast %421 : vector<1x16x32xf32> to vector<16x32xf32>
      %423 = vector.shape_cast %419 : vector<16x32xf32> to vector<1x16x32xf32>
      tpu.vector_store %arg5[%420, %c0_392, %c0_393], %423 {strides = array<i32>} : memref<8x16x32xf32, #tpu.memory_space<vmem>>, vector<1x16x32xf32>,
    }
    %c8_i32_0 = arith.constant 8 : i32
    %c0 = arith.constant 0 : index
    %c0_1 = arith.constant 0 : index
    %c0_2 = arith.constant 0 : index
    %1 = tpu.strided_load %arg5[%c0, %c0_1, %c0_2] {strides = array<i32: 1, 2, 1>} : memref<8x16x32xf32, #tpu.memory_space<vmem>>, vector<8x8x32xf32>
    %c0_3 = arith.constant 0 : index
    %c1 = arith.constant 1 : index
    %c0_4 = arith.constant 0 : index
    %2 = tpu.strided_load %arg5[%c0_3, %c1, %c0_4] {strides = array<i32: 1, 2, 1>} : memref<8x16x32xf32, #tpu.memory_space<vmem>>, vector<8x8x32xf32>
    %3 = arith.maximumf %1, %2 : vector<8x8x32xf32>
    %c0_5 = arith.constant 0 : index
    %c0_6 = arith.constant 0 : index
    %c0_7 = arith.constant 0 : index
    %4 = vector.load %arg3[%c0_5, %c0_6, %c0_7] : memref<1x1x32xf32, #tpu.memory_space<vmem>>, vector<1x1x32xf32>
    %5 = vector.broadcast %4 : vector<1x1x32xf32> to vector<8x8x32xf32>
    %6 = arith.addf %3, %5 : vector<8x8x32xf32>
    %cst = arith.constant 0.000000e+00 : f32
    %7 = vector.broadcast %cst : f32 to vector<8x8x32xf32>
    %8 = arith.maximumf %6, %7 : vector<8x8x32xf32>
    %9 = arith.truncf %8 : vector<8x8x32xf32> to vector<8x8x32xbf16>
    %c0_8 = arith.constant 0 : index
    %c0_9 = arith.constant 0 : index
    %c0_10 = arith.constant 0 : index
    %c0_11 = arith.constant 0 : index
    %10 = vector.load %arg4[%c0_8, %c0_9, %c0_10, %c0_11] : memref<1x8x8x32xbf16, #tpu.memory_space<vmem>>, vector<1x8x8x32xbf16>
    %11 = vector.shape_cast %10 : vector<1x8x8x32xbf16> to vector<8x8x32xbf16>
    %12 = vector.shape_cast %9 : vector<8x8x32xbf16> to vector<1x8x8x32xbf16>
    tpu.vector_store %arg4[%c0_8, %c0_9, %c0_10, %c0_11], %12 {strides = array<i32>} : memref<1x8x8x32xbf16, #tpu.memory_space<vmem>>, vector<1x8x8x32xbf16>,
    return
  }
  func.func @transform_0(%arg0: i32) -> (i32, i32, i32, i32) {
    %c0_i32 = arith.constant 0 : i32
    %c0_i32_0 = arith.constant 0 : i32
    %c0_i32_1 = arith.constant 0 : i32
    %c0_i32_2 = arith.constant 0 : i32
    return %arg0, %c0_i32, %c0_i32_0, %c0_i32_1 : i32, i32, i32, i32
  }
  func.func @transform_1(%arg0: i32) -> (i32, i32, i32) {
    %c0_i32 = arith.constant 0 : i32
    %c0_i32_0 = arith.constant 0 : i32
    %c0_i32_1 = arith.constant 0 : i32
    %c0_i32_2 = arith.constant 0 : i32
    return %c0_i32, %c0_i32_0, %c0_i32_1 : i32, i32, i32
  }
  func.func @transform_2(%arg0: i32) -> (i32, i32, i32) {
    %c0_i32 = arith.constant 0 : i32
    %c0_i32_0 = arith.constant 0 : i32
    %c0_i32_1 = arith.constant 0 : i32
    %c0_i32_2 = arith.constant 0 : i32
    return %c0_i32, %c0_i32_0, %c0_i32_1 : i32, i32, i32
  }
  func.func @transform_3(%arg0: i32) -> (i32, i32, i32, i32) {
    %c0_i32 = arith.constant 0 : i32
    %c0_i32_0 = arith.constant 0 : i32
    %c0_i32_1 = arith.constant 0 : i32
    %c0_i32_2 = arith.constant 0 : i32
    return %arg0, %c0_i32, %c0_i32_0, %c0_i32_1 : i32, i32, i32, i32
  }
}

module attributes {stable_mosaic.version = 11 : i64} {
  func.func @_conv_pool_kernel(%arg0: i32, %arg1: memref<1x10x10x32xbf16, #tpu.memory_space<vmem>>, %arg2: memref<9x32x64xbf16, #tpu.memory_space<vmem>>, %arg3: memref<1x1x64xf32, #tpu.memory_space<vmem>>, %arg4: memref<1x4x4x64xbf16, #tpu.memory_space<vmem>>, %arg5: memref<4x8x64xf32, #tpu.memory_space<vmem>>) attributes {dimension_semantics = [#tpu.dimension_semantics<parallel>], iteration_bounds = array<i64: 2>, scalar_prefetch = 0 : i64, scratch_operands = 1 : i64, tpu.core_type = #tpu.core_type<tc>, window_params = [{transform_indices = @transform_0, window_bounds = array<i64: 1, 10, 10, 32>}, {pipeline_mode = #tpu.pipeline_mode<synchronous>, transform_indices = @transform_1, window_bounds = array<i64: 9, 32, 64>}, {pipeline_mode = #tpu.pipeline_mode<synchronous>, transform_indices = @transform_2, window_bounds = array<i64: 1, 1, 64>}, {transform_indices = @transform_3, window_bounds = array<i64: 1, 4, 4, 64>}]} {
    %c0_i32 = arith.constant 0 : i32
    %c4_i32 = arith.constant 4 : i32
    %0 = arith.addi %c0_i32, %c4_i32 : i32
    %c1_i32 = arith.constant 1 : i32
    scf.for %arg6 = %c0_i32 to %0 step %c1_i32  : i32 {
      %c2_i32 = arith.constant 2 : i32
      %13 = arith.muli %c2_i32, %arg6 : i32
      %c0_i32_12 = arith.constant 0 : i32
      %14 = arith.addi %13, %c0_i32_12 : i32
      %cst_13 = arith.constant 0.000000e+00 : f32
      %15 = vector.broadcast %cst_13 : f32 to vector<8x64xf32>
      %c0_i32_14 = arith.constant 0 : i32
      %16 = arith.addi %14, %c0_i32_14 : i32
      %c0_15 = arith.constant 0 : index
      %17 = arith.index_cast %16 : i32 to index
      %c0_16 = arith.constant 0 : index
      %c0_17 = arith.constant 0 : index
      %18 = vector.load %arg1[%c0_15, %17, %c0_16, %c0_17] : memref<1x10x10x32xbf16, #tpu.memory_space<vmem>>, vector<1x1x8x32xbf16>
      %19 = vector.shape_cast %18 : vector<1x1x8x32xbf16> to vector<8x32xbf16>
      %c0_18 = arith.constant 0 : index
      %c0_19 = arith.constant 0 : index
      %c0_20 = arith.constant 0 : index
      %20 = vector.load %arg2[%c0_18, %c0_19, %c0_20] : memref<9x32x64xbf16, #tpu.memory_space<vmem>>, vector<1x32x64xbf16>
      %21 = vector.shape_cast %20 : vector<1x32x64xbf16> to vector<32x64xbf16>
      %cst_21 = arith.constant dense<0.000000e+00> : vector<8x64xf32>
      %22 = tpu.matmul %19, %21, %cst_21 {dimension_numbers = #tpu.dot_dimension_numbers<[1], [0], [0], [1], [0, 0, 1, 1], [], []>} : vector<8x32xbf16>, vector<32x64xbf16>, vector<8x64xf32> -> vector<8x64xf32>
      %23 = arith.addf %15, %22 : vector<8x64xf32>
      %c0_i32_22 = arith.constant 0 : i32
      %24 = arith.addi %14, %c0_i32_22 : i32
      %c0_23 = arith.constant 0 : index
      %25 = arith.index_cast %24 : i32 to index
      %c1_24 = arith.constant 1 : index
      %c0_25 = arith.constant 0 : index
      %26 = vector.load %arg1[%c0_23, %25, %c1_24, %c0_25] : memref<1x10x10x32xbf16, #tpu.memory_space<vmem>>, vector<1x1x8x32xbf16>
      %27 = vector.shape_cast %26 : vector<1x1x8x32xbf16> to vector<8x32xbf16>
      %c1_26 = arith.constant 1 : index
      %c0_27 = arith.constant 0 : index
      %c0_28 = arith.constant 0 : index
      %28 = vector.load %arg2[%c1_26, %c0_27, %c0_28] : memref<9x32x64xbf16, #tpu.memory_space<vmem>>, vector<1x32x64xbf16>
      %29 = vector.shape_cast %28 : vector<1x32x64xbf16> to vector<32x64xbf16>
      %cst_29 = arith.constant dense<0.000000e+00> : vector<8x64xf32>
      %30 = tpu.matmul %27, %29, %cst_29 {dimension_numbers = #tpu.dot_dimension_numbers<[1], [0], [0], [1], [0, 0, 1, 1], [], []>} : vector<8x32xbf16>, vector<32x64xbf16>, vector<8x64xf32> -> vector<8x64xf32>
      %31 = arith.addf %23, %30 : vector<8x64xf32>
      %c0_i32_30 = arith.constant 0 : i32
      %32 = arith.addi %14, %c0_i32_30 : i32
      %c0_31 = arith.constant 0 : index
      %33 = arith.index_cast %32 : i32 to index
      %c2 = arith.constant 2 : index
      %c0_32 = arith.constant 0 : index
      %34 = vector.load %arg1[%c0_31, %33, %c2, %c0_32] : memref<1x10x10x32xbf16, #tpu.memory_space<vmem>>, vector<1x1x8x32xbf16>
      %35 = vector.shape_cast %34 : vector<1x1x8x32xbf16> to vector<8x32xbf16>
      %c2_33 = arith.constant 2 : index
      %c0_34 = arith.constant 0 : index
      %c0_35 = arith.constant 0 : index
      %36 = vector.load %arg2[%c2_33, %c0_34, %c0_35] : memref<9x32x64xbf16, #tpu.memory_space<vmem>>, vector<1x32x64xbf16>
      %37 = vector.shape_cast %36 : vector<1x32x64xbf16> to vector<32x64xbf16>
      %cst_36 = arith.constant dense<0.000000e+00> : vector<8x64xf32>
      %38 = tpu.matmul %35, %37, %cst_36 {dimension_numbers = #tpu.dot_dimension_numbers<[1], [0], [0], [1], [0, 0, 1, 1], [], []>} : vector<8x32xbf16>, vector<32x64xbf16>, vector<8x64xf32> -> vector<8x64xf32>
      %39 = arith.addf %31, %38 : vector<8x64xf32>
      %c1_i32_37 = arith.constant 1 : i32
      %40 = arith.addi %14, %c1_i32_37 : i32
      %c0_38 = arith.constant 0 : index
      %41 = arith.index_cast %40 : i32 to index
      %c0_39 = arith.constant 0 : index
      %c0_40 = arith.constant 0 : index
      %42 = vector.load %arg1[%c0_38, %41, %c0_39, %c0_40] : memref<1x10x10x32xbf16, #tpu.memory_space<vmem>>, vector<1x1x8x32xbf16>
      %43 = vector.shape_cast %42 : vector<1x1x8x32xbf16> to vector<8x32xbf16>
      %c3 = arith.constant 3 : index
      %c0_41 = arith.constant 0 : index
      %c0_42 = arith.constant 0 : index
      %44 = vector.load %arg2[%c3, %c0_41, %c0_42] : memref<9x32x64xbf16, #tpu.memory_space<vmem>>, vector<1x32x64xbf16>
      %45 = vector.shape_cast %44 : vector<1x32x64xbf16> to vector<32x64xbf16>
      %cst_43 = arith.constant dense<0.000000e+00> : vector<8x64xf32>
      %46 = tpu.matmul %43, %45, %cst_43 {dimension_numbers = #tpu.dot_dimension_numbers<[1], [0], [0], [1], [0, 0, 1, 1], [], []>} : vector<8x32xbf16>, vector<32x64xbf16>, vector<8x64xf32> -> vector<8x64xf32>
      %47 = arith.addf %39, %46 : vector<8x64xf32>
      %c1_i32_44 = arith.constant 1 : i32
      %48 = arith.addi %14, %c1_i32_44 : i32
      %c0_45 = arith.constant 0 : index
      %49 = arith.index_cast %48 : i32 to index
      %c1_46 = arith.constant 1 : index
      %c0_47 = arith.constant 0 : index
      %50 = vector.load %arg1[%c0_45, %49, %c1_46, %c0_47] : memref<1x10x10x32xbf16, #tpu.memory_space<vmem>>, vector<1x1x8x32xbf16>
      %51 = vector.shape_cast %50 : vector<1x1x8x32xbf16> to vector<8x32xbf16>
      %c4 = arith.constant 4 : index
      %c0_48 = arith.constant 0 : index
      %c0_49 = arith.constant 0 : index
      %52 = vector.load %arg2[%c4, %c0_48, %c0_49] : memref<9x32x64xbf16, #tpu.memory_space<vmem>>, vector<1x32x64xbf16>
      %53 = vector.shape_cast %52 : vector<1x32x64xbf16> to vector<32x64xbf16>
      %cst_50 = arith.constant dense<0.000000e+00> : vector<8x64xf32>
      %54 = tpu.matmul %51, %53, %cst_50 {dimension_numbers = #tpu.dot_dimension_numbers<[1], [0], [0], [1], [0, 0, 1, 1], [], []>} : vector<8x32xbf16>, vector<32x64xbf16>, vector<8x64xf32> -> vector<8x64xf32>
      %55 = arith.addf %47, %54 : vector<8x64xf32>
      %c1_i32_51 = arith.constant 1 : i32
      %56 = arith.addi %14, %c1_i32_51 : i32
      %c0_52 = arith.constant 0 : index
      %57 = arith.index_cast %56 : i32 to index
      %c2_53 = arith.constant 2 : index
      %c0_54 = arith.constant 0 : index
      %58 = vector.load %arg1[%c0_52, %57, %c2_53, %c0_54] : memref<1x10x10x32xbf16, #tpu.memory_space<vmem>>, vector<1x1x8x32xbf16>
      %59 = vector.shape_cast %58 : vector<1x1x8x32xbf16> to vector<8x32xbf16>
      %c5 = arith.constant 5 : index
      %c0_55 = arith.constant 0 : index
      %c0_56 = arith.constant 0 : index
      %60 = vector.load %arg2[%c5, %c0_55, %c0_56] : memref<9x32x64xbf16, #tpu.memory_space<vmem>>, vector<1x32x64xbf16>
      %61 = vector.shape_cast %60 : vector<1x32x64xbf16> to vector<32x64xbf16>
      %cst_57 = arith.constant dense<0.000000e+00> : vector<8x64xf32>
      %62 = tpu.matmul %59, %61, %cst_57 {dimension_numbers = #tpu.dot_dimension_numbers<[1], [0], [0], [1], [0, 0, 1, 1], [], []>} : vector<8x32xbf16>, vector<32x64xbf16>, vector<8x64xf32> -> vector<8x64xf32>
      %63 = arith.addf %55, %62 : vector<8x64xf32>
      %c2_i32_58 = arith.constant 2 : i32
      %64 = arith.addi %14, %c2_i32_58 : i32
      %c0_59 = arith.constant 0 : index
      %65 = arith.index_cast %64 : i32 to index
      %c0_60 = arith.constant 0 : index
      %c0_61 = arith.constant 0 : index
      %66 = vector.load %arg1[%c0_59, %65, %c0_60, %c0_61] : memref<1x10x10x32xbf16, #tpu.memory_space<vmem>>, vector<1x1x8x32xbf16>
      %67 = vector.shape_cast %66 : vector<1x1x8x32xbf16> to vector<8x32xbf16>
      %c6 = arith.constant 6 : index
      %c0_62 = arith.constant 0 : index
      %c0_63 = arith.constant 0 : index
      %68 = vector.load %arg2[%c6, %c0_62, %c0_63] : memref<9x32x64xbf16, #tpu.memory_space<vmem>>, vector<1x32x64xbf16>
      %69 = vector.shape_cast %68 : vector<1x32x64xbf16> to vector<32x64xbf16>
      %cst_64 = arith.constant dense<0.000000e+00> : vector<8x64xf32>
      %70 = tpu.matmul %67, %69, %cst_64 {dimension_numbers = #tpu.dot_dimension_numbers<[1], [0], [0], [1], [0, 0, 1, 1], [], []>} : vector<8x32xbf16>, vector<32x64xbf16>, vector<8x64xf32> -> vector<8x64xf32>
      %71 = arith.addf %63, %70 : vector<8x64xf32>
      %c2_i32_65 = arith.constant 2 : i32
      %72 = arith.addi %14, %c2_i32_65 : i32
      %c0_66 = arith.constant 0 : index
      %73 = arith.index_cast %72 : i32 to index
      %c1_67 = arith.constant 1 : index
      %c0_68 = arith.constant 0 : index
      %74 = vector.load %arg1[%c0_66, %73, %c1_67, %c0_68] : memref<1x10x10x32xbf16, #tpu.memory_space<vmem>>, vector<1x1x8x32xbf16>
      %75 = vector.shape_cast %74 : vector<1x1x8x32xbf16> to vector<8x32xbf16>
      %c7 = arith.constant 7 : index
      %c0_69 = arith.constant 0 : index
      %c0_70 = arith.constant 0 : index
      %76 = vector.load %arg2[%c7, %c0_69, %c0_70] : memref<9x32x64xbf16, #tpu.memory_space<vmem>>, vector<1x32x64xbf16>
      %77 = vector.shape_cast %76 : vector<1x32x64xbf16> to vector<32x64xbf16>
      %cst_71 = arith.constant dense<0.000000e+00> : vector<8x64xf32>
      %78 = tpu.matmul %75, %77, %cst_71 {dimension_numbers = #tpu.dot_dimension_numbers<[1], [0], [0], [1], [0, 0, 1, 1], [], []>} : vector<8x32xbf16>, vector<32x64xbf16>, vector<8x64xf32> -> vector<8x64xf32>
      %79 = arith.addf %71, %78 : vector<8x64xf32>
      %c2_i32_72 = arith.constant 2 : i32
      %80 = arith.addi %14, %c2_i32_72 : i32
      %c0_73 = arith.constant 0 : index
      %81 = arith.index_cast %80 : i32 to index
      %c2_74 = arith.constant 2 : index
      %c0_75 = arith.constant 0 : index
      %82 = vector.load %arg1[%c0_73, %81, %c2_74, %c0_75] : memref<1x10x10x32xbf16, #tpu.memory_space<vmem>>, vector<1x1x8x32xbf16>
      %83 = vector.shape_cast %82 : vector<1x1x8x32xbf16> to vector<8x32xbf16>
      %c8 = arith.constant 8 : index
      %c0_76 = arith.constant 0 : index
      %c0_77 = arith.constant 0 : index
      %84 = vector.load %arg2[%c8, %c0_76, %c0_77] : memref<9x32x64xbf16, #tpu.memory_space<vmem>>, vector<1x32x64xbf16>
      %85 = vector.shape_cast %84 : vector<1x32x64xbf16> to vector<32x64xbf16>
      %cst_78 = arith.constant dense<0.000000e+00> : vector<8x64xf32>
      %86 = tpu.matmul %83, %85, %cst_78 {dimension_numbers = #tpu.dot_dimension_numbers<[1], [0], [0], [1], [0, 0, 1, 1], [], []>} : vector<8x32xbf16>, vector<32x64xbf16>, vector<8x64xf32> -> vector<8x64xf32>
      %87 = arith.addf %79, %86 : vector<8x64xf32>
      %c2_i32_79 = arith.constant 2 : i32
      %88 = arith.muli %c2_i32_79, %arg6 : i32
      %c1_i32_80 = arith.constant 1 : i32
      %89 = arith.addi %88, %c1_i32_80 : i32
      %cst_81 = arith.constant 0.000000e+00 : f32
      %90 = vector.broadcast %cst_81 : f32 to vector<8x64xf32>
      %c0_i32_82 = arith.constant 0 : i32
      %91 = arith.addi %89, %c0_i32_82 : i32
      %c0_83 = arith.constant 0 : index
      %92 = arith.index_cast %91 : i32 to index
      %c0_84 = arith.constant 0 : index
      %c0_85 = arith.constant 0 : index
      %93 = vector.load %arg1[%c0_83, %92, %c0_84, %c0_85] : memref<1x10x10x32xbf16, #tpu.memory_space<vmem>>, vector<1x1x8x32xbf16>
      %94 = vector.shape_cast %93 : vector<1x1x8x32xbf16> to vector<8x32xbf16>
      %c0_86 = arith.constant 0 : index
      %c0_87 = arith.constant 0 : index
      %c0_88 = arith.constant 0 : index
      %95 = vector.load %arg2[%c0_86, %c0_87, %c0_88] : memref<9x32x64xbf16, #tpu.memory_space<vmem>>, vector<1x32x64xbf16>
      %96 = vector.shape_cast %95 : vector<1x32x64xbf16> to vector<32x64xbf16>
      %cst_89 = arith.constant dense<0.000000e+00> : vector<8x64xf32>
      %97 = tpu.matmul %94, %96, %cst_89 {dimension_numbers = #tpu.dot_dimension_numbers<[1], [0], [0], [1], [0, 0, 1, 1], [], []>} : vector<8x32xbf16>, vector<32x64xbf16>, vector<8x64xf32> -> vector<8x64xf32>
      %98 = arith.addf %90, %97 : vector<8x64xf32>
      %c0_i32_90 = arith.constant 0 : i32
      %99 = arith.addi %89, %c0_i32_90 : i32
      %c0_91 = arith.constant 0 : index
      %100 = arith.index_cast %99 : i32 to index
      %c1_92 = arith.constant 1 : index
      %c0_93 = arith.constant 0 : index
      %101 = vector.load %arg1[%c0_91, %100, %c1_92, %c0_93] : memref<1x10x10x32xbf16, #tpu.memory_space<vmem>>, vector<1x1x8x32xbf16>
      %102 = vector.shape_cast %101 : vector<1x1x8x32xbf16> to vector<8x32xbf16>
      %c1_94 = arith.constant 1 : index
      %c0_95 = arith.constant 0 : index
      %c0_96 = arith.constant 0 : index
      %103 = vector.load %arg2[%c1_94, %c0_95, %c0_96] : memref<9x32x64xbf16, #tpu.memory_space<vmem>>, vector<1x32x64xbf16>
      %104 = vector.shape_cast %103 : vector<1x32x64xbf16> to vector<32x64xbf16>
      %cst_97 = arith.constant dense<0.000000e+00> : vector<8x64xf32>
      %105 = tpu.matmul %102, %104, %cst_97 {dimension_numbers = #tpu.dot_dimension_numbers<[1], [0], [0], [1], [0, 0, 1, 1], [], []>} : vector<8x32xbf16>, vector<32x64xbf16>, vector<8x64xf32> -> vector<8x64xf32>
      %106 = arith.addf %98, %105 : vector<8x64xf32>
      %c0_i32_98 = arith.constant 0 : i32
      %107 = arith.addi %89, %c0_i32_98 : i32
      %c0_99 = arith.constant 0 : index
      %108 = arith.index_cast %107 : i32 to index
      %c2_100 = arith.constant 2 : index
      %c0_101 = arith.constant 0 : index
      %109 = vector.load %arg1[%c0_99, %108, %c2_100, %c0_101] : memref<1x10x10x32xbf16, #tpu.memory_space<vmem>>, vector<1x1x8x32xbf16>
      %110 = vector.shape_cast %109 : vector<1x1x8x32xbf16> to vector<8x32xbf16>
      %c2_102 = arith.constant 2 : index
      %c0_103 = arith.constant 0 : index
      %c0_104 = arith.constant 0 : index
      %111 = vector.load %arg2[%c2_102, %c0_103, %c0_104] : memref<9x32x64xbf16, #tpu.memory_space<vmem>>, vector<1x32x64xbf16>
      %112 = vector.shape_cast %111 : vector<1x32x64xbf16> to vector<32x64xbf16>
      %cst_105 = arith.constant dense<0.000000e+00> : vector<8x64xf32>
      %113 = tpu.matmul %110, %112, %cst_105 {dimension_numbers = #tpu.dot_dimension_numbers<[1], [0], [0], [1], [0, 0, 1, 1], [], []>} : vector<8x32xbf16>, vector<32x64xbf16>, vector<8x64xf32> -> vector<8x64xf32>
      %114 = arith.addf %106, %113 : vector<8x64xf32>
      %c1_i32_106 = arith.constant 1 : i32
      %115 = arith.addi %89, %c1_i32_106 : i32
      %c0_107 = arith.constant 0 : index
      %116 = arith.index_cast %115 : i32 to index
      %c0_108 = arith.constant 0 : index
      %c0_109 = arith.constant 0 : index
      %117 = vector.load %arg1[%c0_107, %116, %c0_108, %c0_109] : memref<1x10x10x32xbf16, #tpu.memory_space<vmem>>, vector<1x1x8x32xbf16>
      %118 = vector.shape_cast %117 : vector<1x1x8x32xbf16> to vector<8x32xbf16>
      %c3_110 = arith.constant 3 : index
      %c0_111 = arith.constant 0 : index
      %c0_112 = arith.constant 0 : index
      %119 = vector.load %arg2[%c3_110, %c0_111, %c0_112] : memref<9x32x64xbf16, #tpu.memory_space<vmem>>, vector<1x32x64xbf16>
      %120 = vector.shape_cast %119 : vector<1x32x64xbf16> to vector<32x64xbf16>
      %cst_113 = arith.constant dense<0.000000e+00> : vector<8x64xf32>
      %121 = tpu.matmul %118, %120, %cst_113 {dimension_numbers = #tpu.dot_dimension_numbers<[1], [0], [0], [1], [0, 0, 1, 1], [], []>} : vector<8x32xbf16>, vector<32x64xbf16>, vector<8x64xf32> -> vector<8x64xf32>
      %122 = arith.addf %114, %121 : vector<8x64xf32>
      %c1_i32_114 = arith.constant 1 : i32
      %123 = arith.addi %89, %c1_i32_114 : i32
      %c0_115 = arith.constant 0 : index
      %124 = arith.index_cast %123 : i32 to index
      %c1_116 = arith.constant 1 : index
      %c0_117 = arith.constant 0 : index
      %125 = vector.load %arg1[%c0_115, %124, %c1_116, %c0_117] : memref<1x10x10x32xbf16, #tpu.memory_space<vmem>>, vector<1x1x8x32xbf16>
      %126 = vector.shape_cast %125 : vector<1x1x8x32xbf16> to vector<8x32xbf16>
      %c4_118 = arith.constant 4 : index
      %c0_119 = arith.constant 0 : index
      %c0_120 = arith.constant 0 : index
      %127 = vector.load %arg2[%c4_118, %c0_119, %c0_120] : memref<9x32x64xbf16, #tpu.memory_space<vmem>>, vector<1x32x64xbf16>
      %128 = vector.shape_cast %127 : vector<1x32x64xbf16> to vector<32x64xbf16>
      %cst_121 = arith.constant dense<0.000000e+00> : vector<8x64xf32>
      %129 = tpu.matmul %126, %128, %cst_121 {dimension_numbers = #tpu.dot_dimension_numbers<[1], [0], [0], [1], [0, 0, 1, 1], [], []>} : vector<8x32xbf16>, vector<32x64xbf16>, vector<8x64xf32> -> vector<8x64xf32>
      %130 = arith.addf %122, %129 : vector<8x64xf32>
      %c1_i32_122 = arith.constant 1 : i32
      %131 = arith.addi %89, %c1_i32_122 : i32
      %c0_123 = arith.constant 0 : index
      %132 = arith.index_cast %131 : i32 to index
      %c2_124 = arith.constant 2 : index
      %c0_125 = arith.constant 0 : index
      %133 = vector.load %arg1[%c0_123, %132, %c2_124, %c0_125] : memref<1x10x10x32xbf16, #tpu.memory_space<vmem>>, vector<1x1x8x32xbf16>
      %134 = vector.shape_cast %133 : vector<1x1x8x32xbf16> to vector<8x32xbf16>
      %c5_126 = arith.constant 5 : index
      %c0_127 = arith.constant 0 : index
      %c0_128 = arith.constant 0 : index
      %135 = vector.load %arg2[%c5_126, %c0_127, %c0_128] : memref<9x32x64xbf16, #tpu.memory_space<vmem>>, vector<1x32x64xbf16>
      %136 = vector.shape_cast %135 : vector<1x32x64xbf16> to vector<32x64xbf16>
      %cst_129 = arith.constant dense<0.000000e+00> : vector<8x64xf32>
      %137 = tpu.matmul %134, %136, %cst_129 {dimension_numbers = #tpu.dot_dimension_numbers<[1], [0], [0], [1], [0, 0, 1, 1], [], []>} : vector<8x32xbf16>, vector<32x64xbf16>, vector<8x64xf32> -> vector<8x64xf32>
      %138 = arith.addf %130, %137 : vector<8x64xf32>
      %c2_i32_130 = arith.constant 2 : i32
      %139 = arith.addi %89, %c2_i32_130 : i32
      %c0_131 = arith.constant 0 : index
      %140 = arith.index_cast %139 : i32 to index
      %c0_132 = arith.constant 0 : index
      %c0_133 = arith.constant 0 : index
      %141 = vector.load %arg1[%c0_131, %140, %c0_132, %c0_133] : memref<1x10x10x32xbf16, #tpu.memory_space<vmem>>, vector<1x1x8x32xbf16>
      %142 = vector.shape_cast %141 : vector<1x1x8x32xbf16> to vector<8x32xbf16>
      %c6_134 = arith.constant 6 : index
      %c0_135 = arith.constant 0 : index
      %c0_136 = arith.constant 0 : index
      %143 = vector.load %arg2[%c6_134, %c0_135, %c0_136] : memref<9x32x64xbf16, #tpu.memory_space<vmem>>, vector<1x32x64xbf16>
      %144 = vector.shape_cast %143 : vector<1x32x64xbf16> to vector<32x64xbf16>
      %cst_137 = arith.constant dense<0.000000e+00> : vector<8x64xf32>
      %145 = tpu.matmul %142, %144, %cst_137 {dimension_numbers = #tpu.dot_dimension_numbers<[1], [0], [0], [1], [0, 0, 1, 1], [], []>} : vector<8x32xbf16>, vector<32x64xbf16>, vector<8x64xf32> -> vector<8x64xf32>
      %146 = arith.addf %138, %145 : vector<8x64xf32>
      %c2_i32_138 = arith.constant 2 : i32
      %147 = arith.addi %89, %c2_i32_138 : i32
      %c0_139 = arith.constant 0 : index
      %148 = arith.index_cast %147 : i32 to index
      %c1_140 = arith.constant 1 : index
      %c0_141 = arith.constant 0 : index
      %149 = vector.load %arg1[%c0_139, %148, %c1_140, %c0_141] : memref<1x10x10x32xbf16, #tpu.memory_space<vmem>>, vector<1x1x8x32xbf16>
      %150 = vector.shape_cast %149 : vector<1x1x8x32xbf16> to vector<8x32xbf16>
      %c7_142 = arith.constant 7 : index
      %c0_143 = arith.constant 0 : index
      %c0_144 = arith.constant 0 : index
      %151 = vector.load %arg2[%c7_142, %c0_143, %c0_144] : memref<9x32x64xbf16, #tpu.memory_space<vmem>>, vector<1x32x64xbf16>
      %152 = vector.shape_cast %151 : vector<1x32x64xbf16> to vector<32x64xbf16>
      %cst_145 = arith.constant dense<0.000000e+00> : vector<8x64xf32>
      %153 = tpu.matmul %150, %152, %cst_145 {dimension_numbers = #tpu.dot_dimension_numbers<[1], [0], [0], [1], [0, 0, 1, 1], [], []>} : vector<8x32xbf16>, vector<32x64xbf16>, vector<8x64xf32> -> vector<8x64xf32>
      %154 = arith.addf %146, %153 : vector<8x64xf32>
      %c2_i32_146 = arith.constant 2 : i32
      %155 = arith.addi %89, %c2_i32_146 : i32
      %c0_147 = arith.constant 0 : index
      %156 = arith.index_cast %155 : i32 to index
      %c2_148 = arith.constant 2 : index
      %c0_149 = arith.constant 0 : index
      %157 = vector.load %arg1[%c0_147, %156, %c2_148, %c0_149] : memref<1x10x10x32xbf16, #tpu.memory_space<vmem>>, vector<1x1x8x32xbf16>
      %158 = vector.shape_cast %157 : vector<1x1x8x32xbf16> to vector<8x32xbf16>
      %c8_150 = arith.constant 8 : index
      %c0_151 = arith.constant 0 : index
      %c0_152 = arith.constant 0 : index
      %159 = vector.load %arg2[%c8_150, %c0_151, %c0_152] : memref<9x32x64xbf16, #tpu.memory_space<vmem>>, vector<1x32x64xbf16>
      %160 = vector.shape_cast %159 : vector<1x32x64xbf16> to vector<32x64xbf16>
      %cst_153 = arith.constant dense<0.000000e+00> : vector<8x64xf32>
      %161 = tpu.matmul %158, %160, %cst_153 {dimension_numbers = #tpu.dot_dimension_numbers<[1], [0], [0], [1], [0, 0, 1, 1], [], []>} : vector<8x32xbf16>, vector<32x64xbf16>, vector<8x64xf32> -> vector<8x64xf32>
      %162 = arith.addf %154, %161 : vector<8x64xf32>
      %163 = arith.maximumf %87, %162 : vector<8x64xf32>
      %164 = arith.index_cast %arg6 : i32 to index
      %c0_154 = arith.constant 0 : index
      %c0_155 = arith.constant 0 : index
      %165 = vector.load %arg5[%164, %c0_154, %c0_155] : memref<4x8x64xf32, #tpu.memory_space<vmem>>, vector<1x8x64xf32>
      %166 = vector.shape_cast %165 : vector<1x8x64xf32> to vector<8x64xf32>
      %167 = vector.shape_cast %163 : vector<8x64xf32> to vector<1x8x64xf32>
      tpu.vector_store %arg5[%164, %c0_154, %c0_155], %167 {strides = array<i32>} : memref<4x8x64xf32, #tpu.memory_space<vmem>>, vector<1x8x64xf32>,
    }
    %c4_i32_0 = arith.constant 4 : i32
    %c0 = arith.constant 0 : index
    %c0_1 = arith.constant 0 : index
    %c0_2 = arith.constant 0 : index
    %1 = tpu.strided_load %arg5[%c0, %c0_1, %c0_2] {strides = array<i32: 1, 2, 1>} : memref<4x8x64xf32, #tpu.memory_space<vmem>>, vector<4x4x64xf32>
    %c0_3 = arith.constant 0 : index
    %c1 = arith.constant 1 : index
    %c0_4 = arith.constant 0 : index
    %2 = tpu.strided_load %arg5[%c0_3, %c1, %c0_4] {strides = array<i32: 1, 2, 1>} : memref<4x8x64xf32, #tpu.memory_space<vmem>>, vector<4x4x64xf32>
    %3 = arith.maximumf %1, %2 : vector<4x4x64xf32>
    %c0_5 = arith.constant 0 : index
    %c0_6 = arith.constant 0 : index
    %c0_7 = arith.constant 0 : index
    %4 = vector.load %arg3[%c0_5, %c0_6, %c0_7] : memref<1x1x64xf32, #tpu.memory_space<vmem>>, vector<1x1x64xf32>
    %5 = vector.broadcast %4 : vector<1x1x64xf32> to vector<4x4x64xf32>
    %6 = arith.addf %3, %5 : vector<4x4x64xf32>
    %cst = arith.constant 0.000000e+00 : f32
    %7 = vector.broadcast %cst : f32 to vector<4x4x64xf32>
    %8 = arith.maximumf %6, %7 : vector<4x4x64xf32>
    %9 = arith.truncf %8 : vector<4x4x64xf32> to vector<4x4x64xbf16>
    %c0_8 = arith.constant 0 : index
    %c0_9 = arith.constant 0 : index
    %c0_10 = arith.constant 0 : index
    %c0_11 = arith.constant 0 : index
    %10 = vector.load %arg4[%c0_8, %c0_9, %c0_10, %c0_11] : memref<1x4x4x64xbf16, #tpu.memory_space<vmem>>, vector<1x4x4x64xbf16>
    %11 = vector.shape_cast %10 : vector<1x4x4x64xbf16> to vector<4x4x64xbf16>
    %12 = vector.shape_cast %9 : vector<4x4x64xbf16> to vector<1x4x4x64xbf16>
    tpu.vector_store %arg4[%c0_8, %c0_9, %c0_10, %c0_11], %12 {strides = array<i32>} : memref<1x4x4x64xbf16, #tpu.memory_space<vmem>>, vector<1x4x4x64xbf16>,
    return
  }
  func.func @transform_0(%arg0: i32) -> (i32, i32, i32, i32) {
    %c0_i32 = arith.constant 0 : i32
    %c0_i32_0 = arith.constant 0 : i32
    %c0_i32_1 = arith.constant 0 : i32
    %c0_i32_2 = arith.constant 0 : i32
    return %arg0, %c0_i32, %c0_i32_0, %c0_i32_1 : i32, i32, i32, i32
  }
  func.func @transform_1(%arg0: i32) -> (i32, i32, i32) {
    %c0_i32 = arith.constant 0 : i32
    %c0_i32_0 = arith.constant 0 : i32
    %c0_i32_1 = arith.constant 0 : i32
    %c0_i32_2 = arith.constant 0 : i32
    return %c0_i32, %c0_i32_0, %c0_i32_1 : i32, i32, i32
  }
  func.func @transform_2(%arg0: i32) -> (i32, i32, i32) {
    %c0_i32 = arith.constant 0 : i32
    %c0_i32_0 = arith.constant 0 : i32
    %c0_i32_1 = arith.constant 0 : i32
    %c0_i32_2 = arith.constant 0 : i32
    return %c0_i32, %c0_i32_0, %c0_i32_1 : i32, i32, i32
  }
  func.func @transform_3(%arg0: i32) -> (i32, i32, i32, i32) {
    %c0_i32 = arith.constant 0 : i32
    %c0_i32_0 = arith.constant 0 : i32
    %c0_i32_1 = arith.constant 0 : i32
    %c0_i32_2 = arith.constant 0 : i32
    return %arg0, %c0_i32, %c0_i32_0, %c0_i32_1 : i32, i32, i32, i32
  }
}

module attributes {stable_mosaic.version = 11 : i64} {
  func.func @_conv_pool_kernel(%arg0: i32, %arg1: memref<1x6x6x64xbf16, #tpu.memory_space<vmem>>, %arg2: memref<9x64x128xbf16, #tpu.memory_space<vmem>>, %arg3: memref<1x1x128xf32, #tpu.memory_space<vmem>>, %arg4: memref<1x2x2x128xbf16, #tpu.memory_space<vmem>>, %arg5: memref<2x4x128xf32, #tpu.memory_space<vmem>>) attributes {dimension_semantics = [#tpu.dimension_semantics<parallel>], iteration_bounds = array<i64: 2>, scalar_prefetch = 0 : i64, scratch_operands = 1 : i64, tpu.core_type = #tpu.core_type<tc>, window_params = [{transform_indices = @transform_0, window_bounds = array<i64: 1, 6, 6, 64>}, {pipeline_mode = #tpu.pipeline_mode<synchronous>, transform_indices = @transform_1, window_bounds = array<i64: 9, 64, 128>}, {pipeline_mode = #tpu.pipeline_mode<synchronous>, transform_indices = @transform_2, window_bounds = array<i64: 1, 1, 128>}, {transform_indices = @transform_3, window_bounds = array<i64: 1, 2, 2, 128>}]} {
    %c0_i32 = arith.constant 0 : i32
    %c2_i32 = arith.constant 2 : i32
    %0 = arith.addi %c0_i32, %c2_i32 : i32
    %c1_i32 = arith.constant 1 : i32
    scf.for %arg6 = %c0_i32 to %0 step %c1_i32  : i32 {
      %c2_i32_12 = arith.constant 2 : i32
      %13 = arith.muli %c2_i32_12, %arg6 : i32
      %c0_i32_13 = arith.constant 0 : i32
      %14 = arith.addi %13, %c0_i32_13 : i32
      %cst_14 = arith.constant 0.000000e+00 : f32
      %15 = vector.broadcast %cst_14 : f32 to vector<4x128xf32>
      %c0_i32_15 = arith.constant 0 : i32
      %16 = arith.addi %14, %c0_i32_15 : i32
      %c0_16 = arith.constant 0 : index
      %17 = arith.index_cast %16 : i32 to index
      %c0_17 = arith.constant 0 : index
      %c0_18 = arith.constant 0 : index
      %18 = vector.load %arg1[%c0_16, %17, %c0_17, %c0_18] : memref<1x6x6x64xbf16, #tpu.memory_space<vmem>>, vector<1x1x4x64xbf16>
      %19 = vector.shape_cast %18 : vector<1x1x4x64xbf16> to vector<4x64xbf16>
      %c0_19 = arith.constant 0 : index
      %c0_20 = arith.constant 0 : index
      %c0_21 = arith.constant 0 : index
      %20 = vector.load %arg2[%c0_19, %c0_20, %c0_21] : memref<9x64x128xbf16, #tpu.memory_space<vmem>>, vector<1x64x128xbf16>
      %21 = vector.shape_cast %20 : vector<1x64x128xbf16> to vector<64x128xbf16>
      %cst_22 = arith.constant dense<0.000000e+00> : vector<4x128xf32>
      %22 = tpu.matmul %19, %21, %cst_22 {dimension_numbers = #tpu.dot_dimension_numbers<[1], [0], [0], [1], [0, 0, 1, 1], [], []>} : vector<4x64xbf16>, vector<64x128xbf16>, vector<4x128xf32> -> vector<4x128xf32>
      %23 = arith.addf %15, %22 : vector<4x128xf32>
      %c0_i32_23 = arith.constant 0 : i32
      %24 = arith.addi %14, %c0_i32_23 : i32
      %c0_24 = arith.constant 0 : index
      %25 = arith.index_cast %24 : i32 to index
      %c1_25 = arith.constant 1 : index
      %c0_26 = arith.constant 0 : index
      %26 = vector.load %arg1[%c0_24, %25, %c1_25, %c0_26] : memref<1x6x6x64xbf16, #tpu.memory_space<vmem>>, vector<1x1x4x64xbf16>
      %27 = vector.shape_cast %26 : vector<1x1x4x64xbf16> to vector<4x64xbf16>
      %c1_27 = arith.constant 1 : index
      %c0_28 = arith.constant 0 : index
      %c0_29 = arith.constant 0 : index
      %28 = vector.load %arg2[%c1_27, %c0_28, %c0_29] : memref<9x64x128xbf16, #tpu.memory_space<vmem>>, vector<1x64x128xbf16>
      %29 = vector.shape_cast %28 : vector<1x64x128xbf16> to vector<64x128xbf16>
      %cst_30 = arith.constant dense<0.000000e+00> : vector<4x128xf32>
      %30 = tpu.matmul %27, %29, %cst_30 {dimension_numbers = #tpu.dot_dimension_numbers<[1], [0], [0], [1], [0, 0, 1, 1], [], []>} : vector<4x64xbf16>, vector<64x128xbf16>, vector<4x128xf32> -> vector<4x128xf32>
      %31 = arith.addf %23, %30 : vector<4x128xf32>
      %c0_i32_31 = arith.constant 0 : i32
      %32 = arith.addi %14, %c0_i32_31 : i32
      %c0_32 = arith.constant 0 : index
      %33 = arith.index_cast %32 : i32 to index
      %c2 = arith.constant 2 : index
      %c0_33 = arith.constant 0 : index
      %34 = vector.load %arg1[%c0_32, %33, %c2, %c0_33] : memref<1x6x6x64xbf16, #tpu.memory_space<vmem>>, vector<1x1x4x64xbf16>
      %35 = vector.shape_cast %34 : vector<1x1x4x64xbf16> to vector<4x64xbf16>
      %c2_34 = arith.constant 2 : index
      %c0_35 = arith.constant 0 : index
      %c0_36 = arith.constant 0 : index
      %36 = vector.load %arg2[%c2_34, %c0_35, %c0_36] : memref<9x64x128xbf16, #tpu.memory_space<vmem>>, vector<1x64x128xbf16>
      %37 = vector.shape_cast %36 : vector<1x64x128xbf16> to vector<64x128xbf16>
      %cst_37 = arith.constant dense<0.000000e+00> : vector<4x128xf32>
      %38 = tpu.matmul %35, %37, %cst_37 {dimension_numbers = #tpu.dot_dimension_numbers<[1], [0], [0], [1], [0, 0, 1, 1], [], []>} : vector<4x64xbf16>, vector<64x128xbf16>, vector<4x128xf32> -> vector<4x128xf32>
      %39 = arith.addf %31, %38 : vector<4x128xf32>
      %c1_i32_38 = arith.constant 1 : i32
      %40 = arith.addi %14, %c1_i32_38 : i32
      %c0_39 = arith.constant 0 : index
      %41 = arith.index_cast %40 : i32 to index
      %c0_40 = arith.constant 0 : index
      %c0_41 = arith.constant 0 : index
      %42 = vector.load %arg1[%c0_39, %41, %c0_40, %c0_41] : memref<1x6x6x64xbf16, #tpu.memory_space<vmem>>, vector<1x1x4x64xbf16>
      %43 = vector.shape_cast %42 : vector<1x1x4x64xbf16> to vector<4x64xbf16>
      %c3 = arith.constant 3 : index
      %c0_42 = arith.constant 0 : index
      %c0_43 = arith.constant 0 : index
      %44 = vector.load %arg2[%c3, %c0_42, %c0_43] : memref<9x64x128xbf16, #tpu.memory_space<vmem>>, vector<1x64x128xbf16>
      %45 = vector.shape_cast %44 : vector<1x64x128xbf16> to vector<64x128xbf16>
      %cst_44 = arith.constant dense<0.000000e+00> : vector<4x128xf32>
      %46 = tpu.matmul %43, %45, %cst_44 {dimension_numbers = #tpu.dot_dimension_numbers<[1], [0], [0], [1], [0, 0, 1, 1], [], []>} : vector<4x64xbf16>, vector<64x128xbf16>, vector<4x128xf32> -> vector<4x128xf32>
      %47 = arith.addf %39, %46 : vector<4x128xf32>
      %c1_i32_45 = arith.constant 1 : i32
      %48 = arith.addi %14, %c1_i32_45 : i32
      %c0_46 = arith.constant 0 : index
      %49 = arith.index_cast %48 : i32 to index
      %c1_47 = arith.constant 1 : index
      %c0_48 = arith.constant 0 : index
      %50 = vector.load %arg1[%c0_46, %49, %c1_47, %c0_48] : memref<1x6x6x64xbf16, #tpu.memory_space<vmem>>, vector<1x1x4x64xbf16>
      %51 = vector.shape_cast %50 : vector<1x1x4x64xbf16> to vector<4x64xbf16>
      %c4 = arith.constant 4 : index
      %c0_49 = arith.constant 0 : index
      %c0_50 = arith.constant 0 : index
      %52 = vector.load %arg2[%c4, %c0_49, %c0_50] : memref<9x64x128xbf16, #tpu.memory_space<vmem>>, vector<1x64x128xbf16>
      %53 = vector.shape_cast %52 : vector<1x64x128xbf16> to vector<64x128xbf16>
      %cst_51 = arith.constant dense<0.000000e+00> : vector<4x128xf32>
      %54 = tpu.matmul %51, %53, %cst_51 {dimension_numbers = #tpu.dot_dimension_numbers<[1], [0], [0], [1], [0, 0, 1, 1], [], []>} : vector<4x64xbf16>, vector<64x128xbf16>, vector<4x128xf32> -> vector<4x128xf32>
      %55 = arith.addf %47, %54 : vector<4x128xf32>
      %c1_i32_52 = arith.constant 1 : i32
      %56 = arith.addi %14, %c1_i32_52 : i32
      %c0_53 = arith.constant 0 : index
      %57 = arith.index_cast %56 : i32 to index
      %c2_54 = arith.constant 2 : index
      %c0_55 = arith.constant 0 : index
      %58 = vector.load %arg1[%c0_53, %57, %c2_54, %c0_55] : memref<1x6x6x64xbf16, #tpu.memory_space<vmem>>, vector<1x1x4x64xbf16>
      %59 = vector.shape_cast %58 : vector<1x1x4x64xbf16> to vector<4x64xbf16>
      %c5 = arith.constant 5 : index
      %c0_56 = arith.constant 0 : index
      %c0_57 = arith.constant 0 : index
      %60 = vector.load %arg2[%c5, %c0_56, %c0_57] : memref<9x64x128xbf16, #tpu.memory_space<vmem>>, vector<1x64x128xbf16>
      %61 = vector.shape_cast %60 : vector<1x64x128xbf16> to vector<64x128xbf16>
      %cst_58 = arith.constant dense<0.000000e+00> : vector<4x128xf32>
      %62 = tpu.matmul %59, %61, %cst_58 {dimension_numbers = #tpu.dot_dimension_numbers<[1], [0], [0], [1], [0, 0, 1, 1], [], []>} : vector<4x64xbf16>, vector<64x128xbf16>, vector<4x128xf32> -> vector<4x128xf32>
      %63 = arith.addf %55, %62 : vector<4x128xf32>
      %c2_i32_59 = arith.constant 2 : i32
      %64 = arith.addi %14, %c2_i32_59 : i32
      %c0_60 = arith.constant 0 : index
      %65 = arith.index_cast %64 : i32 to index
      %c0_61 = arith.constant 0 : index
      %c0_62 = arith.constant 0 : index
      %66 = vector.load %arg1[%c0_60, %65, %c0_61, %c0_62] : memref<1x6x6x64xbf16, #tpu.memory_space<vmem>>, vector<1x1x4x64xbf16>
      %67 = vector.shape_cast %66 : vector<1x1x4x64xbf16> to vector<4x64xbf16>
      %c6 = arith.constant 6 : index
      %c0_63 = arith.constant 0 : index
      %c0_64 = arith.constant 0 : index
      %68 = vector.load %arg2[%c6, %c0_63, %c0_64] : memref<9x64x128xbf16, #tpu.memory_space<vmem>>, vector<1x64x128xbf16>
      %69 = vector.shape_cast %68 : vector<1x64x128xbf16> to vector<64x128xbf16>
      %cst_65 = arith.constant dense<0.000000e+00> : vector<4x128xf32>
      %70 = tpu.matmul %67, %69, %cst_65 {dimension_numbers = #tpu.dot_dimension_numbers<[1], [0], [0], [1], [0, 0, 1, 1], [], []>} : vector<4x64xbf16>, vector<64x128xbf16>, vector<4x128xf32> -> vector<4x128xf32>
      %71 = arith.addf %63, %70 : vector<4x128xf32>
      %c2_i32_66 = arith.constant 2 : i32
      %72 = arith.addi %14, %c2_i32_66 : i32
      %c0_67 = arith.constant 0 : index
      %73 = arith.index_cast %72 : i32 to index
      %c1_68 = arith.constant 1 : index
      %c0_69 = arith.constant 0 : index
      %74 = vector.load %arg1[%c0_67, %73, %c1_68, %c0_69] : memref<1x6x6x64xbf16, #tpu.memory_space<vmem>>, vector<1x1x4x64xbf16>
      %75 = vector.shape_cast %74 : vector<1x1x4x64xbf16> to vector<4x64xbf16>
      %c7 = arith.constant 7 : index
      %c0_70 = arith.constant 0 : index
      %c0_71 = arith.constant 0 : index
      %76 = vector.load %arg2[%c7, %c0_70, %c0_71] : memref<9x64x128xbf16, #tpu.memory_space<vmem>>, vector<1x64x128xbf16>
      %77 = vector.shape_cast %76 : vector<1x64x128xbf16> to vector<64x128xbf16>
      %cst_72 = arith.constant dense<0.000000e+00> : vector<4x128xf32>
      %78 = tpu.matmul %75, %77, %cst_72 {dimension_numbers = #tpu.dot_dimension_numbers<[1], [0], [0], [1], [0, 0, 1, 1], [], []>} : vector<4x64xbf16>, vector<64x128xbf16>, vector<4x128xf32> -> vector<4x128xf32>
      %79 = arith.addf %71, %78 : vector<4x128xf32>
      %c2_i32_73 = arith.constant 2 : i32
      %80 = arith.addi %14, %c2_i32_73 : i32
      %c0_74 = arith.constant 0 : index
      %81 = arith.index_cast %80 : i32 to index
      %c2_75 = arith.constant 2 : index
      %c0_76 = arith.constant 0 : index
      %82 = vector.load %arg1[%c0_74, %81, %c2_75, %c0_76] : memref<1x6x6x64xbf16, #tpu.memory_space<vmem>>, vector<1x1x4x64xbf16>
      %83 = vector.shape_cast %82 : vector<1x1x4x64xbf16> to vector<4x64xbf16>
      %c8 = arith.constant 8 : index
      %c0_77 = arith.constant 0 : index
      %c0_78 = arith.constant 0 : index
      %84 = vector.load %arg2[%c8, %c0_77, %c0_78] : memref<9x64x128xbf16, #tpu.memory_space<vmem>>, vector<1x64x128xbf16>
      %85 = vector.shape_cast %84 : vector<1x64x128xbf16> to vector<64x128xbf16>
      %cst_79 = arith.constant dense<0.000000e+00> : vector<4x128xf32>
      %86 = tpu.matmul %83, %85, %cst_79 {dimension_numbers = #tpu.dot_dimension_numbers<[1], [0], [0], [1], [0, 0, 1, 1], [], []>} : vector<4x64xbf16>, vector<64x128xbf16>, vector<4x128xf32> -> vector<4x128xf32>
      %87 = arith.addf %79, %86 : vector<4x128xf32>
      %c2_i32_80 = arith.constant 2 : i32
      %88 = arith.muli %c2_i32_80, %arg6 : i32
      %c1_i32_81 = arith.constant 1 : i32
      %89 = arith.addi %88, %c1_i32_81 : i32
      %cst_82 = arith.constant 0.000000e+00 : f32
      %90 = vector.broadcast %cst_82 : f32 to vector<4x128xf32>
      %c0_i32_83 = arith.constant 0 : i32
      %91 = arith.addi %89, %c0_i32_83 : i32
      %c0_84 = arith.constant 0 : index
      %92 = arith.index_cast %91 : i32 to index
      %c0_85 = arith.constant 0 : index
      %c0_86 = arith.constant 0 : index
      %93 = vector.load %arg1[%c0_84, %92, %c0_85, %c0_86] : memref<1x6x6x64xbf16, #tpu.memory_space<vmem>>, vector<1x1x4x64xbf16>
      %94 = vector.shape_cast %93 : vector<1x1x4x64xbf16> to vector<4x64xbf16>
      %c0_87 = arith.constant 0 : index
      %c0_88 = arith.constant 0 : index
      %c0_89 = arith.constant 0 : index
      %95 = vector.load %arg2[%c0_87, %c0_88, %c0_89] : memref<9x64x128xbf16, #tpu.memory_space<vmem>>, vector<1x64x128xbf16>
      %96 = vector.shape_cast %95 : vector<1x64x128xbf16> to vector<64x128xbf16>
      %cst_90 = arith.constant dense<0.000000e+00> : vector<4x128xf32>
      %97 = tpu.matmul %94, %96, %cst_90 {dimension_numbers = #tpu.dot_dimension_numbers<[1], [0], [0], [1], [0, 0, 1, 1], [], []>} : vector<4x64xbf16>, vector<64x128xbf16>, vector<4x128xf32> -> vector<4x128xf32>
      %98 = arith.addf %90, %97 : vector<4x128xf32>
      %c0_i32_91 = arith.constant 0 : i32
      %99 = arith.addi %89, %c0_i32_91 : i32
      %c0_92 = arith.constant 0 : index
      %100 = arith.index_cast %99 : i32 to index
      %c1_93 = arith.constant 1 : index
      %c0_94 = arith.constant 0 : index
      %101 = vector.load %arg1[%c0_92, %100, %c1_93, %c0_94] : memref<1x6x6x64xbf16, #tpu.memory_space<vmem>>, vector<1x1x4x64xbf16>
      %102 = vector.shape_cast %101 : vector<1x1x4x64xbf16> to vector<4x64xbf16>
      %c1_95 = arith.constant 1 : index
      %c0_96 = arith.constant 0 : index
      %c0_97 = arith.constant 0 : index
      %103 = vector.load %arg2[%c1_95, %c0_96, %c0_97] : memref<9x64x128xbf16, #tpu.memory_space<vmem>>, vector<1x64x128xbf16>
      %104 = vector.shape_cast %103 : vector<1x64x128xbf16> to vector<64x128xbf16>
      %cst_98 = arith.constant dense<0.000000e+00> : vector<4x128xf32>
      %105 = tpu.matmul %102, %104, %cst_98 {dimension_numbers = #tpu.dot_dimension_numbers<[1], [0], [0], [1], [0, 0, 1, 1], [], []>} : vector<4x64xbf16>, vector<64x128xbf16>, vector<4x128xf32> -> vector<4x128xf32>
      %106 = arith.addf %98, %105 : vector<4x128xf32>
      %c0_i32_99 = arith.constant 0 : i32
      %107 = arith.addi %89, %c0_i32_99 : i32
      %c0_100 = arith.constant 0 : index
      %108 = arith.index_cast %107 : i32 to index
      %c2_101 = arith.constant 2 : index
      %c0_102 = arith.constant 0 : index
      %109 = vector.load %arg1[%c0_100, %108, %c2_101, %c0_102] : memref<1x6x6x64xbf16, #tpu.memory_space<vmem>>, vector<1x1x4x64xbf16>
      %110 = vector.shape_cast %109 : vector<1x1x4x64xbf16> to vector<4x64xbf16>
      %c2_103 = arith.constant 2 : index
      %c0_104 = arith.constant 0 : index
      %c0_105 = arith.constant 0 : index
      %111 = vector.load %arg2[%c2_103, %c0_104, %c0_105] : memref<9x64x128xbf16, #tpu.memory_space<vmem>>, vector<1x64x128xbf16>
      %112 = vector.shape_cast %111 : vector<1x64x128xbf16> to vector<64x128xbf16>
      %cst_106 = arith.constant dense<0.000000e+00> : vector<4x128xf32>
      %113 = tpu.matmul %110, %112, %cst_106 {dimension_numbers = #tpu.dot_dimension_numbers<[1], [0], [0], [1], [0, 0, 1, 1], [], []>} : vector<4x64xbf16>, vector<64x128xbf16>, vector<4x128xf32> -> vector<4x128xf32>
      %114 = arith.addf %106, %113 : vector<4x128xf32>
      %c1_i32_107 = arith.constant 1 : i32
      %115 = arith.addi %89, %c1_i32_107 : i32
      %c0_108 = arith.constant 0 : index
      %116 = arith.index_cast %115 : i32 to index
      %c0_109 = arith.constant 0 : index
      %c0_110 = arith.constant 0 : index
      %117 = vector.load %arg1[%c0_108, %116, %c0_109, %c0_110] : memref<1x6x6x64xbf16, #tpu.memory_space<vmem>>, vector<1x1x4x64xbf16>
      %118 = vector.shape_cast %117 : vector<1x1x4x64xbf16> to vector<4x64xbf16>
      %c3_111 = arith.constant 3 : index
      %c0_112 = arith.constant 0 : index
      %c0_113 = arith.constant 0 : index
      %119 = vector.load %arg2[%c3_111, %c0_112, %c0_113] : memref<9x64x128xbf16, #tpu.memory_space<vmem>>, vector<1x64x128xbf16>
      %120 = vector.shape_cast %119 : vector<1x64x128xbf16> to vector<64x128xbf16>
      %cst_114 = arith.constant dense<0.000000e+00> : vector<4x128xf32>
      %121 = tpu.matmul %118, %120, %cst_114 {dimension_numbers = #tpu.dot_dimension_numbers<[1], [0], [0], [1], [0, 0, 1, 1], [], []>} : vector<4x64xbf16>, vector<64x128xbf16>, vector<4x128xf32> -> vector<4x128xf32>
      %122 = arith.addf %114, %121 : vector<4x128xf32>
      %c1_i32_115 = arith.constant 1 : i32
      %123 = arith.addi %89, %c1_i32_115 : i32
      %c0_116 = arith.constant 0 : index
      %124 = arith.index_cast %123 : i32 to index
      %c1_117 = arith.constant 1 : index
      %c0_118 = arith.constant 0 : index
      %125 = vector.load %arg1[%c0_116, %124, %c1_117, %c0_118] : memref<1x6x6x64xbf16, #tpu.memory_space<vmem>>, vector<1x1x4x64xbf16>
      %126 = vector.shape_cast %125 : vector<1x1x4x64xbf16> to vector<4x64xbf16>
      %c4_119 = arith.constant 4 : index
      %c0_120 = arith.constant 0 : index
      %c0_121 = arith.constant 0 : index
      %127 = vector.load %arg2[%c4_119, %c0_120, %c0_121] : memref<9x64x128xbf16, #tpu.memory_space<vmem>>, vector<1x64x128xbf16>
      %128 = vector.shape_cast %127 : vector<1x64x128xbf16> to vector<64x128xbf16>
      %cst_122 = arith.constant dense<0.000000e+00> : vector<4x128xf32>
      %129 = tpu.matmul %126, %128, %cst_122 {dimension_numbers = #tpu.dot_dimension_numbers<[1], [0], [0], [1], [0, 0, 1, 1], [], []>} : vector<4x64xbf16>, vector<64x128xbf16>, vector<4x128xf32> -> vector<4x128xf32>
      %130 = arith.addf %122, %129 : vector<4x128xf32>
      %c1_i32_123 = arith.constant 1 : i32
      %131 = arith.addi %89, %c1_i32_123 : i32
      %c0_124 = arith.constant 0 : index
      %132 = arith.index_cast %131 : i32 to index
      %c2_125 = arith.constant 2 : index
      %c0_126 = arith.constant 0 : index
      %133 = vector.load %arg1[%c0_124, %132, %c2_125, %c0_126] : memref<1x6x6x64xbf16, #tpu.memory_space<vmem>>, vector<1x1x4x64xbf16>
      %134 = vector.shape_cast %133 : vector<1x1x4x64xbf16> to vector<4x64xbf16>
      %c5_127 = arith.constant 5 : index
      %c0_128 = arith.constant 0 : index
      %c0_129 = arith.constant 0 : index
      %135 = vector.load %arg2[%c5_127, %c0_128, %c0_129] : memref<9x64x128xbf16, #tpu.memory_space<vmem>>, vector<1x64x128xbf16>
      %136 = vector.shape_cast %135 : vector<1x64x128xbf16> to vector<64x128xbf16>
      %cst_130 = arith.constant dense<0.000000e+00> : vector<4x128xf32>
      %137 = tpu.matmul %134, %136, %cst_130 {dimension_numbers = #tpu.dot_dimension_numbers<[1], [0], [0], [1], [0, 0, 1, 1], [], []>} : vector<4x64xbf16>, vector<64x128xbf16>, vector<4x128xf32> -> vector<4x128xf32>
      %138 = arith.addf %130, %137 : vector<4x128xf32>
      %c2_i32_131 = arith.constant 2 : i32
      %139 = arith.addi %89, %c2_i32_131 : i32
      %c0_132 = arith.constant 0 : index
      %140 = arith.index_cast %139 : i32 to index
      %c0_133 = arith.constant 0 : index
      %c0_134 = arith.constant 0 : index
      %141 = vector.load %arg1[%c0_132, %140, %c0_133, %c0_134] : memref<1x6x6x64xbf16, #tpu.memory_space<vmem>>, vector<1x1x4x64xbf16>
      %142 = vector.shape_cast %141 : vector<1x1x4x64xbf16> to vector<4x64xbf16>
      %c6_135 = arith.constant 6 : index
      %c0_136 = arith.constant 0 : index
      %c0_137 = arith.constant 0 : index
      %143 = vector.load %arg2[%c6_135, %c0_136, %c0_137] : memref<9x64x128xbf16, #tpu.memory_space<vmem>>, vector<1x64x128xbf16>
      %144 = vector.shape_cast %143 : vector<1x64x128xbf16> to vector<64x128xbf16>
      %cst_138 = arith.constant dense<0.000000e+00> : vector<4x128xf32>
      %145 = tpu.matmul %142, %144, %cst_138 {dimension_numbers = #tpu.dot_dimension_numbers<[1], [0], [0], [1], [0, 0, 1, 1], [], []>} : vector<4x64xbf16>, vector<64x128xbf16>, vector<4x128xf32> -> vector<4x128xf32>
      %146 = arith.addf %138, %145 : vector<4x128xf32>
      %c2_i32_139 = arith.constant 2 : i32
      %147 = arith.addi %89, %c2_i32_139 : i32
      %c0_140 = arith.constant 0 : index
      %148 = arith.index_cast %147 : i32 to index
      %c1_141 = arith.constant 1 : index
      %c0_142 = arith.constant 0 : index
      %149 = vector.load %arg1[%c0_140, %148, %c1_141, %c0_142] : memref<1x6x6x64xbf16, #tpu.memory_space<vmem>>, vector<1x1x4x64xbf16>
      %150 = vector.shape_cast %149 : vector<1x1x4x64xbf16> to vector<4x64xbf16>
      %c7_143 = arith.constant 7 : index
      %c0_144 = arith.constant 0 : index
      %c0_145 = arith.constant 0 : index
      %151 = vector.load %arg2[%c7_143, %c0_144, %c0_145] : memref<9x64x128xbf16, #tpu.memory_space<vmem>>, vector<1x64x128xbf16>
      %152 = vector.shape_cast %151 : vector<1x64x128xbf16> to vector<64x128xbf16>
      %cst_146 = arith.constant dense<0.000000e+00> : vector<4x128xf32>
      %153 = tpu.matmul %150, %152, %cst_146 {dimension_numbers = #tpu.dot_dimension_numbers<[1], [0], [0], [1], [0, 0, 1, 1], [], []>} : vector<4x64xbf16>, vector<64x128xbf16>, vector<4x128xf32> -> vector<4x128xf32>
      %154 = arith.addf %146, %153 : vector<4x128xf32>
      %c2_i32_147 = arith.constant 2 : i32
      %155 = arith.addi %89, %c2_i32_147 : i32
      %c0_148 = arith.constant 0 : index
      %156 = arith.index_cast %155 : i32 to index
      %c2_149 = arith.constant 2 : index
      %c0_150 = arith.constant 0 : index
      %157 = vector.load %arg1[%c0_148, %156, %c2_149, %c0_150] : memref<1x6x6x64xbf16, #tpu.memory_space<vmem>>, vector<1x1x4x64xbf16>
      %158 = vector.shape_cast %157 : vector<1x1x4x64xbf16> to vector<4x64xbf16>
      %c8_151 = arith.constant 8 : index
      %c0_152 = arith.constant 0 : index
      %c0_153 = arith.constant 0 : index
      %159 = vector.load %arg2[%c8_151, %c0_152, %c0_153] : memref<9x64x128xbf16, #tpu.memory_space<vmem>>, vector<1x64x128xbf16>
      %160 = vector.shape_cast %159 : vector<1x64x128xbf16> to vector<64x128xbf16>
      %cst_154 = arith.constant dense<0.000000e+00> : vector<4x128xf32>
      %161 = tpu.matmul %158, %160, %cst_154 {dimension_numbers = #tpu.dot_dimension_numbers<[1], [0], [0], [1], [0, 0, 1, 1], [], []>} : vector<4x64xbf16>, vector<64x128xbf16>, vector<4x128xf32> -> vector<4x128xf32>
      %162 = arith.addf %154, %161 : vector<4x128xf32>
      %163 = arith.maximumf %87, %162 : vector<4x128xf32>
      %164 = arith.index_cast %arg6 : i32 to index
      %c0_155 = arith.constant 0 : index
      %c0_156 = arith.constant 0 : index
      %165 = vector.load %arg5[%164, %c0_155, %c0_156] : memref<2x4x128xf32, #tpu.memory_space<vmem>>, vector<1x4x128xf32>
      %166 = vector.shape_cast %165 : vector<1x4x128xf32> to vector<4x128xf32>
      %167 = vector.shape_cast %163 : vector<4x128xf32> to vector<1x4x128xf32>
      tpu.vector_store %arg5[%164, %c0_155, %c0_156], %167 {strides = array<i32>} : memref<2x4x128xf32, #tpu.memory_space<vmem>>, vector<1x4x128xf32>,
    }
    %c2_i32_0 = arith.constant 2 : i32
    %c0 = arith.constant 0 : index
    %c0_1 = arith.constant 0 : index
    %c0_2 = arith.constant 0 : index
    %1 = tpu.strided_load %arg5[%c0, %c0_1, %c0_2] {strides = array<i32: 1, 2, 1>} : memref<2x4x128xf32, #tpu.memory_space<vmem>>, vector<2x2x128xf32>
    %c0_3 = arith.constant 0 : index
    %c1 = arith.constant 1 : index
    %c0_4 = arith.constant 0 : index
    %2 = tpu.strided_load %arg5[%c0_3, %c1, %c0_4] {strides = array<i32: 1, 2, 1>} : memref<2x4x128xf32, #tpu.memory_space<vmem>>, vector<2x2x128xf32>
    %3 = arith.maximumf %1, %2 : vector<2x2x128xf32>
    %c0_5 = arith.constant 0 : index
    %c0_6 = arith.constant 0 : index
    %c0_7 = arith.constant 0 : index
    %4 = vector.load %arg3[%c0_5, %c0_6, %c0_7] : memref<1x1x128xf32, #tpu.memory_space<vmem>>, vector<1x1x128xf32>
    %5 = vector.broadcast %4 : vector<1x1x128xf32> to vector<2x2x128xf32>
    %6 = arith.addf %3, %5 : vector<2x2x128xf32>
    %cst = arith.constant 0.000000e+00 : f32
    %7 = vector.broadcast %cst : f32 to vector<2x2x128xf32>
    %8 = arith.maximumf %6, %7 : vector<2x2x128xf32>
    %9 = arith.truncf %8 : vector<2x2x128xf32> to vector<2x2x128xbf16>
    %c0_8 = arith.constant 0 : index
    %c0_9 = arith.constant 0 : index
    %c0_10 = arith.constant 0 : index
    %c0_11 = arith.constant 0 : index
    %10 = vector.load %arg4[%c0_8, %c0_9, %c0_10, %c0_11] : memref<1x2x2x128xbf16, #tpu.memory_space<vmem>>, vector<1x2x2x128xbf16>
    %11 = vector.shape_cast %10 : vector<1x2x2x128xbf16> to vector<2x2x128xbf16>
    %12 = vector.shape_cast %9 : vector<2x2x128xbf16> to vector<1x2x2x128xbf16>
    tpu.vector_store %arg4[%c0_8, %c0_9, %c0_10, %c0_11], %12 {strides = array<i32>} : memref<1x2x2x128xbf16, #tpu.memory_space<vmem>>, vector<1x2x2x128xbf16>,
    return
  }
  func.func @transform_0(%arg0: i32) -> (i32, i32, i32, i32) {
    %c0_i32 = arith.constant 0 : i32
    %c0_i32_0 = arith.constant 0 : i32
    %c0_i32_1 = arith.constant 0 : i32
    %c0_i32_2 = arith.constant 0 : i32
    return %arg0, %c0_i32, %c0_i32_0, %c0_i32_1 : i32, i32, i32, i32
  }
  func.func @transform_1(%arg0: i32) -> (i32, i32, i32) {
    %c0_i32 = arith.constant 0 : i32
    %c0_i32_0 = arith.constant 0 : i32
    %c0_i32_1 = arith.constant 0 : i32
    %c0_i32_2 = arith.constant 0 : i32
    return %c0_i32, %c0_i32_0, %c0_i32_1 : i32, i32, i32
  }
  func.func @transform_2(%arg0: i32) -> (i32, i32, i32) {
    %c0_i32 = arith.constant 0 : i32
    %c0_i32_0 = arith.constant 0 : i32
    %c0_i32_1 = arith.constant 0 : i32
    %c0_i32_2 = arith.constant 0 : i32
    return %c0_i32, %c0_i32_0, %c0_i32_1 : i32, i32, i32
  }
  func.func @transform_3(%arg0: i32) -> (i32, i32, i32, i32) {
    %c0_i32 = arith.constant 0 : i32
    %c0_i32_0 = arith.constant 0 : i32
    %c0_i32_1 = arith.constant 0 : i32
    %c0_i32_2 = arith.constant 0 : i32
    return %arg0, %c0_i32, %c0_i32_0, %c0_i32_1 : i32, i32, i32, i32
  }
}

module attributes {stable_mosaic.version = 11 : i64} {
  func.func @_fc_kernel(%arg0: i32, %arg1: i32, %arg2: i32, %arg3: memref<2x256xbf16, #tpu.memory_space<vmem>>, %arg4: memref<256x512xbf16, #tpu.memory_space<vmem>>, %arg5: memref<1x512xf32, #tpu.memory_space<vmem>>, %arg6: memref<2x512xbf16, #tpu.memory_space<vmem>>, %arg7: memref<2x512xf32, #tpu.memory_space<vmem>>) attributes {dimension_semantics = [#tpu.dimension_semantics<parallel>, #tpu.dimension_semantics<parallel>, #tpu.dimension_semantics<arbitrary>], iteration_bounds = array<i64: 1, 1, 2>, scalar_prefetch = 0 : i64, scratch_operands = 1 : i64, tpu.core_type = #tpu.core_type<tc>, window_params = [{transform_indices = @transform_0, window_bounds = array<i64: 2, 256>}, {transform_indices = @transform_1, window_bounds = array<i64: 256, 512>}, {transform_indices = @transform_2, window_bounds = array<i64: 1, 512>}, {transform_indices = @transform_3, window_bounds = array<i64: 2, 512>}]} {
    %c0_i32 = arith.constant 0 : i32
    %0 = arith.cmpi eq, %arg2, %c0_i32 : i32
    %1 = arith.extui %0 : i1 to i32
    %c0_i32_0 = arith.constant 0 : i32
    %2 = arith.cmpi ne, %1, %c0_i32_0 : i32
    scf.if %2 {
      %cst_9 = arith.constant 0.000000e+00 : f32
      %12 = vector.broadcast %cst_9 : f32 to vector<2x512xf32>
      %c0_10 = arith.constant 0 : index
      %c0_11 = arith.constant 0 : index
      %13 = vector.load %arg7[%c0_10, %c0_11] : memref<2x512xf32, #tpu.memory_space<vmem>>, vector<2x512xf32>
      tpu.vector_store %arg7[%c0_10, %c0_11], %12 {strides = array<i32>} : memref<2x512xf32, #tpu.memory_space<vmem>>, vector<2x512xf32>,
    } else {
    }
    %c0 = arith.constant 0 : index
    %c0_1 = arith.constant 0 : index
    %3 = vector.load %arg7[%c0, %c0_1] : memref<2x512xf32, #tpu.memory_space<vmem>>, vector<2x512xf32>
    %c0_2 = arith.constant 0 : index
    %c0_3 = arith.constant 0 : index
    %4 = vector.load %arg3[%c0_2, %c0_3] : memref<2x256xbf16, #tpu.memory_space<vmem>>, vector<2x256xbf16>
    %c0_4 = arith.constant 0 : index
    %c0_5 = arith.constant 0 : index
    %5 = vector.load %arg4[%c0_4, %c0_5] : memref<256x512xbf16, #tpu.memory_space<vmem>>, vector<256x512xbf16>
    %cst = arith.constant dense<0.000000e+00> : vector<2x512xf32>
    %6 = tpu.matmul %4, %5, %cst {dimension_numbers = #tpu.dot_dimension_numbers<[1], [0], [0], [1], [0, 0, 1, 1], [], []>} : vector<2x256xbf16>, vector<256x512xbf16>, vector<2x512xf32> -> vector<2x512xf32>
    %7 = arith.addf %3, %6 : vector<2x512xf32>
    %c0_6 = arith.constant 0 : index
    %c0_7 = arith.constant 0 : index
    %8 = vector.load %arg7[%c0_6, %c0_7] : memref<2x512xf32, #tpu.memory_space<vmem>>, vector<2x512xf32>
    tpu.vector_store %arg7[%c0_6, %c0_7], %7 {strides = array<i32>} : memref<2x512xf32, #tpu.memory_space<vmem>>, vector<2x512xf32>,
    %c1_i32 = arith.constant 1 : i32
    %9 = arith.cmpi eq, %arg2, %c1_i32 : i32
    %10 = arith.extui %9 : i1 to i32
    %c0_i32_8 = arith.constant 0 : i32
    %11 = arith.cmpi ne, %10, %c0_i32_8 : i32
    scf.if %11 {
      %c0_9 = arith.constant 0 : index
      %c0_10 = arith.constant 0 : index
      %12 = vector.load %arg7[%c0_9, %c0_10] : memref<2x512xf32, #tpu.memory_space<vmem>>, vector<2x512xf32>
      %c0_11 = arith.constant 0 : index
      %c0_12 = arith.constant 0 : index
      %13 = vector.load %arg5[%c0_11, %c0_12] : memref<1x512xf32, #tpu.memory_space<vmem>>, vector<1x512xf32>
      %14 = vector.broadcast %13 : vector<1x512xf32> to vector<2x512xf32>
      %15 = arith.addf %12, %14 : vector<2x512xf32>
      %cst_13 = arith.constant 0.000000e+00 : f32
      %16 = vector.broadcast %cst_13 : f32 to vector<2x512xf32>
      %17 = arith.maximumf %15, %16 : vector<2x512xf32>
      %18 = arith.truncf %17 : vector<2x512xf32> to vector<2x512xbf16>
      %c0_14 = arith.constant 0 : index
      %c0_15 = arith.constant 0 : index
      %19 = vector.load %arg6[%c0_14, %c0_15] : memref<2x512xbf16, #tpu.memory_space<vmem>>, vector<2x512xbf16>
      tpu.vector_store %arg6[%c0_14, %c0_15], %18 {strides = array<i32>} : memref<2x512xbf16, #tpu.memory_space<vmem>>, vector<2x512xbf16>,
    } else {
    }
    return
  }
  func.func @transform_0(%arg0: i32, %arg1: i32, %arg2: i32) -> (i32, i32) {
    %c0_i32 = arith.constant 0 : i32
    return %arg0, %arg2 : i32, i32
  }
  func.func @transform_1(%arg0: i32, %arg1: i32, %arg2: i32) -> (i32, i32) {
    %c0_i32 = arith.constant 0 : i32
    return %arg2, %arg1 : i32, i32
  }
  func.func @transform_2(%arg0: i32, %arg1: i32, %arg2: i32) -> (i32, i32) {
    %c0_i32 = arith.constant 0 : i32
    %c0_i32_0 = arith.constant 0 : i32
    return %c0_i32, %arg1 : i32, i32
  }
  func.func @transform_3(%arg0: i32, %arg1: i32, %arg2: i32) -> (i32, i32) {
    %c0_i32 = arith.constant 0 : i32
    return %arg0, %arg1 : i32, i32
  }
}

module attributes {stable_mosaic.version = 11 : i64} {
  func.func @_fc_kernel(%arg0: i32, %arg1: i32, %arg2: i32, %arg3: memref<2x256xbf16, #tpu.memory_space<vmem>>, %arg4: memref<256x256xbf16, #tpu.memory_space<vmem>>, %arg5: memref<1x256xf32, #tpu.memory_space<vmem>>, %arg6: memref<2x256xbf16, #tpu.memory_space<vmem>>, %arg7: memref<2x256xf32, #tpu.memory_space<vmem>>) attributes {dimension_semantics = [#tpu.dimension_semantics<parallel>, #tpu.dimension_semantics<parallel>, #tpu.dimension_semantics<arbitrary>], iteration_bounds = array<i64: 1, 1, 2>, scalar_prefetch = 0 : i64, scratch_operands = 1 : i64, tpu.core_type = #tpu.core_type<tc>, window_params = [{transform_indices = @transform_0, window_bounds = array<i64: 2, 256>}, {transform_indices = @transform_1, window_bounds = array<i64: 256, 256>}, {transform_indices = @transform_2, window_bounds = array<i64: 1, 256>}, {transform_indices = @transform_3, window_bounds = array<i64: 2, 256>}]} {
    %c0_i32 = arith.constant 0 : i32
    %0 = arith.cmpi eq, %arg2, %c0_i32 : i32
    %1 = arith.extui %0 : i1 to i32
    %c0_i32_0 = arith.constant 0 : i32
    %2 = arith.cmpi ne, %1, %c0_i32_0 : i32
    scf.if %2 {
      %cst_9 = arith.constant 0.000000e+00 : f32
      %12 = vector.broadcast %cst_9 : f32 to vector<2x256xf32>
      %c0_10 = arith.constant 0 : index
      %c0_11 = arith.constant 0 : index
      %13 = vector.load %arg7[%c0_10, %c0_11] : memref<2x256xf32, #tpu.memory_space<vmem>>, vector<2x256xf32>
      tpu.vector_store %arg7[%c0_10, %c0_11], %12 {strides = array<i32>} : memref<2x256xf32, #tpu.memory_space<vmem>>, vector<2x256xf32>,
    } else {
    }
    %c0 = arith.constant 0 : index
    %c0_1 = arith.constant 0 : index
    %3 = vector.load %arg7[%c0, %c0_1] : memref<2x256xf32, #tpu.memory_space<vmem>>, vector<2x256xf32>
    %c0_2 = arith.constant 0 : index
    %c0_3 = arith.constant 0 : index
    %4 = vector.load %arg3[%c0_2, %c0_3] : memref<2x256xbf16, #tpu.memory_space<vmem>>, vector<2x256xbf16>
    %c0_4 = arith.constant 0 : index
    %c0_5 = arith.constant 0 : index
    %5 = vector.load %arg4[%c0_4, %c0_5] : memref<256x256xbf16, #tpu.memory_space<vmem>>, vector<256x256xbf16>
    %cst = arith.constant dense<0.000000e+00> : vector<2x256xf32>
    %6 = tpu.matmul %4, %5, %cst {dimension_numbers = #tpu.dot_dimension_numbers<[1], [0], [0], [1], [0, 0, 1, 1], [], []>} : vector<2x256xbf16>, vector<256x256xbf16>, vector<2x256xf32> -> vector<2x256xf32>
    %7 = arith.addf %3, %6 : vector<2x256xf32>
    %c0_6 = arith.constant 0 : index
    %c0_7 = arith.constant 0 : index
    %8 = vector.load %arg7[%c0_6, %c0_7] : memref<2x256xf32, #tpu.memory_space<vmem>>, vector<2x256xf32>
    tpu.vector_store %arg7[%c0_6, %c0_7], %7 {strides = array<i32>} : memref<2x256xf32, #tpu.memory_space<vmem>>, vector<2x256xf32>,
    %c1_i32 = arith.constant 1 : i32
    %9 = arith.cmpi eq, %arg2, %c1_i32 : i32
    %10 = arith.extui %9 : i1 to i32
    %c0_i32_8 = arith.constant 0 : i32
    %11 = arith.cmpi ne, %10, %c0_i32_8 : i32
    scf.if %11 {
      %c0_9 = arith.constant 0 : index
      %c0_10 = arith.constant 0 : index
      %12 = vector.load %arg7[%c0_9, %c0_10] : memref<2x256xf32, #tpu.memory_space<vmem>>, vector<2x256xf32>
      %c0_11 = arith.constant 0 : index
      %c0_12 = arith.constant 0 : index
      %13 = vector.load %arg5[%c0_11, %c0_12] : memref<1x256xf32, #tpu.memory_space<vmem>>, vector<1x256xf32>
      %14 = vector.broadcast %13 : vector<1x256xf32> to vector<2x256xf32>
      %15 = arith.addf %12, %14 : vector<2x256xf32>
      %cst_13 = arith.constant 0.000000e+00 : f32
      %16 = vector.broadcast %cst_13 : f32 to vector<2x256xf32>
      %17 = arith.maximumf %15, %16 : vector<2x256xf32>
      %18 = arith.truncf %17 : vector<2x256xf32> to vector<2x256xbf16>
      %c0_14 = arith.constant 0 : index
      %c0_15 = arith.constant 0 : index
      %19 = vector.load %arg6[%c0_14, %c0_15] : memref<2x256xbf16, #tpu.memory_space<vmem>>, vector<2x256xbf16>
      tpu.vector_store %arg6[%c0_14, %c0_15], %18 {strides = array<i32>} : memref<2x256xbf16, #tpu.memory_space<vmem>>, vector<2x256xbf16>,
    } else {
    }
    return
  }
  func.func @transform_0(%arg0: i32, %arg1: i32, %arg2: i32) -> (i32, i32) {
    %c0_i32 = arith.constant 0 : i32
    return %arg0, %arg2 : i32, i32
  }
  func.func @transform_1(%arg0: i32, %arg1: i32, %arg2: i32) -> (i32, i32) {
    %c0_i32 = arith.constant 0 : i32
    return %arg2, %arg1 : i32, i32
  }
  func.func @transform_2(%arg0: i32, %arg1: i32, %arg2: i32) -> (i32, i32) {
    %c0_i32 = arith.constant 0 : i32
    %c0_i32_0 = arith.constant 0 : i32
    return %c0_i32, %arg1 : i32, i32
  }
  func.func @transform_3(%arg0: i32, %arg1: i32, %arg2: i32) -> (i32, i32) {
    %c0_i32 = arith.constant 0 : i32
    return %arg0, %arg1 : i32, i32
  }
}

module attributes {stable_mosaic.version = 11 : i64} {
  func.func @_fc_kernel(%arg0: i32, %arg1: i32, %arg2: i32, %arg3: memref<2x128xbf16, #tpu.memory_space<vmem>>, %arg4: memref<128x136xbf16, #tpu.memory_space<vmem>>, %arg5: memref<1x136xf32, #tpu.memory_space<vmem>>, %arg6: memref<2x136xf32, #tpu.memory_space<vmem>>, %arg7: memref<2x136xf32, #tpu.memory_space<vmem>>) attributes {dimension_semantics = [#tpu.dimension_semantics<parallel>, #tpu.dimension_semantics<parallel>, #tpu.dimension_semantics<arbitrary>], iteration_bounds = array<i64: 1, 1, 2>, scalar_prefetch = 0 : i64, scratch_operands = 1 : i64, tpu.core_type = #tpu.core_type<tc>, window_params = [{transform_indices = @transform_0, window_bounds = array<i64: 2, 128>}, {transform_indices = @transform_1, window_bounds = array<i64: 128, 136>}, {transform_indices = @transform_2, window_bounds = array<i64: 1, 136>}, {transform_indices = @transform_3, window_bounds = array<i64: 2, 136>}]} {
    %c0_i32 = arith.constant 0 : i32
    %0 = arith.cmpi eq, %arg2, %c0_i32 : i32
    %1 = arith.extui %0 : i1 to i32
    %c0_i32_0 = arith.constant 0 : i32
    %2 = arith.cmpi ne, %1, %c0_i32_0 : i32
    scf.if %2 {
      %cst_9 = arith.constant 0.000000e+00 : f32
      %12 = vector.broadcast %cst_9 : f32 to vector<2x136xf32>
      %c0_10 = arith.constant 0 : index
      %c0_11 = arith.constant 0 : index
      %13 = vector.load %arg7[%c0_10, %c0_11] : memref<2x136xf32, #tpu.memory_space<vmem>>, vector<2x136xf32>
      tpu.vector_store %arg7[%c0_10, %c0_11], %12 {strides = array<i32>} : memref<2x136xf32, #tpu.memory_space<vmem>>, vector<2x136xf32>,
    } else {
    }
    %c0 = arith.constant 0 : index
    %c0_1 = arith.constant 0 : index
    %3 = vector.load %arg7[%c0, %c0_1] : memref<2x136xf32, #tpu.memory_space<vmem>>, vector<2x136xf32>
    %c0_2 = arith.constant 0 : index
    %c0_3 = arith.constant 0 : index
    %4 = vector.load %arg3[%c0_2, %c0_3] : memref<2x128xbf16, #tpu.memory_space<vmem>>, vector<2x128xbf16>
    %c0_4 = arith.constant 0 : index
    %c0_5 = arith.constant 0 : index
    %5 = vector.load %arg4[%c0_4, %c0_5] : memref<128x136xbf16, #tpu.memory_space<vmem>>, vector<128x136xbf16>
    %cst = arith.constant dense<0.000000e+00> : vector<2x136xf32>
    %6 = tpu.matmul %4, %5, %cst {dimension_numbers = #tpu.dot_dimension_numbers<[1], [0], [0], [1], [0, 0, 1, 1], [], []>} : vector<2x128xbf16>, vector<128x136xbf16>, vector<2x136xf32> -> vector<2x136xf32>
    %7 = arith.addf %3, %6 : vector<2x136xf32>
    %c0_6 = arith.constant 0 : index
    %c0_7 = arith.constant 0 : index
    %8 = vector.load %arg7[%c0_6, %c0_7] : memref<2x136xf32, #tpu.memory_space<vmem>>, vector<2x136xf32>
    tpu.vector_store %arg7[%c0_6, %c0_7], %7 {strides = array<i32>} : memref<2x136xf32, #tpu.memory_space<vmem>>, vector<2x136xf32>,
    %c1_i32 = arith.constant 1 : i32
    %9 = arith.cmpi eq, %arg2, %c1_i32 : i32
    %10 = arith.extui %9 : i1 to i32
    %c0_i32_8 = arith.constant 0 : i32
    %11 = arith.cmpi ne, %10, %c0_i32_8 : i32
    scf.if %11 {
      %c0_9 = arith.constant 0 : index
      %c0_10 = arith.constant 0 : index
      %12 = vector.load %arg7[%c0_9, %c0_10] : memref<2x136xf32, #tpu.memory_space<vmem>>, vector<2x136xf32>
      %c0_11 = arith.constant 0 : index
      %c0_12 = arith.constant 0 : index
      %13 = vector.load %arg5[%c0_11, %c0_12] : memref<1x136xf32, #tpu.memory_space<vmem>>, vector<1x136xf32>
      %14 = vector.broadcast %13 : vector<1x136xf32> to vector<2x136xf32>
      %15 = arith.addf %12, %14 : vector<2x136xf32>
      %c0_13 = arith.constant 0 : index
      %c0_14 = arith.constant 0 : index
      %16 = vector.load %arg6[%c0_13, %c0_14] : memref<2x136xf32, #tpu.memory_space<vmem>>, vector<2x136xf32>
      tpu.vector_store %arg6[%c0_13, %c0_14], %15 {strides = array<i32>} : memref<2x136xf32, #tpu.memory_space<vmem>>, vector<2x136xf32>,
    } else {
    }
    return
  }
  func.func @transform_0(%arg0: i32, %arg1: i32, %arg2: i32) -> (i32, i32) {
    %c0_i32 = arith.constant 0 : i32
    return %arg0, %arg2 : i32, i32
  }
  func.func @transform_1(%arg0: i32, %arg1: i32, %arg2: i32) -> (i32, i32) {
    %c0_i32 = arith.constant 0 : i32
    return %arg2, %arg1 : i32, i32
  }
  func.func @transform_2(%arg0: i32, %arg1: i32, %arg2: i32) -> (i32, i32) {
    %c0_i32 = arith.constant 0 : i32
    %c0_i32_0 = arith.constant 0 : i32
    return %c0_i32, %arg1 : i32, i32
  }
  func.func @transform_3(%arg0: i32, %arg1: i32, %arg2: i32) -> (i32, i32) {
    %c0_i32 = arith.constant 0 : i32
    return %arg0, %arg1 : i32, i32
  }
}

</mosaic_0001>

<bundles_post_ra>
// kernel: net_forward.9
= control target key start
LH: loop header
LB: loop body
LE: loop exit
PB: predicated region body
PF: predicated region fallthrough
CT: control target
= control target key end

     0   :  { %s1063_s12 = smov 0   ;;  %s1238_s0 = inlined_call_operand.vmem [shape: bf16[2,10,10,32], index: 0, kind: input, shape index: {}]   ;;  %s1239_s1 = inlined_call_operand.vmem [shape: bf16[9,32,64], index: 1, kind: input, shape index: {}]   ;;  %s1240_s2 = inlined_call_operand.vmem [shape: f32[1,1,64], index: 2, kind: input, shape index: {}]   ;;  %s1241_s3 = inlined_call_operand.vmem [shape: bf16[2,4,4,64], index: 3, kind: output, shape index: {}]  }
   0x1 LB: > { %s831_s13 = sadd.s32 4294967295, %s1037_s12   ;;  %p835_p0 = scmp.ge.s32.totalorder %s1037_s12, 1  ;;  %s1037_s12 = sphi %s1063_s12, %s13_s12  }
   0x2   : > { %p137_p1 = scmp.lt.s32.totalorder %s1037_s12, 3 }
   0x4   : > { %p138_p2 = pnand %p835_p0, %p137_p1 }
   0x5   : > { %p161_p3 = scmp.lt.s32.totalorder (!%p138_p2), %s831_s13, 1  ;;  %s1081_s22 = smov (!%p138_p2), 0  }
   0x6   : > { %141 = sbr.rel (%p138_p2) target bundleno = 246 (0xf6), region = 32 }
   0xb   : > { %s1243_s13 = smov (!%p161_p3, %s831_s13), 1 }
   0xc   : > { %s1009_s14 = smul.u32 80, %s1243_s13  ;;  %s985_s15 = sshll.u32 %s1243_s13, 3 }
   0xd   : > { %s1074_s18 = scalar_lea.vmem %s1241_s3, %s985_s15 }
   0xe   : > { %s1079_s21 = scalar_lea.vmem %s1238_s0, %s1009_s14 }
   0xf LB: >> { %v1089_v0 = vld [vmem:[%s1239_s1 + $0x8] sm:$0xff]  ;;  %v1099_v2 = vld [vmem:[%s1239_s1 + $0x38] sm:$0xff]  ;;  %v1109_v4 = vld [vmem:[%s1239_s1] sm:$0xff]  ;;  %s987_s8 = sshll.u32 %s1041_s22, 4  ;;  %vm217_vm0 = vcmask 261120   ;;  %vm713_vm1 = vcmask 523264   ;;  %s1041_s22 = sphi %s1081_s22, %s177_s22  }
  0x10   : >> { %v1094_v1 = vld [vmem:[%s1239_s1 + $0x28] sm:$0xff]  ;;  %v991_v3 = vld [vmem:[%s1239_s1 + $0x18] sm:$0xff]  ;;  %255 = vmatpush.bf16.msra.mxu1 %v1089_v0  ;;  %v1114_v5 = vld [vmem:[%s1239_s1 + $0x20] sm:$0xff]  ;;  %332 = vmatpush.bf16.msra.mxu3 %v1099_v2  ;;  %s1124_s11 = scalar_lea.vmem %s1079_s21, %s987_s8 }
  0x11   : >> { %293 = vmatpush.bf16.msra.mxu2 %v1094_v1  ;;  %v1120_v6 = vld [vmem:[%s1239_s1 + $0x30] sm:$0xff]  ;;  %227 = vmatpush.bf16.msra.mxu0 %v991_v3  ;;  %v1132_v8 = vld [vmem:[%s1239_s1 + $0x48] sm:$0xff]  ;;  %v1137_v9 = vld [vmem:[%s1239_s1 + $0x58] sm:$0xff] }
  0x12   : >> { %v990_v7 = vld [vmem:[%s1239_s1 + $0x10] sm:$0xff]  ;;  %v182_v10 = vld [vmem:[%s1124_s11] sm:$0xf]  ;;  %v187_v11 = vld [vmem:[%s1124_s11 + $0x4] sm:$0x1] }
  0x13   : >> { %v262_v12 = vld [vmem:[%s1124_s11] sm:$0xe]  ;;  %v195_v13 = vunpack.c.l.b16 %v182_v10  ;;  %v196_v14 = vunpack.c.l.b16 %v187_v11  ;;  %v1145_v16 = vld [vmem:[%s1239_s1 + $0x68] sm:$0xff]  ;;  %v1152_v17 = vld [vmem:[%s1239_s1 + $0x78] sm:$0xff] }
  0x14   : >> { %v269_v15 = vunpack.c.l.b16 %v262_v12  ;;  %256 = vmatpush.bf16.msra.mxu1 %v1109_v4  ;;  %333 = vmatpush.bf16.msra.mxu3 %v1120_v6  ;;  %v1156_v20 = vld [vmem:[%s1124_s11 + $0x8] sm:$0xf]  ;;  %v997_v21 = vld [vmem:[%s1239_s1 + $0x40] sm:$0xff]  ;;  %v938_v22 = vld [vmem:[%s1124_s11 + $0x10] sm:$0xf] }
  0x15   : >> { %294 = vmatpush.bf16.msra.mxu2 %v1114_v5  ;;  %v197_v18 = vpack.c.b16 %v196_v14, %v195_v13  ;;  %228 = vmatpush.bf16.msra.mxu0 %v990_v7  ;;  %v999_v23 = vld [vmem:[%s1239_s1 + $0x50] sm:$0xff]  ;;  %v475_v25 = vunpack.c.l.b16 %v938_v22  ;;  %v893_v26 = vld [vmem:[%s1124_s11 + $0x8] sm:$0xf]  ;;  %v1002_v30 = vld [vmem:[%s1239_s1 + $0x60] sm:$0xff] }
  0x16   : >> { %v270_v19 = vpack.c.b16 %v196_v14, %v269_v15  ;;  %v1168_v24 = vld [vmem:[%s1124_s11 + $0x14] sm:$0x1]  ;;  %v894_v31 = vld [vmem:[%s1124_s11 + $0xc] sm:$0x1]  ;;  %v908_v32 = vld [vmem:[%s1124_s11 + $0x8] sm:$0xe]  ;;  %v349_v36 = vunpack.c.l.b16 %v893_v26 }
  0x17   : >> { %863 = vmatmul.msk.bf16.vlgmr.msra.gmra.mxu1 %vm217_vm0, %v182_v10  ;;  %v199_v28 = vshrl.u32 %v197_v18, 16  ;;  %v201_v29 = vshll.u32 %v197_v18, 16  ;;  %892 = vmatmul.msk.bf16.vlgmr.msra.gmra.mxu3 %vm217_vm0, %v1156_v20  ;;  %v476_v33 = vunpack.c.l.b16 %v1168_v24  ;;  %v1004_v35 = vld [vmem:[%s1239_s1 + $0x70] sm:$0xff]  ;;  %v1007_v38 = vld [vmem:[%s1239_s1 + $0x88] sm:$0xff]  ;;  %v350_v40 = vunpack.c.l.b16 %v894_v31  ;;  %v1006_v44 = vld [vmem:[%s1239_s1 + $0x80] sm:$0xff] }
  0x18   : >> { %419 = vmatpush.bf16.msrb.mxu1 %v1137_v9  ;;  %v271_v27 = vrot.slane %v270_v19, 1  ;;  %506 = vmatpush.bf16.msrb.mxu3 %v1152_v17  ;;  %v395_v41 = vunpack.c.l.b16 %v908_v32  ;;  %v924_v53 = vld [vmem:[%s1124_s11 + $0x10] sm:$0xf]  ;;  %v975_v59 = vld [vmem:[%s1124_s11 + $0x18] sm:$0xf] }
  0x19   : >> { %380 = vmatpush.bf16.msrb.mxu0 %v1132_v8  ;;  %458 = vmatpush.bf16.msrb.mxu2 %v1145_v16  ;;  %v203_v34 = vrot.slane %v201_v29, 1  ;;  %v477_v37 = vpack.c.b16 %v476_v33, %v475_v25  ;;  %v351_v43 = vpack.c.b16 %v350_v40, %v349_v36  ;;  %v953_v55 = vld [vmem:[%s1124_s11 + $0x10] sm:$0xe]  ;;  %v977_v60 = vld [vmem:[%s1124_s11 + $0x18] sm:$0xf] }
  0x1a   : >> { %876 = vmatmul.msk.bf16.vlgmr.msra.gmra.mxu2 %vm217_vm0, %v271_v27  ;;  %v396_v45 = vpack.c.b16 %v350_v40, %v395_v41  ;;  %v521_v56 = vunpack.c.l.b16 %v953_v55  ;;  %v978_v61 = vld [vmem:[%s1124_s11 + $0x1c] sm:$0x1]  ;;  %v980_v62 = vld [vmem:[%s1124_s11 + $0x18] sm:$0xe]  ;;  %v661_v63 = vunpack.c.l.b16 %v977_v60  ;;  %s982_s11 = sshll.u32 %s1041_s22, 3  ;;  %s177_s22 = sadd.s32 1, %s1041_s22  }
  0x1b   : >> { %v204_v39 = vor.u32 %v203_v34, %v199_v28  ;;  %v481_v42 = vshll.u32 %v477_v37, 16  ;;  %v479_v46 = vshrl.u32 %v477_v37, 16  ;;  %v355_v48 = vshll.u32 %v351_v43, 16  ;;  %s712_s13 = scalar_lea.vmem [#allocation2], %s982_s11  ;;  %p174_p4 = scmp.ge.s32.totalorder %s177_s22, 4  }
  0x1c   : >> { %420 = vmatpush.bf16.msrb.mxu1 %v999_v23  ;;  %507 = vmatpush.bf16.msrb.mxu3 %v1004_v35  ;;  %v397_v49 = vrot.slane %v396_v45, 1  ;;  %v353_v51 = vshrl.u32 %v351_v43, 16  ;;  %v522_v57 = vpack.c.b16 %v476_v33, %v521_v56  ;;  %vm750_vm2 = vcmask (%p174_p4), 517120  }
  0x1d   : >> { %381 = vmatpush.bf16.msrb.mxu0 %v997_v21  ;;  %459 = vmatpush.bf16.msrb.mxu2 %v1002_v30  ;;  %v483_v47 = vrot.slane %v481_v42, 1  ;;  %v357_v52 = vrot.slane %v355_v48, 1 }
  0x1e   : >> { %854 = vmatmul.msk.bf16.vlgmr.msra.gmra.mxu0 %vm217_vm0, %v204_v39  ;;  %v523_v58 = vrot.slane %v522_v57, 1 }
  0x1f   : >> { %v484_v50 = vor.u32 %v483_v47, %v479_v46  ;;  %v358_v54 = vor.u32 %v357_v52, %v353_v51 }
  0x20   : >> { %559 = vmatpush.bf16.msra.mxu1 %v991_v3  ;;  %585 = vmatpush.bf16.msra.mxu3 %v1094_v1  ;;  %v690_v1 = vunpack.c.l.b16 %v980_v62 }
  0x21   : >> { %572 = vmatpush.bf16.msra.mxu2 %v1089_v0  ;;  %545 = vmatpush.bf16.msra.mxu0 %v1007_v38  ;;  %v662_v0 = vunpack.c.l.b16 %v978_v61 }
  0x23   : >> { %v691_v3 = vpack.c.b16 %v662_v0, %v690_v1  ;;  %v1026_v1 = vld [vmem:[%s1240_s2] ss:$0 sm:$0xff] (%p174_p4) }
  0x24   : >> { %560 = vmatpush.bf16.msra.mxu1 %v990_v7  ;;  %586 = vmatpush.bf16.msra.mxu3 %v1114_v5 }
  0x25   : >> { %573 = vmatpush.bf16.msra.mxu2 %v1109_v4  ;;  %546 = vmatpush.bf16.msra.mxu0 %v1006_v44  ;;  %v692_v5 = vrot.slane %v691_v3, 1 }
  0x27   : >> { %921 = vmatmul.msk.bf16.vlgmr.msrb.gmra.mxu1 %vm217_vm0, %v397_v49  ;;  %952 = vmatmul.msk.bf16.vlgmr.msrb.gmra.mxu3 %vm217_vm0, %v484_v50 }
  0x28   : >> { %613 = vmatpush.bf16.msrb.mxu1 %v1132_v8  ;;  %649 = vmatpush.bf16.msrb.mxu3 %v1145_v16 }
  0x2a   : >> { %937 = vmatmul.msk.bf16.vlgmr.msrb.gmra.mxu2 %vm217_vm0, %v924_v53 }
  0x2b   : >> { %627 = vmatpush.bf16.msrb.mxu2 %v1137_v9 }
  0x2c   : >> { %614 = vmatpush.bf16.msrb.mxu1 %v997_v21  ;;  %650 = vmatpush.bf16.msrb.mxu3 %v1002_v30 }
  0x2e   : >> { %907 = vmatmul.msk.bf16.vlgmr.msrb.gmra.mxu0 %vm217_vm0, %v358_v54 }
  0x2f   : >> { %599 = vmatpush.bf16.msrb.mxu0 %v1099_v2  ;;  %628 = vmatpush.bf16.msrb.mxu2 %v999_v23  ;;  %v663_v2 = vpack.c.b16 %v662_v0, %v661_v63 }
  0x31   : >> { %v667_v4 = vshll.u32 %v663_v2, 16 }
  0x33   : >> { %600 = vmatpush.bf16.msrb.mxu0 %v1120_v6  ;;  %v665_v6 = vshrl.u32 %v663_v2, 16  ;;  %v669_v7 = vrot.slane %v667_v4, 1 }
  0x35   : >> { %v670_v8 = vor.u32 %v669_v7, %v665_v6 }
  0x37   : >> { %967 = vmatmul.msk.bf16.vlgmr.msra.gmra.mxu1 %vm217_vm0, %v358_v54  ;;  %969 = vmatmul.msk.bf16.vlgmr.msra.gmra.mxu3 %vm217_vm0, %v397_v49 }
  0x38   : >> { %702 = vmatpush.bf16.msra.mxu1 %v1007_v38 }
  0x3a   : >> { %968 = vmatmul.msk.bf16.vlgmr.msra.gmra.mxu2 %vm217_vm0, %v1156_v20 }
  0x3c   : >> { %703 = vmatpush.bf16.msra.mxu1 %v1006_v44 }
  0x3e   : >> { %966 = vmatmul.msk.bf16.vlgmr.msra.gmra.mxu0 %vm217_vm0, %v523_v58 }
  0x3f   : >> { %680 = vmatpush.bf16.msra.mxu0 %v1152_v17 }
  0x43   : >> { %681 = vmatpush.bf16.msra.mxu0 %v1004_v35 }
  0x47   : >> { %971 = vmatmul.msk.bf16.vlgmr.msrb.gmra.mxu1 %vm217_vm0, %v484_v50  ;;  %976 = vmatmul.msk.bf16.vlgmr.msrb.gmra.mxu3 %vm217_vm0, %v975_v59 }
  0x4a   : >> { %972 = vmatmul.msk.bf16.vlgmr.msrb.gmra.mxu2 %vm217_vm0, %v523_v58 }
  0x4e   : >> { %970 = vmatmul.msk.bf16.vlgmr.msrb.gmra.mxu0 %vm217_vm0, %v924_v53 }
  0x57   : >> { %981 = vmatmul.msk.bf16.vlgmr.msra.gmra.mxu1 %vm217_vm0, %v692_v5 }
  0x5e   : >> { %979 = vmatmul.msk.bf16.vlgmr.msra.gmra.mxu0 %vm217_vm0, %v670_v8 }
  0x94   : >> { %v258_v9 = vpop.f32.mrf.mxu1 }
  0x9a   : >> { %v335_v11 = vpop.f32.mrf.mxu3 }
  0x9b   : >> { %v230_v10 = vpop.f32.mrf.mxu0 }
  0x9c   : >> { %v260_v13 = vpop.f32.mrf.mxu1  ;;  %v259_v34 = vadd.f32 %v258_v9, %v230_v10 }
  0x9d   : >> { %v296_v12 = vpop.f32.mrf.mxu2 }
  0x9e   : >> { %v300_v36 = vadd.f32 %v296_v12, %v259_v34 }
  0xa0   : >> { %v339_v42 = vadd.f32 %v335_v11, %v300_v36 }
  0xa2   : >> { %v337_v15 = vpop.f32.mrf.mxu3 }
  0xa3   : >> { %v232_v14 = vpop.f32.mrf.mxu0 }
  0xa4   : >> { %v422_v17 = vpop.f32.mrf.mxu1 }
  0xa5   : >> { %v298_v16 = vpop.f32.mrf.mxu2 }
  0xaa   : >> { %v509_v19 = vpop.f32.mrf.mxu3 }
  0xab   : >> { %v383_v18 = vpop.f32.mrf.mxu0 }
  0xac   : >> { %v424_v21 = vpop.f32.mrf.mxu1  ;;  %v387_v44 = vadd.f32 %v383_v18, %v339_v42 }
  0xad   : >> { %v461_v20 = vpop.f32.mrf.mxu2 }
  0xae   : >> { %v426_v47 = vadd.f32 %v422_v17, %v387_v44 }
  0xb0   : >> { %v465_v52 = vadd.f32 %v461_v20, %v426_v47 }
  0xb2   : >> { %v511_v23 = vpop.f32.mrf.mxu3  ;;  %v513_v55 = vadd.f32 %v509_v19, %v465_v52 }
  0xb3   : >> { %v385_v22 = vpop.f32.mrf.mxu0 }
  0xb4   : >> { %v562_v25 = vpop.f32.mrf.mxu1 }
  0xb5   : >> { %v463_v24 = vpop.f32.mrf.mxu2 }
  0xba   : >> { %v588_v27 = vpop.f32.mrf.mxu3 }
  0xbb   : >> { %v548_v26 = vpop.f32.mrf.mxu0 }
  0xbc   : >> { %v564_v29 = vpop.f32.mrf.mxu1  ;;  %v552_v58 = vadd.f32 %v548_v26, %v513_v55 }
  0xbd   : >> { %v575_v28 = vpop.f32.mrf.mxu2 }
  0xbe   : >> { %v576_v35 = vadd.f32 %v575_v28, %v562_v25 }
  0xc0   : >> { %v592_v38 = vadd.f32 %v588_v27, %v576_v35 }
  0xc2   : >> { %v590_v31 = vpop.f32.mrf.mxu3 }
  0xc3   : >> { %v550_v30 = vpop.f32.mrf.mxu0 }
  0xc4   : >> { %v616_v32 = vpop.f32.mrf.mxu1 }
  0xc5   : >> { %v577_v33 = vpop.f32.mrf.mxu2 }
  0xca   : >> { %v652_v39 = vpop.f32.mrf.mxu3 }
  0xcb   : >> { %v602_v37 = vpop.f32.mrf.mxu0 }
  0xcc   : >> { %v618_v40 = vpop.f32.mrf.mxu1  ;;  %v606_v43 = vadd.f32 %v602_v37, %v592_v38 }
  0xcd   : >> { %v630_v41 = vpop.f32.mrf.mxu2 }
  0xce   : >> { %v620_v45 = vadd.f32 %v616_v32, %v606_v43 }
  0xd0   : >> { %v634_v51 = vadd.f32 %v630_v41, %v620_v45 }
  0xd2   : >> { %v654_v48 = vpop.f32.mrf.mxu3  ;;  %v656_v53 = vadd.f32 %v652_v39, %v634_v51 }
  0xd3   : >> { %v604_v46 = vpop.f32.mrf.mxu0 }
  0xd4   : >> { %v705_v49 = vpop.f32.mrf.mxu1 }
  0xd5   : >> { %v632_v50 = vpop.f32.mrf.mxu2 }
  0xdb   : >> { %v683_v54 = vpop.f32.mrf.mxu0 }
  0xdc   : >> { %v687_v56 = vadd.f32 %v683_v54, %v656_v53  ;;  %v707_v57 = vpop.f32.mrf.mxu1 }
  0xde   : >> { %v709_v59 = vadd.f32 %v705_v49, %v687_v56 }
  0xdf   : > { %176 = sbr.rel (!%p174_p4) target bundleno = 15 (0xf), region = 89 }
  0xe0   : >> { %v710_v60 = vmax.f32 %v552_v58, %v709_v59 }
  0xe2   : >> { %714 = vst.msk [vmem:[%s712_s13] sm:$0xff] %vm713_vm1, %v710_v60 }
  0xe3   : >> { %v685_v61 = vpop.f32.mrf.mxu0 }
  0xe9   : > { %v715_v62 = vld [vmem:[#allocation2] ss:$2 sm:$0xf]  ;;  %v723_v63 = vld [vmem:[#allocation2 + $0x1] ss:$2 sm:$0xf] }
  0xea   : > { %v730_v0 = vmax.f32 %v715_v62, %v723_v63  ;;  %v717_v2 = vld [vmem:[#allocation2 + $0x8] ss:$2 sm:$0xf]  ;;  %v725_v3 = vld [vmem:[#allocation2 + $0x9] ss:$2 sm:$0xf] }
  0xeb   : > { %v731_v5 = vmax.f32 %v717_v2, %v725_v3  ;;  %v719_v6 = vld [vmem:[#allocation2 + $0x10] ss:$2 sm:$0xf]  ;;  %v727_v7 = vld [vmem:[#allocation2 + $0x11] ss:$2 sm:$0xf] }
  0xec   : > { %v738_v4 = vadd.f32 %v1026_v1, %v730_v0  ;;  %v732_v8 = vmax.f32 %v719_v6, %v727_v7  ;;  %v721_v9 = vld [vmem:[#allocation2 + $0x18] ss:$2 sm:$0xf]  ;;  %v729_v10 = vld [vmem:[#allocation2 + $0x19] ss:$2 sm:$0xf] }
  0xed   : > { %v739_v12 = vadd.f32 %v1026_v1, %v731_v5  ;;  %v733_v13 = vmax.f32 %v721_v9, %v729_v10 }
  0xee   : > { %v742_v11 = vmax.f32 %v738_v4, 0.0  ;;  %v740_v14 = vadd.f32 %v1026_v1, %v732_v8 }
  0xef   : > { %v743_v16 = vmax.f32 %v739_v12, 0.0  ;;  %v741_v17 = vadd.f32 %v1026_v1, %v733_v13 }
  0xf0   : > { %v746_v15 = vpack.c.bf16 %v742_v11, %v742_v11  ;;  %v744_v18 = vmax.f32 %v740_v14, 0.0 }
  0xf1   : > { %v747_v19 = vpack.c.bf16 %v743_v16, %v743_v16  ;;  %v745_v20 = vmax.f32 %v741_v17, 0.0 }
  0xf2   : > { %751 = vst.msk [vmem:[%s1074_s18] sm:$0x3] %vm750_vm2, %v746_v15  ;;  %v748_v21 = vpack.c.bf16 %v744_v18, %v744_v18 }
  0xf3   : > { %752 = vst.msk [vmem:[%s1074_s18 + $0x2] sm:$0x3] %vm750_vm2, %v747_v19  ;;  %v749_v22 = vpack.c.bf16 %v745_v20, %v745_v20 }
  0xf4   : > { %753 = vst.msk [vmem:[%s1074_s18 + $0x4] sm:$0x3] %vm750_vm2, %v748_v21 }
  0xf5   : > { %754 = vst.msk [vmem:[%s1074_s18 + $0x6] sm:$0x3] %vm750_vm2, %v749_v22 }
  0xf6 PF: > { %s13_s12 = sadd.s32 1, %s1037_s12  }
  0xf7   : > { %p10_p5 = scmp.ge.s32.totalorder %s13_s12, 4  }
  0xf9   :  { %12 = sbr.rel (!%p10_p5) target bundleno = 1 (0x1), region = 100 }

// kernel: net_forward.8
= control target key start
LH: loop header
LB: loop body
LE: loop exit
PB: predicated region body
PF: predicated region fallthrough
CT: control target
= control target key end

     0   :  { %s2616_s12 = smov 0   ;;  %s3279_s0 = inlined_call_operand.vmem [shape: bf16[2,20,20,32], index: 0, kind: input, shape index: {}]   ;;  %s3280_s1 = inlined_call_operand.vmem [shape: bf16[25,32,32], index: 1, kind: input, shape index: {}]   ;;  %s3281_s2 = inlined_call_operand.vmem [shape: f32[1,1,32], index: 2, kind: input, shape index: {}]   ;;  %s3282_s3 = inlined_call_operand.vmem [shape: bf16[2,8,8,32], index: 3, kind: output, shape index: {}]  }
   0x1 LB: > { %s2061_s13 = sadd.s32 4294967295, %s2590_s12   ;;  %p2065_p0 = scmp.ge.s32.totalorder %s2590_s12, 1  ;;  %s2590_s12 = sphi %s2616_s12, %s13_s12  }
   0x2   : > { %p137_p1 = scmp.lt.s32.totalorder %s2590_s12, 3 }
   0x4   : > { %p138_p2 = pnand %p2065_p0, %p137_p1 }
   0x5   : > { %p161_p3 = scmp.lt.s32.totalorder (!%p138_p2), %s2061_s13, 1  ;;  %s2634_s22 = smov (!%p138_p2), 0  }
   0x6   : > { %141 = sbr.rel (%p138_p2) target bundleno = 386 (0x182), region = 32 }
   0xb   : > { %s3341_s13 = smov (!%p161_p3, %s2061_s13), 1 }
   0xc   : > { %s2562_s14 = smul.u32 240, %s3341_s13  ;;  %s2491_s15 = sshll.u32 %s3341_s13, 5 }
   0xd   : > { %s2627_s18 = scalar_lea.vmem %s3282_s3, %s2491_s15 }
   0xe   : > { %s2632_s21 = scalar_lea.vmem %s3279_s0, %s2562_s14 }
   0xf LB: >> { %v2642_v0 = vld [vmem:[%s3280_s1 + $0x8] sm:$0xff]  ;;  %v2652_v2 = vld [vmem:[%s3280_s1 + $0x18] sm:$0xff]  ;;  %v2664_v4 = vld [vmem:[%s3280_s1] sm:$0xff]  ;;  %s2492_s6 = smul.u32 24, %s2594_s22  ;;  %vm227_vm0 = vcmask 261120   ;;  %vm282_vm1 = vcmask 1046528   ;;  %s2594_s22 = sphi %s2634_s22, %s177_s22  }
  0x10   : >> { %v2647_v1 = vld [vmem:[%s3280_s1 + $0x28] sm:$0xff]  ;;  %v2657_v3 = vld [vmem:[%s3280_s1 + $0x38] sm:$0xff]  ;;  %265 = vmatpush.bf16.msra.mxu1 %v2642_v0  ;;  %v2670_v5 = vld [vmem:[%s3280_s1 + $0x20] sm:$0xff]  ;;  %237 = vmatpush.bf16.msra.mxu0 %v2652_v2  ;;  %vm202_vm2 = vsmask.f32 7424  ;;  %vm384_vm4 = vcmask 1045504  }
  0x11   : >> { %307 = vmatpush.bf16.msra.mxu2 %v2647_v1  ;;  %365 = vmatpush.bf16.msra.mxu3 %v2657_v3  ;;  %v2677_v6 = vld [vmem:[%s3280_s1 + $0x10] sm:$0xff]  ;;  %s2685_s14 = scalar_lea.vmem %s2632_s21, %s2492_s6  ;;  %v2690_v8 = vld [vmem:[%s3280_s1 + $0x48] sm:$0xff]  ;;  %v2695_v9 = vld [vmem:[%s3280_s1 + $0x58] sm:$0xff]  ;;  %vm326_vm3 = vsmask.f32 6400 }
  0x12   : >> { %v2682_v7 = vld [vmem:[%s3280_s1 + $0x30] sm:$0xff]  ;;  %v2700_v10 = vld [vmem:[%s3280_s1 + $0x68] sm:$0xff]  ;;  %v2703_v11 = vld [vmem:[%s2685_s14] sm:$0xff]  }
  0x13   : >> { %v273_v12 = vld [vmem:[%s2685_s14] sm:$0xe]  ;;  %v188_v13 = vld [vmem:[%s2685_s14 + $0x8] sm:$0x1]  ;;  %v2551_v14 = vunpack.c.h.b16 %v2703_v11  ;;  %v204_v15 = vshrl.u32 %v2703_v11, 16  ;;  %v206_v16 = vshll.u32 %v2703_v11, 16 }
  0x14   : >> { %266 = vmatpush.bf16.msra.mxu1 %v2664_v4  ;;  %v280_v17 = vunpack.c.l.b16 %v273_v12  ;;  %v317_v18 = vld [vmem:[%s2685_s14 + $0x8] sm:$0x3]  ;;  %v2716_v19 = vld [vmem:[%s3280_s1 + $0x78] sm:$0xff]  ;;  %v2719_v20 = vld [vmem:[%s2685_s14 + $0xc] sm:$0xff]   ;;  %238 = vmatpush.bf16.msra.mxu0 %v2677_v6  ;;  %v199_v21 = vunpack.c.l.b16 %v188_v13 }
  0x15   : >> { %308 = vmatpush.bf16.msra.mxu2 %v2670_v5  ;;  %366 = vmatpush.bf16.msra.mxu3 %v2682_v7  ;;  %v324_v22 = vunpack.c.l.b16 %v317_v18  ;;  %v2156_v23 = vld [vmem:[%s2685_s14 + $0x14] sm:$0x1]  ;;  %v478_v24 = vunpack.c.h.b16 %v2719_v20  ;;  %v208_v25 = vrot.slane %v206_v16, 1  ;;  %v2732_v27 = vld [vmem:[%s3280_s1 + $0x40] sm:$0xff]  ;;  %v2752_v33 = vld [vmem:[%s3280_s1 + $0x98] sm:$0xff]  ;;  %v485_v57 = vshll.u32 %v2719_v20, 16 }
  0x16   : >> { %v281_v26 = vpack.c.b16 %v2551_v14, %v280_v17  ;;  %v2737_v28 = vld [vmem:[%s3280_s1 + $0x50] sm:$0xff]  ;;  %v201_v29 = vpack.c.b16 %v199_v21, %v199_v21  ;;  %v2747_v31 = vld [vmem:[%s3280_s1 + $0x60] sm:$0xff]  ;;  %v479_v32 = vunpack.c.l.b16 %v2156_v23  ;;  %v2765_v43 = vld [vmem:[%s3280_s1 + $0xa8] sm:$0xff]  ;;  %v483_v12 = vshrl.u32 %v2719_v20, 16 }
  0x17   : >> { %2093 = vmatmul.msk.bf16.vlgmr.msra.gmra.mxu1 %vm227_vm0, %v2703_v11  ;;  %v2741_v30 = vpack.c.b16 %v324_v22, %v324_v22  ;;  %v209_v35 = vor.u32 %v208_v25, %v204_v15  ;;  %v2758_v38 = vld [vmem:[%s3280_s1 + $0x70] sm:$0xff]  ;;  %v2774_v50 = vld [vmem:[%s3280_s1 + $0x88] sm:$0xff]  ;;  %v375_v53 = vld [vmem:[%s2685_s14] sm:$0xc]  ;;  %v487_v13 = vrot.slane %v485_v57, 1 }
  0x18   : >> { %409 = vmatpush.bf16.msrb.mxu0 %v2690_v8  ;;  %456 = vmatpush.bf16.msrb.mxu1 %v2695_v9  ;;  %v283_v34 = vrot.slane %v281_v26, 1  ;;  %v328_v36 = vshrl.u32 %v281_v26, 16  ;;  %v331_v37 = vshll.u32 %v281_v26, 16  ;;  %v284_v39 = vrot.slane %v201_v29, 1  ;;  %v2780_v51 = vld [vmem:[%s3280_s1 + $0x90] sm:$0xff]  ;;  %v2791_v58 = vld [vmem:[%s3280_s1 + $0xb8] sm:$0xff] }
  0x19   : >> { %515 = vmatpush.bf16.msrb.mxu2 %v2700_v10  ;;  %558 = vmatpush.bf16.msrb.mxu3 %v2716_v19  ;;  %v211_v40 = vshll.u32 %v201_v29, 16  ;;  %v336_v41 = vshrl.u32 %v2741_v30, 16  ;;  %v339_v42 = vshll.u32 %v2741_v30, 16  ;;  %v481_v56 = vpack.c.b16 %v479_v32, %v479_v32  ;;  %v2796_v59 = vld [vmem:[%s3280_s1 + $0xa0] sm:$0xff]  ;;  %v2170_v60 = vld [vmem:[%s2685_s14 + $0xc] sm:$0xe] }
  0x1a   : >> { %v330_v44 = vrot.slane %v328_v36, 1  ;;  %v333_v45 = vrot.slane %v331_v37, 2  ;;  %v285_v46 = vsel %vm282_vm1, %v283_v34, %v284_v39  ;;  %v382_v62 = vunpack.c.l.b16 %v375_v53  ;;  %v2805_v63 = vld [vmem:[%s3280_s1 + $0x80] sm:$0xff]  ;;  %v2815_v17 = vld [vmem:[%s3280_s1 + $0xb0] sm:$0xff]  ;;  %v2826_v22 = vld [vmem:[%s3280_s1 + $0xd8] sm:$0xff] }
  0x1b   : >> { %v213_v47 = vrot.slane %v211_v40, 1  ;;  %v338_v48 = vrot.slane %v336_v41, 1  ;;  %v341_v49 = vrot.slane %v339_v42, 2  ;;  %2106 = vmatmul.msk.bf16.vlgmr.msra.gmra.mxu2 %vm227_vm0, %v285_v46  ;;  %v490_v15 = vshll.u32 %v481_v56, 16  ;;  %v2818_v18 = vld [vmem:[%s2685_s14 + $0xc] sm:$0xff]  ;;  %v2876_v20 = vld [vmem:[%s3280_s1 + $0xe0] sm:$0xff] }
  0x1c   : >> { %410 = vmatpush.bf16.msrb.mxu0 %v2732_v27  ;;  %457 = vmatpush.bf16.msrb.mxu1 %v2737_v28  ;;  %v334_v52 = vor.u32 %v333_v45, %v330_v44  ;;  %v532_v16 = vunpack.c.l.b16 %v2170_v60  ;;  %v383_v21 = vpack.c.b16 %v2551_v14, %v382_v62  ;;  %v488_v23 = vor.u32 %v487_v13, %v483_v12  ;;  %v2184_v29 = vld [vmem:[%s2685_s14 + $0x14] sm:$0x3]  ;;  %v2198_v32 = vld [vmem:[%s2685_s14 + $0xc] sm:$0xc]  ;;  %v2235_v41 = vld [vmem:[%s2685_s14 + $0x20] sm:$0x1] }
  0x1d   : >> { %516 = vmatpush.bf16.msrb.mxu2 %v2747_v31  ;;  %559 = vmatpush.bf16.msrb.mxu3 %v2758_v38  ;;  %v214_v54 = vsel %vm202_vm2, %v209_v35, %v213_v47  ;;  %v342_v55 = vor.u32 %v341_v49, %v338_v48  ;;  %v492_v25 = vrot.slane %v490_v15, 1  ;;  %v386_v14 = vrot.slane %v2741_v30, 2  ;;  %v2840_v36 = vld [vmem:[%s3280_s1 + $0xd0] sm:$0xff]  ;;  %v2848_v30 = vld [vmem:[%s3280_s1 + $0xe8] sm:$0xff]  ;;  %v2249_v47 = vld [vmem:[%s2685_s14 + $0x18] sm:$0xe] }
  0x1e   : >> { %2084 = vmatmul.msk.bf16.vlgmr.msra.gmra.mxu0 %vm227_vm0, %v214_v54  ;;  %v533_v26 = vpack.c.b16 %v478_v24, %v532_v16  ;;  %v385_v11 = vrot.slane %v383_v21, 2  ;;  %v575_v34 = vunpack.c.l.b16 %v2184_v29  ;;  %v632_v35 = vunpack.c.l.b16 %v2198_v32  ;;  %v2855_v44 = vld [vmem:[%s3280_s1 + $0xc8] sm:$0xff]  ;;  %v2263_v53 = vld [vmem:[%s2685_s14 + $0x20] sm:$0x3]  ;;  %v2880_v54 = vld [vmem:[%s2685_s14 + $0x18] sm:$0xff]  }
  0x1f   : >> { %v343_v61 = vsel %vm326_vm3, %v334_v52, %v342_v55  ;;  %v2843_v37 = vsel %vm202_vm2, %v488_v23, %v492_v25  ;;  %v535_v40 = vrot.slane %v481_v56, 1  ;;  %v728_v49 = vunpack.c.l.b16 %v2235_v41  ;;  %v2870_v52 = vld [vmem:[%s3280_s1 + $0xf8] sm:$0xff]  ;;  %v2899_v23 = vld [vmem:[%s3280_s1 + $0xf0] sm:$0xff] }
  0x20   : >> { %658 = vmatpush.bf16.msra.mxu1 %v2752_v33  ;;  %615 = vmatpush.bf16.msra.mxu0 %v2774_v50  ;;  %v534_v39 = vrot.slane %v533_v26, 1  ;;  %v387_v42 = vsel %vm384_vm4, %v385_v11, %v386_v14  ;;  %v576_v45 = vpack.c.b16 %v575_v34, %v575_v34  ;;  %v633_v46 = vpack.c.b16 %v478_v24, %v632_v35  ;;  %v2912_v35 = vld [vmem:[%s3280_s1 + $0x118] sm:$0xff] }
  0x21   : >> { %705 = vmatpush.bf16.msra.mxu2 %v2765_v43  ;;  %2119 = vmatmul.msk.bf16.vlgmr.msra.gmra.mxu3 %vm227_vm0, %v343_v61  ;;  %3302 = vst [vmem:[#allocation3_spill] sm:$0xff] %v2870_v52  ;;  %v578_v24 = vshrl.u32 %v533_v26, 16  ;;  %v581_v55 = vshll.u32 %v533_v26, 16  ;;  %v2555_v60 = vunpack.c.h.b16 %v2880_v54  ;;  %v2887_v61 = vld [vmem:[%s3280_s1 + $0xc0] sm:$0xff]  ;;  %v781_v13 = vunpack.c.l.b16 %v2249_v47 }
  0x22   : >> { %764 = vmatpush.bf16.msra.mxu3 %v2791_v58  ;;  %v2864_v48 = vsel %vm282_vm1, %v534_v39, %v535_v40  ;;  %v586_v56 = vshrl.u32 %v576_v45, 16  ;;  %v589_v57 = vshll.u32 %v576_v45, 16  ;;  %v634_v62 = vrot.slane %v633_v46, 2  ;;  %3303 = vst [vmem:[#allocation4_spill] sm:$0xff] %v2899_v23  ;;  %v2920_v46 = vld [vmem:[%s2685_s14 + $0x18] sm:$0xff] }
  0x23   : >> { %v635_v12 = vrot.slane %v576_v45, 2  ;;  %v824_v15 = vunpack.c.l.b16 %v2263_v53  ;;  %v2891_v16 = vpack.c.b16 %v728_v49, %v728_v49  ;;  %v734_v21 = vshll.u32 %v2880_v54, 16  ;;  %3304 = vst [vmem:[#allocation5_spill] sm:$0xff] %v2912_v35 }
  0x24   : >> { %659 = vmatpush.bf16.msra.mxu1 %v2780_v51  ;;  %616 = vmatpush.bf16.msra.mxu0 %v2805_v63  ;;  %v580_v25 = vrot.slane %v578_v24, 1  ;;  %v583_v26 = vrot.slane %v581_v55, 2  ;;  %v588_v29 = vrot.slane %v586_v56, 1  ;;  %v591_v32 = vrot.slane %v589_v57, 2  ;;  %v2935_v57 = vld [vmem:[%s3280_s1 + $0x128] sm:$0xff] }
  0x25   : >> { %706 = vmatpush.bf16.msra.mxu2 %v2796_v59  ;;  %v2903_v11 = vsel %vm384_vm4, %v634_v62, %v635_v12  ;;  %v2905_v14 = vpack.c.b16 %v2555_v60, %v781_v13  ;;  %v2907_v34 = vpack.c.b16 %v824_v15, %v824_v15  ;;  %v732_v39 = vshrl.u32 %v2880_v54, 16  ;;  %v2930_v54 = vld [vmem:[%s3280_s1 + $0x110] sm:$0xff]  ;;  %3306 = vst [vmem:[#allocation7_spill] sm:$0xff] %v2935_v57  ;;  %v2277_v62 = vld [vmem:[%s2685_s14 + $0x18] sm:$0xc]  ;;  %v2944_v13 = vld [vmem:[%s3280_s1 + $0x108] sm:$0xff] }
  0x26   : >> { %765 = vmatpush.bf16.msra.mxu3 %v2815_v17  ;;  %v736_v40 = vrot.slane %v734_v21, 1  ;;  %v739_v41 = vshll.u32 %v2891_v16, 16  ;;  %v592_v45 = vor.u32 %v591_v32, %v588_v29  ;;  %3305 = vst [vmem:[#allocation6_spill] sm:$0xff] %v2930_v54  ;;  %v881_v32 = vunpack.c.l.b16 %v2277_v62  ;;  %v2314_v62 = vld [vmem:[%s2685_s14 + $0x2c] sm:$0x1] }
  0x27   : >> { %2153 = vmatmul.msk.bf16.vlgmr.msrb.gmra.mxu1 %vm227_vm0, %v2818_v18  ;;  %v827_v47 = vshrl.u32 %v2905_v14, 16  ;;  %v830_v49 = vshll.u32 %v2905_v14, 16  ;;  %v835_v53 = vshrl.u32 %v2907_v34, 16  ;;  %v838_v24 = vshll.u32 %v2907_v34, 16  ;;  %3307 = vst [vmem:[#allocation8_spill] sm:$0xff] %v2944_v13 }
  0x28   : >> { %864 = vmatpush.bf16.msrb.mxu1 %v2826_v22  ;;  %v737_v55 = vor.u32 %v736_v40, %v732_v39  ;;  %v741_v56 = vrot.slane %v739_v41, 1  ;;  %v2956_v39 = vld [vmem:[%s3280_s1 + $0x138] sm:$0xff]  ;;  %v2961_v40 = vld [vmem:[%s3280_s1 + $0x120] sm:$0xff] }
  0x29   : >> { %v829_v15 = vrot.slane %v827_v47, 1  ;;  %v832_v21 = vrot.slane %v830_v49, 2  ;;  %3308 = vst [vmem:[#allocation9_spill] sm:$0xff] %v2956_v39  ;;  %v2969_v41 = vld [vmem:[%s3280_s1 + $0x100] sm:$0xff]  ;;  %v882_v49 = vpack.c.b16 %v2555_v60, %v881_v32  ;;  %v884_v32 = vrot.slane %v2907_v34, 2  ;;  %v3008_v34 = vld [vmem:[%s3280_s1 + $0x150] sm:$0xff] }
  0x2a   : >> { %v2950_v29 = vsel %vm202_vm2, %v737_v55, %v741_v56  ;;  %3309 = vst [vmem:[#allocation10_spill] sm:$0xff] %v2961_v40  ;;  %v2974_v47 = vld [vmem:[%s2685_s14 + $0x24] sm:$0xff]   ;;  %v2983_v55 = vld [vmem:[%s3280_s1 + $0x130] sm:$0xff] }
  0x2b   : >> { %2169 = vmatmul.msk.bf16.vlgmr.msrb.gmra.mxu2 %vm227_vm0, %v2843_v37  ;;  %3310 = vst [vmem:[#allocation11_spill] sm:$0xff] %v2969_v41 }
  0x2c   : >> { %865 = vmatpush.bf16.msrb.mxu1 %v2840_v36  ;;  %907 = vmatpush.bf16.msrb.mxu2 %v2848_v30  ;;  %3311 = vst [vmem:[#allocation12_spill] sm:$0xff] %v2983_v55 }
  0x2d   : >> { %3313 = vst [vmem:[#allocation14_spill] sm:$0xff] %v3008_v34 }
  0x2e   : >> { %2132 = vmatmul.msk.bf16.vlgmr.msrb.gmra.mxu0 %vm227_vm0, %v387_v42  ;;  %v584_v42 = vor.u32 %v583_v26, %v580_v25  ;;  %v837_v25 = vrot.slane %v835_v53, 1  ;;  %v840_v26 = vrot.slane %v838_v24, 2  ;;  %v2328_v53 = vld [vmem:[%s2685_s14 + $0x24] sm:$0xe]  ;;  %v2342_v24 = vld [vmem:[%s2685_s14 + $0x2c] sm:$0x3] }
  0x2f   : >> { %807 = vmatpush.bf16.msrb.mxu0 %v2855_v44  ;;  %v1030_v60 = vunpack.c.l.b16 %v2328_v53  ;;  %v977_v53 = vunpack.c.l.b16 %v2314_v62 }
  0x30   : >> { %908 = vmatpush.bf16.msrb.mxu2 %v2876_v20  ;;  %v2939_v12 = vsel %vm326_vm3, %v584_v42, %v592_v45  ;;  %v833_v42 = vor.u32 %v832_v21, %v829_v15  ;;  %v841_v45 = vor.u32 %v840_v26, %v837_v25  ;;  %v976_v15 = vunpack.c.h.b16 %v2974_v47  ;;  %v2994_v25 = vld [vmem:[%s3280_s1 + $0x158] sm:$0xff] }
  0x31   : >> { %2183 = vmatmul.msk.bf16.vlgmr.msrb.gmra.mxu3 %vm227_vm0, %v2864_v48  ;;  %v1073_v21 = vunpack.c.l.b16 %v2342_v24  ;;  %3312 = vst [vmem:[#allocation13_spill] sm:$0xff] %v2994_v25  ;;  %v883_v26 = vrot.slane %v882_v49, 2  ;;  %v979_v62 = vpack.c.b16 %v977_v53, %v977_v53  ;;  %v2356_v53 = vld [vmem:[%s2685_s14 + $0x24] sm:$0xc] }
  0x32   : >> { %954 = vmatpush.bf16.msrb.mxu3 %v2870_v52  ;;  %v2987_v56 = vsel %vm326_vm3, %v833_v42, %v841_v45  ;;  %v783_v42 = vrot.slane %v2905_v14, 1  ;;  %v784_v45 = vrot.slane %v2891_v16, 1  ;;  %v1031_v24 = vpack.c.b16 %v976_v15, %v1030_v60  ;;  %v3016_v14 = vld [vmem:[%s3280_s1 + $0x168] sm:$0xff] }
  0x33   : >> { %808 = vmatpush.bf16.msrb.mxu0 %v2887_v61  ;;  %v3011_v49 = vsel %vm384_vm4, %v883_v26, %v884_v32  ;;  %3315 = vst [vmem:[#allocation16_spill] sm:$0xff] %v3016_v14  ;;  %v3024_v60 = vld [vmem:[%s3280_s1 + $0x148] sm:$0xff] }
  0x34   : >> { %3314 = vst [vmem:[#allocation15_spill] sm:$0xff] %v3011_v49  ;;  %v3019_v16 = vsel %vm282_vm1, %v783_v42, %v784_v45  ;;  %v1076_v26 = vshrl.u32 %v1031_v24, 16  ;;  %v1079_v32 = vshll.u32 %v1031_v24, 16  ;;  %v3038_v42 = vld [vmem:[%s3280_s1 + $0x178] sm:$0xff]  ;;  %v3043_v45 = vld [vmem:[%s3280_s1 + $0x160] sm:$0xff] }
  0x35   : >> { %3316 = vst [vmem:[#allocation17_spill] sm:$0xff] %v3019_v16 }
  0x36   : >> { %955 = vmatpush.bf16.msrb.mxu3 %v2899_v23  ;;  %3317 = vst [vmem:[#allocation18_spill] sm:$0xff] %v3024_v60  ;;  %v1033_v23 = vrot.slane %v979_v62, 1 }
  0x37   : >> { %2211 = vmatmul.msk.bf16.vlgmr.msra.gmra.mxu1 %vm227_vm0, %v2903_v11  ;;  %3319 = vst [vmem:[#allocation20_spill] sm:$0xff] %v3038_v42 }
  0x38   : >> { %1056 = vmatpush.bf16.msra.mxu1 %v2912_v35  ;;  %3320 = vst [vmem:[#allocation21_spill] sm:$0xff] %v3043_v45  ;;  %v1130_v35 = vunpack.c.l.b16 %v2356_v53 }
  0x3b   : >> { %2232 = vmatmul.msk.bf16.vlgmr.msra.gmra.mxu2 %vm227_vm0, %v2920_v46 }
  0x3c   : >> { %1057 = vmatpush.bf16.msra.mxu1 %v2930_v54  ;;  %1113 = vmatpush.bf16.msra.mxu2 %v2935_v57  ;;  %v1078_v54 = vrot.slane %v1076_v26, 1  ;;  %v1081_v57 = vrot.slane %v1079_v32, 2  ;;  %v988_v32 = vshll.u32 %v979_v62, 16 }
  0x3e   : >> { %2197 = vmatmul.msk.bf16.vlgmr.msra.gmra.mxu0 %vm227_vm0, %v2939_v12 }
  0x3f   : >> { %1013 = vmatpush.bf16.msra.mxu0 %v2944_v13  ;;  %v2421_v13 = vld [vmem:[%s2685_s14 + $0x38] sm:$0x3] }
  0x40   : >> { %1114 = vmatpush.bf16.msra.mxu2 %v2961_v40  ;;  %v1032_v40 = vrot.slane %v1031_v24, 1  ;;  %v2393_v24 = vld [vmem:[%s2685_s14 + $0x38] sm:$0x1] }
  0x41   : >> { %2248 = vmatmul.msk.bf16.vlgmr.msra.gmra.mxu3 %vm227_vm0, %v2950_v29 }
  0x42   : >> { %1156 = vmatpush.bf16.msra.mxu3 %v2956_v39  ;;  %v3002_v39 = vpack.c.b16 %v1073_v21, %v1073_v21  ;;  %v3029_v21 = vld [vmem:[%s2685_s14 + $0x24] sm:$0xff] }
  0x43   : >> { %1014 = vmatpush.bf16.msra.mxu0 %v2969_v41  ;;  %3318 = vst [vmem:[#allocation19_spill] sm:$0xff] %v3029_v21  ;;  %v1131_v41 = vpack.c.b16 %v976_v15, %v1130_v35  ;;  %v1322_v15 = vunpack.c.l.b16 %v2421_v13 }
  0x45   : >> { %v1132_v35 = vrot.slane %v1131_v41, 2 }
  0x46   : >> { %1157 = vmatpush.bf16.msra.mxu3 %v2983_v55  ;;  %v1084_v55 = vshrl.u32 %v3002_v39, 16 }
  0x47   : >> { %2276 = vmatmul.msk.bf16.vlgmr.msrb.gmra.mxu1 %vm227_vm0, %v2987_v56 }
  0x48   : >> { %1262 = vmatpush.bf16.msrb.mxu1 %v2994_v25  ;;  %v1087_v25 = vshll.u32 %v3002_v39, 16  ;;  %v1086_v52 = vrot.slane %v1084_v55, 1  ;;  %v3068_v55 = vsel %vm282_vm1, %v1032_v40, %v1033_v23  ;;  %v1133_v23 = vrot.slane %v3002_v39, 2 }
  0x4a   : >> { %v3098_v41 = vsel %vm384_vm4, %v1132_v35, %v1133_v23 }
  0x4b   : >> { %2290 = vmatmul.msk.bf16.vlgmr.msrb.gmra.mxu2 %vm227_vm0, %v3011_v49  ;;  %v3071_v49 = vld [vmem:[%s2685_s14 + $0x30] sm:$0xff]  }
  0x4c   : >> { %1263 = vmatpush.bf16.msrb.mxu1 %v3008_v34  ;;  %1305 = vmatpush.bf16.msrb.mxu2 %v3016_v14  ;;  %v983_v34 = vshll.u32 %v2974_v47, 16  ;;  %v3053_v14 = vld [vmem:[%s3280_s1 + $0x140] sm:$0xff]  ;;  %v1230_v39 = vshrl.u32 %v3071_v49, 16 }
  0x4e   : >> { %2262 = vmatmul.msk.bf16.vlgmr.msrb.gmra.mxu0 %vm227_vm0, %v3019_v16  ;;  %v1089_v16 = vrot.slane %v1087_v25, 2  ;;  %v985_v26 = vrot.slane %v983_v34, 1  ;;  %v1082_v25 = vor.u32 %v1081_v57, %v1078_v54  ;;  %v990_v34 = vrot.slane %v988_v32, 1 }
  0x4f   : >> { %1203 = vmatpush.bf16.msrb.mxu0 %v3024_v60  ;;  %v3063_v60 = vld [vmem:[%s3280_s1 + $0x170] sm:$0xff]  ;;  %v2559_v57 = vunpack.c.h.b16 %v3071_v49 }
  0x50   : >> { %1306 = vmatpush.bf16.msrb.mxu2 %v3043_v45  ;;  %v1090_v53 = vor.u32 %v1089_v16, %v1086_v52  ;;  %v2407_v45 = vld [vmem:[%s2685_s14 + $0x30] sm:$0xe]  ;;  %v1232_v52 = vshll.u32 %v3071_v49, 16  ;;  %v3107_v49 = vld [vmem:[%s3280_s1 + $0x180] sm:$0xff] }
  0x51   : >> { %2311 = vmatmul.msk.bf16.vlgmr.msrb.gmra.mxu3 %vm227_vm0, %v3029_v21  ;;  %v981_v21 = vshrl.u32 %v2974_v47, 16  ;;  %v1279_v40 = vunpack.c.l.b16 %v2407_v45  ;;  %v1323_v45 = vpack.c.b16 %v1322_v15, %v1322_v15 }
  0x52   : >> { %1362 = vmatpush.bf16.msrb.mxu3 %v3038_v42  ;;  %v1226_v42 = vunpack.c.l.b16 %v2393_v24  ;;  %v3079_v62 = vsel %vm326_vm3, %v1082_v25, %v1090_v53 }
  0x53   : >> { %1204 = vmatpush.bf16.msrb.mxu0 %v3053_v14  ;;  %v986_v47 = vor.u32 %v985_v26, %v981_v21  ;;  %v3091_v21 = vld [vmem:[%s3280_s1 + $0x188] sm:$0xff]  ;;  %v1280_v13 = vpack.c.b16 %v2559_v57, %v1279_v40  ;;  %v1333_v25 = vshrl.u32 %v1323_v45, 16  ;;  %v1336_v53 = vshll.u32 %v1323_v45, 16 }
  0x54   : >> { %v1228_v54 = vpack.c.b16 %v1226_v42, %v1226_v42  ;;  %v1234_v42 = vrot.slane %v1232_v52, 1 }
  0x55   : >> { %v3086_v16 = vsel %vm202_vm2, %v986_v47, %v990_v34  ;;  %v1325_v26 = vshrl.u32 %v1280_v13, 16  ;;  %v1328_v32 = vshll.u32 %v1280_v13, 16  ;;  %v1281_v47 = vrot.slane %v1280_v13, 1  ;;  %v3333_v13 = vld [vmem:[#allocation13_spill] sm:$0xff] }
  0x56   : >> { %1363 = vmatpush.bf16.msrb.mxu3 %v3063_v60  ;;  %v1282_v34 = vrot.slane %v1228_v54, 1  ;;  %v1335_v35 = vrot.slane %v1333_v25, 1  ;;  %v1338_v40 = vrot.slane %v1336_v53, 2  ;;  %v3337_v53 = vld [vmem:[#allocation12_spill] sm:$0xff] }
  0x57   : >> { %2341 = vmatmul.msk.bf16.vlgmr.msra.gmra.mxu1 %vm227_vm0, %v3068_v55  ;;  %v1327_v23 = vrot.slane %v1325_v26, 1  ;;  %v1330_v52 = vrot.slane %v1328_v32, 2  ;;  %v3335_v26 = vld [vmem:[#allocation16_spill] sm:$0xff]  ;;  %v3210_v32 = vld [vmem:[%s2685_s14 + $0x3c] sm:$0xff]  }
  0x58   : >> { %1421 = vmatpush.bf16.msra.mxu1 %v2652_v2  ;;  %v1237_v2 = vshll.u32 %v1228_v54, 16  ;;  %v1339_v15 = vor.u32 %v1338_v40, %v1335_v35  ;;  %v2435_v54 = vld [vmem:[%s2685_s14 + $0x30] sm:$0xc]  ;;  %v2480_v40 = vld [vmem:[%s2685_s14 + $0x44] sm:$0x1] }
  0x5a   : >> { %v1239_v24 = vrot.slane %v1237_v2, 1 }
  0x5b   : >> { %2355 = vmatmul.msk.bf16.vlgmr.msra.gmra.mxu2 %vm227_vm0, %v3079_v62 }
  0x5c   : >> { %1422 = vmatpush.bf16.msra.mxu1 %v2677_v6  ;;  %1435 = vmatpush.bf16.msra.mxu2 %v2642_v0  ;;  %v1235_v6 = vor.u32 %v1234_v42, %v1230_v39  ;;  %v3125_v39 = vld [vmem:[%s2685_s14 + $0x30] sm:$0xff] }
  0x5e   : >> { %2327 = vmatmul.msk.bf16.vlgmr.msra.gmra.mxu0 %vm227_vm0, %v3086_v16  ;;  %v3115_v0 = vsel %vm202_vm2, %v1235_v6, %v1239_v24  ;;  %v3334_v6 = vld [vmem:[#allocation9_spill] sm:$0xff] }
  0x5f   : >> { %1405 = vmatpush.bf16.msra.mxu0 %v3091_v21 }
  0x60   : >> { %1436 = vmatpush.bf16.msra.mxu2 %v2664_v4  ;;  %v1331_v4 = vor.u32 %v1330_v52, %v1327_v23  ;;  %v1768_v23 = vunpack.c.h.b16 %v3210_v32  ;;  %v3338_v52 = vld [vmem:[#allocation21_spill] sm:$0xff] }
  0x61   : >> { %2369 = vmatmul.msk.bf16.vlgmr.msra.gmra.mxu3 %vm227_vm0, %v3098_v41 }
  0x62   : >> { %1449 = vmatpush.bf16.msra.mxu3 %v2647_v1  ;;  %v3122_v1 = vsel %vm282_vm1, %v1281_v47, %v1282_v34 }
  0x63   : >> { %1406 = vmatpush.bf16.msra.mxu0 %v3107_v49 }
  0x66   : >> { %1450 = vmatpush.bf16.msra.mxu3 %v2670_v5  ;;  %v3132_v5 = vsel %vm326_vm3, %v1331_v4, %v1339_v15  ;;  %v1769_v15 = vunpack.c.l.b16 %v2480_v40 }
  0x67   : >> { %2406 = vmatmul.msk.bf16.vlgmr.msrb.gmra.mxu1 %vm227_vm0, %v3115_v0 }
  0x68   : >> { %1481 = vmatpush.bf16.msrb.mxu1 %v2690_v8  ;;  %v1379_v8 = vunpack.c.l.b16 %v2435_v54 }
  0x6a   : >> { %v1380_v42 = vpack.c.b16 %v2559_v57, %v1379_v8 }
  0x6b   : >> { %2420 = vmatmul.msk.bf16.vlgmr.msrb.gmra.mxu2 %vm227_vm0, %v3122_v1 }
  0x6c   : >> { %1482 = vmatpush.bf16.msrb.mxu1 %v2732_v27  ;;  %1497 = vmatpush.bf16.msrb.mxu2 %v2695_v9  ;;  %v1381_v9 = vrot.slane %v1380_v42, 2  ;;  %v1382_v27 = vrot.slane %v1323_v45, 2 }
  0x6e   : >> { %2390 = vmatmul.msk.bf16.vlgmr.msrb.gmra.mxu0 %vm227_vm0, %v3125_v39 }
  0x6f   : >> { %1465 = vmatpush.bf16.msrb.mxu0 %v2657_v3  ;;  %v3148_v3 = vsel %vm384_vm4, %v1381_v9, %v1382_v27 }
  0x70   : >> { %1498 = vmatpush.bf16.msrb.mxu2 %v2737_v28 }
  0x71   : >> { %2434 = vmatmul.msk.bf16.vlgmr.msrb.gmra.mxu3 %vm227_vm0, %v3132_v5 }
  0x72   : >> { %1513 = vmatpush.bf16.msrb.mxu3 %v2700_v10  ;;  %v3321_v10 = vld [vmem:[#allocation8_spill] sm:$0xff] }
  0x73   : >> { %1466 = vmatpush.bf16.msrb.mxu0 %v2682_v7 }
  0x76   : >> { %1514 = vmatpush.bf16.msrb.mxu3 %v2747_v31  ;;  %v3322_v31 = vld [vmem:[#allocation15_spill] sm:$0xff] }
  0x77   : >> { %2449 = vmatmul.msk.bf16.vlgmr.msra.gmra.mxu1 %vm227_vm0, %v2843_v37  ;;  %v3330_v37 = vld [vmem:[#allocation4_spill] sm:$0xff] }
  0x78   : >> { %1545 = vmatpush.bf16.msra.mxu1 %v2774_v50  ;;  %v3325_v50 = vld [vmem:[#allocation17_spill] sm:$0xff] }
  0x7b   : >> { %2450 = vmatmul.msk.bf16.vlgmr.msra.gmra.mxu2 %vm227_vm0, %v2818_v18  ;;  %v3329_v18 = vld [vmem:[#allocation6_spill] sm:$0xff] }
  0x7c   : >> { %1546 = vmatpush.bf16.msra.mxu1 %v2805_v63  ;;  %1561 = vmatpush.bf16.msra.mxu2 %v2752_v33  ;;  %v3327_v63 = vld [vmem:[#allocation19_spill] sm:$0xff] }
  0x7e   : >> { %2448 = vmatmul.msk.bf16.vlgmr.msra.gmra.mxu0 %vm227_vm0, %v3148_v3 }
  0x7f   : >> { %1529 = vmatpush.bf16.msra.mxu0 %v2716_v19 }
  0x80   : >> { %1562 = vmatpush.bf16.msra.mxu2 %v2780_v51 }
  0x81   : >> { %2451 = vmatmul.msk.bf16.vlgmr.msra.gmra.mxu3 %vm227_vm0, %v2864_v48 }
  0x82   : >> { %1577 = vmatpush.bf16.msra.mxu3 %v2765_v43  ;;  %v3324_v43 = vld [vmem:[#allocation5_spill] sm:$0xff] }
  0x83   : >> { %1530 = vmatpush.bf16.msra.mxu0 %v2758_v38  ;;  %v3323_v38 = vld [vmem:[#allocation11_spill] sm:$0xff] }
  0x86   : >> { %1578 = vmatpush.bf16.msra.mxu3 %v2796_v59 }
  0x87   : >> { %2453 = vmatmul.msk.bf16.vlgmr.msrb.gmra.mxu1 %vm227_vm0, %v2903_v11 }
  0x88   : >> { %1609 = vmatpush.bf16.msrb.mxu1 %v2855_v44 }
  0x8b   : >> { %2454 = vmatmul.msk.bf16.vlgmr.msrb.gmra.mxu2 %vm227_vm0, %v2920_v46  ;;  %v3332_v46 = vld [vmem:[#allocation18_spill] sm:$0xff] }
  0x8c   : >> { %1610 = vmatpush.bf16.msrb.mxu1 %v2887_v61  ;;  %1625 = vmatpush.bf16.msrb.mxu2 %v2826_v22 }
  0x8e   : >> { %2452 = vmatmul.msk.bf16.vlgmr.msrb.gmra.mxu0 %vm227_vm0, %v2939_v12 }
  0x8f   : >> { %1593 = vmatpush.bf16.msrb.mxu0 %v2791_v58  ;;  %v3326_v58 = vld [vmem:[#allocation3_spill] sm:$0xff] }
  0x90   : >> { %1626 = vmatpush.bf16.msrb.mxu2 %v2840_v36 }
  0x91   : >> { %2455 = vmatmul.msk.bf16.vlgmr.msrb.gmra.mxu3 %vm227_vm0, %v2950_v29 }
  0x92   : >> { %1641 = vmatpush.bf16.msrb.mxu3 %v2848_v30 }
  0x93   : >> { %1594 = vmatpush.bf16.msrb.mxu0 %v2815_v17  ;;  %v3328_v17 = vld [vmem:[#allocation7_spill] sm:$0xff] }
  0x94   : >> { %v268_v7 = vpop.f32.mrf.mxu1 }
  0x96   : >> { %1642 = vmatpush.bf16.msrb.mxu3 %v2876_v20  ;;  %v3331_v20 = vld [vmem:[#allocation10_spill] sm:$0xff] }
  0x97   : >> { %2457 = vmatmul.msk.bf16.vlgmr.msra.gmra.mxu1 %vm227_vm0, %v2987_v56 }
  0x98   : >> { %1673 = vmatpush.bf16.msra.mxu1 %v3321_v10  ;;  %v1775_v10 = vshll.u32 %v3210_v32, 16 }
  0x9b   : >> { %v240_v19 = vpop.f32.mrf.mxu0  ;;  %2458 = vmatmul.msk.bf16.vlgmr.msra.gmra.mxu2 %vm227_vm0, %v3322_v31 }
  0x9c   : >> { %v269_v28 = vadd.f32 %v268_v7, %v240_v19  ;;  %v270_v33 = vpop.f32.mrf.mxu1  ;;  %1674 = vmatpush.bf16.msra.mxu1 %v3323_v38  ;;  %1689 = vmatpush.bf16.msra.mxu2 %v3324_v43  ;;  %v1771_v7 = vpack.c.b16 %v1769_v15, %v1769_v15 }
  0x9e   : >> { %2456 = vmatmul.msk.bf16.vlgmr.msra.gmra.mxu0 %vm227_vm0, %v3325_v50  ;;  %v310_v51 = vpop.f32.mrf.mxu2 }
  0x9f   : >> { %1657 = vmatpush.bf16.msra.mxu0 %v3326_v58  ;;  %v315_v59 = vadd.f32 %v310_v51, %v269_v28  ;;  %v3339_v28 = vld [vmem:[#allocation20_spill] sm:$0xff]  ;;  %v2547_v51 = vld [vmem:[%s2685_s14 + $0x3c] sm:$0xff] }
  0xa0   : >> { %1690 = vmatpush.bf16.msra.mxu2 %v3329_v18 }
  0xa1   : >> { %2459 = vmatmul.msk.bf16.vlgmr.msra.gmra.mxu3 %vm227_vm0, %v3327_v63 }
  0xa2   : >> { %1705 = vmatpush.bf16.msra.mxu3 %v3328_v17 }
  0xa3   : >> { %v242_v22 = vpop.f32.mrf.mxu0  ;;  %1658 = vmatpush.bf16.msra.mxu0 %v3330_v37 }
  0xa4   : >> { %v368_v36 = vpop.f32.mrf.mxu3  ;;  %v271_v30 = vadd.f32 %v270_v33, %v242_v22  ;;  %v459_v48 = vpop.f32.mrf.mxu1  ;;  %v1780_v33 = vshll.u32 %v1771_v7, 16  ;;  %v2484_v22 = vld [vmem:[%s2685_s14 + $0x44] sm:$0x3] }
  0xa5   : >> { %v373_v44 = vadd.f32 %v368_v36, %v315_v59  ;;  %v2486_v36 = vld [vmem:[%s2685_s14 + $0x3c] sm:$0xc] }
  0xa6   : >> { %1706 = vmatpush.bf16.msra.mxu3 %v3331_v20  ;;  %v312_v61 = vpop.f32.mrf.mxu2  ;;  %v1782_v17 = vrot.slane %v1780_v33, 1 }
  0xa7   : >> { %2461 = vmatmul.msk.bf16.vlgmr.msrb.gmra.mxu1 %vm227_vm0, %v3068_v55  ;;  %v316_v11 = vadd.f32 %v312_v61, %v271_v30 }
  0xa8   : >> { %1751 = vmatpush.bf16.msrb.mxu1 %v3332_v46 }
  0xab   : >> { %v412_v29 = vpop.f32.mrf.mxu0  ;;  %2462 = vmatmul.msk.bf16.vlgmr.msrb.gmra.mxu2 %vm227_vm0, %v3079_v62  ;;  %v3336_v62 = vld [vmem:[#allocation14_spill] sm:$0xff] }
  0xac   : >> { %v370_v12 = vpop.f32.mrf.mxu3  ;;  %v417_v57 = vadd.f32 %v412_v29, %v373_v44  ;;  %v461_v2 = vpop.f32.mrf.mxu1  ;;  %1752 = vmatpush.bf16.msrb.mxu1 %v3053_v14  ;;  %1793 = vmatpush.bf16.msrb.mxu2 %v3333_v13  ;;  %v1831_v44 = vunpack.c.l.b16 %v2484_v22 }
  0xad   : >> { %v374_v56 = vadd.f32 %v370_v12, %v316_v11  ;;  %v1808_v11 = vrot.slane %v1771_v7, 1 }
  0xae   : >> { %2460 = vmatmul.msk.bf16.vlgmr.msrb.gmra.mxu0 %vm227_vm0, %v3086_v16  ;;  %v464_v55 = vadd.f32 %v459_v48, %v417_v57  ;;  %v518_v45 = vpop.f32.mrf.mxu2  ;;  %v1871_v48 = vunpack.c.l.b16 %v2486_v36  ;;  %v1832_v57 = vpack.c.b16 %v1831_v44, %v1831_v44 }
  0xaf   : >> { %1721 = vmatpush.bf16.msrb.mxu0 %v3334_v6 }
  0xb0   : >> { %v523_v24 = vadd.f32 %v518_v45, %v464_v55  ;;  %1794 = vmatpush.bf16.msrb.mxu2 %v3336_v62  ;;  %v1845_v62 = vshll.u32 %v1832_v57, 16 }
  0xb1   : >> { %2463 = vmatmul.msk.bf16.vlgmr.msrb.gmra.mxu3 %vm227_vm0, %v3098_v41 }
  0xb2   : >> { %1819 = vmatpush.bf16.msrb.mxu3 %v3335_v26  ;;  %v1842_v26 = vshrl.u32 %v1832_v57, 16 }
  0xb3   : >> { %v414_v14 = vpop.f32.mrf.mxu0  ;;  %1722 = vmatpush.bf16.msrb.mxu0 %v3337_v53 }
  0xb4   : >> { %v561_v25 = vpop.f32.mrf.mxu3  ;;  %v418_v16 = vadd.f32 %v414_v14, %v374_v56  ;;  %v661_v34 = vpop.f32.mrf.mxu1 }
  0xb5   : >> { %v566_v47 = vadd.f32 %v561_v25, %v523_v24  ;;  %v1874_v25 = vrot.slane %v1832_v57, 2 }
  0xb6   : >> { %1820 = vmatpush.bf16.msrb.mxu3 %v3338_v52  ;;  %v465_v35 = vadd.f32 %v461_v2, %v418_v16  ;;  %v520_v41 = vpop.f32.mrf.mxu2  ;;  %v1872_v2 = vpack.c.b16 %v1768_v23, %v1871_v48  ;;  %v1847_v52 = vrot.slane %v1845_v62, 2 }
  0xb7   : >> { %2465 = vmatmul.msk.bf16.vlgmr.msra.gmra.mxu1 %vm227_vm0, %v3115_v0 }
  0xb8   : >> { %v524_v4 = vadd.f32 %v520_v41, %v465_v35  ;;  %1885 = vmatpush.bf16.msra.mxu1 %v3091_v21  ;;  %v2482_v21 = vld [vmem:[%s2685_s14 + $0x3c] sm:$0xe]  ;;  %v1873_v14 = vrot.slane %v1872_v2, 2  ;;  %s2488_s14 = sshll.u32 %s2594_s22, 4  ;;  %s177_s22 = sadd.s32 1, %s2594_s22  }
  0xb9   : >> { %v1805_v38 = vunpack.c.l.b16 %v2482_v21  ;;  %s1898_s9 = scalar_lea.vmem [#allocation2], %s2488_s14  ;;  %p174_p4 = scmp.ge.s32.totalorder %s177_s22, 8  }
  0xba   : >> { %v1875_v41 = vsel %vm384_vm4, %v1873_v14, %v1874_v25  ;;  %vm1968_vm5 = vcmask (%p174_p4), 257024  }
  0xbb   : >> { %v618_v8 = vpop.f32.mrf.mxu0  ;;  %2466 = vmatmul.msk.bf16.vlgmr.msra.gmra.mxu2 %vm227_vm0, %v3122_v1  ;;  %v1777_v1 = vrot.slane %v1775_v10, 1  ;;  %v1806_v18 = vpack.c.b16 %v1768_v23, %v1805_v38  ;;  %v1844_v23 = vrot.slane %v1842_v26, 1 }
  0xbc   : >> { %v563_v54 = vpop.f32.mrf.mxu3  ;;  %v623_v9 = vadd.f32 %v618_v8, %v566_v47  ;;  %v663_v27 = vpop.f32.mrf.mxu1  ;;  %1886 = vmatpush.bf16.msra.mxu1 %v3107_v49  ;;  %v1773_v49 = vshrl.u32 %v3210_v32, 16 }
  0xbd   : >> { %v567_v42 = vadd.f32 %v563_v54, %v524_v4  ;;  %v1807_v61 = vrot.slane %v1806_v18, 1  ;;  %v1834_v6 = vshrl.u32 %v1806_v18, 16  ;;  %v1837_v24 = vshll.u32 %v1806_v18, 16 }
  0xbe   : >> { %2464 = vmatmul.msk.bf16.vlgmr.msra.gmra.mxu0 %vm227_vm0, %v3125_v39  ;;  %v666_v0 = vadd.f32 %v661_v34, %v623_v9  ;;  %v708_v19 = vpop.f32.mrf.mxu2  ;;  %v1778_v63 = vor.u32 %v1777_v1, %v1773_v49  ;;  %v1848_v8 = vor.u32 %v1847_v52, %v1844_v23 }
  0xbf   : >> { %1859 = vmatpush.bf16.msra.mxu0 %v3339_v28  ;;  %v1809_v13 = vsel %vm282_vm1, %v1807_v61, %v1808_v11  ;;  %v1836_v47 = vrot.slane %v1834_v6, 1  ;;  %v1839_v34 = vrot.slane %v1837_v24, 2 }
  0xc0   : >> { %v713_v31 = vadd.f32 %v708_v19, %v666_v0  ;;  %v1783_v20 = vsel %vm202_vm2, %v1778_v63, %v1782_v17 }
  0xc1   : >> { %2467 = vmatmul.msk.bf16.vlgmr.msra.gmra.mxu3 %vm227_vm0, %v3132_v5  ;;  %v1840_v54 = vor.u32 %v1839_v34, %v1836_v47 }
  0xc3   : >> { %v620_v43 = vpop.f32.mrf.mxu0  ;;  %1860 = vmatpush.bf16.msra.mxu0 %v3063_v60  ;;  %v1849_v7 = vsel %vm326_vm3, %v1840_v54, %v1848_v8 }
  0xc4   : >> { %v767_v50 = vpop.f32.mrf.mxu3  ;;  %v624_v39 = vadd.f32 %v620_v43, %v567_v42  ;;  %v867_v59 = vpop.f32.mrf.mxu1 }
  0xc5   : >> { %v772_v58 = vadd.f32 %v767_v50, %v713_v31 }
  0xc6   : >> { %v667_v5 = vadd.f32 %v663_v27, %v624_v39  ;;  %v710_v37 = vpop.f32.mrf.mxu2 }
  0xc7   : >> { %2477 = vmatmul.msk.bf16.vlgmr.msrb.gmra.mxu1 %vm227_vm0, %v2547_v51 }
  0xc8   : >> { %v714_v30 = vadd.f32 %v710_v37, %v667_v5 }
  0xcb   : >> { %v810_v46 = vpop.f32.mrf.mxu0  ;;  %2481 = vmatmul.msk.bf16.vlgmr.msrb.gmra.mxu2 %vm227_vm0, %v1783_v20 }
  0xcc   : >> { %v769_v60 = vpop.f32.mrf.mxu3  ;;  %v815_v29 = vadd.f32 %v810_v46, %v772_v58  ;;  %v869_v56 = vpop.f32.mrf.mxu1 }
  0xcd   : >> { %v773_v12 = vadd.f32 %v769_v60, %v714_v30 }
  0xce   : >> { %2468 = vmatmul.msk.bf16.vlgmr.msrb.gmra.mxu0 %vm227_vm0, %v3148_v3  ;;  %v872_v55 = vadd.f32 %v867_v59, %v815_v29  ;;  %v910_v45 = vpop.f32.mrf.mxu2 }
  0xd0   : >> { %v915_v32 = vadd.f32 %v910_v45, %v872_v55 }
  0xd1   : >> { %2483 = vmatmul.msk.bf16.vlgmr.msrb.gmra.mxu3 %vm227_vm0, %v1809_v13 }
  0xd3   : >> { %v812_v53 = vpop.f32.mrf.mxu0 }
  0xd4   : >> { %v957_v16 = vpop.f32.mrf.mxu3  ;;  %v816_v35 = vadd.f32 %v812_v53, %v773_v12  ;;  %v1059_v3 = vpop.f32.mrf.mxu1 }
  0xd5   : >> { %v962_v40 = vadd.f32 %v957_v16, %v915_v32 }
  0xd6   : >> { %v873_v4 = vadd.f32 %v869_v56, %v816_v35  ;;  %v912_v15 = vpop.f32.mrf.mxu2 }
  0xd7   : >> { %2487 = vmatmul.msk.bf16.vlgmr.msra.gmra.mxu1 %vm227_vm0, %v1875_v41 }
  0xd8   : >> { %v916_v42 = vadd.f32 %v912_v15, %v873_v4 }
  0xdb   : >> { %v1016_v27 = vpop.f32.mrf.mxu0 }
  0xdc   : >> { %v959_v9 = vpop.f32.mrf.mxu3  ;;  %v1021_v0 = vadd.f32 %v1016_v27, %v962_v40  ;;  %v1061_v21 = vpop.f32.mrf.mxu1 }
  0xdd   : >> { %v963_v10 = vadd.f32 %v959_v9, %v916_v42 }
  0xde   : >> { %2485 = vmatmul.msk.bf16.vlgmr.msra.gmra.mxu0 %vm227_vm0, %v1849_v7  ;;  %v1064_v19 = vadd.f32 %v1059_v3, %v1021_v0  ;;  %v1116_v28 = vpop.f32.mrf.mxu2 }
  0xe0   : >> { %v1121_v31 = vadd.f32 %v1116_v28, %v1064_v19 }
  0xe3   : >> { %v1018_v49 = vpop.f32.mrf.mxu0 }
  0xe4   : >> { %v1159_v1 = vpop.f32.mrf.mxu3  ;;  %v1022_v33 = vadd.f32 %v1018_v49, %v963_v10  ;;  %v1265_v43 = vpop.f32.mrf.mxu1 }
  0xe5   : >> { %v1164_v38 = vadd.f32 %v1159_v1, %v1121_v31 }
  0xe6   : >> { %v1065_v50 = vadd.f32 %v1061_v21, %v1022_v33  ;;  %v1118_v51 = vpop.f32.mrf.mxu2 }
  0xe8   : >> { %v1122_v39 = vadd.f32 %v1118_v51, %v1065_v50 }
  0xeb   : >> { %v1206_v59 = vpop.f32.mrf.mxu0 }
  0xec   : >> { %v1161_v58 = vpop.f32.mrf.mxu3  ;;  %v1211_v17 = vadd.f32 %v1206_v59, %v1164_v38  ;;  %v1267_v18 = vpop.f32.mrf.mxu1 }
  0xed   : >> { %v1165_v63 = vadd.f32 %v1161_v58, %v1122_v39 }
  0xee   : >> { %v1270_v22 = vadd.f32 %v1265_v43, %v1211_v17  ;;  %v1308_v36 = vpop.f32.mrf.mxu2 }
  0xf0   : >> { %v1313_v5 = vadd.f32 %v1308_v36, %v1270_v22 }
  0xf3   : >> { %v1208_v37 = vpop.f32.mrf.mxu0 }
  0xf4   : >> { %v1365_v30 = vpop.f32.mrf.mxu3  ;;  %v1212_v44 = vadd.f32 %v1208_v37, %v1165_v63  ;;  %v1424_v20 = vpop.f32.mrf.mxu1 }
  0xf5   : >> { %v1370_v48 = vadd.f32 %v1365_v30, %v1313_v5 }
  0xf6   : >> { %v1271_v61 = vadd.f32 %v1267_v18, %v1212_v44  ;;  %v1310_v11 = vpop.f32.mrf.mxu2 }
  0xf8   : >> { %v1314_v60 = vadd.f32 %v1310_v11, %v1271_v61 }
  0xfb   : >> { %v1408_v12 = vpop.f32.mrf.mxu0 }
  0xfc   : >> { %v1367_v46 = vpop.f32.mrf.mxu3  ;;  %v3245_v56 = vadd.f32 %v1408_v12, %v1370_v48  ;;  %v1426_v57 = vpop.f32.mrf.mxu1 }
  0xfd   : >> { %v1371_v29 = vadd.f32 %v1367_v46, %v1314_v60 }
  0xfe   : >> { %v1438_v2 = vpop.f32.mrf.mxu2 }
  0xff   : >> { %v1439_v52 = vadd.f32 %v1438_v2, %v1424_v20 }
 0x103   : >> { %v1410_v13 = vpop.f32.mrf.mxu0 }
 0x104   : >> { %v1452_v55 = vpop.f32.mrf.mxu3  ;;  %v3247_v45 = vadd.f32 %v1410_v13, %v1371_v29  ;;  %v1484_v6 = vpop.f32.mrf.mxu1 }
 0x105   : >> { %v1457_v40 = vadd.f32 %v1452_v55, %v1439_v52 }
 0x106   : >> { %v1440_v24 = vpop.f32.mrf.mxu2 }
 0x107   : >> { %v1441_v54 = vadd.f32 %v1440_v24, %v1426_v57 }
 0x10b   : >> { %v1468_v62 = vpop.f32.mrf.mxu0 }
 0x10c   : >> { %v1454_v26 = vpop.f32.mrf.mxu3  ;;  %v1486_v32 = vpop.f32.mrf.mxu1  ;;  %v1473_v41 = vadd.f32 %v1468_v62, %v1457_v40 }
 0x10d   : >> { %v1458_v9 = vadd.f32 %v1454_v26, %v1441_v54 }
 0x10e   : >> { %v1500_v14 = vpop.f32.mrf.mxu2  ;;  %v1489_v8 = vadd.f32 %v1484_v6, %v1473_v41 }
 0x110   : >> { %v1505_v7 = vadd.f32 %v1500_v14, %v1489_v8 }
 0x113   : >> { %v1470_v25 = vpop.f32.mrf.mxu0 }
 0x114   : >> { %v1516_v53 = vpop.f32.mrf.mxu3  ;;  %v1548_v16 = vpop.f32.mrf.mxu1  ;;  %v1474_v10 = vadd.f32 %v1470_v25, %v1458_v9 }
 0x115   : >> { %v1521_v0 = vadd.f32 %v1516_v53, %v1505_v7 }
 0x116   : >> { %v1502_v47 = vpop.f32.mrf.mxu2  ;;  %v1490_v28 = vadd.f32 %v1486_v32, %v1474_v10 }
 0x118   : >> { %v1506_v33 = vadd.f32 %v1502_v47, %v1490_v28 }
 0x11b   : >> { %v1532_v23 = vpop.f32.mrf.mxu0 }
 0x11c   : >> { %v1518_v34 = vpop.f32.mrf.mxu3  ;;  %v1550_v35 = vpop.f32.mrf.mxu1  ;;  %v1537_v31 = vadd.f32 %v1532_v23, %v1521_v0 }
 0x11d   : >> { %v1522_v43 = vadd.f32 %v1518_v34, %v1506_v33 }
 0x11e   : >> { %v1564_v3 = vpop.f32.mrf.mxu2  ;;  %v1553_v38 = vadd.f32 %v1548_v16, %v1537_v31 }
 0x120   : >> { %v1569_v39 = vadd.f32 %v1564_v3, %v1553_v38 }
 0x123   : >> { %v1534_v4 = vpop.f32.mrf.mxu0 }
 0x124   : >> { %v1580_v15 = vpop.f32.mrf.mxu3  ;;  %v1612_v42 = vpop.f32.mrf.mxu1  ;;  %v1538_v58 = vadd.f32 %v1534_v4, %v1522_v43 }
 0x125   : >> { %v1585_v63 = vadd.f32 %v1580_v15, %v1569_v39 }
 0x126   : >> { %v1566_v27 = vpop.f32.mrf.mxu2  ;;  %v1554_v18 = vadd.f32 %v1550_v35, %v1538_v58 }
 0x128   : >> { %v1570_v37 = vadd.f32 %v1566_v27, %v1554_v18 }
 0x12b   : >> { %v1596_v19 = vpop.f32.mrf.mxu0 }
 0x12c   : >> { %v1582_v21 = vpop.f32.mrf.mxu3  ;;  %v1614_v49 = vpop.f32.mrf.mxu1  ;;  %v1601_v22 = vadd.f32 %v1596_v19, %v1585_v63 }
 0x12d   : >> { %v1586_v48 = vadd.f32 %v1582_v21, %v1570_v37 }
 0x12e   : >> { %v1628_v1 = vpop.f32.mrf.mxu2  ;;  %v1617_v30 = vadd.f32 %v1612_v42, %v1601_v22 }
 0x130   : >> { %v1633_v61 = vadd.f32 %v1628_v1, %v1617_v30 }
 0x133   : >> { %v1598_v50 = vpop.f32.mrf.mxu0 }
 0x134   : >> { %v1644_v51 = vpop.f32.mrf.mxu3  ;;  %v1676_v59 = vpop.f32.mrf.mxu1  ;;  %v1602_v11 = vadd.f32 %v1598_v50, %v1586_v48  ;;  %v2579_v50 = vld [vmem:[%s3281_s2] ss:$0 sm:$0xff] (%p174_p4) }
 0x135   : >> { %v1649_v60 = vadd.f32 %v1644_v51, %v1633_v61 }
 0x136   : >> { %v1630_v17 = vpop.f32.mrf.mxu2  ;;  %v1618_v29 = vadd.f32 %v1614_v49, %v1602_v11 }
 0x138   : >> { %v1634_v13 = vadd.f32 %v1630_v17, %v1618_v29 }
 0x13b   : >> { %v1660_v5 = vpop.f32.mrf.mxu0 }
 0x13c   : >> { %v1646_v36 = vpop.f32.mrf.mxu3  ;;  %v1678_v44 = vpop.f32.mrf.mxu1  ;;  %v1665_v57 = vadd.f32 %v1660_v5, %v1649_v60 }
 0x13d   : >> { %v1650_v24 = vadd.f32 %v1646_v36, %v1634_v13 }
 0x13e   : >> { %v1692_v20 = vpop.f32.mrf.mxu2  ;;  %v1681_v55 = vadd.f32 %v1676_v59, %v1665_v57 }
 0x140   : >> { %v1697_v32 = vadd.f32 %v1692_v20, %v1681_v55 }
 0x143   : >> { %v1662_v46 = vpop.f32.mrf.mxu0 }
 0x144   : >> { %v1708_v12 = vpop.f32.mrf.mxu3  ;;  %v1754_v2 = vpop.f32.mrf.mxu1  ;;  %v1666_v14 = vadd.f32 %v1662_v46, %v1650_v24 }
 0x145   : >> { %v1713_v25 = vadd.f32 %v1708_v12, %v1697_v32 }
 0x146   : >> { %v1694_v6 = vpop.f32.mrf.mxu2  ;;  %v1682_v53 = vadd.f32 %v1678_v44, %v1666_v14 }
 0x148   : >> { %v1698_v52 = vadd.f32 %v1694_v6, %v1682_v53 }
 0x14b   : >> { %v1724_v62 = vpop.f32.mrf.mxu0 }
 0x14c   : >> { %v1710_v26 = vpop.f32.mrf.mxu3  ;;  %v1729_v16 = vadd.f32 %v1724_v62, %v1713_v25  ;;  %v1756_v47 = vpop.f32.mrf.mxu1 }
 0x14d   : >> { %v1714_v3 = vadd.f32 %v1710_v26, %v1698_v52 }
 0x14e   : >> { %v1796_v34 = vpop.f32.mrf.mxu2  ;;  %v1759_v35 = vadd.f32 %v1754_v2, %v1729_v16 }
 0x150   : >> { %v1801_v41 = vadd.f32 %v1796_v34, %v1759_v35 }
 0x153   : >> { %v1726_v23 = vpop.f32.mrf.mxu0 }
 0x154   : >> { %v1822_v40 = vpop.f32.mrf.mxu3  ;;  %v1730_v4 = vadd.f32 %v1726_v23, %v1714_v3  ;;  %v1888_v54 = vpop.f32.mrf.mxu1 }
 0x155   : >> { %v1827_v15 = vadd.f32 %v1822_v40, %v1801_v41 }
 0x156   : >> { %v1760_v42 = vadd.f32 %v1756_v47, %v1730_v4  ;;  %v1798_v27 = vpop.f32.mrf.mxu2 }
 0x158   : >> { %v1802_v0 = vadd.f32 %v1798_v27, %v1760_v42 }
 0x15b   : >> { %v1862_v8 = vpop.f32.mrf.mxu0 }
 0x15c   : >> { %v1867_v9 = vadd.f32 %v1862_v8, %v1827_v15  ;;  %v1824_v10 = vpop.f32.mrf.mxu3  ;;  %v1890_v49 = vpop.f32.mrf.mxu1 }
 0x15d   : >> { %v1828_v19 = vadd.f32 %v1824_v10, %v1802_v0 }
 0x15e   : >> { %v1893_v7 = vadd.f32 %v1888_v54, %v1867_v9 }
 0x160   : >> { %v1895_v21 = vmax.f32 %v3245_v56, %v1893_v7 }
 0x162   : >> { %1899 = vst.msk [vmem:[%s1898_s9] sm:$0xff] %vm227_vm0, %v1895_v21 }
 0x163   : >> { %v1864_v28 = vpop.f32.mrf.mxu0 }
 0x164   : >> { %v1868_v31 = vadd.f32 %v1864_v28, %v1828_v19 }
 0x166   : >> { %v1894_v1 = vadd.f32 %v1890_v49, %v1868_v31  ;;  %176 = sbr.rel (!%p174_p4) target bundleno = 15 (0xf), region = 115 }
 0x168   : >> { %v1896_v33 = vmax.f32 %v3247_v45, %v1894_v1 }
 0x16a   : >> { %1900 = vst.msk [vmem:[%s1898_s9 + $0x8] sm:$0xff] %vm227_vm0, %v1896_v33 }
 0x171   : > { %v1901_v38 = vld [vmem:[#allocation2] ss:$2 sm:$0xff]  ;;  %v1917_v56 = vld [vmem:[#allocation2 + $0x1] ss:$2 sm:$0xff]  ;;  %v1903_v51 = vld [vmem:[#allocation2 + $0x10] ss:$2 sm:$0xff] }
 0x172   : > { %v1932_v43 = vmax.f32 %v1901_v38, %v1917_v56  ;;  %v1919_v39 = vld [vmem:[#allocation2 + $0x11] ss:$2 sm:$0xff]  ;;  %v1905_v58 = vld [vmem:[#allocation2 + $0x20] ss:$2 sm:$0xff]  ;;  %v1921_v59 = vld [vmem:[#allocation2 + $0x21] ss:$2 sm:$0xff] }
 0x173   : > { %v1933_v63 = vmax.f32 %v1903_v51, %v1919_v39  ;;  %v1934_v17 = vmax.f32 %v1905_v58, %v1921_v59  ;;  %v1907_v18 = vld [vmem:[#allocation2 + $0x30] ss:$2 sm:$0xff]  ;;  %v1923_v22 = vld [vmem:[#allocation2 + $0x31] ss:$2 sm:$0xff]  ;;  %v1909_v36 = vld [vmem:[#allocation2 + $0x40] ss:$2 sm:$0xff] }
 0x174   : > { %v1944_v45 = vadd.f32 %v2579_v50, %v1932_v43  ;;  %v1935_v5 = vmax.f32 %v1907_v18, %v1923_v22  ;;  %v1925_v37 = vld [vmem:[#allocation2 + $0x41] ss:$2 sm:$0xff]  ;;  %v1911_v30 = vld [vmem:[#allocation2 + $0x50] ss:$2 sm:$0xff]  ;;  %v1927_v44 = vld [vmem:[#allocation2 + $0x51] ss:$2 sm:$0xff] }
 0x175   : > { %v1945_v20 = vadd.f32 %v2579_v50, %v1933_v63  ;;  %v1946_v61 = vadd.f32 %v2579_v50, %v1934_v17  ;;  %v1936_v11 = vmax.f32 %v1909_v36, %v1925_v37  ;;  %v1913_v60 = vld [vmem:[#allocation2 + $0x60] ss:$2 sm:$0xff]  ;;  %v1929_v46 = vld [vmem:[#allocation2 + $0x61] ss:$2 sm:$0xff]  ;;  %v1937_v29 = vmax.f32 %v1911_v30, %v1927_v44  ;;  %v1915_v2 = vld [vmem:[#allocation2 + $0x70] ss:$2 sm:$0xff] }
 0x176   : > { %v1952_v48 = vmax.f32 %v1944_v45, 0.0  ;;  %v1947_v12 = vadd.f32 %v2579_v50, %v1935_v5  ;;  %v1938_v57 = vmax.f32 %v1913_v60, %v1929_v46  ;;  %v1931_v13 = vld [vmem:[#allocation2 + $0x71] ss:$2 sm:$0xff] }
 0x177   : > { %v1953_v6 = vmax.f32 %v1945_v20, 0.0  ;;  %v1954_v24 = vmax.f32 %v1946_v61, 0.0  ;;  %v1948_v26 = vadd.f32 %v2579_v50, %v1936_v11  ;;  %v1949_v32 = vadd.f32 %v2579_v50, %v1937_v29 }
 0x178   : > { %v1960_v55 = vpack.c.bf16 %v1952_v48, %v1952_v48  ;;  %v1955_v62 = vmax.f32 %v1947_v12, 0.0  ;;  %v1950_v14 = vadd.f32 %v2579_v50, %v1938_v57  ;;  %v1939_v25 = vmax.f32 %v1915_v2, %v1931_v13 }
 0x179   : > { %v1961_v53 = vpack.c.bf16 %v1953_v6, %v1953_v6  ;;  %v1962_v16 = vpack.c.bf16 %v1954_v24, %v1954_v24  ;;  %v1956_v47 = vmax.f32 %v1948_v26, 0.0  ;;  %v1957_v23 = vmax.f32 %v1949_v32, 0.0 }
 0x17a   : > { %1969 = vst.msk [vmem:[%s2627_s18] sm:$0xf] %vm1968_vm5, %v1960_v55  ;;  %v1963_v34 = vpack.c.bf16 %v1955_v62, %v1955_v62  ;;  %v1958_v52 = vmax.f32 %v1950_v14, 0.0  ;;  %v1951_v35 = vadd.f32 %v2579_v50, %v1939_v25 }
 0x17b   : > { %1970 = vst.msk [vmem:[%s2627_s18 + $0x4] sm:$0xf] %vm1968_vm5, %v1961_v53  ;;  %v1964_v40 = vpack.c.bf16 %v1956_v47, %v1956_v47  ;;  %v1965_v3 = vpack.c.bf16 %v1957_v23, %v1957_v23 }
 0x17c   : > { %1971 = vst.msk [vmem:[%s2627_s18 + $0x8] sm:$0xf] %vm1968_vm5, %v1962_v16  ;;  %v1966_v41 = vpack.c.bf16 %v1958_v52, %v1958_v52  ;;  %v1959_v4 = vmax.f32 %v1951_v35, 0.0 }
 0x17d   : > { %1972 = vst.msk [vmem:[%s2627_s18 + $0xc] sm:$0xf] %vm1968_vm5, %v1963_v34 }
 0x17e   : > { %1973 = vst.msk [vmem:[%s2627_s18 + $0x10] sm:$0xf] %vm1968_vm5, %v1964_v40  ;;  %v1967_v15 = vpack.c.bf16 %v1959_v4, %v1959_v4 }
 0x17f   : > { %1974 = vst.msk [vmem:[%s2627_s18 + $0x14] sm:$0xf] %vm1968_vm5, %v1965_v3 }
 0x180   : > { %1975 = vst.msk [vmem:[%s2627_s18 + $0x18] sm:$0xf] %vm1968_vm5, %v1966_v41 }
 0x181   : > { %1976 = vst.msk [vmem:[%s2627_s18 + $0x1c] sm:$0xf] %vm1968_vm5, %v1967_v15 }
 0x182 PF: > { %s13_s12 = sadd.s32 1, %s2590_s12  }
 0x183   : > { %p10_p5 = scmp.ge.s32.totalorder %s13_s12, 4  }
 0x185   :  { %12 = sbr.rel (!%p10_p5) target bundleno = 1 (0x1), region = 126 }

// kernel: net_forward.7
= control target key start
LH: loop header
LB: loop body
LE: loop exit
PB: predicated region body
PF: predicated region fallthrough
CT: control target
= control target key end

     0   :  { %s2947_s12 = smov 0   ;;  %s3771_s0 = inlined_call_operand.vmem [shape: bf16[2,36,36,8], index: 0, kind: input, shape index: {}]   ;;  %s3772_s1 = inlined_call_operand.vmem [shape: bf16[25,8,32], index: 1, kind: input, shape index: {}]   ;;  %s3773_s2 = inlined_call_operand.vmem [shape: f32[1,1,32], index: 2, kind: input, shape index: {}]   ;;  %s3774_s3 = inlined_call_operand.vmem [shape: bf16[2,16,16,32], index: 3, kind: output, shape index: {}]  }
   0x1 LB: > { %s2587_s13 = sadd.s32 4294967295, %s2921_s12   ;;  %p2591_p0 = scmp.ge.s32.totalorder %s2921_s12, 1  ;;  %s2921_s12 = sphi %s2947_s12, %s13_s12  }
   0x2   : > { %p137_p1 = scmp.lt.s32.totalorder %s2921_s12, 3 }
   0x4   : > { %p138_p2 = pnand %p2591_p0, %p137_p1 }
   0x5   : > { %p161_p3 = scmp.lt.s32.totalorder (!%p138_p2), %s2587_s13, 1  ;;  %s2965_s22 = smov (!%p138_p2), 0  }
   0x6   : > { %141 = sbr.rel (%p138_p2) target bundleno = 616 (0x268), region = 32 }
   0xb   : > { %s3860_s13 = smov (!%p161_p3, %s2587_s13), 1 }
   0xc   : > { %s2893_s14 = smul.u32 720, %s3860_s13  ;;  %s2859_s15 = sshll.u32 %s3860_s13, 7 }
   0xd   : > { %s2958_s18 = scalar_lea.vmem %s3774_s3, %s2859_s15 }
   0xe   : > { %s2963_s21 = scalar_lea.vmem %s3771_s0, %s2893_s14 }
   0xf LB: >> { %v186_v0 = vld [vmem:[%s3772_s1] sm:$0xf]  ;;  %vm231_vm0 = vcmask 1043456   ;;  %v2598_v1 = vld [vmem:[%s3772_s1 + $0x4] sm:$0xf]  ;;  %s2860_s29 = smul.u32 40, %s2925_s22  ;;  %s2925_s22 = sphi %s2965_s22, %s177_s22  }
  0x10   : >> { %v2977_v2 = vsel %vm231_vm0, %v186_v0, 0  ;;  %v2980_v3 = vsel %vm231_vm0, %v2598_v1, 0  ;;  %v2607_v4 = vld [vmem:[%s3772_s1 + $0x8] sm:$0xf]  ;;  %v2610_v6 = vld [vmem:[%s3772_s1 + $0xc] sm:$0xf] }
  0x11   : >> { %2892 = vmatpush.bf16.msra.mxu3 %v2977_v2  ;;  %2891 = vmatpush.bf16.msra.mxu2 %v2980_v3  ;;  %v2989_v5 = vsel %vm231_vm0, %v2607_v4, 0  ;;  %v2997_v7 = vsel %vm231_vm0, %v2610_v6, 0  ;;  %v2613_v8 = vld [vmem:[%s3772_s1 + $0x10] sm:$0xf]  ;;  %v2622_v9 = vld [vmem:[%s3772_s1 + $0x14] sm:$0xf]  ;;  %s3006_s9 = scalar_lea.vmem %s2963_s21, %s2860_s29 }
  0x12   : >> { %242 = vmatpush.bf16.msra.mxu0 %v2980_v3  ;;  %268 = vmatpush.bf16.msra.mxu1 %v2977_v2  ;;  %vm224_vm1 = vcmask 64512   ;;  %v3011_v10 = vsel %vm231_vm0, %v2613_v8, 0  ;;  %v3014_v11 = vsel %vm231_vm0, %v2622_v9, 0  ;;  %v3017_v12 = vld [vmem:[%s3006_s9 + $0x8] sm:$0xff]  ;;  %v187_v13 = vld [vmem:[%s3006_s9 + $0x10] sm:$0x1] }
  0x13   : >> { %v2878_v14 = vld [vmem:[%s3006_s9] sm:$0xff]   ;;  %v199_v15 = vunpack.c.l.b16 %v187_v13  ;;  %v212_v20 = vshll.u32 %v3017_v12, 16  ;;  %v216_v21 = vshrl.u32 %v3017_v12, 16  ;;  %v2646_v23 = vld [vmem:[%s3772_s1 + $0x1c] sm:$0xf]  ;;  %v3067_v54 = vld [vmem:[%s3006_s9 + $0x14] sm:$0xff] }
  0x14   : >> { %v2880_v16 = vunpack.c.h.b16 %v2878_v14  ;;  %v205_v17 = vshrl.u32 %v2878_v14, 16  ;;  %v207_v18 = vshll.u32 %v2878_v14, 16  ;;  %v280_v19 = vld [vmem:[%s3006_s9] sm:$0xe]  ;;  %2606 = vmatmul.msk.bf16.vlgmr.msra.gmra.mxu3 %vm224_vm1, %v3017_v12  ;;  %vm203_vm2 = vsmask.f32 7424 }
  0x15   : >> { %308 = vmatpush.bf16.msrb.mxu2 %v2989_v5  ;;  %368 = vmatpush.bf16.msrb.mxu3 %v2997_v7  ;;  %v284_v22 = vunpack.c.l.b16 %v280_v19  ;;  %v3032_v24 = vpack.c.b16 %v199_v15, %v199_v15  ;;  %v214_v26 = vrot.slane %v212_v20, 1  ;;  %v2638_v30 = vld [vmem:[%s3772_s1 + $0x18] sm:$0xf]  ;;  %v3039_v31 = vsel %vm231_vm0, %v2646_v23, 0  ;;  %v2650_v32 = vld [vmem:[%s3772_s1 + $0x20] sm:$0xf] }
  0x16   : >> { %412 = vmatpush.bf16.msrb.mxu0 %v3011_v10  ;;  %464 = vmatpush.bf16.msrb.mxu1 %v3014_v11  ;;  %v209_v25 = vrot.slane %v207_v18, 1  ;;  %v384_v36 = vld [vmem:[%s3006_s9] sm:$0xc]  ;;  %v2654_v37 = vld [vmem:[%s3772_s1 + $0x24] sm:$0xf]  ;;  %v339_v40 = vrot.slane %v216_v21, 1 }
  0x17   : >> { %2605 = vmatmul.msk.bf16.vlgmr.msra.gmra.mxu1 %vm224_vm1, %v2878_v14  ;;  %v285_v27 = vpack.c.b16 %v2880_v16, %v284_v22  ;;  %v220_v28 = vshll.u32 %v3032_v24, 16  ;;  %v218_v33 = vor.u32 %v216_v21, %v214_v26  ;;  %v340_v41 = vrot.slane %v212_v20, 2  ;;  %v324_v45 = vld [vmem:[%s3006_s9 + $0x10] sm:$0x3]  ;;  %v2663_v6 = vld [vmem:[%s3772_s1 + $0x28] sm:$0xf] }
  0x18   : >> { %v210_v29 = vor.u32 %v209_v25, %v205_v17  ;;  %v3052_v44 = vsel %vm231_vm0, %v2638_v30, 0  ;;  %v3056_v46 = vsel %vm231_vm0, %v2650_v32, 0  ;;  %v388_v48 = vunpack.c.l.b16 %v384_v36  ;;  %v2679_v8 = vld [vmem:[%s3772_s1 + $0x2c] sm:$0xf]  ;;  %v3094_v14 = vld [vmem:[%s3006_s9 + $0x1c] sm:$0xff] }
  0x19   : >> { %v332_v34 = vshrl.u32 %v285_v27, 16  ;;  %v335_v35 = vshll.u32 %v285_v27, 16  ;;  %579 = vmatpush.bf16.msra.mxu3 %v3039_v31  ;;  %v222_v38 = vrot.slane %v220_v28, 1  ;;  %v3061_v49 = vsel %vm231_vm0, %v2654_v37, 0  ;;  %v2653_v17 = vld [vmem:[%s3006_s9 + $0x14] sm:$0xc] }
  0x1a   : >> { %v215_v39 = vsel %vm203_vm2, %v210_v29, %v214_v26  ;;  %681 = vmatpush.bf16.msra.mxu1 %v3061_v49  ;;  %v341_v51 = vor.u32 %v340_v41, %v339_v40  ;;  %v328_v52 = vunpack.c.l.b16 %v324_v45  ;;  %vm330_vm3 = vsmask.f32 6400  ;;  %v2645_v18 = vld [vmem:[%s3006_s9 + $0x14] sm:$0xe]  ;;  %v2687_v23 = vld [vmem:[%s3772_s1 + $0x30] sm:$0xf] }
  0x1b   : >> { %2603 = vmatmul.msk.bf16.vlgmr.msra.gmra.mxu0 %vm224_vm1, %v215_v39  ;;  %v334_v42 = vrot.slane %v332_v34, 1  ;;  %v337_v43 = vrot.slane %v335_v35, 2  ;;  %v223_v47 = vsel %vm203_vm2, %v218_v33, %v222_v38  ;;  %v389_v53 = vpack.c.b16 %v2880_v16, %v388_v48  ;;  %v2634_v16 = vld [vmem:[%s3006_s9 + $0x14] sm:$0xff]   ;;  %v3121_v32 = vld [vmem:[%s3006_s9 + $0x1c] sm:$0xff] }
  0x1c   : >> { %638 = vmatpush.bf16.msra.mxu0 %v3056_v46  ;;  %2604 = vmatmul.msk.bf16.vlgmr.msra.gmra.mxu2 %vm224_vm1, %v223_v47  ;;  %v329_v56 = vpack.c.b16 %v328_v52, %v328_v52  ;;  %v392_v58 = vrot.slane %v3017_v12, 2  ;;  %vm390_vm4 = vcmask 1045504   ;;  %v287_v59 = vrot.slane %v285_v27, 1  ;;  %v2691_v25 = vld [vmem:[%s3772_s1 + $0x34] sm:$0xf] }
  0x1d   : >> { %v338_v50 = vor.u32 %v337_v43, %v334_v42  ;;  %536 = vmatpush.bf16.msra.mxu2 %v3052_v44  ;;  %v391_v57 = vrot.slane %v389_v53, 2  ;;  %v288_v60 = vrot.slane %v3017_v12, 1  ;;  %vm286_vm5 = vcmask 1046528  }
  0x1e   : >> { %v344_v61 = vshrl.u32 %v329_v56, 16  ;;  %v347_v62 = vshll.u32 %v329_v56, 16  ;;  %v3086_v12 = vsel %vm231_vm0, %v2663_v6, 0  ;;  %v3089_v13 = vsel %vm231_vm0, %v2679_v8, 0  ;;  %v2686_v6 = vld [vmem:[%s3006_s9 + $0x28] sm:$0xe] }
  0x1f   : >> { %v342_v55 = vsel %vm330_vm3, %v338_v50, %v341_v51  ;;  %v393_v63 = vsel %vm390_vm4, %v391_v57, %v392_v58  ;;  %v289_v0 = vsel %vm286_vm5, %v287_v59, %v288_v60  ;;  %v394_v19 = vrot.slane %v329_v56, 2  ;;  %v2637_v56 = vld [vmem:[%s3006_s9 + $0x24] sm:$0x1] }
  0x20   : >> { %v346_v1 = vrot.slane %v344_v61, 1  ;;  %v349_v4 = vrot.slane %v347_v62, 2  ;;  %v290_v20 = vrot.slane %v3032_v24, 1  ;;  %v493_v21 = vunpack.c.h.b16 %v2634_v16 }
  0x21   : >> { %v658_v22 = vunpack.c.l.b16 %v2653_v17  ;;  %v556_v26 = vunpack.c.l.b16 %v2645_v18  ;;  %v3111_v27 = vsel %vm231_vm0, %v2687_v23, 0  ;;  %v3114_v28 = vsel %vm231_vm0, %v2691_v25, 0  ;;  %v2695_v17 = vld [vmem:[%s3772_s1 + $0x38] sm:$0xf] }
  0x22   : >> { %v350_v9 = vor.u32 %v349_v4, %v346_v1  ;;  %v395_v24 = vsel %vm390_vm4, %v392_v58, %v394_v19  ;;  %v291_v30 = vsel %vm286_vm5, %v288_v60, %v290_v20  ;;  %v508_v34 = vshll.u32 %v3121_v32, 16  ;;  %v2704_v20 = vld [vmem:[%s3772_s1 + $0x3c] sm:$0xf] }
  0x23   : >> { %v659_v29 = vpack.c.b16 %v493_v21, %v658_v22  ;;  %v557_v33 = vpack.c.b16 %v493_v21, %v556_v26  ;;  %v512_v35 = vshrl.u32 %v3121_v32, 16  ;;  %v661_v39 = vrot.slane %v3121_v32, 2 }
  0x24   : >> { %2611 = vmatmul.msk.bf16.vlgmr.msrb.gmra.mxu3 %vm224_vm1, %v342_v55  ;;  %v351_v15 = vsel %vm330_vm3, %v341_v51, %v350_v9  ;;  %v559_v41 = vrot.slane %v3121_v32, 1  ;;  %v503_v42 = vshll.u32 %v2634_v16, 16  ;;  %v610_v48 = vrot.slane %v508_v34, 2  ;;  %v2649_v51 = vld [vmem:[%s3006_s9 + $0x24] sm:$0x3] }
  0x25   : >> { %805 = vmatpush.bf16.msrb.mxu3 %v3089_v13  ;;  %v602_v36 = vshrl.u32 %v557_v33, 16  ;;  %v605_v37 = vshll.u32 %v557_v33, 16  ;;  %v660_v38 = vrot.slane %v659_v29, 2  ;;  %v558_v40 = vrot.slane %v557_v33, 1  ;;  %v3179_v33 = vld [vmem:[%s3006_s9 + $0x30] sm:$0xff] }
  0x26   : >> { %v609_v47 = vrot.slane %v512_v35, 1  ;;  %v501_v53 = vshrl.u32 %v2634_v16, 16  ;;  %v505_v55 = vrot.slane %v503_v42, 1  ;;  %v599_v59 = vunpack.c.l.b16 %v2649_v51 }
  0x27   : >> { %2631 = vmatmul.msk.bf16.vlgmr.msrb.gmra.mxu1 %vm224_vm1, %v3067_v54  ;;  %v604_v43 = vrot.slane %v602_v36, 1  ;;  %v607_v45 = vrot.slane %v605_v37, 2  ;;  %v3130_v50 = vsel %vm390_vm4, %v660_v38, %v661_v39  ;;  %v3134_v52 = vsel %vm286_vm5, %v558_v40, %v559_v41  ;;  %v2720_v40 = vld [vmem:[%s3772_s1 + $0x40] sm:$0xf] }
  0x28   : >> { %907 = vmatpush.bf16.msrb.mxu1 %v3114_v28  ;;  %v611_v58 = vor.u32 %v610_v48, %v609_v47  ;;  %v506_v60 = vor.u32 %v505_v55, %v501_v53  ;;  %v510_v61 = vrot.slane %v508_v34, 1  ;;  %v496_v62 = vunpack.c.l.b16 %v2637_v56 }
  0x29   : >> { %v608_v57 = vor.u32 %v607_v45, %v604_v43  ;;  %v825_v19 = vunpack.c.l.b16 %v2686_v6  ;;  %v3163_v22 = vsel %vm231_vm0, %v2695_v17, 0  ;;  %v3166_v23 = vsel %vm231_vm0, %v2704_v20, 0 }
  0x2a   : >> { %v3145_v1 = vsel %vm203_vm2, %v506_v60, %v510_v61  ;;  %v499_v4 = vpack.c.b16 %v496_v62, %v496_v62  ;;  %v781_v36 = vshrl.u32 %v3179_v33, 16  ;;  %v514_v37 = vor.u32 %v512_v35, %v510_v61  ;;  %v2690_v61 = vld [vmem:[%s3006_s9 + $0x38] sm:$0x3] }
  0x2b   : >> { %2614 = vmatmul.msk.bf16.vlgmr.msrb.gmra.mxu0 %vm224_vm1, %v393_v63  ;;  %v3142_v63 = vsel %vm330_vm3, %v608_v57, %v611_v58  ;;  %v3194_v45 = vsel %vm231_vm0, %v2720_v40, 0  ;;  %v777_v35 = vshll.u32 %v3179_v33, 16  ;;  %vm2206_vm6 = vcmask 261120  }
  0x2c   : >> { %2608 = vmatmul.msk.bf16.vlgmr.msrb.gmra.mxu2 %vm224_vm1, %v289_v0  ;;  %848 = vmatpush.bf16.msrb.mxu0 %v3111_v27  ;;  %v600_v0 = vpack.c.b16 %v599_v59, %v599_v59  ;;  %v561_v21 = vrot.slane %v499_v4, 1  ;;  %v516_v32 = vshll.u32 %v499_v4, 16  ;;  %v878_v55 = vrot.slane %v781_v36, 1 }
  0x2d   : >> { %733 = vmatpush.bf16.msrb.mxu2 %v3086_v12  ;;  %v879_v56 = vrot.slane %v777_v35, 2  ;;  %v779_v6 = vrot.slane %v777_v35, 1 }
  0x2e   : >> { %v614_v8 = vshrl.u32 %v600_v0, 16  ;;  %v617_v9 = vshll.u32 %v600_v0, 16  ;;  %v663_v16 = vrot.slane %v600_v0, 2  ;;  %v518_v42 = vrot.slane %v516_v32, 1 }
  0x2f   : >> { %v880_v62 = vor.u32 %v879_v56, %v878_v55  ;;  %v868_v0 = vunpack.c.l.b16 %v2690_v61  ;;  %v3258_v56 = vld [vmem:[%s3006_s9 + $0x3c] sm:$0xff]  }
  0x30   : >> { %v616_v25 = vrot.slane %v614_v8, 1  ;;  %v619_v26 = vrot.slane %v617_v9, 2  ;;  %v3206_v57 = vsel %vm203_vm2, %v514_v37, %v518_v42  ;;  %v2678_v8 = vld [vmem:[%s3006_s9 + $0x38] sm:$0x1]  ;;  %v3234_v37 = vld [vmem:[%s3006_s9 + $0x28] sm:$0xff]  ;;  %v3776_v61 = vunpack.c.h.b16 %v3258_v56 }
  0x31   : >> { %v2736_v42 = vld [vmem:[%s3772_s1 + $0x4c] sm:$0xf] }
  0x32   : >> { %v620_v34 = vor.u32 %v619_v26, %v616_v25 }
  0x34   : >> { %2612 = vmatmul.msk.bf16.gmra.mxu3 %vm224_vm1, %v351_v15  ;;  %v3151_v15 = vld [vmem:[%s3006_s9 + $0x28] sm:$0xff]   ;;  %v3203_v48 = vsel %vm330_vm3, %v611_v58, %v620_v34 }
  0x35   : >> { %v2884_v18 = vunpack.c.h.b16 %v3151_v15  ;;  %v772_v43 = vshll.u32 %v3151_v15, 16  ;;  %v770_v59 = vshrl.u32 %v3151_v15, 16 }
  0x37   : >> { %2632 = vmatmul.msk.bf16.gmra.mxu1 %vm224_vm1, %v3094_v14  ;;  %v826_v29 = vpack.c.b16 %v2884_v18, %v825_v19  ;;  %v774_v60 = vrot.slane %v772_v43, 1  ;;  %v765_v19 = vunpack.c.l.b16 %v2678_v8  ;;  %v783_v43 = vor.u32 %v781_v36, %v779_v6  ;;  %v2727_v36 = vld [vmem:[%s3006_s9 + $0x3c] sm:$0xe] }
  0x39   : >> { %v871_v38 = vshrl.u32 %v826_v29, 16  ;;  %v775_v4 = vor.u32 %v774_v60, %v770_v59  ;;  %v827_v20 = vrot.slane %v826_v29, 1  ;;  %v768_v32 = vpack.c.b16 %v765_v19, %v765_v19  ;;  %v3287_v19 = vld [vmem:[%s3006_s9 + $0x30] sm:$0xff] }
  0x3a   : >> { %3810 = vst [vmem:[#allocation9_spill] sm:$0xff] %v3287_v19 }
  0x3b   : >> { %2615 = vmatmul.msk.bf16.gmra.mxu0 %vm224_vm1, %v395_v24  ;;  %v3171_v24 = vsel %vm390_vm4, %v661_v39, %v663_v16  ;;  %v874_v39 = vshll.u32 %v826_v29, 16  ;;  %v873_v51 = vrot.slane %v871_v38, 1  ;;  %v3218_v16 = vpack.c.b16 %v868_v0, %v868_v0  ;;  %v2761_v0 = vld [vmem:[%s3772_s1 + $0x54] sm:$0xf] }
  0x3c   : >> { %2609 = vmatmul.msk.bf16.gmra.mxu2 %vm224_vm1, %v291_v30  ;;  %v3176_v30 = vsel %vm286_vm5, %v559_v41, %v561_v21  ;;  %v2728_v41 = vld [vmem:[%s3772_s1 + $0x44] sm:$0xf]  ;;  %v3221_v17 = vsel %vm203_vm2, %v775_v4, %v779_v6  ;;  %v828_v21 = vrot.slane %v3179_v33, 1  ;;  %v830_v60 = vrot.slane %v768_v32, 1 }
  0x3d   : >> { %v3197_v47 = vsel %vm231_vm0, %v2728_v41, 0  ;;  %v876_v53 = vrot.slane %v874_v39, 2  ;;  %v883_v25 = vshrl.u32 %v3218_v16, 16  ;;  %v886_v26 = vshll.u32 %v3218_v16, 16  ;;  %v2732_v41 = vld [vmem:[%s3772_s1 + $0x48] sm:$0xf] }
  0x3e   : >> { %3804 = vst [vmem:[#allocation3_spill] sm:$0xff] %v3197_v47  ;;  %v3231_v34 = vsel %vm286_vm5, %v827_v20, %v828_v21  ;;  %v785_v39 = vshll.u32 %v768_v32, 16  ;;  %v3279_v6 = vsel %vm231_vm0, %v2761_v0, 0  ;;  %v3284_v8 = vsel %vm286_vm5, %v828_v21, %v830_v60 }
  0x3f   : >> { %v877_v58 = vor.u32 %v876_v53, %v873_v51  ;;  %v885_v29 = vrot.slane %v883_v25, 1  ;;  %v888_v38 = vrot.slane %v886_v26, 2  ;;  %v3247_v51 = vsel %vm231_vm0, %v2732_v41, 0  ;;  %3808 = vst [vmem:[#allocation7_spill] sm:$0xff] %v3279_v6  ;;  %v2694_v25 = vld [vmem:[%s3006_s9 + $0x28] sm:$0xc] }
  0x40   : >> { %v787_v35 = vrot.slane %v785_v39, 1  ;;  %3805 = vst [vmem:[#allocation4_spill] sm:$0xff] %v3247_v51  ;;  %v3250_v53 = vsel %vm231_vm0, %v2736_v42, 0  ;;  %v3297_v26 = vld [vmem:[%s3006_s9 + $0x44] sm:$0xff]  ;;  %v1041_v32 = vshll.u32 %v3258_v56, 16  ;;  %v1039_v39 = vshrl.u32 %v3258_v56, 16 }
  0x41   : >> { %v3216_v9 = vsel %vm330_vm3, %v877_v58, %v880_v62  ;;  %v889_v40 = vor.u32 %v888_v38, %v885_v29  ;;  %3806 = vst [vmem:[#allocation5_spill] sm:$0xff] %v3250_v53  ;;  %v1094_v58 = vunpack.c.l.b16 %v2727_v36  ;;  %v1097_v29 = vrot.slane %v3297_v26, 1  ;;  %v3307_v42 = vld [vmem:[%s3006_s9 + $0x3c] sm:$0xff] }
  0x42   : >> { %v3261_v59 = vsel %vm203_vm2, %v783_v43, %v787_v35  ;;  %3809 = vst [vmem:[#allocation8_spill] sm:$0xff] %v3284_v8  ;;  %v927_v38 = vunpack.c.l.b16 %v2694_v25  ;;  %v3775_v41 = vshll.u32 %v3297_v26, 16  ;;  %v930_v0 = vrot.slane %v3179_v33, 2  ;;  %v2769_v33 = vld [vmem:[%s3772_s1 + $0x58] sm:$0xf] }
  0x43   : >> { %v3255_v55 = vsel %vm330_vm3, %v880_v62, %v889_v40  ;;  %v2745_v62 = vld [vmem:[%s3772_s1 + $0x50] sm:$0xf]  ;;  %v3291_v20 = vpack.c.b16 %v3776_v61, %v1094_v58  ;;  %v1043_v40 = vrot.slane %v1041_v32, 1  ;;  %3811 = vst [vmem:[#allocation10_spill] sm:$0xff] %v3307_v42  ;;  %v2719_v58 = vld [vmem:[%s3006_s9 + $0x4c] sm:$0x1] }
  0x44   : >> { %2647 = vmatmul.msk.bf16.vlgmr.msra.gmra.mxu3 %vm224_vm1, %v3134_v52  ;;  %v3276_v4 = vsel %vm231_vm0, %v2745_v62, 0  ;;  %v928_v35 = vpack.c.b16 %v2884_v18, %v927_v38  ;;  %v1048_v60 = vrot.slane %v3775_v41, 1  ;;  %v1034_v25 = vunpack.c.l.b16 %v2719_v58 }
  0x45   : >> { %1002 = vmatpush.bf16.msra.mxu3 %v3166_v23  ;;  %3807 = vst [vmem:[#allocation6_spill] sm:$0xff] %v3276_v4  ;;  %v1096_v21 = vrot.slane %v3291_v20, 1  ;;  %v1044_v36 = vor.u32 %v1043_v40, %v1039_v39  ;;  %v3340_v38 = vsel %vm231_vm0, %v2769_v33, 0  ;;  %v1050_v40 = vshrl.u32 %v3297_v26, 16  ;;  %v3356_v33 = vld [vmem:[%s3006_s9 + $0x50] sm:$0xff]  }
  0x46   : >> { %v929_v62 = vrot.slane %v928_v35, 2  ;;  %v1037_v32 = vpack.c.b16 %v1034_v25, %v1034_v25  ;;  %3815 = vst [vmem:[#allocation14_spill] sm:$0xff] %v3340_v38  ;;  %v2735_v25 = vld [vmem:[%s3006_s9 + $0x3c] sm:$0xc] }
  0x47   : >> { %2655 = vmatmul.msk.bf16.vlgmr.msra.gmra.mxu1 %vm224_vm1, %v3130_v50  ;;  %v3310_v43 = vsel %vm286_vm5, %v1096_v21, %v1097_v29  ;;  %v3324_v15 = vsel %vm203_vm2, %v1044_v36, %v1048_v60  ;;  %v2773_v21 = vld [vmem:[%s3772_s1 + $0x5c] sm:$0xf]  ;;  %v3349_v36 = vld [vmem:[%s3006_s9 + $0x44] sm:$0xff]  ;;  %v1052_v41 = vor.u32 %v1050_v40, %v1048_v60 }
  0x48   : >> { %1117 = vmatpush.bf16.msra.mxu1 %v3197_v47  ;;  %3812 = vst [vmem:[#allocation11_spill] sm:$0xff] %v3310_v43  ;;  %v3327_v18 = vsel %vm390_vm4, %v929_v62, %v930_v0  ;;  %v3343_v39 = vsel %vm231_vm0, %v2773_v21, 0  ;;  %v1054_v35 = vshll.u32 %v1037_v32, 16  ;;  %v1196_v21 = vunpack.c.l.b16 %v2735_v25 }
  0x49   : >> { %3813 = vst [vmem:[#allocation12_spill] sm:$0xff] %v3324_v15 }
  0x4a   : >> { %3814 = vst [vmem:[#allocation13_spill] sm:$0xff] %v3327_v18  ;;  %v1056_v61 = vrot.slane %v1054_v35, 1 }
  0x4b   : >> { %2651 = vmatmul.msk.bf16.vlgmr.msra.gmra.mxu0 %vm224_vm1, %v3142_v63  ;;  %3816 = vst [vmem:[#allocation15_spill] sm:$0xff] %v3343_v39 }
  0x4c   : >> { %2643 = vmatmul.msk.bf16.vlgmr.msra.gmra.mxu2 %vm224_vm1, %v3145_v1  ;;  %1074 = vmatpush.bf16.msra.mxu0 %v3194_v45  ;;  %3817 = vst [vmem:[#allocation16_spill] sm:$0xff] %v3349_v36 }
  0x4d   : >> { %950 = vmatpush.bf16.msra.mxu2 %v3163_v22 }
  0x54   : >> { %2648 = vmatmul.msk.bf16.gmra.mxu3 %vm224_vm1, %v3176_v30 }
  0x57   : >> { %2656 = vmatmul.msk.bf16.gmra.mxu1 %vm224_vm1, %v3171_v24 }
  0x5b   : >> { %2652 = vmatmul.msk.bf16.gmra.mxu0 %vm224_vm1, %v3203_v48 }
  0x5c   : >> { %2644 = vmatmul.msk.bf16.gmra.mxu2 %vm224_vm1, %v3206_v57 }
  0x64   : >> { %2684 = vmatmul.msk.bf16.vlgmr.msrb.gmra.mxu3 %vm224_vm1, %v3221_v17 }
  0x65   : >> { %1219 = vmatpush.bf16.msrb.mxu3 %v3250_v53 }
  0x67   : >> { %2692 = vmatmul.msk.bf16.vlgmr.msrb.gmra.mxu1 %vm224_vm1, %v3216_v9 }
  0x68   : >> { %1343 = vmatpush.bf16.msrb.mxu1 %v3279_v6  ;;  %v3363_v6 = vld [vmem:[%s3006_s9 + $0x58] sm:$0xff] }
  0x6b   : >> { %2688 = vmatmul.msk.bf16.vlgmr.msrb.gmra.mxu0 %vm224_vm1, %v3231_v34 }
  0x6c   : >> { %2672 = vmatmul.msk.bf16.vlgmr.msrb.gmra.mxu2 %vm224_vm1, %v3234_v37  ;;  %1271 = vmatpush.bf16.msrb.mxu0 %v3276_v4  ;;  %v2731_v4 = vld [vmem:[%s3006_s9 + $0x4c] sm:$0x3] }
  0x6d   : >> { %1176 = vmatpush.bf16.msrb.mxu2 %v3247_v51 }
  0x74   : >> { %2685 = vmatmul.msk.bf16.gmra.mxu3 %vm224_vm1, %v3261_v59 }
  0x77   : >> { %2693 = vmatmul.msk.bf16.gmra.mxu1 %vm224_vm1, %v3255_v55 }
  0x7b   : >> { %2689 = vmatmul.msk.bf16.gmra.mxu0 %vm224_vm1, %v3284_v8 }
  0x7c   : >> { %2673 = vmatmul.msk.bf16.gmra.mxu2 %vm224_vm1, %v3287_v19 }
  0x84   : >> { %2713 = vmatmul.msk.bf16.vlgmr.msra.gmra.mxu3 %vm224_vm1, %v3307_v42 }
  0x85   : >> { %1445 = vmatpush.bf16.msra.mxu3 %v3343_v39  ;;  %v3375_v39 = vsel %vm203_vm2, %v1052_v41, %v1056_v61 }
  0x86   : >> { %3820 = vst [vmem:[#allocation19_spill] sm:$0xff] %v3375_v39 }
  0x87   : >> { %2729 = vmatmul.msk.bf16.vlgmr.msra.gmra.mxu1 %vm224_vm1, %v3310_v43 }
  0x88   : >> { %1511 = vmatpush.bf16.msra.mxu1 %v2980_v3  ;;  %v1099_v3 = vrot.slane %v1037_v32, 1  ;;  %v1310_v32 = vshll.u32 %v3356_v33, 16 }
  0x8a   : >> { %v3352_v62 = vsel %vm286_vm5, %v1097_v29, %v1099_v3  ;;  %v2777_v29 = vld [vmem:[%s3772_s1 + $0x60] sm:$0xf]  ;;  %v932_v3 = vrot.slane %v3218_v16, 2  ;;  %v1312_v53 = vrot.slane %v1310_v32, 1  ;;  %v3788_v16 = vshll.u32 %v3363_v6, 16 }
  0x8b   : >> { %2725 = vmatmul.msk.bf16.vlgmr.msra.gmra.mxu0 %vm224_vm1, %v3324_v15  ;;  %3818 = vst [vmem:[#allocation17_spill] sm:$0xff] %v3352_v62  ;;  %v3371_v60 = vsel %vm231_vm0, %v2777_v29, 0  ;;  %v1147_v32 = vrot.slane %v1050_v40, 1 }
  0x8c   : >> { %2696 = vmatmul.msk.bf16.vlgmr.msra.gmra.mxu2 %vm224_vm1, %v3327_v18  ;;  %3819 = vst [vmem:[#allocation18_spill] sm:$0xff] %v3371_v60  ;;  %1488 = vmatpush.bf16.msra.mxu0 %v3371_v60  ;;  %v1308_v18 = vshrl.u32 %v3356_v33, 16  ;;  %v3382_v29 = vsel %vm390_vm4, %v930_v0, %v932_v3  ;;  %v2760_v0 = vld [vmem:[%s3006_s9 + $0x60] sm:$0x1] }
  0x8d   : >> { %1386 = vmatpush.bf16.msra.mxu2 %v3340_v38  ;;  %v3821_v38 = vunpack.c.h.b16 %v3258_v56  ;;  %3822 = vst [vmem:[#allocation20_spill] sm:$0xff] %v3382_v29  ;;  %v1199_v56 = vrot.slane %v3297_v26, 2 }
  0x8e   : >> { %v1313_v41 = vor.u32 %v1312_v53, %v1308_v18  ;;  %v1303_v18 = vunpack.c.l.b16 %v2760_v0 }
  0x94   : >> { %v270_v58 = vpop.f32.mrf.mxu1  ;;  %2714 = vmatmul.msk.bf16.gmra.mxu3 %vm224_vm1, %v3349_v36  ;;  %v1197_v36 = vpack.c.b16 %v3821_v38, %v1196_v21  ;;  %v1317_v38 = vrot.slane %v3788_v16, 1  ;;  %v1143_v21 = vshll.u32 %v3291_v20, 16 }
  0x96   : >> { %v1198_v61 = vrot.slane %v1197_v36, 2  ;;  %v3400_v53 = vsel %vm203_vm2, %v1313_v41, %v1317_v38  ;;  %v1145_v51 = vrot.slane %v1143_v21, 2 }
  0x97   : >> { %2730 = vmatmul.msk.bf16.gmra.mxu1 %vm224_vm1, %v3352_v62  ;;  %v275_v35 = vpop.f32.mrf.mxu3  ;;  %3824 = vst [vmem:[#allocation22_spill] sm:$0xff] %v3400_v53 }
  0x98   : >> { %v244_v25 = vpop.f32.mrf.mxu0  ;;  %v3397_v36 = vsel %vm390_vm4, %v1198_v61, %v1199_v56 }
  0x99   : >> { %v271_v62 = vadd.f32 %v270_v58, %v244_v25  ;;  %v1140_v58 = vshrl.u32 %v3291_v20, 16  ;;  %3823 = vst [vmem:[#allocation21_spill] sm:$0xff] %v3397_v36  ;;  %v3825_v20 = vshll.u32 %v3297_v26, 16 }
  0x9b   : >> { %2726 = vmatmul.msk.bf16.gmra.mxu0 %vm224_vm1, %v3375_v39  ;;  %v1142_v15 = vrot.slane %v1140_v58, 1  ;;  %v1148_v40 = vrot.slane %v3825_v20, 2  ;;  %v1319_v20 = vshrl.u32 %v3363_v6, 16 }
  0x9c   : >> { %v272_v47 = vpop.f32.mrf.mxu1  ;;  %2697 = vmatmul.msk.bf16.gmra.mxu2 %vm224_vm1, %v3382_v29 }
  0x9d   : >> { %v1146_v61 = vor.u32 %v1145_v51, %v1142_v15  ;;  %v1149_v41 = vor.u32 %v1148_v40, %v1147_v32  ;;  %v1321_v32 = vor.u32 %v1319_v20, %v1317_v38  ;;  %v2888_v40 = vunpack.c.h.b16 %v3356_v33 }
  0x9f   : >> { %v249_v3 = vpop.f32.mrf.mxu2  ;;  %v277_v25 = vpop.f32.mrf.mxu3 }
  0xa0   : >> { %v3394_v60 = vadd.f32 %v275_v35, %v249_v3  ;;  %v246_v39 = vpop.f32.mrf.mxu0  ;;  %v3409_v35 = vpack.c.b16 %v1303_v18, %v1303_v18 }
  0xa1   : >> { %v273_v16 = vadd.f32 %v272_v47, %v246_v39  ;;  %v1137_v47 = vunpack.c.l.b16 %v2731_v4  ;;  %v3414_v39 = vld [vmem:[%s3006_s9 + $0x50] sm:$0xff] }
  0xa2   : >> { %3826 = vst [vmem:[#allocation23_spill] sm:$0xff] %v3414_v39  ;;  %v1323_v18 = vshll.u32 %v3409_v35, 16 }
  0xa3   : >> { %v1138_v51 = vpack.c.b16 %v1137_v47, %v1137_v47 }
  0xa4   : >> { %v466_v29 = vpop.f32.mrf.mxu1  ;;  %2737 = vmatmul.msk.bf16.vlgmr.msrb.gmra.mxu3 %vm224_vm1, %v3397_v36 }
  0xa5   : >> { %1549 = vmatpush.bf16.msrb.mxu3 %v2989_v5  ;;  %v2768_v5 = vld [vmem:[%s3006_s9 + $0x50] sm:$0xe]  ;;  %v1152_v4 = vshrl.u32 %v1138_v51, 16  ;;  %v1155_v15 = vshll.u32 %v1138_v51, 16 }
  0xa6   : >> { %v1363_v36 = vunpack.c.l.b16 %v2768_v5 }
  0xa7   : >> { %2766 = vmatmul.msk.bf16.vlgmr.msrb.gmra.mxu1 %vm224_vm1, %v3400_v53  ;;  %v251_v26 = vpop.f32.mrf.mxu2  ;;  %v370_v58 = vpop.f32.mrf.mxu3  ;;  %v1154_v42 = vrot.slane %v1152_v4, 1  ;;  %v3442_v4 = vld [vmem:[%s3006_s9 + $0x58] sm:$0xff] }
  0xa8   : >> { %1595 = vmatpush.bf16.msrb.mxu1 %v3011_v10  ;;  %v3416_v21 = vadd.f32 %v277_v25, %v251_v26  ;;  %v414_v0 = vpop.f32.mrf.mxu0  ;;  %v3421_v10 = vsel %vm330_vm3, %v1146_v61, %v1149_v41  ;;  %v1325_v25 = vrot.slane %v1323_v18, 1  ;;  %v1201_v26 = vrot.slane %v1138_v51, 2  ;;  %3830 = vst [vmem:[#allocation27_spill] sm:$0xff] %v3442_v4 }
  0xa9   : >> { %3827 = vst [vmem:[#allocation24_spill] sm:$0xff] %v3421_v10  ;;  %v1364_v18 = vpack.c.b16 %v2888_v40, %v1363_v36 }
  0xaa   : >> { %v3435_v38 = vsel %vm390_vm4, %v1199_v56, %v1201_v26  ;;  %v2776_v26 = vld [vmem:[%s3006_s9 + $0x50] sm:$0xc] }
  0xab   : >> { %2754 = vmatmul.msk.bf16.vlgmr.msrb.gmra.mxu0 %vm224_vm1, %v3414_v39  ;;  %3829 = vst [vmem:[#allocation26_spill] sm:$0xff] %v3435_v38  ;;  %v1409_v51 = vshrl.u32 %v1364_v18, 16  ;;  %v1412_v5 = vshll.u32 %v1364_v18, 16 }
  0xac   : >> { %v468_v3 = vpop.f32.mrf.mxu1  ;;  %1572 = vmatpush.bf16.msrb.mxu0 %v2997_v7  ;;  %2733 = vmatmul.msk.bf16.vlgmr.msrb.gmra.mxu2 %vm224_vm1, %v3421_v10  ;;  %v1157_v7 = vrot.slane %v1155_v15, 2  ;;  %v3432_v10 = vsel %vm203_vm2, %v1321_v32, %v1325_v25 }
  0xad   : >> { %1530 = vmatpush.bf16.msrb.mxu2 %v2977_v2  ;;  %3828 = vst [vmem:[#allocation25_spill] sm:$0xff] %v3432_v10 }
  0xae   : >> { %v1158_v2 = vor.u32 %v1157_v7, %v1154_v42  ;;  %v3832_v42 = vshll.u32 %v3363_v6, 16 }
  0xaf   : >> { %v310_v61 = vpop.f32.mrf.mxu2  ;;  %v372_v47 = vpop.f32.mrf.mxu3 }
  0xb0   : >> { %v320_v39 = vadd.f32 %v310_v61, %v271_v62  ;;  %v416_v53 = vpop.f32.mrf.mxu0  ;;  %v1416_v61 = vrot.slane %v1319_v20, 1 }
  0xb2   : >> { %v380_v33 = vadd.f32 %v370_v58, %v320_v39  ;;  %v3445_v39 = vsel %vm330_vm3, %v1149_v41, %v1158_v2 }
  0xb3   : >> { %3831 = vst [vmem:[#allocation28_spill] sm:$0xff] %v3445_v39 }
  0xb4   : >> { %v471_v43 = vpop.f32.mrf.mxu1  ;;  %2738 = vmatmul.msk.bf16.gmra.mxu3 %vm224_vm1, %v3435_v38  ;;  %v424_v62 = vadd.f32 %v414_v0, %v380_v33  ;;  %v1414_v38 = vrot.slane %v1412_v5, 2  ;;  %v1417_v0 = vrot.slane %v3832_v42, 2  ;;  %v1465_v33 = vunpack.c.l.b16 %v2776_v26 }
  0xb6   : >> { %v476_v15 = vadd.f32 %v466_v29, %v424_v62  ;;  %v2772_v29 = vld [vmem:[%s3006_s9 + $0x60] sm:$0x3]  ;;  %v1418_v2 = vor.u32 %v1417_v0, %v1416_v61  ;;  %v1466_v5 = vpack.c.b16 %v2888_v40, %v1465_v33 }
  0xb7   : >> { %2767 = vmatmul.msk.bf16.gmra.mxu1 %vm224_vm1, %v3432_v10  ;;  %v312_v32 = vpop.f32.mrf.mxu2  ;;  %v375_v56 = vpop.f32.mrf.mxu3  ;;  %v1411_v10 = vrot.slane %v1409_v51, 1  ;;  %v1406_v62 = vunpack.c.l.b16 %v2772_v29 }
  0xb8   : >> { %v321_v25 = vadd.f32 %v312_v32, %v273_v16  ;;  %v419_v36 = vpop.f32.mrf.mxu0  ;;  %v1467_v8 = vrot.slane %v1466_v5, 2 }
  0xb9   : >> { %v1415_v41 = vor.u32 %v1414_v38, %v1411_v10 }
  0xba   : >> { %v381_v7 = vadd.f32 %v372_v47, %v321_v25 }
  0xbb   : >> { %2755 = vmatmul.msk.bf16.gmra.mxu0 %vm224_vm1, %v3442_v4  ;;  %v3457_v25 = vsel %vm330_vm3, %v1415_v41, %v1418_v2  ;;  %v1407_v4 = vpack.c.b16 %v1406_v62, %v1406_v62 }
  0xbc   : >> { %v473_v58 = vpop.f32.mrf.mxu1  ;;  %2734 = vmatmul.msk.bf16.gmra.mxu2 %vm224_vm1, %v3445_v39  ;;  %v425_v16 = vadd.f32 %v416_v53, %v381_v7  ;;  %v1468_v39 = vrot.slane %v3363_v6, 2 }
  0xbd   : >> { %v1421_v10 = vshrl.u32 %v1407_v4, 16  ;;  %v1424_v40 = vshll.u32 %v1407_v4, 16 }
  0xbe   : >> { %v477_v32 = vadd.f32 %v468_v3, %v425_v16  ;;  %v1366_v3 = vrot.slane %v3363_v6, 1  ;;  %v3468_v61 = vsel %vm390_vm4, %v1467_v8, %v1468_v39 }
  0xbf   : >> { %v315_v20 = vpop.f32.mrf.mxu2  ;;  %v377_v51 = vpop.f32.mrf.mxu3 }
  0xc0   : >> { %v322_v19 = vadd.f32 %v315_v20, %v3394_v60  ;;  %v421_v42 = vpop.f32.mrf.mxu0  ;;  %v1365_v60 = vrot.slane %v1364_v18, 1  ;;  %v1426_v18 = vrot.slane %v1424_v40, 2 }
  0xc2   : >> { %v382_v26 = vadd.f32 %v375_v56, %v322_v19 }
  0xc4   : >> { %v683_v47 = vpop.f32.mrf.mxu1  ;;  %2774 = vmatmul.msk.bf16.vlgmr.msra.gmra.mxu3 %vm224_vm1, %v3457_v25  ;;  %v426_v53 = vadd.f32 %v419_v36, %v382_v26  ;;  %v3472_v36 = vsel %vm286_vm5, %v1365_v60, %v1366_v3 }
  0xc5   : >> { %1641 = vmatpush.bf16.msra.mxu3 %v3052_v44 }
  0xc6   : >> { %v478_v19 = vadd.f32 %v471_v43, %v426_v53 }
  0xc7   : >> { %2780 = vmatmul.msk.bf16.vlgmr.msra.gmra.mxu1 %vm224_vm1, %v3145_v1  ;;  %v317_v38 = vpop.f32.mrf.mxu2  ;;  %v581_v56 = vpop.f32.mrf.mxu3 }
  0xc8   : >> { %1687 = vmatpush.bf16.msra.mxu1 %v3056_v46  ;;  %v323_v1 = vadd.f32 %v317_v38, %v3416_v21  ;;  %v640_v0 = vpop.f32.mrf.mxu0  ;;  %v1423_v46 = vrot.slane %v1421_v10, 1 }
  0xca   : >> { %v383_v6 = vadd.f32 %v377_v51, %v323_v1  ;;  %v1427_v8 = vor.u32 %v1426_v18, %v1423_v46  ;;  %v1470_v51 = vrot.slane %v1407_v4, 2 }
  0xcb   : >> { %2778 = vmatmul.msk.bf16.vlgmr.msra.gmra.mxu0 %vm224_vm1, %v3468_v61 }
  0xcc   : >> { %v685_v7 = vpop.f32.mrf.mxu1  ;;  %1664 = vmatpush.bf16.msra.mxu0 %v3039_v31  ;;  %2770 = vmatmul.msk.bf16.vlgmr.msra.gmra.mxu2 %vm224_vm1, %v3472_v36  ;;  %v427_v44 = vadd.f32 %v421_v42, %v383_v6  ;;  %v3481_v62 = vsel %vm330_vm3, %v1418_v2, %v1427_v8 }
  0xcd   : >> { %1618 = vmatpush.bf16.msra.mxu2 %v3014_v11  ;;  %v1368_v11 = vrot.slane %v3409_v35, 1 }
  0xce   : >> { %v479_v43 = vadd.f32 %v473_v58, %v427_v44 }
  0xcf   : >> { %v538_v21 = vpop.f32.mrf.mxu2  ;;  %v583_v29 = vpop.f32.mrf.mxu3  ;;  %v3492_v4 = vsel %vm286_vm5, %v1366_v3, %v1368_v11 }
  0xd0   : >> { %v548_v33 = vadd.f32 %v538_v21, %v476_v15  ;;  %v642_v16 = vpop.f32.mrf.mxu0  ;;  %v3489_v15 = vsel %vm390_vm4, %v1468_v39, %v1470_v51 }
  0xd2   : >> { %v591_v20 = vadd.f32 %v581_v56, %v548_v33 }
  0xd4   : >> { %v688_v41 = vpop.f32.mrf.mxu1  ;;  %2775 = vmatmul.msk.bf16.gmra.mxu3 %vm224_vm1, %v3481_v62  ;;  %v650_v31 = vadd.f32 %v640_v0, %v591_v20 }
  0xd6   : >> { %v693_v58 = vadd.f32 %v683_v47, %v650_v31 }
  0xd7   : >> { %2781 = vmatmul.msk.bf16.gmra.mxu1 %vm224_vm1, %v3206_v57  ;;  %v540_v5 = vpop.f32.mrf.mxu2  ;;  %v586_v42 = vpop.f32.mrf.mxu3 }
  0xd8   : >> { %v549_v26 = vadd.f32 %v540_v5, %v477_v32  ;;  %v645_v2 = vpop.f32.mrf.mxu0 }
  0xda   : >> { %v592_v60 = vadd.f32 %v583_v29, %v549_v26 }
  0xdb   : >> { %2779 = vmatmul.msk.bf16.gmra.mxu0 %vm224_vm1, %v3489_v15 }
  0xdc   : >> { %v690_v53 = vpop.f32.mrf.mxu1  ;;  %2771 = vmatmul.msk.bf16.gmra.mxu2 %vm224_vm1, %v3492_v4  ;;  %v651_v57 = vadd.f32 %v642_v16, %v592_v60 }
  0xde   : >> { %v694_v35 = vadd.f32 %v685_v7, %v651_v57 }
  0xdf   : >> { %v543_v47 = vpop.f32.mrf.mxu2  ;;  %v588_v10 = vpop.f32.mrf.mxu3 }
  0xe0   : >> { %v550_v40 = vadd.f32 %v543_v47, %v478_v19  ;;  %v647_v39 = vpop.f32.mrf.mxu0 }
  0xe2   : >> { %v593_v32 = vadd.f32 %v586_v42, %v550_v40 }
  0xe4   : >> { %v909_v38 = vpop.f32.mrf.mxu1  ;;  %2784 = vmatmul.msk.bf16.vlgmr.msrb.gmra.mxu3 %vm224_vm1, %v3134_v52  ;;  %v652_v3 = vadd.f32 %v645_v2, %v593_v32 }
  0xe5   : >> { %1733 = vmatpush.bf16.msrb.mxu3 %v3086_v12 }
  0xe6   : >> { %v695_v56 = vadd.f32 %v688_v41, %v652_v3  ;;  %v3833_v3 = vld [vmem:[#allocation8_spill] sm:$0xff] }
  0xe7   : >> { %2788 = vmatmul.msk.bf16.vlgmr.msrb.gmra.mxu1 %vm224_vm1, %v3130_v50  ;;  %v545_v1 = vpop.f32.mrf.mxu2  ;;  %v807_v0 = vpop.f32.mrf.mxu3 }
  0xe8   : >> { %1779 = vmatpush.bf16.msrb.mxu1 %v3111_v27  ;;  %v551_v7 = vadd.f32 %v545_v1, %v479_v43  ;;  %v850_v46 = vpop.f32.mrf.mxu0 }
  0xea   : >> { %v594_v18 = vadd.f32 %v588_v10, %v551_v7 }
  0xeb   : >> { %2786 = vmatmul.msk.bf16.vlgmr.msrb.gmra.mxu0 %vm224_vm1, %v3142_v63 }
  0xec   : >> { %v911_v19 = vpop.f32.mrf.mxu1  ;;  %1756 = vmatpush.bf16.msrb.mxu0 %v3089_v13  ;;  %2782 = vmatmul.msk.bf16.vlgmr.msrb.gmra.mxu2 %vm224_vm1, %v3067_v54  ;;  %v653_v50 = vadd.f32 %v647_v39, %v594_v18 }
  0xed   : >> { %1710 = vmatpush.bf16.msrb.mxu2 %v3061_v49 }
  0xee   : >> { %v696_v27 = vadd.f32 %v690_v53, %v653_v50  ;;  %v3835_v50 = vld [vmem:[#allocation11_spill] sm:$0xff] }
  0xef   : >> { %v735_v12 = vpop.f32.mrf.mxu2  ;;  %v809_v52 = vpop.f32.mrf.mxu3 }
  0xf0   : >> { %v745_v6 = vadd.f32 %v735_v12, %v693_v58  ;;  %v852_v44 = vpop.f32.mrf.mxu0 }
  0xf2   : >> { %v817_v43 = vadd.f32 %v807_v0, %v745_v6  ;;  %v3838_v6 = vld [vmem:[#allocation4_spill] sm:$0xff] }
  0xf4   : >> { %v914_v8 = vpop.f32.mrf.mxu1  ;;  %2785 = vmatmul.msk.bf16.gmra.mxu3 %vm224_vm1, %v3176_v30  ;;  %v860_v13 = vadd.f32 %v850_v46, %v817_v43 }
  0xf6   : >> { %v919_v63 = vadd.f32 %v909_v38, %v860_v13 }
  0xf7   : >> { %2789 = vmatmul.msk.bf16.gmra.mxu1 %vm224_vm1, %v3171_v24  ;;  %v737_v21 = vpop.f32.mrf.mxu2  ;;  %v812_v54 = vpop.f32.mrf.mxu3 }
  0xf8   : >> { %v746_v29 = vadd.f32 %v737_v21, %v694_v35  ;;  %v855_v33 = vpop.f32.mrf.mxu0 }
  0xfa   : >> { %v818_v16 = vadd.f32 %v809_v52, %v746_v29  ;;  %v3837_v52 = vld [vmem:[#allocation6_spill] sm:$0xff]  ;;  %v3839_v29 = vld [vmem:[#allocation12_spill] sm:$0xff] }
  0xfb   : >> { %2787 = vmatmul.msk.bf16.gmra.mxu0 %vm224_vm1, %v3203_v48 }
  0xfc   : >> { %v916_v49 = vpop.f32.mrf.mxu1  ;;  %2783 = vmatmul.msk.bf16.gmra.mxu2 %vm224_vm1, %v3094_v14  ;;  %v861_v41 = vadd.f32 %v852_v44, %v818_v16 }
  0xfe   : >> { %v920_v20 = vadd.f32 %v911_v19, %v861_v41  ;;  %v3842_v41 = vld [vmem:[#allocation3_spill] sm:$0xff] }
  0xff   : >> { %v740_v24 = vpop.f32.mrf.mxu2  ;;  %v814_v51 = vpop.f32.mrf.mxu3 }
 0x100   : >> { %v747_v31 = vadd.f32 %v740_v24, %v695_v56  ;;  %v857_v30 = vpop.f32.mrf.mxu0  ;;  %v3834_v56 = vld [vmem:[#allocation9_spill] sm:$0xff] }
 0x102   : >> { %v819_v58 = vadd.f32 %v812_v54, %v747_v31 }
 0x104   : >> { %v1119_v11 = vpop.f32.mrf.mxu1  ;;  %2792 = vmatmul.msk.bf16.vlgmr.msra.gmra.mxu3 %vm224_vm1, %v3221_v17  ;;  %v862_v5 = vadd.f32 %v855_v33, %v819_v58  ;;  %v3840_v33 = vld [vmem:[#allocation5_spill] sm:$0xff] }
 0x105   : >> { %1825 = vmatpush.bf16.msra.mxu3 %v3163_v22 }
 0x106   : >> { %v921_v14 = vadd.f32 %v914_v8, %v862_v5  ;;  %v3843_v5 = vld [vmem:[#allocation17_spill] sm:$0xff] }
 0x107   : >> { %2796 = vmatmul.msk.bf16.vlgmr.msra.gmra.mxu1 %vm224_vm1, %v3216_v9  ;;  %v742_v48 = vpop.f32.mrf.mxu2  ;;  %v1004_v42 = vpop.f32.mrf.mxu3 }
 0x108   : >> { %1871 = vmatpush.bf16.msra.mxu1 %v3194_v45  ;;  %v748_v26 = vadd.f32 %v742_v48, %v696_v27  ;;  %v1076_v2 = vpop.f32.mrf.mxu0  ;;  %v3836_v27 = vld [vmem:[#allocation10_spill] sm:$0xff] }
 0x10a   : >> { %v820_v60 = vadd.f32 %v814_v51, %v748_v26 }
 0x10b   : >> { %2794 = vmatmul.msk.bf16.vlgmr.msra.gmra.mxu0 %vm224_vm1, %v3231_v34 }
 0x10c   : >> { %v1121_v53 = vpop.f32.mrf.mxu1  ;;  %1848 = vmatpush.bf16.msra.mxu0 %v3166_v23  ;;  %2790 = vmatmul.msk.bf16.vlgmr.msra.gmra.mxu2 %vm224_vm1, %v3234_v37  ;;  %v863_v9 = vadd.f32 %v857_v30, %v820_v60 }
 0x10d   : >> { %1802 = vmatpush.bf16.msra.mxu2 %v3114_v28 }
 0x10e   : >> { %v922_v45 = vadd.f32 %v916_v49, %v863_v9  ;;  %v3841_v49 = vld [vmem:[#allocation13_spill] sm:$0xff] }
 0x10f   : >> { %v952_v22 = vpop.f32.mrf.mxu2  ;;  %v1006_v17 = vpop.f32.mrf.mxu3 }
 0x110   : >> { %v962_v57 = vadd.f32 %v952_v22, %v919_v63  ;;  %v1078_v35 = vpop.f32.mrf.mxu0  ;;  %v3845_v22 = vld [vmem:[#allocation19_spill] sm:$0xff] }
 0x112   : >> { %v1014_v10 = vadd.f32 %v1004_v42, %v962_v57 }
 0x114   : >> { %v1124_v47 = vpop.f32.mrf.mxu1  ;;  %2793 = vmatmul.msk.bf16.gmra.mxu3 %vm224_vm1, %v3261_v59  ;;  %v1086_v23 = vadd.f32 %v1076_v2, %v1014_v10 }
 0x116   : >> { %v1129_v34 = vadd.f32 %v1119_v11, %v1086_v23 }
 0x117   : >> { %2797 = vmatmul.msk.bf16.gmra.mxu1 %vm224_vm1, %v3255_v55  ;;  %v954_v40 = vpop.f32.mrf.mxu2  ;;  %v1009_v37 = vpop.f32.mrf.mxu3 }
 0x118   : >> { %v963_v39 = vadd.f32 %v954_v40, %v920_v20  ;;  %v1081_v38 = vpop.f32.mrf.mxu0 }
 0x11a   : >> { %v1015_v32 = vadd.f32 %v1006_v17, %v963_v39  ;;  %v3846_v17 = vld [vmem:[#allocation20_spill] sm:$0xff]  ;;  %v3847_v39 = vld [vmem:[#allocation22_spill] sm:$0xff] }
 0x11b   : >> { %2795 = vmatmul.msk.bf16.gmra.mxu0 %vm224_vm1, %v3833_v3  ;;  %v3850_v3 = vld [vmem:[#allocation14_spill] sm:$0xff] }
 0x11c   : >> { %v1126_v28 = vpop.f32.mrf.mxu1  ;;  %2791 = vmatmul.msk.bf16.gmra.mxu2 %vm224_vm1, %v3834_v56  ;;  %v1087_v1 = vadd.f32 %v1078_v35, %v1015_v32  ;;  %v3849_v32 = vld [vmem:[#allocation18_spill] sm:$0xff] }
 0x11e   : >> { %v1130_v0 = vadd.f32 %v1121_v53, %v1087_v1 }
 0x11f   : >> { %v957_v55 = vpop.f32.mrf.mxu2  ;;  %v1011_v7 = vpop.f32.mrf.mxu3 }
 0x120   : >> { %v964_v46 = vadd.f32 %v957_v55, %v921_v14  ;;  %v1083_v59 = vpop.f32.mrf.mxu0  ;;  %v3844_v14 = vld [vmem:[#allocation16_spill] sm:$0xff] }
 0x122   : >> { %v1016_v18 = vadd.f32 %v1009_v37, %v964_v46 }
 0x124   : >> { %v1345_v19 = vpop.f32.mrf.mxu1  ;;  %2800 = vmatmul.msk.bf16.vlgmr.msrb.gmra.mxu3 %vm224_vm1, %v3836_v27  ;;  %v1088_v12 = vadd.f32 %v1081_v38, %v1016_v18  ;;  %v3848_v38 = vld [vmem:[#allocation21_spill] sm:$0xff]  ;;  %v3852_v18 = vld [vmem:[#allocation15_spill] sm:$0xff] }
 0x125   : >> { %1917 = vmatpush.bf16.msrb.mxu3 %v3838_v6 }
 0x126   : >> { %v1131_v44 = vadd.f32 %v1124_v47, %v1088_v12  ;;  %v3854_v12 = vld [vmem:[#allocation7_spill] sm:$0xff] }
 0x127   : >> { %2804 = vmatmul.msk.bf16.vlgmr.msrb.gmra.mxu1 %vm224_vm1, %v3835_v50  ;;  %v959_v8 = vpop.f32.mrf.mxu2  ;;  %v1221_v43 = vpop.f32.mrf.mxu3  ;;  %v3853_v50 = vld [vmem:[#allocation24_spill] sm:$0xff] }
 0x128   : >> { %1987 = vmatpush.bf16.msrb.mxu1 %v3837_v52  ;;  %v965_v13 = vadd.f32 %v959_v8, %v922_v45  ;;  %v1273_v63 = vpop.f32.mrf.mxu0 }
 0x12a   : >> { %v1017_v54 = vadd.f32 %v1011_v7, %v965_v13 }
 0x12b   : >> { %2802 = vmatmul.msk.bf16.vlgmr.msrb.gmra.mxu0 %vm224_vm1, %v3839_v29  ;;  %v3856_v29 = vld [vmem:[#allocation26_spill] sm:$0xff] }
 0x12c   : >> { %v1347_v21 = vpop.f32.mrf.mxu1  ;;  %1940 = vmatpush.bf16.msrb.mxu0 %v3840_v33  ;;  %2798 = vmatmul.msk.bf16.vlgmr.msrb.gmra.mxu2 %vm224_vm1, %v3841_v49  ;;  %v1089_v16 = vadd.f32 %v1083_v59, %v1017_v54 }
 0x12d   : >> { %1894 = vmatpush.bf16.msrb.mxu2 %v3842_v41 }
 0x12e   : >> { %v1132_v20 = vadd.f32 %v1126_v28, %v1089_v16 }
 0x12f   : >> { %v1178_v24 = vpop.f32.mrf.mxu2  ;;  %v1223_v51 = vpop.f32.mrf.mxu3 }
 0x130   : >> { %v1188_v31 = vadd.f32 %v1178_v24, %v1129_v34  ;;  %v1275_v30 = vpop.f32.mrf.mxu0 }
 0x132   : >> { %v1231_v58 = vadd.f32 %v1221_v43, %v1188_v31 }
 0x134   : >> { %v1350_v11 = vpop.f32.mrf.mxu1  ;;  %2801 = vmatmul.msk.bf16.gmra.mxu3 %vm224_vm1, %v3844_v14  ;;  %v1283_v48 = vadd.f32 %v1273_v63, %v1231_v58 }
 0x136   : >> { %v1355_v42 = vadd.f32 %v1345_v19, %v1283_v48  ;;  %v3851_v19 = vld [vmem:[#allocation23_spill] sm:$0xff] }
 0x137   : >> { %2805 = vmatmul.msk.bf16.gmra.mxu1 %vm224_vm1, %v3843_v5  ;;  %v1180_v26 = vpop.f32.mrf.mxu2  ;;  %v1226_v2 = vpop.f32.mrf.mxu3  ;;  %v2874_v5 = vld [vmem:[%s3006_s9 + $0x64] sm:$0xff] }
 0x138   : >> { %v1189_v53 = vadd.f32 %v1180_v26, %v1130_v0  ;;  %v1278_v60 = vpop.f32.mrf.mxu0 }
 0x13a   : >> { %v1232_v45 = vadd.f32 %v1223_v51, %v1189_v53  ;;  %v3857_v51 = vld [vmem:[#allocation27_spill] sm:$0xff] }
 0x13b   : >> { %2803 = vmatmul.msk.bf16.gmra.mxu0 %vm224_vm1, %v3845_v22 }
 0x13c   : >> { %v1352_v9 = vpop.f32.mrf.mxu1  ;;  %2799 = vmatmul.msk.bf16.gmra.mxu2 %vm224_vm1, %v3846_v17  ;;  %v1284_v57 = vadd.f32 %v1275_v30, %v1232_v45  ;;  %v3858_v30 = vld [vmem:[#allocation28_spill] sm:$0xff] }
 0x13e   : >> { %v1356_v35 = vadd.f32 %v1347_v21, %v1284_v57  ;;  %v3855_v21 = vld [vmem:[#allocation25_spill] sm:$0xff] }
 0x13f   : >> { %v1183_v47 = vpop.f32.mrf.mxu2  ;;  %v1228_v10 = vpop.f32.mrf.mxu3 }
 0x140   : >> { %v1190_v23 = vadd.f32 %v1183_v47, %v1131_v44  ;;  %v1280_v34 = vpop.f32.mrf.mxu0 }
 0x142   : >> { %v1233_v37 = vadd.f32 %v1226_v2, %v1190_v23 }
 0x144   : >> { %v1513_v40 = vpop.f32.mrf.mxu1  ;;  %2808 = vmatmul.msk.bf16.vlgmr.msra.gmra.mxu3 %vm224_vm1, %v3848_v38  ;;  %v1285_v28 = vadd.f32 %v1278_v60, %v1233_v37  ;;  %v2853_v37 = vld [vmem:[%s3006_s9 + $0x64] sm:$0xc] }
 0x145   : >> { %2092 = vmatpush.bf16.msra.mxu3 %v3850_v3  ;;  %v2837_v38 = vld [vmem:[%s3006_s9 + $0x64] sm:$0xff]  }
 0x146   : >> { %v1357_v56 = vadd.f32 %v1350_v11, %v1285_v28  ;;  %v2847_v28 = vld [vmem:[%s3006_s9 + $0x64] sm:$0xe]  ;;  %v2014_v3 = vunpack.c.h.b16 %v2837_v38 }
 0x147   : >> { %2812 = vmatmul.msk.bf16.vlgmr.msra.gmra.mxu1 %vm224_vm1, %v3847_v39  ;;  %v1185_v1 = vpop.f32.mrf.mxu2  ;;  %v1447_v0 = vpop.f32.mrf.mxu3 }
 0x148   : >> { %2184 = vmatpush.bf16.msra.mxu1 %v3849_v32  ;;  %v1191_v55 = vadd.f32 %v1185_v1, %v1132_v20  ;;  %v1490_v7 = vpop.f32.mrf.mxu0  ;;  %v2164_v32 = vunpack.c.l.b16 %v2853_v37 }
 0x14a   : >> { %v1234_v59 = vadd.f32 %v1228_v10, %v1191_v55 }
 0x14b   : >> { %2810 = vmatmul.msk.bf16.vlgmr.msra.gmra.mxu0 %vm224_vm1, %v3851_v19  ;;  %v3611_v19 = vld [vmem:[%s3006_s9 + $0x6c] sm:$0xff] }
 0x14c   : >> { %v3564_v46 = vpop.f32.mrf.mxu1  ;;  %2146 = vmatpush.bf16.msra.mxu0 %v3852_v18  ;;  %2806 = vmatmul.msk.bf16.vlgmr.msra.gmra.mxu2 %vm224_vm1, %v3853_v50  ;;  %v1286_v27 = vadd.f32 %v1280_v34, %v1234_v59  ;;  %v2165_v59 = vpack.c.b16 %v2014_v3, %v2164_v32 }
 0x14d   : >> { %2054 = vmatpush.bf16.msra.mxu2 %v3854_v12 }
 0x14e   : >> { %v1358_v52 = vadd.f32 %v1352_v9, %v1286_v27  ;;  %v2033_v27 = vshrl.u32 %v3611_v19, 16 }
 0x14f   : >> { %v1388_v6 = vpop.f32.mrf.mxu2  ;;  %v1449_v44 = vpop.f32.mrf.mxu3 }
 0x150   : >> { %v1398_v8 = vadd.f32 %v1388_v6, %v1355_v42  ;;  %v1492_v43 = vpop.f32.mrf.mxu0  ;;  %v2167_v6 = vrot.slane %v3611_v19, 2 }
 0x152   : >> { %v1457_v63 = vadd.f32 %v1447_v0, %v1398_v8 }
 0x154   : >> { %v3572_v13 = vpop.f32.mrf.mxu1  ;;  %v3576_v54 = vadd.f32 %v1490_v7, %v1457_v63  ;;  %2809 = vmatmul.msk.bf16.gmra.mxu3 %vm224_vm1, %v3856_v29  ;;  %v2024_v63 = vshll.u32 %v2837_v38, 16 }
 0x157   : >> { %2813 = vmatmul.msk.bf16.gmra.mxu1 %vm224_vm1, %v3855_v21  ;;  %v1390_v33 = vpop.f32.mrf.mxu2  ;;  %v1452_v49 = vpop.f32.mrf.mxu3 }
 0x158   : >> { %v1399_v16 = vadd.f32 %v1390_v33, %v1356_v35  ;;  %v1495_v41 = vpop.f32.mrf.mxu0 }
 0x15a   : >> { %v1458_v24 = vadd.f32 %v1449_v44, %v1399_v16  ;;  %v2120_v16 = vrot.slane %v2033_v27, 1 }
 0x15b   : >> { %2811 = vmatmul.msk.bf16.gmra.mxu0 %vm224_vm1, %v3857_v51 }
 0x15c   : >> { %v3580_v20 = vpop.f32.mrf.mxu1  ;;  %v3584_v31 = vadd.f32 %v1492_v43, %v1458_v24  ;;  %2807 = vmatmul.msk.bf16.gmra.mxu2 %vm224_vm1, %v3858_v30  ;;  %v2075_v43 = vrot.slane %v3611_v19, 1 }
 0x15f   : >> { %v1393_v11 = vpop.f32.mrf.mxu2  ;;  %v1454_v58 = vpop.f32.mrf.mxu3 }
 0x160   : >> { %v1400_v14 = vadd.f32 %v1393_v11, %v1357_v56  ;;  %v1497_v48 = vpop.f32.mrf.mxu0  ;;  %v2850_v11 = vld [vmem:[%s3006_s9 + $0x74] sm:$0x3] }
 0x162   : >> { %v1459_v26 = vadd.f32 %v1452_v49, %v1400_v14  ;;  %v2026_v14 = vrot.slane %v2024_v63, 1 }
 0x164   : >> { %v1597_v42 = vpop.f32.mrf.mxu1  ;;  %v3590_v2 = vadd.f32 %v1495_v41, %v1459_v26  ;;  %2816 = vmatmul.msk.bf16.vlgmr.msrb.gmra.mxu3 %vm224_vm1, %v3457_v25  ;;  %v2875_v25 = vld [vmem:[%s3006_s9 + $0x6c] sm:$0xff] }
 0x167   : >> { %2834 = vmatmul.msk.bf16.vlgmr.msrb.gmra.mxu1 %vm224_vm1, %v2874_v5  ;;  %v1395_v53 = vpop.f32.mrf.mxu2  ;;  %v1551_v60 = vpop.f32.mrf.mxu3  ;;  %v2022_v5 = vshrl.u32 %v2837_v38, 16 }
 0x168   : >> { %v1401_v9 = vadd.f32 %v1395_v53, %v1358_v52  ;;  %v1574_v45 = vpop.f32.mrf.mxu0 }
 0x16a   : >> { %v1460_v17 = vadd.f32 %v1454_v58, %v1401_v9 }
 0x16b   : >> { %2818 = vmatmul.msk.bf16.vlgmr.msrb.gmra.mxu0 %vm224_vm1, %v3468_v61 }
 0x16c   : >> { %v1599_v22 = vpop.f32.mrf.mxu1  ;;  %v3596_v57 = vadd.f32 %v1497_v48, %v1460_v17  ;;  %2814 = vmatmul.msk.bf16.vlgmr.msrb.gmra.mxu2 %vm224_vm1, %v3472_v36  ;;  %v2072_v36 = vunpack.c.l.b16 %v2847_v28 }
 0x16e   : >> { %v2073_v18 = vpack.c.b16 %v2014_v3, %v2072_v36 }
 0x16f   : >> { %v1532_v35 = vpop.f32.mrf.mxu2  ;;  %v1553_v47 = vpop.f32.mrf.mxu3 }
 0x170   : >> { %v1533_v10 = vadd.f32 %v1532_v35, %v1513_v40  ;;  %v1576_v23 = vpop.f32.mrf.mxu0  ;;  %v2113_v12 = vshrl.u32 %v2073_v18, 16  ;;  %v2116_v52 = vshll.u32 %v2073_v18, 16  ;;  %v2074_v8 = vrot.slane %v2073_v18, 1 }
 0x172   : >> { %v1561_v39 = vadd.f32 %v1551_v60, %v1533_v10  ;;  %v2115_v33 = vrot.slane %v2113_v12, 1  ;;  %v2118_v49 = vrot.slane %v2116_v52, 2  ;;  %v2076_v58 = vsel %vm286_vm5, %v2074_v8, %v2075_v43 }
 0x173   : >> { %v2110_v60 = vunpack.c.l.b16 %v2850_v11 }
 0x174   : >> { %v1602_v34 = vpop.f32.mrf.mxu1  ;;  %2817 = vmatmul.msk.bf16.gmra.mxu3 %vm224_vm1, %v3481_v62  ;;  %v1584_v61 = vadd.f32 %v1574_v45, %v1561_v39  ;;  %v2029_v62 = vshll.u32 %v3611_v19, 16  ;;  %v2119_v26 = vor.u32 %v2118_v49, %v2115_v33 }
 0x175   : >> { %v2111_v10 = vpack.c.b16 %v2110_v60, %v2110_v60 }
 0x176   : >> { %v3607_v56 = vadd.f32 %v1597_v42, %v1584_v61  ;;  %v2840_v42 = vld [vmem:[%s3006_s9 + $0x74] sm:$0x1]  ;;  %v2031_v45 = vrot.slane %v2029_v62, 1  ;;  %s2856_s9 = sshll.u32 %s2925_s22, 5  ;;  %s177_s22 = sadd.s32 1, %s2925_s22  }
 0x177   : >> { %2835 = vmatmul.msk.bf16.gmra.mxu1 %vm224_vm1, %v2875_v25  ;;  %v1534_v1 = vpop.f32.mrf.mxu2  ;;  %v1556_v40 = vpop.f32.mrf.mxu3  ;;  %v2125_v32 = vshrl.u32 %v2111_v10, 16  ;;  %v2128_v3 = vshll.u32 %v2111_v10, 16  ;;  %s3651_s30 = scalar_lea.vmem [#allocation2], %s2856_s9  ;;  %p174_p4 = scmp.ge.s32.totalorder %s177_s22, 16  }
 0x178   : >> { %v1535_v0 = vadd.f32 %v1534_v1, %v3564_v46  ;;  %v1579_v55 = vpop.f32.mrf.mxu0  ;;  %v2166_v46 = vrot.slane %v2165_v59, 2  ;;  %v2035_v63 = vor.u32 %v2033_v27, %v2031_v45  ;;  %vm2470_vm7 = vcmask (%p174_p4), 257024  }
 0x179   : >> { %v2127_v59 = vrot.slane %v2125_v32, 1 }
 0x17a   : >> { %v1562_v50 = vadd.f32 %v1553_v47, %v1535_v0  ;;  %v2168_v30 = vsel %vm390_vm4, %v2166_v46, %v2167_v6 }
 0x17b   : >> { %2819 = vmatmul.msk.bf16.gmra.mxu0 %vm224_vm1, %v3489_v15 }
 0x17c   : >> { %v1604_v7 = vpop.f32.mrf.mxu1  ;;  %2815 = vmatmul.msk.bf16.gmra.mxu2 %vm224_vm1, %v3492_v4  ;;  %v1585_v44 = vadd.f32 %v1576_v23, %v1562_v50  ;;  %v2121_v4 = vrot.slane %v2029_v62, 2 }
 0x17e   : >> { %v3621_v21 = vadd.f32 %v1599_v22, %v1585_v44  ;;  %v2122_v53 = vor.u32 %v2121_v4, %v2120_v16  ;;  %v2017_v22 = vunpack.c.l.b16 %v2840_v42 }
 0x17f   : >> { %v1537_v15 = vpop.f32.mrf.mxu2  ;;  %v1558_v29 = vpop.f32.mrf.mxu3 }
 0x180   : >> { %v1538_v41 = vadd.f32 %v1537_v15, %v3572_v13  ;;  %v1581_v24 = vpop.f32.mrf.mxu0  ;;  %v2027_v13 = vor.u32 %v2026_v14, %v2022_v5  ;;  %v2123_v25 = vsel %vm330_vm3, %v2119_v26, %v2122_v53  ;;  %v2020_v28 = vpack.c.b16 %v2017_v22, %v2017_v22 }
 0x182   : >> { %v1563_v48 = vadd.f32 %v1556_v40, %v1538_v41  ;;  %v2032_v38 = vsel %vm203_vm2, %v2027_v13, %v2031_v45  ;;  %v2077_v1 = vrot.slane %v2020_v28, 1  ;;  %v2037_v46 = vshll.u32 %v2020_v28, 16 }
 0x184   : >> { %v1689_v51 = vpop.f32.mrf.mxu1  ;;  %2848 = vmatmul.msk.bf16.vlgmr.msra.gmra.mxu3 %vm224_vm1, %v2076_v58  ;;  %v1586_v9 = vadd.f32 %v1579_v55, %v1563_v48  ;;  %v2078_v52 = vsel %vm286_vm5, %v2075_v43, %v2077_v1  ;;  %v2039_v15 = vrot.slane %v2037_v46, 1 }
 0x186   : >> { %v1609_v17 = vadd.f32 %v1602_v34, %v1586_v9  ;;  %v2169_v34 = vrot.slane %v2111_v10, 2  ;;  %v2040_v4 = vsel %vm203_vm2, %v2035_v63, %v2039_v15 }
 0x187   : >> { %2854 = vmatmul.msk.bf16.vlgmr.msra.gmra.mxu1 %vm224_vm1, %v2168_v30  ;;  %v1539_v35 = vpop.f32.mrf.mxu2  ;;  %v1643_v47 = vpop.f32.mrf.mxu3 }
 0x188   : >> { %v1540_v23 = vadd.f32 %v1539_v35, %v3580_v20  ;;  %v1666_v37 = vpop.f32.mrf.mxu0  ;;  %v2130_v20 = vrot.slane %v2128_v3, 2  ;;  %v2170_v12 = vsel %vm390_vm4, %v2167_v6, %v2169_v34 }
 0x18a   : >> { %v1564_v61 = vadd.f32 %v1558_v29, %v1540_v23  ;;  %v2131_v8 = vor.u32 %v2130_v20, %v2127_v59 }
 0x18b   : >> { %2851 = vmatmul.msk.bf16.vlgmr.msra.gmra.mxu0 %vm224_vm1, %v2123_v25 }
 0x18c   : >> { %v1691_v39 = vpop.f32.mrf.mxu1  ;;  %2845 = vmatmul.msk.bf16.vlgmr.msra.gmra.mxu2 %vm224_vm1, %v2032_v38  ;;  %v1587_v36 = vadd.f32 %v1581_v24, %v1564_v61  ;;  %v2132_v49 = vsel %vm330_vm3, %v2122_v53, %v2131_v8 }
 0x18e   : >> { %v1610_v40 = vadd.f32 %v1604_v7, %v1587_v36 }
 0x18f   : >> { %v1620_v0 = vpop.f32.mrf.mxu2  ;;  %v1645_v55 = vpop.f32.mrf.mxu3 }
 0x190   : >> { %v1630_v18 = vadd.f32 %v1620_v0, %v3607_v56  ;;  %v1668_v50 = vpop.f32.mrf.mxu0 }
 0x192   : >> { %v1653_v44 = vadd.f32 %v1643_v47, %v1630_v18 }
 0x194   : >> { %v1694_v62 = vpop.f32.mrf.mxu1  ;;  %2849 = vmatmul.msk.bf16.gmra.mxu3 %vm224_vm1, %v2078_v52  ;;  %v1676_v7 = vadd.f32 %v1666_v37, %v1653_v44 }
 0x196   : >> { %v1699_v29 = vadd.f32 %v1689_v51, %v1676_v7 }
 0x197   : >> { %2855 = vmatmul.msk.bf16.gmra.mxu1 %vm224_vm1, %v2170_v12  ;;  %v1622_v56 = vpop.f32.mrf.mxu2  ;;  %v1648_v33 = vpop.f32.mrf.mxu3 }
 0x198   : >> { %v1631_v6 = vadd.f32 %v1622_v56, %v3621_v21  ;;  %v1671_v43 = vpop.f32.mrf.mxu0 }
 0x19a   : >> { %v1654_v41 = vadd.f32 %v1645_v55, %v1631_v6 }
 0x19b   : >> { %2852 = vmatmul.msk.bf16.gmra.mxu0 %vm224_vm1, %v2132_v49 }
 0x19c   : >> { %v1696_v16 = vpop.f32.mrf.mxu1  ;;  %2846 = vmatmul.msk.bf16.gmra.mxu2 %vm224_vm1, %v2040_v4  ;;  %v1677_v24 = vadd.f32 %v1668_v50, %v1654_v41 }
 0x19e   : >> { %v1700_v19 = vadd.f32 %v1691_v39, %v1677_v24 }
 0x19f   : >> { %v1625_v27 = vpop.f32.mrf.mxu2  ;;  %v1650_v30 = vpop.f32.mrf.mxu3 }
 0x1a0   : >> { %v1632_v51 = vadd.f32 %v1625_v27, %v1609_v17  ;;  %v1673_v11 = vpop.f32.mrf.mxu0 }
 0x1a2   : >> { %v1655_v5 = vadd.f32 %v1648_v33, %v1632_v51 }
 0x1a4   : >> { %v1781_v58 = vpop.f32.mrf.mxu1  ;;  %v1678_v14 = vadd.f32 %v1671_v43, %v1655_v5 }
 0x1a6   : >> { %v1701_v48 = vadd.f32 %v1694_v62, %v1678_v14 }
 0x1a7   : >> { %v1627_v21 = vpop.f32.mrf.mxu2  ;;  %v1735_v42 = vpop.f32.mrf.mxu3 }
 0x1a8   : >> { %v1633_v26 = vadd.f32 %v1627_v21, %v1610_v40  ;;  %v1758_v53 = vpop.f32.mrf.mxu0 }
 0x1aa   : >> { %v1656_v9 = vadd.f32 %v1650_v30, %v1633_v26 }
 0x1ac   : >> { %v1783_v60 = vpop.f32.mrf.mxu1  ;;  %v1679_v13 = vadd.f32 %v1673_v11, %v1656_v9 }
 0x1ae   : >> { %v1702_v45 = vadd.f32 %v1696_v16, %v1679_v13 }
 0x1af   : >> { %v1712_v22 = vpop.f32.mrf.mxu2  ;;  %v1737_v35 = vpop.f32.mrf.mxu3 }
 0x1b0   : >> { %v1722_v47 = vadd.f32 %v1712_v22, %v1699_v29  ;;  %v1760_v25 = vpop.f32.mrf.mxu0 }
 0x1b2   : >> { %v1745_v23 = vadd.f32 %v1735_v42, %v1722_v47 }
 0x1b4   : >> { %v1786_v10 = vpop.f32.mrf.mxu1  ;;  %v1768_v17 = vadd.f32 %v1758_v53, %v1745_v23 }
 0x1b6   : >> { %v1791_v37 = vadd.f32 %v1781_v58, %v1768_v17 }
 0x1b7   : >> { %v1714_v39 = vpop.f32.mrf.mxu2  ;;  %v1740_v38 = vpop.f32.mrf.mxu3 }
 0x1b8   : >> { %v1723_v28 = vadd.f32 %v1714_v39, %v1700_v19  ;;  %v1763_v61 = vpop.f32.mrf.mxu0 }
 0x1ba   : >> { %v1746_v3 = vadd.f32 %v1737_v35, %v1723_v28 }
 0x1bc   : >> { %v1788_v32 = vpop.f32.mrf.mxu1  ;;  %v1769_v34 = vadd.f32 %v1760_v25, %v1746_v3 }
 0x1be   : >> { %v1792_v36 = vadd.f32 %v1783_v60, %v1769_v34 }
 0x1bf   : >> { %v1717_v1 = vpop.f32.mrf.mxu2  ;;  %v1742_v40 = vpop.f32.mrf.mxu3 }
 0x1c0   : >> { %v1724_v0 = vadd.f32 %v1717_v1, %v1701_v48  ;;  %v1765_v55 = vpop.f32.mrf.mxu0 }
 0x1c2   : >> { %v1747_v20 = vadd.f32 %v1740_v38, %v1724_v0 }
 0x1c4   : >> { %v1873_v59 = vpop.f32.mrf.mxu1  ;;  %v1770_v18 = vadd.f32 %v1763_v61, %v1747_v20 }
 0x1c6   : >> { %v1793_v50 = vadd.f32 %v1786_v10, %v1770_v18 }
 0x1c7   : >> { %v1719_v62 = vpop.f32.mrf.mxu2  ;;  %v1827_v12 = vpop.f32.mrf.mxu3 }
 0x1c8   : >> { %v1725_v52 = vadd.f32 %v1719_v62, %v1702_v45  ;;  %v1850_v46 = vpop.f32.mrf.mxu0 }
 0x1ca   : >> { %v1748_v8 = vadd.f32 %v1742_v40, %v1725_v52 }
 0x1cc   : >> { %v1875_v44 = vpop.f32.mrf.mxu1  ;;  %v1771_v7 = vadd.f32 %v1765_v55, %v1748_v8 }
 0x1ce   : >> { %v1794_v63 = vadd.f32 %v1788_v32, %v1771_v7 }
 0x1cf   : >> { %v1804_v15 = vpop.f32.mrf.mxu2  ;;  %v1829_v29 = vpop.f32.mrf.mxu3 }
 0x1d0   : >> { %v1852_v56 = vpop.f32.mrf.mxu0  ;;  %v1814_v48 = vadd.f32 %v1804_v15, %v1791_v37 }
 0x1d2   : >> { %v1837_v26 = vadd.f32 %v1827_v12, %v1814_v48 }
 0x1d4   : >> { %v1878_v33 = vpop.f32.mrf.mxu1  ;;  %v1860_v13 = vadd.f32 %v1850_v46, %v1837_v26 }
 0x1d6   : >> { %v1883_v35 = vadd.f32 %v1873_v59, %v1860_v13 }
 0x1d7   : >> { %v1806_v49 = vpop.f32.mrf.mxu2  ;;  %v1832_v6 = vpop.f32.mrf.mxu3 }
 0x1d8   : >> { %v1855_v43 = vpop.f32.mrf.mxu0  ;;  %v1815_v9 = vadd.f32 %v1806_v49, %v1792_v36 }
 0x1da   : >> { %v1838_v22 = vadd.f32 %v1829_v29, %v1815_v9 }
 0x1dc   : >> { %v1880_v16 = vpop.f32.mrf.mxu1  ;;  %v1861_v17 = vadd.f32 %v1852_v56, %v1838_v22 }
 0x1de   : >> { %v1884_v37 = vadd.f32 %v1875_v44, %v1861_v17 }
 0x1df   : >> { %v1809_v4 = vpop.f32.mrf.mxu2  ;;  %v1834_v41 = vpop.f32.mrf.mxu3 }
 0x1e0   : >> { %v1857_v24 = vpop.f32.mrf.mxu0  ;;  %v1816_v23 = vadd.f32 %v1809_v4, %v1793_v50 }
 0x1e2   : >> { %v1839_v61 = vadd.f32 %v1832_v6, %v1816_v23 }
 0x1e4   : >> { %v1989_v19 = vpop.f32.mrf.mxu1  ;;  %v1862_v36 = vadd.f32 %v1855_v43, %v1839_v61 }
 0x1e6   : >> { %v1885_v62 = vadd.f32 %v1878_v33, %v1862_v36 }
 0x1e7   : >> { %v1811_v27 = vpop.f32.mrf.mxu2  ;;  %v1919_v30 = vpop.f32.mrf.mxu3 }
 0x1e8   : >> { %v1942_v51 = vpop.f32.mrf.mxu0  ;;  %v1817_v1 = vadd.f32 %v1811_v27, %v1794_v63 }
 0x1ea   : >> { %v1840_v18 = vadd.f32 %v1834_v41, %v1817_v1 }
 0x1ec   : >> { %v1991_v14 = vpop.f32.mrf.mxu1  ;;  %v1863_v8 = vadd.f32 %v1857_v24, %v1840_v18 }
 0x1ee   : >> { %v1886_v6 = vadd.f32 %v1880_v16, %v1863_v8 }
 0x1ef   : >> { %v1896_v11 = vpop.f32.mrf.mxu2  ;;  %v1921_v58 = vpop.f32.mrf.mxu3 }
 0x1f0   : >> { %v1944_v5 = vpop.f32.mrf.mxu0  ;;  %v1906_v25 = vadd.f32 %v1896_v11, %v1883_v35 }
 0x1f2   : >> { %v1929_v38 = vadd.f32 %v1919_v30, %v1906_v25 }
 0x1f4   : >> { %v1994_v60 = vpop.f32.mrf.mxu1  ;;  %v1952_v3 = vadd.f32 %v1942_v51, %v1929_v38  ;;  %v3670_v38 = vld [vmem:[%s3773_s2] ss:$0 sm:$0xff] (%p174_p4) }
 0x1f6   : >> { %v1999_v55 = vadd.f32 %v1989_v19, %v1952_v3 }
 0x1f7   : >> { %v1898_v21 = vpop.f32.mrf.mxu2  ;;  %v1924_v42 = vpop.f32.mrf.mxu3 }
 0x1f8   : >> { %v1947_v53 = vpop.f32.mrf.mxu0  ;;  %v1907_v32 = vadd.f32 %v1898_v21, %v1884_v37 }
 0x1fa   : >> { %v1930_v0 = vadd.f32 %v1921_v58, %v1907_v32 }
 0x1fc   : >> { %v1996_v39 = vpop.f32.mrf.mxu1  ;;  %v1953_v46 = vadd.f32 %v1944_v5, %v1930_v0 }
 0x1fe   : >> { %v2000_v56 = vadd.f32 %v1991_v14, %v1953_v46 }
 0x1ff   : >> { %v1901_v45 = vpop.f32.mrf.mxu2  ;;  %v1926_v47 = vpop.f32.mrf.mxu3 }
 0x200   : >> { %v1949_v10 = vpop.f32.mrf.mxu0  ;;  %v1908_v12 = vadd.f32 %v1901_v45, %v1885_v62 }
 0x202   : >> { %v1931_v15 = vadd.f32 %v1924_v42, %v1908_v12 }
 0x204   : >> { %v2186_v59 = vpop.f32.mrf.mxu1  ;;  %v1954_v19 = vadd.f32 %v1947_v53, %v1931_v15 }
 0x206   : >> { %v2001_v11 = vadd.f32 %v1994_v60, %v1954_v19 }
 0x207   : >> { %v1903_v28 = vpop.f32.mrf.mxu2  ;;  %v2094_v34 = vpop.f32.mrf.mxu3 }
 0x208   : >> { %v2148_v40 = vpop.f32.mrf.mxu0  ;;  %v1909_v33 = vadd.f32 %v1903_v28, %v1886_v6 }
 0x20a   : >> { %v1932_v30 = vadd.f32 %v1926_v47, %v1909_v33 }
 0x20c   : >> { %v2188_v41 = vpop.f32.mrf.mxu1  ;;  %v1955_v21 = vadd.f32 %v1949_v10, %v1932_v30 }
 0x20e   : >> { %v2002_v53 = vadd.f32 %v1996_v39, %v1955_v21 }
 0x20f   : >> { %v2056_v20 = vpop.f32.mrf.mxu2  ;;  %v2096_v44 = vpop.f32.mrf.mxu3 }
 0x210   : >> { %v2066_v50 = vadd.f32 %v2056_v20, %v1999_v55  ;;  %v2150_v63 = vpop.f32.mrf.mxu0 }
 0x212   : >> { %v2104_v52 = vadd.f32 %v2094_v34, %v2066_v50 }
 0x214   : >> { %v2158_v7 = vadd.f32 %v2148_v40, %v2104_v52  ;;  %v2191_v42 = vpop.f32.mrf.mxu1 }
 0x216   : >> { %v2196_v29 = vadd.f32 %v2186_v59, %v2158_v7 }
 0x217   : >> { %v2058_v49 = vpop.f32.mrf.mxu2  ;;  %v2099_v58 = vpop.f32.mrf.mxu3 }
 0x218   : >> { %v2200_v43 = vmax.f32 %v3576_v54, %v2196_v29  ;;  %v2067_v4 = vadd.f32 %v2058_v49, %v2000_v56  ;;  %v2153_v14 = vpop.f32.mrf.mxu0 }
 0x21a   : >> { %2207 = vst.msk [vmem:[%s3651_s30] sm:$0xff] %vm2206_vm6, %v2200_v43  ;;  %v2105_v24 = vadd.f32 %v2096_v44, %v2067_v4 }
 0x21c   : >> { %v2159_v27 = vadd.f32 %v2150_v63, %v2105_v24  ;;  %v2193_v25 = vpop.f32.mrf.mxu1 }
 0x21e   : >> { %v2197_v51 = vadd.f32 %v2188_v41, %v2159_v27 }
 0x21f   : >> { %v2061_v16 = vpop.f32.mrf.mxu2  ;;  %v2101_v22 = vpop.f32.mrf.mxu3 }
 0x220   : >> { %v2201_v54 = vmax.f32 %v3584_v31, %v2197_v51  ;;  %v2068_v5 = vadd.f32 %v2061_v16, %v2001_v11  ;;  %v2155_v31 = vpop.f32.mrf.mxu0 }
 0x222   : >> { %2208 = vst.msk [vmem:[%s3651_s30 + $0x8] sm:$0xff] %vm2206_vm6, %v2201_v54  ;;  %v2106_v48 = vadd.f32 %v2099_v58, %v2068_v5 }
 0x224   : >> { %v2160_v26 = vadd.f32 %v2153_v14, %v2106_v48 }
 0x226   : >> { %v2198_v9 = vadd.f32 %v2191_v42, %v2160_v26 }
 0x227   : >> { %v2063_v13 = vpop.f32.mrf.mxu2 }
 0x228   : >> { %v2202_v45 = vmax.f32 %v3590_v2, %v2198_v9  ;;  %v2069_v60 = vadd.f32 %v2063_v13, %v2002_v53 }
 0x22a   : >> { %2209 = vst.msk [vmem:[%s3651_s30 + $0x10] sm:$0xff] %vm2206_vm6, %v2202_v45  ;;  %v2107_v35 = vadd.f32 %v2101_v22, %v2069_v60 }
 0x22c   : >> { %v2161_v47 = vadd.f32 %v2155_v31, %v2107_v35 }
 0x22e   : >> { %v2199_v23 = vadd.f32 %v2193_v25, %v2161_v47  ;;  %176 = sbr.rel (!%p174_p4) target bundleno = 15 (0xf), region = 163 }
 0x230   : >> { %v2203_v17 = vmax.f32 %v3596_v57, %v2199_v23 }
 0x232   : >> { %2210 = vst.msk [vmem:[%s3651_s30 + $0x18] sm:$0xff] %vm2206_vm6, %v2203_v17 }
 0x239   : > { %v2211_v2 = vld [vmem:[#allocation2] ss:$2 sm:$0xff]  ;;  %v2275_v10 = vld [vmem:[#allocation2 + $0x1] ss:$2 sm:$0xff]  ;;  %v2213_v28 = vld [vmem:[#allocation2 + $0x10] ss:$2 sm:$0xff] }
 0x23a   : > { %v2338_v39 = vmax.f32 %v2211_v2, %v2275_v10  ;;  %v2277_v61 = vld [vmem:[#allocation2 + $0x11] ss:$2 sm:$0xff]  ;;  %v2215_v57 = vld [vmem:[#allocation2 + $0x20] ss:$2 sm:$0xff]  ;;  %v2279_v37 = vld [vmem:[#allocation2 + $0x21] ss:$2 sm:$0xff] }
 0x23b   : > { %v2339_v3 = vmax.f32 %v2213_v28, %v2277_v61  ;;  %v2340_v34 = vmax.f32 %v2215_v57, %v2279_v37  ;;  %v2217_v1 = vld [vmem:[#allocation2 + $0x30] ss:$2 sm:$0xff]  ;;  %v2281_v36 = vld [vmem:[#allocation2 + $0x31] ss:$2 sm:$0xff]  ;;  %v2219_v40 = vld [vmem:[#allocation2 + $0x40] ss:$2 sm:$0xff] }
 0x23c   : > { %v2374_v32 = vadd.f32 %v3670_v38, %v2338_v39  ;;  %v2341_v0 = vmax.f32 %v2217_v1, %v2281_v36  ;;  %v2283_v55 = vld [vmem:[#allocation2 + $0x41] ss:$2 sm:$0xff]  ;;  %v2221_v59 = vld [vmem:[#allocation2 + $0x50] ss:$2 sm:$0xff]  ;;  %v2285_v20 = vld [vmem:[#allocation2 + $0x51] ss:$2 sm:$0xff] }
 0x23d   : > { %v2375_v62 = vadd.f32 %v3670_v38, %v2339_v3  ;;  %v2376_v50 = vadd.f32 %v3670_v38, %v2340_v34  ;;  %v2342_v12 = vmax.f32 %v2219_v40, %v2283_v55  ;;  %v2223_v52 = vld [vmem:[#allocation2 + $0x60] ss:$2 sm:$0xff]  ;;  %v2287_v46 = vld [vmem:[#allocation2 + $0x61] ss:$2 sm:$0xff]  ;;  %v2343_v7 = vmax.f32 %v2221_v59, %v2285_v20  ;;  %v2225_v15 = vld [vmem:[#allocation2 + $0x70] ss:$2 sm:$0xff] }
 0x23e   : > { %v2406_v18 = vmax.f32 %v2374_v32, 0.0  ;;  %v2377_v8 = vadd.f32 %v3670_v38, %v2341_v0  ;;  %v2344_v44 = vmax.f32 %v2223_v52, %v2287_v46  ;;  %v2289_v29 = vld [vmem:[#allocation2 + $0x71] ss:$2 sm:$0xff]  ;;  %v2227_v56 = vld [vmem:[#allocation2 + $0x80] ss:$2 sm:$0xff] }
 0x23f   : > { %v2407_v49 = vmax.f32 %v2375_v62, 0.0  ;;  %v2408_v6 = vmax.f32 %v2376_v50, 0.0  ;;  %v2378_v43 = vadd.f32 %v3670_v38, %v2342_v12  ;;  %v2291_v4 = vld [vmem:[#allocation2 + $0x81] ss:$2 sm:$0xff]  ;;  %v2229_v41 = vld [vmem:[#allocation2 + $0x90] ss:$2 sm:$0xff]  ;;  %v2379_v24 = vadd.f32 %v3670_v38, %v2343_v7 }
 0x240   : > { %v2438_v63 = vpack.c.bf16 %v2406_v18, %v2406_v18  ;;  %v2409_v33 = vmax.f32 %v2377_v8, 0.0  ;;  %v2380_v19 = vadd.f32 %v3670_v38, %v2344_v44  ;;  %v2345_v27 = vmax.f32 %v2225_v15, %v2289_v29  ;;  %v2293_v30 = vld [vmem:[#allocation2 + $0x91] ss:$2 sm:$0xff]  ;;  %v2231_v51 = vld [vmem:[#allocation2 + $0xa0] ss:$2 sm:$0xff] }
 0x241   : > { %v2439_v11 = vpack.c.bf16 %v2407_v49, %v2407_v49  ;;  %v2440_v58 = vpack.c.bf16 %v2408_v6, %v2408_v6  ;;  %v2410_v16 = vmax.f32 %v2378_v43, 0.0  ;;  %v2346_v54 = vmax.f32 %v2227_v56, %v2291_v4  ;;  %v2295_v5 = vld [vmem:[#allocation2 + $0xa1] ss:$2 sm:$0xff]  ;;  %v2233_v26 = vld [vmem:[#allocation2 + $0xb0] ss:$2 sm:$0xff] }
 0x242   : > { %2471 = vst.msk [vmem:[%s2958_s18] sm:$0xf] %vm2470_vm7, %v2438_v63  ;;  %v2441_v14 = vpack.c.bf16 %v2409_v33, %v2409_v33  ;;  %v2411_v48 = vmax.f32 %v2379_v24, 0.0  ;;  %v2412_v21 = vmax.f32 %v2380_v19, 0.0  ;;  %v2381_v42 = vadd.f32 %v3670_v38, %v2345_v27  ;;  %v2297_v9 = vld [vmem:[#allocation2 + $0xb1] ss:$2 sm:$0xff] }
 0x243   : > { %2472 = vst.msk [vmem:[%s2958_s18 + $0x4] sm:$0xf] %vm2470_vm7, %v2439_v11  ;;  %v2442_v53 = vpack.c.bf16 %v2410_v16, %v2410_v16  ;;  %v2382_v13 = vadd.f32 %v3670_v38, %v2346_v54  ;;  %v2347_v45 = vmax.f32 %v2229_v41, %v2293_v30  ;;  %v2348_v60 = vmax.f32 %v2231_v51, %v2295_v5  ;;  %v2235_v22 = vld [vmem:[#allocation2 + $0xc0] ss:$2 sm:$0xff]  ;;  %v2299_v35 = vld [vmem:[#allocation2 + $0xc1] ss:$2 sm:$0xff] }
 0x244   : > { %2473 = vst.msk [vmem:[%s2958_s18 + $0x8] sm:$0xf] %vm2470_vm7, %v2440_v58  ;;  %v2443_v31 = vpack.c.bf16 %v2411_v48, %v2411_v48  ;;  %v2444_v47 = vpack.c.bf16 %v2412_v21, %v2412_v21  ;;  %v2413_v25 = vmax.f32 %v2381_v42, 0.0  ;;  %v2349_v23 = vmax.f32 %v2233_v26, %v2297_v9  ;;  %v2237_v17 = vld [vmem:[#allocation2 + $0xd0] ss:$2 sm:$0xff] }
 0x245   : > { %2474 = vst.msk [vmem:[%s2958_s18 + $0xc] sm:$0xf] %vm2470_vm7, %v2441_v14  ;;  %v2414_v2 = vmax.f32 %v2382_v13, 0.0  ;;  %v2383_v10 = vadd.f32 %v3670_v38, %v2347_v45  ;;  %v2384_v39 = vadd.f32 %v3670_v38, %v2348_v60  ;;  %v2350_v28 = vmax.f32 %v2235_v22, %v2299_v35  ;;  %v2301_v61 = vld [vmem:[#allocation2 + $0xd1] ss:$2 sm:$0xff] }
 0x246   : > { %2475 = vst.msk [vmem:[%s2958_s18 + $0x10] sm:$0xf] %vm2470_vm7, %v2442_v53  ;;  %v2445_v57 = vpack.c.bf16 %v2413_v25, %v2413_v25  ;;  %v2385_v37 = vadd.f32 %v3670_v38, %v2349_v23  ;;  %v2351_v32 = vmax.f32 %v2237_v17, %v2301_v61  ;;  %v2239_v3 = vld [vmem:[#allocation2 + $0xe0] ss:$2 sm:$0xff]  ;;  %v2303_v34 = vld [vmem:[#allocation2 + $0xe1] ss:$2 sm:$0xff] }
 0x247   : > { %2476 = vst.msk [vmem:[%s2958_s18 + $0x14] sm:$0xf] %vm2470_vm7, %v2443_v31  ;;  %v2446_v1 = vpack.c.bf16 %v2414_v2, %v2414_v2  ;;  %v2415_v36 = vmax.f32 %v2383_v10, 0.0  ;;  %v2416_v40 = vmax.f32 %v2384_v39, 0.0  ;;  %v2386_v0 = vadd.f32 %v3670_v38, %v2350_v28  ;;  %v2241_v55 = vld [vmem:[#allocation2 + $0xf0] ss:$2 sm:$0xff] }
 0x248   : > { %2477 = vst.msk [vmem:[%s2958_s18 + $0x18] sm:$0xf] %vm2470_vm7, %v2444_v47  ;;  %v2417_v59 = vmax.f32 %v2385_v37, 0.0  ;;  %v2387_v20 = vadd.f32 %v3670_v38, %v2351_v32  ;;  %v2352_v18 = vmax.f32 %v2239_v3, %v2303_v34  ;;  %v2305_v62 = vld [vmem:[#allocation2 + $0xf1] ss:$2 sm:$0xff] }
 0x249   : > { %2478 = vst.msk [vmem:[%s2958_s18 + $0x1c] sm:$0xf] %vm2470_vm7, %v2445_v57  ;;  %v2447_v50 = vpack.c.bf16 %v2415_v36, %v2415_v36  ;;  %v2448_v12 = vpack.c.bf16 %v2416_v40, %v2416_v40  ;;  %v2418_v52 = vmax.f32 %v2386_v0, 0.0  ;;  %v2353_v46 = vmax.f32 %v2241_v55, %v2305_v62  ;;  %v2243_v8 = vld [vmem:[#allocation2 + $0x100] ss:$2 sm:$0xff] }
 0x24a   : > { %2479 = vst.msk [vmem:[%s2958_s18 + $0x20] sm:$0xf] %vm2470_vm7, %v2446_v1  ;;  %v2449_v7 = vpack.c.bf16 %v2417_v59, %v2417_v59  ;;  %v2419_v44 = vmax.f32 %v2387_v20, 0.0  ;;  %v2388_v15 = vadd.f32 %v3670_v38, %v2352_v18  ;;  %v2307_v29 = vld [vmem:[#allocation2 + $0x101] ss:$2 sm:$0xff] }
 0x24b   : > { %2480 = vst.msk [vmem:[%s2958_s18 + $0x24] sm:$0xf] %vm2470_vm7, %v2447_v50  ;;  %v2450_v56 = vpack.c.bf16 %v2418_v52, %v2418_v52  ;;  %v2389_v63 = vadd.f32 %v3670_v38, %v2353_v46  ;;  %v2354_v49 = vmax.f32 %v2243_v8, %v2307_v29  ;;  %v2245_v6 = vld [vmem:[#allocation2 + $0x110] ss:$2 sm:$0xff]  ;;  %v2309_v43 = vld [vmem:[#allocation2 + $0x111] ss:$2 sm:$0xff] }
 0x24c   : > { %2481 = vst.msk [vmem:[%s2958_s18 + $0x28] sm:$0xf] %vm2470_vm7, %v2448_v12  ;;  %v2451_v4 = vpack.c.bf16 %v2419_v44, %v2419_v44  ;;  %v2420_v41 = vmax.f32 %v2388_v15, 0.0  ;;  %v2355_v33 = vmax.f32 %v2245_v6, %v2309_v43  ;;  %v2247_v24 = vld [vmem:[#allocation2 + $0x120] ss:$2 sm:$0xff] }
 0x24d   : > { %2482 = vst.msk [vmem:[%s2958_s18 + $0x2c] sm:$0xf] %vm2470_vm7, %v2449_v7  ;;  %v2421_v19 = vmax.f32 %v2389_v63, 0.0  ;;  %v2390_v27 = vadd.f32 %v3670_v38, %v2354_v49  ;;  %v2311_v30 = vld [vmem:[#allocation2 + $0x121] ss:$2 sm:$0xff] }
 0x24e   : > { %2483 = vst.msk [vmem:[%s2958_s18 + $0x30] sm:$0xf] %vm2470_vm7, %v2450_v56  ;;  %v2452_v51 = vpack.c.bf16 %v2420_v41, %v2420_v41  ;;  %v2391_v11 = vadd.f32 %v3670_v38, %v2355_v33  ;;  %v2356_v58 = vmax.f32 %v2247_v24, %v2311_v30  ;;  %v2249_v16 = vld [vmem:[#allocation2 + $0x130] ss:$2 sm:$0xff]  ;;  %v2313_v54 = vld [vmem:[#allocation2 + $0x131] ss:$2 sm:$0xff] }
 0x24f   : > { %2484 = vst.msk [vmem:[%s2958_s18 + $0x34] sm:$0xf] %vm2470_vm7, %v2451_v4  ;;  %v2453_v5 = vpack.c.bf16 %v2421_v19, %v2421_v19  ;;  %v2422_v14 = vmax.f32 %v2390_v27, 0.0  ;;  %v2357_v48 = vmax.f32 %v2249_v16, %v2313_v54  ;;  %v2251_v21 = vld [vmem:[#allocation2 + $0x140] ss:$2 sm:$0xff] }
 0x250   : > { %2485 = vst.msk [vmem:[%s2958_s18 + $0x38] sm:$0xf] %vm2470_vm7, %v2452_v51  ;;  %v2423_v42 = vmax.f32 %v2391_v11, 0.0  ;;  %v2392_v26 = vadd.f32 %v3670_v38, %v2356_v58  ;;  %v2315_v9 = vld [vmem:[#allocation2 + $0x141] ss:$2 sm:$0xff] }
 0x251   : > { %2486 = vst.msk [vmem:[%s2958_s18 + $0x3c] sm:$0xf] %vm2470_vm7, %v2453_v5  ;;  %v2454_v53 = vpack.c.bf16 %v2422_v14, %v2422_v14  ;;  %v2393_v13 = vadd.f32 %v3670_v38, %v2357_v48  ;;  %v2358_v45 = vmax.f32 %v2251_v21, %v2315_v9  ;;  %v2253_v60 = vld [vmem:[#allocation2 + $0x150] ss:$2 sm:$0xff]  ;;  %v2317_v22 = vld [vmem:[#allocation2 + $0x151] ss:$2 sm:$0xff] }
 0x252   : > { %v2455_v35 = vpack.c.bf16 %v2423_v42, %v2423_v42  ;;  %v2424_v31 = vmax.f32 %v2392_v26, 0.0  ;;  %v2359_v47 = vmax.f32 %v2253_v60, %v2317_v22  ;;  %v2255_v25 = vld [vmem:[#allocation2 + $0x160] ss:$2 sm:$0xff]  ;;  %v2319_v23 = vld [vmem:[#allocation2 + $0x161] ss:$2 sm:$0xff] }
 0x253   : > { %2487 = vst.msk [vmem:[%s2958_s18 + $0x40] sm:$0xf] %vm2470_vm7, %v2454_v53  ;;  %v2425_v17 = vmax.f32 %v2393_v13, 0.0  ;;  %v2394_v2 = vadd.f32 %v3670_v38, %v2358_v45  ;;  %v2360_v10 = vmax.f32 %v2255_v25, %v2319_v23  ;;  %v2257_v39 = vld [vmem:[#allocation2 + $0x170] ss:$2 sm:$0xff] }
 0x254   : > { %2488 = vst.msk [vmem:[%s2958_s18 + $0x44] sm:$0xf] %vm2470_vm7, %v2455_v35  ;;  %v2456_v28 = vpack.c.bf16 %v2424_v31, %v2424_v31  ;;  %v2395_v61 = vadd.f32 %v3670_v38, %v2359_v47  ;;  %v2321_v57 = vld [vmem:[#allocation2 + $0x171] ss:$2 sm:$0xff]  ;;  %v2259_v37 = vld [vmem:[#allocation2 + $0x180] ss:$2 sm:$0xff] }
 0x255   : > { %v2457_v32 = vpack.c.bf16 %v2425_v17, %v2425_v17  ;;  %v2426_v3 = vmax.f32 %v2394_v2, 0.0  ;;  %v2396_v34 = vadd.f32 %v3670_v38, %v2360_v10  ;;  %v2361_v1 = vmax.f32 %v2257_v39, %v2321_v57  ;;  %v2323_v36 = vld [vmem:[#allocation2 + $0x181] ss:$2 sm:$0xff]  ;;  %v2261_v40 = vld [vmem:[#allocation2 + $0x190] ss:$2 sm:$0xff] }
 0x256   : > { %2489 = vst.msk [vmem:[%s2958_s18 + $0x48] sm:$0xf] %vm2470_vm7, %v2456_v28  ;;  %v2427_v0 = vmax.f32 %v2395_v61, 0.0  ;;  %v2362_v55 = vmax.f32 %v2259_v37, %v2323_v36  ;;  %v2325_v59 = vld [vmem:[#allocation2 + $0x191] ss:$2 sm:$0xff] }
 0x257   : > { %2490 = vst.msk [vmem:[%s2958_s18 + $0x4c] sm:$0xf] %vm2470_vm7, %v2457_v32  ;;  %v2458_v20 = vpack.c.bf16 %v2426_v3, %v2426_v3  ;;  %v2428_v18 = vmax.f32 %v2396_v34, 0.0  ;;  %v2397_v62 = vadd.f32 %v3670_v38, %v2361_v1  ;;  %v2363_v50 = vmax.f32 %v2261_v40, %v2325_v59  ;;  %v2263_v12 = vld [vmem:[#allocation2 + $0x1a0] ss:$2 sm:$0xff] }
 0x258   : > { %v2459_v52 = vpack.c.bf16 %v2427_v0, %v2427_v0  ;;  %v2398_v46 = vadd.f32 %v3670_v38, %v2362_v55  ;;  %v2327_v8 = vld [vmem:[#allocation2 + $0x1a1] ss:$2 sm:$0xff]  ;;  %v2265_v7 = vld [vmem:[#allocation2 + $0x1b0] ss:$2 sm:$0xff]  ;;  %v2329_v44 = vld [vmem:[#allocation2 + $0x1b1] ss:$2 sm:$0xff] }
 0x259   : > { %2491 = vst.msk [vmem:[%s2958_s18 + $0x50] sm:$0xf] %vm2470_vm7, %v2458_v20  ;;  %v2460_v15 = vpack.c.bf16 %v2428_v18, %v2428_v18  ;;  %v2429_v29 = vmax.f32 %v2397_v62, 0.0  ;;  %v2399_v56 = vadd.f32 %v3670_v38, %v2363_v50  ;;  %v2364_v63 = vmax.f32 %v2263_v12, %v2327_v8  ;;  %v2267_v49 = vld [vmem:[#allocation2 + $0x1c0] ss:$2 sm:$0xff] }
 0x25a   : > { %2492 = vst.msk [vmem:[%s2958_s18 + $0x54] sm:$0xf] %vm2470_vm7, %v2459_v52  ;;  %v2430_v6 = vmax.f32 %v2398_v46, 0.0  ;;  %v2365_v43 = vmax.f32 %v2265_v7, %v2329_v44  ;;  %v2331_v4 = vld [vmem:[#allocation2 + $0x1c1] ss:$2 sm:$0xff] }
 0x25b   : > { %2493 = vst.msk [vmem:[%s2958_s18 + $0x58] sm:$0xf] %vm2470_vm7, %v2460_v15  ;;  %v2461_v41 = vpack.c.bf16 %v2429_v29, %v2429_v29  ;;  %v2431_v33 = vmax.f32 %v2399_v56, 0.0  ;;  %v2400_v24 = vadd.f32 %v3670_v38, %v2364_v63  ;;  %v2366_v19 = vmax.f32 %v2267_v49, %v2331_v4  ;;  %v2269_v27 = vld [vmem:[#allocation2 + $0x1d0] ss:$2 sm:$0xff] }
 0x25c   : > { %v2462_v30 = vpack.c.bf16 %v2430_v6, %v2430_v6  ;;  %v2401_v51 = vadd.f32 %v3670_v38, %v2365_v43  ;;  %v2333_v11 = vld [vmem:[#allocation2 + $0x1d1] ss:$2 sm:$0xff]  ;;  %v2271_v58 = vld [vmem:[#allocation2 + $0x1e0] ss:$2 sm:$0xff]  ;;  %v2335_v16 = vld [vmem:[#allocation2 + $0x1e1] ss:$2 sm:$0xff] }
 0x25d   : > { %2494 = vst.msk [vmem:[%s2958_s18 + $0x5c] sm:$0xf] %vm2470_vm7, %v2461_v41  ;;  %v2463_v54 = vpack.c.bf16 %v2431_v33, %v2431_v33  ;;  %v2432_v5 = vmax.f32 %v2400_v24, 0.0  ;;  %v2402_v14 = vadd.f32 %v3670_v38, %v2366_v19  ;;  %v2367_v48 = vmax.f32 %v2269_v27, %v2333_v11  ;;  %v2273_v21 = vld [vmem:[#allocation2 + $0x1f0] ss:$2 sm:$0xff] }
 0x25e   : > { %2495 = vst.msk [vmem:[%s2958_s18 + $0x60] sm:$0xf] %vm2470_vm7, %v2462_v30  ;;  %v2433_v42 = vmax.f32 %v2401_v51, 0.0  ;;  %v2368_v26 = vmax.f32 %v2271_v58, %v2335_v16  ;;  %v2337_v9 = vld [vmem:[#allocation2 + $0x1f1] ss:$2 sm:$0xff] }
 0x25f   : > { %2496 = vst.msk [vmem:[%s2958_s18 + $0x64] sm:$0xf] %vm2470_vm7, %v2463_v54  ;;  %v2464_v53 = vpack.c.bf16 %v2432_v5, %v2432_v5  ;;  %v2434_v13 = vmax.f32 %v2402_v14, 0.0  ;;  %v2403_v45 = vadd.f32 %v3670_v38, %v2367_v48  ;;  %v2369_v60 = vmax.f32 %v2273_v21, %v2337_v9 }
 0x260   : > { %v2465_v22 = vpack.c.bf16 %v2433_v42, %v2433_v42  ;;  %v2404_v35 = vadd.f32 %v3670_v38, %v2368_v26 }
 0x261   : > { %2497 = vst.msk [vmem:[%s2958_s18 + $0x68] sm:$0xf] %vm2470_vm7, %v2464_v53  ;;  %v2466_v31 = vpack.c.bf16 %v2434_v13, %v2434_v13  ;;  %v2435_v47 = vmax.f32 %v2403_v45, 0.0  ;;  %v2405_v25 = vadd.f32 %v3670_v38, %v2369_v60 }
 0x262   : > { %2498 = vst.msk [vmem:[%s2958_s18 + $0x6c] sm:$0xf] %vm2470_vm7, %v2465_v22  ;;  %v2436_v23 = vmax.f32 %v2404_v35, 0.0 }
 0x263   : > { %2499 = vst.msk [vmem:[%s2958_s18 + $0x70] sm:$0xf] %vm2470_vm7, %v2466_v31  ;;  %v2467_v17 = vpack.c.bf16 %v2435_v47, %v2435_v47  ;;  %v2437_v2 = vmax.f32 %v2405_v25, 0.0 }
 0x264   : > { %v2468_v10 = vpack.c.bf16 %v2436_v23, %v2436_v23 }
 0x265   : > { %2500 = vst.msk [vmem:[%s2958_s18 + $0x74] sm:$0xf] %vm2470_vm7, %v2467_v17  ;;  %v2469_v39 = vpack.c.bf16 %v2437_v2, %v2437_v2 }
 0x266   : > { %2501 = vst.msk [vmem:[%s2958_s18 + $0x78] sm:$0xf] %vm2470_vm7, %v2468_v10 }
 0x267   : > { %2502 = vst.msk [vmem:[%s2958_s18 + $0x7c] sm:$0xf] %vm2470_vm7, %v2469_v39 }
 0x268 PF: > { %s13_s12 = sadd.s32 1, %s2921_s12  }
 0x269   : > { %p10_p5 = scmp.ge.s32.totalorder %s13_s12, 4  }
 0x26b   :  { %12 = sbr.rel (!%p10_p5) target bundleno = 1 (0x1), region = 174 }

// kernel: net_forward.10
= control target key start
LH: loop header
LB: loop body
LE: loop exit
PB: predicated region body
PF: predicated region fallthrough
CT: control target
= control target key end

     0   :  { %s1283_s12 = smov 0   ;;  %s1592_s0 = inlined_call_operand.vmem [shape: bf16[2,6,6,64], index: 0, kind: input, shape index: {}]   ;;  %s1593_s1 = inlined_call_operand.vmem [shape: bf16[9,64,128], index: 1, kind: input, shape index: {}]   ;;  %s1594_s2 = inlined_call_operand.vmem [shape: f32[1,1,128], index: 2, kind: input, shape index: {}]   ;;  %s1595_s3 = inlined_call_operand.vmem [shape: bf16[2,2,2,128], index: 3, kind: output, shape index: {}]  }
   0x1 LB: > { %s936_s13 = sadd.s32 4294967295, %s1257_s12   ;;  %p940_p0 = scmp.ge.s32.totalorder %s1257_s12, 1  ;;  %s1257_s12 = sphi %s1283_s12, %s13_s12  }
   0x2   : > { %p137_p1 = scmp.lt.s32.totalorder %s1257_s12, 3 }
   0x4   : > { %p138_p2 = pnand %p940_p0, %p137_p1 }
   0x5   : > { %p160_p3 = scmp.lt.s32.totalorder (!%p138_p2), %s936_s13, 1  ;;  %s1301_s22 = smov (!%p138_p2), 0  }
   0x6   : > { %141 = sbr.rel (%p138_p2) target bundleno = 245 (0xf5), region = 32 }
   0xb   : > { %s1597_s13 = smov (!%p160_p3, %s936_s13), 1 }
   0xc   : > { %s1229_s14 = smul.u32 24, %s1597_s13  ;;  %s942_s15 = sshll.u32 %s1597_s13, 1 }
   0xd   : > { %s1294_s18 = scalar_lea.vmem %s1595_s3, %s942_s15 }
   0xe   : > { %s1299_s21 = scalar_lea.vmem %s1592_s0, %s1229_s14 }
   0xf LB: >> { %v1309_v0 = vld [vmem:[%s1593_s1 + $0x38] sm:$0xff]  ;;  %v1331_v4 = vld [vmem:[%s1593_s1 + $0x30] sm:$0xff]  ;;  %s1189_s8 = sshll.u32 %s1261_s22, 3  ;;  %v1360_v9 = vld [vmem:[%s1593_s1 + $0x28] sm:$0xff]  ;;  %vm232_vm0 = vcmask 523264   ;;  %s1261_s22 = sphi %s1301_s22, %s175_s22  }
  0x10   : >> { %v1314_v1 = vld [vmem:[%s1593_s1 + $0x18] sm:$0xff]  ;;  %240 = vmatpush.bf16.msra.mxu0 %v1309_v0  ;;  %v1336_v5 = vld [vmem:[%s1593_s1 + $0x10] sm:$0xff]  ;;  %s1352_s14 = scalar_lea.vmem %s1299_s21, %s1189_s8  ;;  %v1365_v10 = vld [vmem:[%s1593_s1 + $0x8] sm:$0xff] }
  0x11   : >> { %v1319_v2 = vld [vmem:[%s1593_s1 + $0x58] sm:$0xff]  ;;  %280 = vmatpush.bf16.msra.mxu1 %v1314_v1  ;;  %v1344_v6 = vld [vmem:[%s1593_s1 + $0x50] sm:$0xff]  ;;  %v188_v8 = vld [vmem:[%s1352_s14] sm:$0x7] }
  0x12   : >> { %v1324_v3 = vld [vmem:[%s1593_s1 + $0x78] sm:$0xff]  ;;  %334 = vmatpush.bf16.msra.mxu2 %v1319_v2  ;;  %v1349_v7 = vld [vmem:[%s1593_s1 + $0x70] sm:$0xff]  ;;  %v199_v11 = vunpack.c.l.b16 %v188_v8  ;;  %v289_v12 = vld [vmem:[%s1352_s14] sm:$0x6] }
  0x13   : >> { %388 = vmatpush.bf16.msra.mxu3 %v1324_v3  ;;  %v1373_v13 = vld [vmem:[%s1593_s1 + $0x48] sm:$0xff]  ;;  %v300_v15 = vunpack.c.l.b16 %v289_v12  ;;  %v1385_v17 = vld [vmem:[%s1593_s1 + $0x20] sm:$0xff]  ;;  %v1407_v25 = vld [vmem:[%s1593_s1 + $0x98] sm:$0xff] }
  0x14   : >> { %241 = vmatpush.bf16.msra.mxu0 %v1331_v4  ;;  %v1378_v14 = vld [vmem:[%s1593_s1 + $0x68] sm:$0xff]  ;;  %v200_v16 = vpack.c.b16 %v199_v11, %v199_v11  ;;  %v1390_v18 = vld [vmem:[%s1593_s1] sm:$0xff]  ;;  %v1412_v26 = vld [vmem:[%s1593_s1 + $0xb8] sm:$0xff] }
  0x15   : >> { %281 = vmatpush.bf16.msra.mxu1 %v1336_v5  ;;  %v301_v21 = vpack.c.b16 %v300_v15, %v300_v15  ;;  %v1397_v22 = vld [vmem:[%s1593_s1 + $0x40] sm:$0xff]  ;;  %v1120_v29 = vld [vmem:[%s1352_s14 + $0x8] sm:$0x7]  ;;  %v1427_v35 = vld [vmem:[%s1593_s1 + $0xd8] sm:$0xff] }
  0x16   : >> { %335 = vmatpush.bf16.msra.mxu2 %v1344_v6  ;;  %v202_v19 = vshrl.u32 %v200_v16, 16  ;;  %v204_v20 = vshll.u32 %v200_v16, 16  ;;  %v1402_v23 = vld [vmem:[%s1593_s1 + $0x60] sm:$0xff]  ;;  %v579_v33 = vunpack.c.l.b16 %v1120_v29  ;;  %v1432_v36 = vld [vmem:[%s1593_s1 + $0xf8] sm:$0xff]  ;;  %v1439_v37 = vld [vmem:[%s1593_s1 + $0x90] sm:$0xff] }
  0x17   : >> { %389 = vmatpush.bf16.msra.mxu3 %v1349_v7  ;;  %v1040_v27 = vld [vmem:[%s1352_s14 + $0x4] sm:$0x7]  ;;  %v179_v31 = vld [vmem:[%s1352_s14] sm:$0x3]  ;;  %v302_v32 = vrot.slane %v301_v21, 1  ;;  %v1444_v38 = vld [vmem:[%s1593_s1 + $0xb0] sm:$0xff] }
  0x18   : >> { %242 = vmatpush.bf16.msra.mxu0 %v1360_v9  ;;  %v206_v24 = vrot.slane %v204_v20, 1  ;;  %v409_v28 = vunpack.c.l.b16 %v1040_v27  ;;  %v1422_v34 = vld [vmem:[%s1352_s14 + $0x4] sm:$0x3]  ;;  %v580_v41 = vpack.c.b16 %v579_v33, %v579_v33  ;;  %v1457_v42 = vld [vmem:[%s1593_s1 + $0xd0] sm:$0xff]  ;;  %v1469_v44 = vld [vmem:[%s1593_s1 + $0x88] sm:$0xff] }
  0x19   : >> { %282 = vmatpush.bf16.msra.mxu1 %v1365_v10  ;;  %v1066_v40 = vld [vmem:[%s1352_s14 + $0x4] sm:$0x6]  ;;  %v1462_v43 = vld [vmem:[%s1593_s1 + $0xf0] sm:$0xff]  ;;  %v1474_v45 = vld [vmem:[%s1593_s1 + $0xa8] sm:$0xff] }
  0x1a   : >> { %336 = vmatpush.bf16.msra.mxu2 %v1373_v13  ;;  %v207_v30 = vor.u32 %v206_v24, %v202_v19  ;;  %v410_v39 = vpack.c.b16 %v409_v28, %v409_v28  ;;  %v470_v47 = vunpack.c.l.b16 %v1066_v40  ;;  %v584_v48 = vshll.u32 %v580_v41, 16  ;;  %v1481_v49 = vld [vmem:[%s1593_s1 + $0xc8] sm:$0xff]  ;;  %v1493_v51 = vld [vmem:[%s1593_s1 + $0x80] sm:$0xff]  ;;  %v1503_v56 = vld [vmem:[%s1593_s1 + $0x118] sm:$0xff] }
  0x1b   : >> { %390 = vmatpush.bf16.msra.mxu3 %v1378_v14  ;;  %v1486_v50 = vld [vmem:[%s1593_s1 + $0xe8] sm:$0xff]  ;;  %v1498_v52 = vld [vmem:[%s1593_s1 + $0xa0] sm:$0xff]  ;;  %v582_v57 = vshrl.u32 %v580_v41, 16  ;;  %v1226_v11 = vld [vmem:[%s1593_s1 + $0x110] sm:$0xff] }
  0x1c   : >> { %243 = vmatpush.bf16.msra.mxu0 %v1385_v17  ;;  %v414_v46 = vshll.u32 %v410_v39, 16  ;;  %v412_v53 = vshrl.u32 %v410_v39, 16  ;;  %v471_v55 = vpack.c.b16 %v470_v47, %v470_v47  ;;  %v586_v58 = vrot.slane %v584_v48, 1  ;;  %v1216_v59 = vld [vmem:[%s1593_s1 + $0xc0] sm:$0xff]  ;;  %v1094_v8 = vld [vmem:[%s1352_s14 + $0x8] sm:$0x3] }
  0x1d   : >> { %283 = vmatpush.bf16.msra.mxu1 %v1390_v18  ;;  %v1513_v60 = vld [vmem:[%s1593_s1 + $0xe0] sm:$0xff]  ;;  %v1225_v12 = vld [vmem:[%s1593_s1 + $0x108] sm:$0xff] }
  0x1e   : >> { %337 = vmatpush.bf16.msra.mxu2 %v1397_v22  ;;  %v416_v54 = vrot.slane %v414_v46, 1  ;;  %v472_v62 = vrot.slane %v471_v55, 1  ;;  %v587_v63 = vor.u32 %v586_v58, %v582_v57 }
  0x1f   : >> { %391 = vmatpush.bf16.msra.mxu3 %v1402_v23  ;;  %969 = vmatmul.msk.bf16.vlgmr.msra.gmra.mxu0 %vm232_vm0, %v207_v30 }
  0x20   : >> { %449 = vmatpush.bf16.msrb.mxu0 %v1407_v25  ;;  %986 = vmatmul.msk.bf16.vlgmr.msra.gmra.mxu1 %vm232_vm0, %v179_v31  ;;  %v417_v61 = vor.u32 %v416_v54, %v412_v53 }
  0x21   : >> { %504 = vmatpush.bf16.msrb.mxu1 %v1412_v26  ;;  %1011 = vmatmul.msk.bf16.vlgmr.msra.gmra.mxu2 %vm232_vm0, %v302_v32 }
  0x22   : >> { %1039 = vmatmul.msk.bf16.vlgmr.msra.gmra.mxu3 %vm232_vm0, %v1422_v34  ;;  %558 = vmatpush.bf16.msrb.mxu2 %v1427_v35 }
  0x23   : >> { %619 = vmatpush.bf16.msrb.mxu3 %v1432_v36 }
  0x24   : >> { %450 = vmatpush.bf16.msrb.mxu0 %v1439_v37 }
  0x25   : >> { %505 = vmatpush.bf16.msrb.mxu1 %v1444_v38 }
  0x26   : >> { %559 = vmatpush.bf16.msrb.mxu2 %v1457_v42 }
  0x27   : >> { %620 = vmatpush.bf16.msrb.mxu3 %v1462_v43 }
  0x28   : >> { %451 = vmatpush.bf16.msrb.mxu0 %v1469_v44 }
  0x29   : >> { %506 = vmatpush.bf16.msrb.mxu1 %v1474_v45 }
  0x2a   : >> { %560 = vmatpush.bf16.msrb.mxu2 %v1481_v49 }
  0x2b   : >> { %621 = vmatpush.bf16.msrb.mxu3 %v1486_v50 }
  0x2c   : >> { %452 = vmatpush.bf16.msrb.mxu0 %v1493_v51 }
  0x2d   : >> { %507 = vmatpush.bf16.msrb.mxu1 %v1498_v52 }
  0x2e   : >> { %561 = vmatpush.bf16.msrb.mxu2 %v1216_v59 }
  0x2f   : >> { %622 = vmatpush.bf16.msrb.mxu3 %v1513_v60  ;;  %1065 = vmatmul.msk.bf16.vlgmr.msrb.gmra.mxu0 %vm232_vm0, %v417_v61 }
  0x30   : >> { %674 = vmatpush.bf16.msra.mxu0 %v1503_v56  ;;  %1091 = vmatmul.msk.bf16.vlgmr.msrb.gmra.mxu1 %vm232_vm0, %v472_v62 }
  0x31   : >> { %688 = vmatpush.bf16.msra.mxu1 %v1309_v0  ;;  %1119 = vmatmul.msk.bf16.vlgmr.msrb.gmra.mxu2 %vm232_vm0, %v1094_v8  ;;  %v1146_v0 = vld [vmem:[%s1352_s14 + $0x8] sm:$0x6] }
  0x32   : >> { %701 = vmatpush.bf16.msra.mxu2 %v1314_v1  ;;  %1145 = vmatmul.msk.bf16.vlgmr.msrb.gmra.mxu3 %vm232_vm0, %v587_v63  ;;  %v640_v1 = vunpack.c.l.b16 %v1146_v0 }
  0x33   : >> { %714 = vmatpush.bf16.msra.mxu3 %v1319_v2  ;;  %v1224_v2 = vld [vmem:[%s1593_s1 + $0x100] sm:$0xff] }
  0x34   : >> { %675 = vmatpush.bf16.msra.mxu0 %v1226_v11 }
  0x35   : >> { %689 = vmatpush.bf16.msra.mxu1 %v1331_v4  ;;  %v641_v4 = vpack.c.b16 %v640_v1, %v640_v1 }
  0x36   : >> { %702 = vmatpush.bf16.msra.mxu2 %v1336_v5 }
  0x37   : >> { %715 = vmatpush.bf16.msra.mxu3 %v1344_v6  ;;  %v642_v5 = vrot.slane %v641_v4, 1 }
  0x38   : >> { %676 = vmatpush.bf16.msra.mxu0 %v1225_v12 }
  0x39   : >> { %690 = vmatpush.bf16.msra.mxu1 %v1360_v9 }
  0x3a   : >> { %703 = vmatpush.bf16.msra.mxu2 %v1365_v10  ;;  %v1184_v10 = vld [vmem:[%s1352_s14 + $0xc] sm:$0x6] }
  0x3b   : >> { %716 = vmatpush.bf16.msra.mxu3 %v1373_v13 }
  0x3c   : >> { %677 = vmatpush.bf16.msra.mxu0 %v1224_v2 }
  0x3d   : >> { %691 = vmatpush.bf16.msra.mxu1 %v1385_v17 }
  0x3e   : >> { %704 = vmatpush.bf16.msra.mxu2 %v1390_v18 }
  0x3f   : >> { %717 = vmatpush.bf16.msra.mxu3 %v1397_v22  ;;  %1171 = vmatmul.msk.bf16.vlgmr.msra.gmra.mxu0 %vm232_vm0, %v642_v5 }
  0x40   : >> { %728 = vmatpush.bf16.msrb.mxu0 %v1324_v3  ;;  %1172 = vmatmul.msk.bf16.vlgmr.msra.gmra.mxu1 %vm232_vm0, %v417_v61  ;;  %v1182_v3 = vld [vmem:[%s1352_s14 + $0xc] sm:$0x7] }
  0x41   : >> { %742 = vmatpush.bf16.msrb.mxu1 %v1407_v25  ;;  %1173 = vmatmul.msk.bf16.vlgmr.msra.gmra.mxu2 %vm232_vm0, %v1422_v34  ;;  %v789_v6 = vunpack.c.l.b16 %v1182_v3 }
  0x42   : >> { %756 = vmatpush.bf16.msrb.mxu2 %v1412_v26  ;;  %1174 = vmatmul.msk.bf16.vlgmr.msra.gmra.mxu3 %vm232_vm0, %v472_v62 }
  0x43   : >> { %777 = vmatpush.bf16.msrb.mxu3 %v1427_v35  ;;  %v790_v9 = vpack.c.b16 %v789_v6, %v789_v6 }
  0x44   : >> { %729 = vmatpush.bf16.msrb.mxu0 %v1349_v7  ;;  %v1180_v7 = vld [vmem:[%s1352_s14 + $0xc] sm:$0x3]  ;;  %s1186_s14 = sshll.u32 %s1261_s22, 2  ;;  %s175_s22 = sadd.s32 1, %s1261_s22  }
  0x45   : >> { %743 = vmatpush.bf16.msrb.mxu1 %v1439_v37  ;;  %v794_v13 = vshll.u32 %v790_v9, 16  ;;  %v792_v15 = vshrl.u32 %v790_v9, 16  ;;  %s839_s30 = scalar_lea.vmem [#allocation2], %s1186_s14  ;;  %p172_p4 = scmp.ge.s32.totalorder %s175_s22, 2  }
  0x46   : >> { %757 = vmatpush.bf16.msrb.mxu2 %v1444_v38 }
  0x47   : >> { %778 = vmatpush.bf16.msrb.mxu3 %v1457_v42  ;;  %v796_v16 = vrot.slane %v794_v13, 1 }
  0x48   : >> { %730 = vmatpush.bf16.msrb.mxu0 %v1378_v14  ;;  %v817_v14 = vunpack.c.l.b16 %v1184_v10  ;;  %v1246_v10 = vld [vmem:[%s1594_s2] ss:$0 sm:$0xff] (%p172_p4) }
  0x49   : >> { %744 = vmatpush.bf16.msrb.mxu1 %v1469_v44  ;;  %v797_v18 = vor.u32 %v796_v16, %v792_v15 }
  0x4a   : >> { %758 = vmatpush.bf16.msrb.mxu2 %v1474_v45  ;;  %v818_v17 = vpack.c.b16 %v817_v14, %v817_v14 }
  0x4b   : >> { %779 = vmatpush.bf16.msrb.mxu3 %v1481_v49 }
  0x4c   : >> { %731 = vmatpush.bf16.msrb.mxu0 %v1402_v23  ;;  %v819_v19 = vrot.slane %v818_v17, 1 }
  0x4d   : >> { %745 = vmatpush.bf16.msrb.mxu1 %v1493_v51 }
  0x4e   : >> { %759 = vmatpush.bf16.msrb.mxu2 %v1498_v52 }
  0x4f   : >> { %780 = vmatpush.bf16.msrb.mxu3 %v1216_v59  ;;  %1175 = vmatmul.msk.bf16.vlgmr.msrb.gmra.mxu0 %vm232_vm0, %v1094_v8 }
  0x50   : >> { %805 = vmatpush.bf16.msra.mxu0 %v1432_v36  ;;  %1176 = vmatmul.msk.bf16.vlgmr.msrb.gmra.mxu1 %vm232_vm0, %v587_v63 }
  0x51   : >> { %827 = vmatpush.bf16.msra.mxu1 %v1503_v56  ;;  %1177 = vmatmul.msk.bf16.vlgmr.msrb.gmra.mxu2 %vm232_vm0, %v642_v5 }
  0x52   : >> { %1181 = vmatmul.msk.bf16.vlgmr.msrb.gmra.mxu3 %vm232_vm0, %v1180_v7 }
  0x54   : >> { %806 = vmatpush.bf16.msra.mxu0 %v1462_v43 }
  0x55   : >> { %828 = vmatpush.bf16.msra.mxu1 %v1226_v11 }
  0x58   : >> { %807 = vmatpush.bf16.msra.mxu0 %v1486_v50 }
  0x59   : >> { %829 = vmatpush.bf16.msra.mxu1 %v1225_v12 }
  0x5c   : >> { %808 = vmatpush.bf16.msra.mxu0 %v1513_v60 }
  0x5d   : >> { %830 = vmatpush.bf16.msra.mxu1 %v1224_v2 }
  0x5f   : >> { %1183 = vmatmul.msk.bf16.vlgmr.msra.gmra.mxu0 %vm232_vm0, %v797_v18 }
  0x60   : >> { %1185 = vmatmul.msk.bf16.vlgmr.msra.gmra.mxu1 %vm232_vm0, %v819_v19 }
  0x9c   : >> { %v245_v20 = vpop.f32.mrf.mxu0 }
  0x9d   : >> { %v285_v21 = vpop.f32.mrf.mxu1 }
  0x9e   : >> { %v286_v42 = vadd.f32 %v285_v21, %v245_v20 }
  0xa4   : >> { %v339_v22 = vpop.f32.mrf.mxu2  ;;  %v247_v24 = vpop.f32.mrf.mxu0 }
  0xa5   : >> { %v393_v23 = vpop.f32.mrf.mxu3  ;;  %v287_v25 = vpop.f32.mrf.mxu1  ;;  %v343_v48 = vadd.f32 %v339_v22, %v286_v42 }
  0xa7   : >> { %v397_v50 = vadd.f32 %v393_v23, %v343_v48 }
  0xac   : >> { %v341_v26 = vpop.f32.mrf.mxu2  ;;  %v454_v28 = vpop.f32.mrf.mxu0 }
  0xad   : >> { %v395_v27 = vpop.f32.mrf.mxu3  ;;  %v509_v29 = vpop.f32.mrf.mxu1  ;;  %v458_v52 = vadd.f32 %v454_v28, %v397_v50 }
  0xaf   : >> { %v513_v58 = vadd.f32 %v509_v29, %v458_v52 }
  0xb4   : >> { %v563_v30 = vpop.f32.mrf.mxu2  ;;  %v456_v32 = vpop.f32.mrf.mxu0 }
  0xb5   : >> { %v624_v31 = vpop.f32.mrf.mxu3  ;;  %v511_v33 = vpop.f32.mrf.mxu1  ;;  %v567_v60 = vadd.f32 %v563_v30, %v513_v58 }
  0xb7   : >> { %v628_v0 = vadd.f32 %v624_v31, %v567_v60 }
  0xbc   : >> { %v565_v34 = vpop.f32.mrf.mxu2  ;;  %v679_v36 = vpop.f32.mrf.mxu0 }
  0xbd   : >> { %v626_v35 = vpop.f32.mrf.mxu3  ;;  %v693_v37 = vpop.f32.mrf.mxu1  ;;  %v683_v1 = vadd.f32 %v679_v36, %v628_v0 }
  0xc4   : >> { %v706_v38 = vpop.f32.mrf.mxu2  ;;  %v681_v40 = vpop.f32.mrf.mxu0 }
  0xc5   : >> { %v719_v39 = vpop.f32.mrf.mxu3  ;;  %v695_v41 = vpop.f32.mrf.mxu1  ;;  %v707_v43 = vadd.f32 %v706_v38, %v693_v37 }
  0xc7   : >> { %v723_v49 = vadd.f32 %v719_v39, %v707_v43 }
  0xcc   : >> { %v708_v44 = vpop.f32.mrf.mxu2  ;;  %v733_v46 = vpop.f32.mrf.mxu0 }
  0xcd   : >> { %v721_v45 = vpop.f32.mrf.mxu3  ;;  %v747_v47 = vpop.f32.mrf.mxu1  ;;  %v737_v51 = vadd.f32 %v733_v46, %v723_v49 }
  0xcf   : >> { %v751_v57 = vadd.f32 %v747_v47, %v737_v51 }
  0xd4   : >> { %v761_v53 = vpop.f32.mrf.mxu2  ;;  %v735_v55 = vpop.f32.mrf.mxu0 }
  0xd5   : >> { %v782_v54 = vpop.f32.mrf.mxu3  ;;  %v749_v56 = vpop.f32.mrf.mxu1  ;;  %v765_v59 = vadd.f32 %v761_v53, %v751_v57 }
  0xd7   : >> { %v786_v61 = vadd.f32 %v782_v54, %v765_v59 }
  0xdc   : >> { %v763_v62 = vpop.f32.mrf.mxu2  ;;  %v810_v8 = vpop.f32.mrf.mxu0 }
  0xdd   : >> { %v784_v63 = vpop.f32.mrf.mxu3  ;;  %v832_v11 = vpop.f32.mrf.mxu1  ;;  %v814_v12 = vadd.f32 %v810_v8, %v786_v61 }
  0xdf   : >> { %v836_v2 = vadd.f32 %v832_v11, %v814_v12 }
  0xe1   : >> { %v837_v4 = vmax.f32 %v683_v1, %v836_v2  ;;  %174 = sbr.rel (!%p172_p4) target bundleno = 15 (0xf), region = 85 }
  0xe3   : >> { %840 = vst [vmem:[%s839_s30] sm:$0xf] %v837_v4 }
  0xe4   : >> { %v812_v5 = vpop.f32.mrf.mxu0 }
  0xe5   : >> { %v834_v3 = vpop.f32.mrf.mxu1 }
  0xea   : > { %v841_v6 = vld [vmem:[#allocation2] ss:$2 sm:$0x3]  ;;  %v845_v7 = vld [vmem:[#allocation2 + $0x1] ss:$2 sm:$0x3] }
  0xeb   : > { %v848_v9 = vmax.f32 %v841_v6, %v845_v7  ;;  %v843_v13 = vld [vmem:[#allocation2 + $0x4] ss:$2 sm:$0x3]  ;;  %v847_v14 = vld [vmem:[#allocation2 + $0x5] ss:$2 sm:$0x3] }
  0xec   : > { %v849_v16 = vmax.f32 %v843_v13, %v847_v14 }
  0xed   : > { %v854_v15 = vadd.f32 %v1246_v10, %v848_v9 }
  0xee   : > { %v855_v18 = vadd.f32 %v1246_v10, %v849_v16 }
  0xef   : > { %v856_v17 = vmax.f32 %v854_v15, 0.0 }
  0xf0   : > { %v857_v20 = vmax.f32 %v855_v18, 0.0 }
  0xf1   : > { %v858_v19 = vpack.c.bf16 %v856_v17, %v856_v17 }
  0xf2   : > { %v859_v21 = vpack.c.bf16 %v857_v20, %v857_v20 }
  0xf3   : > { %860 = vst [vmem:[%s1294_s18] sm:$0x1] %v858_v19 }
  0xf4   : > { %861 = vst [vmem:[%s1294_s18 + $0x1] sm:$0x1] %v859_v21 }
  0xf5 PF: > { %s13_s12 = sadd.s32 1, %s1257_s12  }
  0xf6   : > { %p10_p5 = scmp.ge.s32.totalorder %s13_s12, 4  }
  0xf8   :  { %12 = sbr.rel (!%p10_p5) target bundleno = 1 (0x1), region = 96 }

// kernel: net_forward.11
= control target key start
LH: loop header
LB: loop body
LE: loop exit
PB: predicated region body
PF: predicated region fallthrough
CT: control target
= control target key end

     0   :  { %s1351_s12 = smov 0   ;;  %s1353_s13 = smov 0   ;;  %s1553_s0 = inlined_call_operand.vmem [shape: bf16[2,512], index: 0, kind: input, shape index: {}]   ;;  %s1554_s1 = inlined_call_operand.vmem [shape: bf16[512,512], index: 1, kind: input, shape index: {}]   ;;  %s1555_s2 = inlined_call_operand.vmem [shape: f32[1,512], index: 2, kind: input, shape index: {}]   ;;  %s1556_s3 = inlined_call_operand.vmem [shape: bf16[2,512], index: 3, kind: output, shape index: {}]  }
   0x1   :  { %s1355_s14 = smov 0  }
   0x2 LB: > { %s25_s15 = sadd.s32 1, %s1324_s13  ;;  %p949_p0 = scmp.ge.s32.totalorder %s1328_s14, 1  ;;  %s1328_s14 = sphi %s1355_s14, %s13_s14   ;;  %s1324_s13 = sphi %s1353_s13, %s1558_s13   ;;  %s1320_s12 = sphi %s1351_s12, %s1557_s12  }
   0x3   : > { %p26_p1 = scmp.ge.s32.totalorder %s25_s15, 2  ;;  %p193_p2 = scmp.lt.s32.totalorder %s1328_s14, 3 }
   0x5   : > { %s1560_s15 = smov (%p26_p1, %s25_s15), 0  ;;  %p194_p3 = pnand %p949_p0, %p193_p2 }
   0x6   : > { %s950_s16 = sshll.u32 (!%p194_p3), %s1320_s12, 1  ;;  %s951_s17 = sshll.u32 (!%p194_p3), %s1320_s12, 5 }
   0x7   : > { %197 = sbr.rel (%p194_p3) target bundleno = 257 (0x101), region = 32  ;;  %p240_p4 = scmp.lt.s32.totalorder (!%p194_p3), %s950_s16, 3 }
   0x8   : > { %p248_p5 = scmp.lt.s32.totalorder (!%p194_p3), %s951_s17, 63  ;;  %p954_p6 = scmp.ne.s32.totalorder (!%p194_p3), %s1320_s12, 0 }
   0xc   : > { %s1562_s16 = smov (!%p240_p4, %s950_s16), 3  ;;  %s1564_s17 = smov (!%p248_p5, %s951_s17), 63 }
   0xd   : > { %s244_s20 = scalar_lea.vmem %s1553_s0, %s1562_s16  ;;  %s1216_s21 = sshll.u32 %s1564_s17, 4 }
   0xe   : > { %s1382_s24 = scalar_lea.vmem %s1554_s1, %s1216_s21  ;;  %275 = sbr.rel (%p954_p6) target bundleno = 21 (0x15), region = 36 }
  0x13   : > { %v1330_v0 = vmov 0.0  }
  0x14   : > { %276 = vst [vmem:[#allocation2] sm:$0xff] %v1330_v0 }
  0x15 PF: > { %v1069_v1 = vld [vmem:[%s1382_s24 + $0xe0] sm:$0xf]  ;;  %v1247_v2 = vld [vmem:[%s1382_s24 + $0xec] sm:$0xf0]  ;;  %v1245_v6 = vld [vmem:[%s1382_s24 + $0xe4] sm:$0xf] }
  0x16   : > { %v1197_v3 = vld [vmem:[%s1382_s24 + $0x1e0] sm:$0xf]  ;;  %v1070_v4 = vor.u32 %v1247_v2, %v1069_v1  ;;  %v1279_v5 = vld [vmem:[%s1382_s24 + $0x1ec] sm:$0xf0]  ;;  %v1071_v7 = vld [vmem:[%s1382_s24 + $0xf0] sm:$0xf0] }
  0x17   : > { %v1198_v8 = vor.u32 %v1279_v5, %v1197_v3  ;;  %v1074_v9 = vor.u32 %v1245_v6, %v1071_v7  ;;  %v1277_v10 = vld [vmem:[%s1382_s24 + $0x1e4] sm:$0xf]  ;;  %v1199_v11 = vld [vmem:[%s1382_s24 + $0x1f0] sm:$0xf0]  ;;  %v1053_v12 = vld [vmem:[%s1382_s24 + $0xc0] sm:$0xf] }
  0x18   : > { %669 = vmatpush.bf16.msra.mxu0 %v1070_v4  ;;  %v1202_v13 = vor.u32 %v1277_v10, %v1199_v11  ;;  %v1243_v14 = vld [vmem:[%s1382_s24 + $0xcc] sm:$0xf0]  ;;  %v1181_v15 = vld [vmem:[%s1382_s24 + $0x1c0] sm:$0xf]  ;;  %v1241_v19 = vld [vmem:[%s1382_s24 + $0xc4] sm:$0xf] }
  0x19   : > { %v1275_v16 = vld [vmem:[%s1382_s24 + $0x1cc] sm:$0xf0]  ;;  %682 = vmatpush.bf16.msra.mxu1 %v1198_v8  ;;  %695 = vmatpush.bf16.msra.mxu2 %v1074_v9  ;;  %v1054_v17 = vor.u32 %v1243_v14, %v1053_v12  ;;  %v1055_v20 = vld [vmem:[%s1382_s24 + $0xd0] sm:$0xf0]  ;;  %v1273_v21 = vld [vmem:[%s1382_s24 + $0x1c4] sm:$0xf] }
  0x1a   : > { %v1182_v18 = vor.u32 %v1275_v16, %v1181_v15  ;;  %708 = vmatpush.bf16.msra.mxu3 %v1202_v13  ;;  %v1058_v22 = vor.u32 %v1241_v19, %v1055_v20  ;;  %v1183_v23 = vld [vmem:[%s1382_s24 + $0x1d0] sm:$0xf0]  ;;  %v1037_v24 = vld [vmem:[%s1382_s24 + $0xa0] sm:$0xf]  ;;  %v1239_v25 = vld [vmem:[%s1382_s24 + $0xac] sm:$0xf0] }
  0x1b   : > { %v1186_v26 = vor.u32 %v1273_v21, %v1183_v23  ;;  %v1165_v27 = vld [vmem:[%s1382_s24 + $0x1a0] sm:$0xf]  ;;  %v1271_v28 = vld [vmem:[%s1382_s24 + $0x1ac] sm:$0xf0]  ;;  %v1237_v29 = vld [vmem:[%s1382_s24 + $0xa4] sm:$0xf]  ;;  %v1038_v30 = vor.u32 %v1239_v25, %v1037_v24 }
  0x1c   : > { %670 = vmatpush.bf16.msra.mxu0 %v1054_v17  ;;  %v1039_v31 = vld [vmem:[%s1382_s24 + $0xb0] sm:$0xf0]  ;;  %v1269_v32 = vld [vmem:[%s1382_s24 + $0x1a4] sm:$0xf]  ;;  %v1166_v34 = vor.u32 %v1271_v28, %v1165_v27  ;;  %v1021_v36 = vld [vmem:[%s1382_s24 + $0x80] sm:$0xf] }
  0x1d   : > { %v1167_v33 = vld [vmem:[%s1382_s24 + $0x1b0] sm:$0xf0]  ;;  %683 = vmatpush.bf16.msra.mxu1 %v1182_v18  ;;  %696 = vmatpush.bf16.msra.mxu2 %v1058_v22  ;;  %v1042_v35 = vor.u32 %v1237_v29, %v1039_v31  ;;  %v1235_v37 = vld [vmem:[%s1382_s24 + $0x8c] sm:$0xf0]  ;;  %v1149_v38 = vld [vmem:[%s1382_s24 + $0x180] sm:$0xf] }
  0x1e   : > { %709 = vmatpush.bf16.msra.mxu3 %v1186_v26  ;;  %v1170_v39 = vor.u32 %v1269_v32, %v1167_v33  ;;  %v1267_v40 = vld [vmem:[%s1382_s24 + $0x18c] sm:$0xf0]  ;;  %v1233_v41 = vld [vmem:[%s1382_s24 + $0x84] sm:$0xf]  ;;  %v1023_v42 = vld [vmem:[%s1382_s24 + $0x90] sm:$0xf0]  ;;  %v1022_v45 = vor.u32 %v1235_v37, %v1021_v36 }
  0x1f   : > { %v1265_v43 = vld [vmem:[%s1382_s24 + $0x184] sm:$0xf]  ;;  %v1151_v44 = vld [vmem:[%s1382_s24 + $0x190] sm:$0xf0]  ;;  %v1150_v46 = vor.u32 %v1267_v40, %v1149_v38  ;;  %v1026_v47 = vor.u32 %v1233_v41, %v1023_v42  ;;  %v1005_v48 = vld [vmem:[%s1382_s24 + $0x60] sm:$0xf] }
  0x20   : > { %671 = vmatpush.bf16.msra.mxu0 %v1038_v30  ;;  %v1231_v49 = vld [vmem:[%s1382_s24 + $0x6c] sm:$0xf0]  ;;  %v1133_v50 = vld [vmem:[%s1382_s24 + $0x160] sm:$0xf]  ;;  %v1154_v51 = vor.u32 %v1265_v43, %v1151_v44  ;;  %v1229_v53 = vld [vmem:[%s1382_s24 + $0x64] sm:$0xf] }
  0x21   : > { %684 = vmatpush.bf16.msra.mxu1 %v1166_v34  ;;  %697 = vmatpush.bf16.msra.mxu2 %v1042_v35  ;;  %v1263_v52 = vld [vmem:[%s1382_s24 + $0x16c] sm:$0xf0]  ;;  %v1007_v54 = vld [vmem:[%s1382_s24 + $0x70] sm:$0xf0]  ;;  %v1261_v55 = vld [vmem:[%s1382_s24 + $0x164] sm:$0xf]  ;;  %v1006_v57 = vor.u32 %v1231_v49, %v1005_v48 }
  0x22   : > { %710 = vmatpush.bf16.msra.mxu3 %v1170_v39  ;;  %v1135_v56 = vld [vmem:[%s1382_s24 + $0x170] sm:$0xf0]  ;;  %v1134_v58 = vor.u32 %v1263_v52, %v1133_v50  ;;  %v1010_v59 = vor.u32 %v1229_v53, %v1007_v54  ;;  %v989_v60 = vld [vmem:[%s1382_s24 + $0x40] sm:$0xf]  ;;  %v1227_v61 = vld [vmem:[%s1382_s24 + $0x4c] sm:$0xf0] }
  0x23   : > { %v1117_v62 = vld [vmem:[%s1382_s24 + $0x140] sm:$0xf]  ;;  %v1138_v63 = vor.u32 %v1261_v55, %v1135_v56  ;;  %v1259_v0 = vld [vmem:[%s1382_s24 + $0x14c] sm:$0xf0]  ;;  %v1225_v1 = vld [vmem:[%s1382_s24 + $0x44] sm:$0xf]  ;;  %v990_v5 = vor.u32 %v1227_v61, %v989_v60 }
  0x24   : > { %672 = vmatpush.bf16.msra.mxu0 %v1022_v45  ;;  %v991_v2 = vld [vmem:[%s1382_s24 + $0x50] sm:$0xf0]  ;;  %v1257_v3 = vld [vmem:[%s1382_s24 + $0x144] sm:$0xf]  ;;  %v1118_v6 = vor.u32 %v1259_v0, %v1117_v62  ;;  %v973_v8 = vld [vmem:[%s1382_s24 + $0x20] sm:$0xf] }
  0x25   : > { %685 = vmatpush.bf16.msra.mxu1 %v1150_v46  ;;  %698 = vmatpush.bf16.msra.mxu2 %v1026_v47  ;;  %v1119_v4 = vld [vmem:[%s1382_s24 + $0x150] sm:$0xf0]  ;;  %v994_v7 = vor.u32 %v1225_v1, %v991_v2  ;;  %v1223_v9 = vld [vmem:[%s1382_s24 + $0x2c] sm:$0xf0]  ;;  %v1101_v10 = vld [vmem:[%s1382_s24 + $0x120] sm:$0xf] }
  0x26   : > { %711 = vmatpush.bf16.msra.mxu3 %v1154_v51  ;;  %v1122_v11 = vor.u32 %v1257_v3, %v1119_v4  ;;  %v1255_v12 = vld [vmem:[%s1382_s24 + $0x12c] sm:$0xf0]  ;;  %v1221_v13 = vld [vmem:[%s1382_s24 + $0x24] sm:$0xf]  ;;  %v975_v14 = vld [vmem:[%s1382_s24 + $0x30] sm:$0xf0]  ;;  %v974_v18 = vor.u32 %v1223_v9, %v973_v8 }
  0x27   : > { %v1253_v15 = vld [vmem:[%s1382_s24 + $0x124] sm:$0xf]  ;;  %v1103_v16 = vld [vmem:[%s1382_s24 + $0x130] sm:$0xf0]  ;;  %v957_v17 = vld [vmem:[%s1382_s24] sm:$0xf]  ;;  %v1102_v22 = vor.u32 %v1255_v12, %v1101_v10  ;;  %v978_v23 = vor.u32 %v1221_v13, %v975_v14 }
  0x28   : > { %673 = vmatpush.bf16.msra.mxu0 %v1006_v57  ;;  %v1219_v19 = vld [vmem:[%s1382_s24 + $0xc] sm:$0xf0]  ;;  %v1085_v20 = vld [vmem:[%s1382_s24 + $0x100] sm:$0xf]  ;;  %v1217_v24 = vld [vmem:[%s1382_s24 + $0x4] sm:$0xf]  ;;  %v1106_v27 = vor.u32 %v1253_v15, %v1103_v16 }
  0x29   : > { %686 = vmatpush.bf16.msra.mxu1 %v1134_v58  ;;  %699 = vmatpush.bf16.msra.mxu2 %v1010_v59  ;;  %v1251_v21 = vld [vmem:[%s1382_s24 + $0x10c] sm:$0xf0]  ;;  %v959_v25 = vld [vmem:[%s1382_s24 + $0x10] sm:$0xf0]  ;;  %v1249_v26 = vld [vmem:[%s1382_s24 + $0x104] sm:$0xf]  ;;  %v958_v34 = vor.u32 %v1219_v19, %v957_v17 }
  0x2a   : > { %712 = vmatpush.bf16.msra.mxu3 %v1138_v63  ;;  %v1087_v28 = vld [vmem:[%s1382_s24 + $0x110] sm:$0xf0]  ;;  %v1077_v29 = vld [vmem:[%s1382_s24 + $0xe8] sm:$0xf]  ;;  %v1248_v30 = vld [vmem:[%s1382_s24 + $0xf4] sm:$0xf0]  ;;  %v1086_v37 = vor.u32 %v1251_v21, %v1085_v20  ;;  %v962_v38 = vor.u32 %v1217_v24, %v959_v25 }
  0x2b   : > { %v1205_v31 = vld [vmem:[%s1382_s24 + $0x1e8] sm:$0xf]  ;;  %v1280_v32 = vld [vmem:[%s1382_s24 + $0x1f4] sm:$0xf0]  ;;  %v278_v33 = vld [vmem:[%s244_s20] sm:$0x3]  ;;  %v1090_v41 = vor.u32 %v1249_v26, %v1087_v28  ;;  %v1078_v42 = vor.u32 %v1248_v30, %v1077_v29 }
  0x2c   : > { %674 = vmatpush.bf16.msra.mxu0 %v990_v5  ;;  %v1246_v35 = vld [vmem:[%s1382_s24 + $0xec] sm:$0xf]  ;;  %v1079_v36 = vld [vmem:[%s1382_s24 + $0xf8] sm:$0xf0]  ;;  %344 = vst [vmem:[#allocation1] ss:$9 sm:$0xff] %v278_v33  ;;  %v1206_v43 = vor.u32 %v1280_v32, %v1205_v31 }
  0x2d   : > { %687 = vmatpush.bf16.msra.mxu1 %v1118_v6  ;;  %700 = vmatpush.bf16.msra.mxu2 %v994_v7  ;;  %v1278_v39 = vld [vmem:[%s1382_s24 + $0x1ec] sm:$0xf]  ;;  %v1207_v40 = vld [vmem:[%s1382_s24 + $0x1f8] sm:$0xf0]  ;;  %v1082_v44 = vor.u32 %v1246_v35, %v1079_v36  ;;  %v1061_v45 = vld [vmem:[%s1382_s24 + $0xc8] sm:$0xf] }
  0x2e   : > { %713 = vmatpush.bf16.msra.mxu3 %v1122_v11  ;;  %v1244_v46 = vld [vmem:[%s1382_s24 + $0xd4] sm:$0xf0]  ;;  %v1189_v47 = vld [vmem:[%s1382_s24 + $0x1c8] sm:$0xf]  ;;  %v1210_v48 = vor.u32 %v1278_v39, %v1207_v40  ;;  %v1242_v50 = vld [vmem:[%s1382_s24 + $0xcc] sm:$0xf] }
  0x2f   : > { %v1276_v49 = vld [vmem:[%s1382_s24 + $0x1d4] sm:$0xf0]  ;;  %v1063_v51 = vld [vmem:[%s1382_s24 + $0xd8] sm:$0xf0]  ;;  %v1274_v52 = vld [vmem:[%s1382_s24 + $0x1cc] sm:$0xf]  ;;  %v1062_v54 = vor.u32 %v1244_v46, %v1061_v45 }
  0x30   : > { %675 = vmatpush.bf16.msra.mxu0 %v974_v18  ;;  %v1191_v53 = vld [vmem:[%s1382_s24 + $0x1d8] sm:$0xf0]  ;;  %v1045_v55 = vld [vmem:[%s1382_s24 + $0xa8] sm:$0xf]  ;;  %v1240_v56 = vld [vmem:[%s1382_s24 + $0xb4] sm:$0xf0]  ;;  %v1190_v57 = vor.u32 %v1276_v49, %v1189_v47  ;;  %v1066_v58 = vor.u32 %v1242_v50, %v1063_v51 }
  0x31   : > { %688 = vmatpush.bf16.msra.mxu1 %v1102_v22  ;;  %701 = vmatpush.bf16.msra.mxu2 %v978_v23  ;;  %v1173_v61 = vld [vmem:[%s1382_s24 + $0x1a8] sm:$0xf]  ;;  %v1194_v62 = vor.u32 %v1274_v52, %v1191_v53  ;;  %v1272_v63 = vld [vmem:[%s1382_s24 + $0x1b4] sm:$0xf0]  ;;  %v1238_v0 = vld [vmem:[%s1382_s24 + $0xac] sm:$0xf]  ;;  %v1046_v4 = vor.u32 %v1240_v56, %v1045_v55 }
  0x32   : > { %714 = vmatpush.bf16.msra.mxu3 %v1106_v27  ;;  %v1047_v1 = vld [vmem:[%s1382_s24 + $0xb8] sm:$0xf0]  ;;  %v1270_v2 = vld [vmem:[%s1382_s24 + $0x1ac] sm:$0xf]  ;;  %v1174_v5 = vor.u32 %v1272_v63, %v1173_v61  ;;  %v1029_v7 = vld [vmem:[%s1382_s24 + $0x88] sm:$0xf] }
  0x33   : > { %v1472_v59 = vld [vmem:[#allocation1] sm:$0xff]  ;;  %v1474_v60 = vld [vmem:[#allocation1 + $0x9] sm:$0xff]  ;;  %v1175_v3 = vld [vmem:[%s1382_s24 + $0x1b8] sm:$0xf0]  ;;  %v1050_v6 = vor.u32 %v1238_v0, %v1047_v1  ;;  %vm780_vm0 = vcmask 1041408   ;;  %vm782_vm1 = vcmask 1045508  }
  0x34   : > { %676 = vmatpush.bf16.msra.mxu0 %v958_v34  ;;  %v1236_v8 = vld [vmem:[%s1382_s24 + $0x94] sm:$0xf0]  ;;  %v1157_v9 = vld [vmem:[%s1382_s24 + $0x188] sm:$0xf]  ;;  %v1178_v10 = vor.u32 %v1270_v2, %v1175_v3  ;;  %v1234_v12 = vld [vmem:[%s1382_s24 + $0x8c] sm:$0xf] }
  0x35   : > { %689 = vmatpush.bf16.msra.mxu1 %v1086_v37  ;;  %702 = vmatpush.bf16.msra.mxu2 %v962_v38  ;;  %v1268_v11 = vld [vmem:[%s1382_s24 + $0x194] sm:$0xf0]  ;;  %v1031_v13 = vld [vmem:[%s1382_s24 + $0x98] sm:$0xf0]  ;;  %v1266_v14 = vld [vmem:[%s1382_s24 + $0x18c] sm:$0xf]  ;;  %v1030_v16 = vor.u32 %v1236_v8, %v1029_v7 }
  0x36   : > { %715 = vmatpush.bf16.msra.mxu3 %v1090_v41  ;;  %v1159_v15 = vld [vmem:[%s1382_s24 + $0x198] sm:$0xf0]  ;;  %v1158_v17 = vor.u32 %v1268_v11, %v1157_v9  ;;  %v1034_v18 = vor.u32 %v1234_v12, %v1031_v13  ;;  %v1013_v19 = vld [vmem:[%s1382_s24 + $0x68] sm:$0xf]  ;;  %v1232_v20 = vld [vmem:[%s1382_s24 + $0x74] sm:$0xf0] }
  0x37   : > { %677 = vmatmul.bf16.vlgmr.msra.gmra.mxu0 %v1472_v59  ;;  %v1141_v21 = vld [vmem:[%s1382_s24 + $0x168] sm:$0xf]  ;;  %v1162_v22 = vor.u32 %v1266_v14, %v1159_v15  ;;  %v1264_v23 = vld [vmem:[%s1382_s24 + $0x174] sm:$0xf0]  ;;  %v1230_v24 = vld [vmem:[%s1382_s24 + $0x6c] sm:$0xf]  ;;  %v1014_v28 = vor.u32 %v1232_v20, %v1013_v19 }
  0x38   : > { %721 = vmatpush.bf16.msrb.mxu0 %v1078_v42  ;;  %703 = vmatmul.bf16.vlgmr.msra.gmra.mxu2 %v1472_v59  ;;  %v1015_v25 = vld [vmem:[%s1382_s24 + $0x78] sm:$0xf0]  ;;  %v1262_v26 = vld [vmem:[%s1382_s24 + $0x16c] sm:$0xf]  ;;  %v1142_v29 = vor.u32 %v1264_v23, %v1141_v21  ;;  %v997_v31 = vld [vmem:[%s1382_s24 + $0x48] sm:$0xf] }
  0x39   : > { %734 = vmatpush.bf16.msrb.mxu1 %v1206_v43  ;;  %747 = vmatpush.bf16.msrb.mxu2 %v1082_v44  ;;  %v1143_v27 = vld [vmem:[%s1382_s24 + $0x178] sm:$0xf0]  ;;  %v1018_v30 = vor.u32 %v1230_v24, %v1015_v25  ;;  %v1228_v32 = vld [vmem:[%s1382_s24 + $0x54] sm:$0xf0]  ;;  %v1125_v33 = vld [vmem:[%s1382_s24 + $0x148] sm:$0xf] }
  0x3a   : > { %760 = vmatpush.bf16.msrb.mxu3 %v1210_v48  ;;  %690 = vmatmul.bf16.vlgmr.msra.gmra.mxu1 %v1474_v60  ;;  %v1146_v34 = vor.u32 %v1262_v26, %v1143_v27  ;;  %v1260_v35 = vld [vmem:[%s1382_s24 + $0x154] sm:$0xf0]  ;;  %v1226_v36 = vld [vmem:[%s1382_s24 + $0x4c] sm:$0xf]  ;;  %v999_v37 = vld [vmem:[%s1382_s24 + $0x58] sm:$0xf0]  ;;  %v998_v40 = vor.u32 %v1228_v32, %v997_v31 }
  0x3b   : > { %716 = vmatmul.bf16.vlgmr.msra.gmra.mxu3 %v1474_v60  ;;  %v1258_v38 = vld [vmem:[%s1382_s24 + $0x14c] sm:$0xf]  ;;  %v1127_v39 = vld [vmem:[%s1382_s24 + $0x158] sm:$0xf0]  ;;  %v1126_v41 = vor.u32 %v1260_v35, %v1125_v33  ;;  %v1002_v42 = vor.u32 %v1226_v36, %v999_v37  ;;  %v981_v43 = vld [vmem:[%s1382_s24 + $0x28] sm:$0xf] }
  0x3c   : > { %722 = vmatpush.bf16.msrb.mxu0 %v1062_v54  ;;  %v1224_v44 = vld [vmem:[%s1382_s24 + $0x34] sm:$0xf0]  ;;  %v1109_v45 = vld [vmem:[%s1382_s24 + $0x128] sm:$0xf]  ;;  %v1130_v46 = vor.u32 %v1258_v38, %v1127_v39  ;;  %v1222_v48 = vld [vmem:[%s1382_s24 + $0x2c] sm:$0xf] }
  0x3d   : > { %735 = vmatpush.bf16.msrb.mxu1 %v1190_v57  ;;  %748 = vmatpush.bf16.msrb.mxu2 %v1066_v58  ;;  %v1256_v47 = vld [vmem:[%s1382_s24 + $0x134] sm:$0xf0]  ;;  %v983_v49 = vld [vmem:[%s1382_s24 + $0x38] sm:$0xf0]  ;;  %v1254_v50 = vld [vmem:[%s1382_s24 + $0x12c] sm:$0xf]  ;;  %v982_v52 = vor.u32 %v1224_v44, %v981_v43 }
  0x3e   : > { %761 = vmatpush.bf16.msrb.mxu3 %v1194_v62  ;;  %v1111_v51 = vld [vmem:[%s1382_s24 + $0x138] sm:$0xf0]  ;;  %v1110_v53 = vor.u32 %v1256_v47, %v1109_v45  ;;  %v986_v54 = vor.u32 %v1222_v48, %v983_v49  ;;  %v965_v55 = vld [vmem:[%s1382_s24 + $0x8] sm:$0xf]  ;;  %v1220_v56 = vld [vmem:[%s1382_s24 + $0x14] sm:$0xf0] }
  0x3f   : > { %v1093_v57 = vld [vmem:[%s1382_s24 + $0x108] sm:$0xf]  ;;  %v1114_v58 = vor.u32 %v1254_v50, %v1111_v51  ;;  %v1252_v61 = vld [vmem:[%s1382_s24 + $0x114] sm:$0xf0]  ;;  %v1218_v62 = vld [vmem:[%s1382_s24 + $0xc] sm:$0xf]  ;;  %v966_v2 = vor.u32 %v1220_v56, %v965_v55 }
  0x40   : > { %723 = vmatpush.bf16.msrb.mxu0 %v1046_v4  ;;  %v967_v63 = vld [vmem:[%s1382_s24 + $0x18] sm:$0xf0]  ;;  %v1250_v0 = vld [vmem:[%s1382_s24 + $0x10c] sm:$0xf]  ;;  %v1094_v3 = vor.u32 %v1252_v61, %v1093_v57  ;;  %vm784_vm2 = vcmask 1043456   ;;  %p1211_p7 = scmp.ne.s32.totalorder %s1320_s12, 1 }
  0x41   : > { %736 = vmatpush.bf16.msrb.mxu1 %v1174_v5  ;;  %749 = vmatpush.bf16.msrb.mxu2 %v1050_v6  ;;  %v1095_v1 = vld [vmem:[%s1382_s24 + $0x118] sm:$0xf0]  ;;  %v970_v4 = vor.u32 %v1218_v62, %v967_v63  ;;  %v277_v25 = vld [vmem:[#allocation2] sm:$0xff] }
  0x42   : > { %762 = vmatpush.bf16.msrb.mxu3 %v1178_v10  ;;  %v1098_v5 = vor.u32 %v1250_v0, %v1095_v1 }
  0x44   : > { %724 = vmatpush.bf16.msrb.mxu0 %v1030_v16 }
  0x45   : > { %737 = vmatpush.bf16.msrb.mxu1 %v1158_v17  ;;  %750 = vmatpush.bf16.msrb.mxu2 %v1034_v18 }
  0x46   : > { %763 = vmatpush.bf16.msrb.mxu3 %v1162_v22 }
  0x48   : > { %725 = vmatpush.bf16.msrb.mxu0 %v1014_v28 }
  0x49   : > { %738 = vmatpush.bf16.msrb.mxu1 %v1142_v29  ;;  %751 = vmatpush.bf16.msrb.mxu2 %v1018_v30 }
  0x4a   : > { %764 = vmatpush.bf16.msrb.mxu3 %v1146_v34 }
  0x4c   : > { %726 = vmatpush.bf16.msrb.mxu0 %v998_v40 }
  0x4d   : > { %739 = vmatpush.bf16.msrb.mxu1 %v1126_v41  ;;  %752 = vmatpush.bf16.msrb.mxu2 %v1002_v42 }
  0x4e   : > { %765 = vmatpush.bf16.msrb.mxu3 %v1130_v46 }
  0x50   : > { %727 = vmatpush.bf16.msrb.mxu0 %v982_v52 }
  0x51   : > { %740 = vmatpush.bf16.msrb.mxu1 %v1110_v53  ;;  %753 = vmatpush.bf16.msrb.mxu2 %v986_v54 }
  0x52   : > { %766 = vmatpush.bf16.msrb.mxu3 %v1114_v58 }
  0x54   : > { %728 = vmatpush.bf16.msrb.mxu0 %v966_v2 }
  0x55   : > { %741 = vmatpush.bf16.msrb.mxu1 %v1094_v3  ;;  %754 = vmatpush.bf16.msrb.mxu2 %v970_v4 }
  0x56   : > { %767 = vmatpush.bf16.msrb.mxu3 %v1098_v5 }
  0x57   : > { %729 = vmatmul.bf16.vlgmr.msrb.gmra.mxu0 %v1472_v59 }
  0x58   : > { %742 = vmatmul.bf16.vlgmr.msrb.gmra.mxu1 %v1474_v60  ;;  %755 = vmatmul.bf16.vlgmr.msrb.gmra.mxu2 %v1472_v59 }
  0x59   : > { %768 = vmatmul.bf16.vlgmr.msrb.gmra.mxu3 %v1474_v60 }
  0xb4   : > { %v678_v6 = vpop.f32.mrf.mxu0 }
  0xb7   : > { %v691_v7 = vpop.f32.mrf.mxu1 }
  0xb8   : > { %v692_v21 = vadd.f32 %v691_v7, %v678_v6 }
  0xbb   : > { %v704_v8 = vpop.f32.mrf.mxu2 }
  0xbc   : > { %v680_v10 = vpop.f32.mrf.mxu0 }
  0xbe   : > { %v717_v9 = vpop.f32.mrf.mxu3 }
  0xbf   : > { %v693_v11 = vpop.f32.mrf.mxu1  ;;  %v718_v16 = vadd.f32 %v717_v9, %v704_v8 }
  0xc1   : > { %v777_v22 = vrot.slane %v718_v16, 6 }
  0xc3   : > { %v706_v12 = vpop.f32.mrf.mxu2  ;;  %v781_v26 = vsel %vm780_vm0, %v692_v21, %v777_v22 }
  0xc6   : > { %v719_v13 = vpop.f32.mrf.mxu3 }
  0xd4   : > { %v730_v14 = vpop.f32.mrf.mxu0 }
  0xd5   : > { %v743_v15 = vpop.f32.mrf.mxu1 }
  0xd6   : > { %v744_v17 = vadd.f32 %v743_v15, %v730_v14 }
  0xd8   : > { %v778_v59 = vrot.slane %v744_v17, 4 }
  0xdb   : > { %v756_v18 = vpop.f32.mrf.mxu2 }
  0xdc   : > { %v769_v19 = vpop.f32.mrf.mxu3  ;;  %v732_v20 = vpop.f32.mrf.mxu0 }
  0xdd   : > { %v770_v23 = vadd.f32 %v769_v19, %v756_v18  ;;  %v745_v60 = vpop.f32.mrf.mxu1 }
  0xdf   : > { %v779_v24 = vrot.slane %v770_v23, 2 }
  0xe1   : > { %v783_v27 = vsel %vm782_vm1, %v778_v59, %v779_v24  ;;  %792 = sbr.rel (%p1211_p7) target bundleno = 257 (0x101), region = 40 }
  0xe2   : > { %v785_v28 = vsel %vm784_vm2, %v781_v26, %v783_v27 }
  0xe3   : > { %v787_v29 = vadd.f32 %v785_v28, %v277_v25  ;;  %v758_v30 = vpop.f32.mrf.mxu2 }
  0xe4   : > { %v771_v31 = vpop.f32.mrf.mxu3 }
  0xe5   : > { %788 = vst [vmem:[#allocation2] sm:$0xff] %v787_v29 }
  0xe6   : > { %v794_v32 = vld [vmem:[%s1555_s2] sm:$0xf]  ;;  %vm826_vm3 = vcmask 1040384   ;;  %vm830_vm4 = vcmask 1042434  }
  0xe7   : > { %v796_v33 = vperm.slane %v794_v32, 0  ;;  %v797_v34 = vperm.slane %v794_v32, 1  ;;  %v798_v35 = vperm.slane %v794_v32, 2  ;;  %v799_v36 = vperm.slane %v794_v32, 3 }
  0xe9   : > { %v800_v37 = vrot.slane %v797_v34, 6  ;;  %v801_v38 = vrot.slane %v798_v35, 4  ;;  %v802_v39 = vrot.slane %v799_v36, 2 }
  0xeb   : > { %v803_v41 = vsel %vm780_vm0, %v796_v33, %v800_v37  ;;  %v804_v42 = vsel %vm782_vm1, %v801_v38, %v802_v39 }
  0xec   : > { %v793_v40 = vld [vmem:[#allocation2] sm:$0xff]  ;;  %v805_v43 = vsel %vm784_vm2, %v803_v41, %v804_v42 }
  0xed   : > { %v807_v44 = vadd.f32 %v805_v43, %v793_v40 }
  0xef   : > { %v808_v45 = vmax.f32 %v807_v44, 0.0 }
  0xf1   : > { %810 = vst [vmem:[#allocation1] ss:$4 sm:$0xff] %v808_v45 }
  0xf8   : > { %v811_v46 = vld.sshfl [vmem:[#allocation1] sm:$0xff pattern:$0x73625140]  ;;  %v812_v47 = vld.sshfl [vmem:[#allocation1 + $0x8] sm:$0xff pattern:$0x73625140] }
  0xf9   : > { %v813_v48 = vld.sshfl [vmem:[#allocation1 + $0x10] sm:$0xff pattern:$0x73625140]  ;;  %v814_v49 = vld.sshfl [vmem:[#allocation1 + $0x18] sm:$0xff pattern:$0x73625140]  ;;  %v819_v50 = vpack.c.bf16 %v812_v47, %v811_v46 }
  0xfa   : > { %v820_v51 = vpack.c.bf16 %v814_v49, %v813_v48 }
  0xfb   : > { %v823_v52 = vrot.slane %v819_v50, 3 }
  0xfc   : > { %v824_v53 = vrot.slane %v820_v51, 6  ;;  %v825_v54 = vrot.slane %v820_v51, 1 }
  0xfd   : > { %v829_v55 = vsel %vm826_vm3, %v819_v50, %v823_v52 }
  0xfe   : > { %v833_v56 = vsel %vm830_vm4, %v824_v53, %v825_v54 }
  0xff   : > { %v834_v57 = vsel %vm780_vm0, %v829_v55, %v833_v56 }
 0x100   : > { %836 = vst [vmem:[%s1556_s3] sm:$0xf] %v834_v57 }
 0x101 PF: > { %s13_s14 = sadd.s32 1, %s1328_s14   ;;  %s1557_s12 = smov %s1324_s13 }
 0x102   : > { %p10_p8 = scmp.ge.s32.totalorder %s13_s14, 4   ;;  %s1558_s13 = smov %s1560_s15 }
 0x104   :  { %12 = sbr.rel (!%p10_p8) target bundleno = 2 (0x2), region = 76 }

// kernel: net_forward.12
= control target key start
LH: loop header
LB: loop body
LE: loop exit
PB: predicated region body
PF: predicated region fallthrough
CT: control target
= control target key end

     0   :  { %s920_s12 = smov 0   ;;  %s922_s13 = smov 0   ;;  %s1041_s0 = inlined_call_operand.vmem [shape: bf16[2,512], index: 0, kind: input, shape index: {}]   ;;  %s1042_s1 = inlined_call_operand.vmem [shape: bf16[512,256], index: 1, kind: input, shape index: {}]   ;;  %s1043_s2 = inlined_call_operand.vmem [shape: f32[1,256], index: 2, kind: input, shape index: {}]   ;;  %s1044_s3 = inlined_call_operand.vmem [shape: bf16[2,256], index: 3, kind: output, shape index: {}]  }
   0x1   :  { %s924_s14 = smov 0  }
   0x2 LB: > { %s25_s15 = sadd.s32 1, %s893_s13  ;;  %p678_p0 = scmp.ge.s32.totalorder %s897_s14, 1  ;;  %s897_s14 = sphi %s924_s14, %s13_s14   ;;  %s893_s13 = sphi %s922_s13, %s1046_s13   ;;  %s889_s12 = sphi %s920_s12, %s1045_s12  }
   0x3   : > { %p26_p1 = scmp.ge.s32.totalorder %s25_s15, 2  ;;  %p193_p2 = scmp.lt.s32.totalorder %s897_s14, 3 }
   0x5   : > { %s1048_s15 = smov (%p26_p1, %s25_s15), 0  ;;  %p194_p3 = pnand %p678_p0, %p193_p2 }
   0x6   : > { %s679_s16 = sshll.u32 (!%p194_p3), %s889_s12, 1  ;;  %s680_s17 = sshll.u32 (!%p194_p3), %s889_s12, 5 }
   0x7   : > { %197 = sbr.rel (%p194_p3) target bundleno = 222 (0xde), region = 32  ;;  %p240_p4 = scmp.lt.s32.totalorder (!%p194_p3), %s679_s16, 3 }
   0x8   : > { %p248_p5 = scmp.lt.s32.totalorder (!%p194_p3), %s680_s17, 63  ;;  %p683_p6 = scmp.ne.s32.totalorder (!%p194_p3), %s889_s12, 0 }
   0xc   : > { %s1050_s16 = smov (!%p240_p4, %s679_s16), 3  ;;  %s1052_s17 = smov (!%p248_p5, %s680_s17), 63 }
   0xd   : > { %s244_s20 = scalar_lea.vmem %s1041_s0, %s1050_s16  ;;  %s817_s21 = sshll.u32 %s1052_s17, 3 }
   0xe   : > { %s951_s24 = scalar_lea.vmem %s1042_s1, %s817_s21  ;;  %275 = sbr.rel (%p683_p6) target bundleno = 21 (0x15), region = 36 }
  0x13   : > { %v899_v0 = vmov 0.0  }
  0x14   : > { %276 = vst [vmem:[#allocation2] sm:$0xf] %v899_v0 }
  0x15 PF: > { %v742_v1 = vld [vmem:[%s951_s24 + $0x70] sm:$0xf]  ;;  %v833_v2 = vld [vmem:[%s951_s24 + $0x74] sm:$0xf0]  ;;  %v832_v6 = vld [vmem:[%s951_s24 + $0x74] sm:$0xf] }
  0x16   : > { %v806_v3 = vld [vmem:[%s951_s24 + $0xf0] sm:$0xf]  ;;  %v743_v4 = vor.u32 %v833_v2, %v742_v1  ;;  %v849_v5 = vld [vmem:[%s951_s24 + $0xf4] sm:$0xf0]  ;;  %v744_v7 = vld [vmem:[%s951_s24 + $0x78] sm:$0xf0] }
  0x17   : > { %v807_v8 = vor.u32 %v849_v5, %v806_v3  ;;  %v747_v9 = vor.u32 %v832_v6, %v744_v7  ;;  %v848_v10 = vld [vmem:[%s951_s24 + $0xf4] sm:$0xf]  ;;  %v808_v11 = vld [vmem:[%s951_s24 + $0xf8] sm:$0xf0]  ;;  %v734_v12 = vld [vmem:[%s951_s24 + $0x60] sm:$0xf] }
  0x18   : > { %477 = vmatpush.bf16.msra.mxu0 %v743_v4  ;;  %v811_v13 = vor.u32 %v848_v10, %v808_v11  ;;  %v831_v14 = vld [vmem:[%s951_s24 + $0x64] sm:$0xf0]  ;;  %v798_v15 = vld [vmem:[%s951_s24 + $0xe0] sm:$0xf]  ;;  %v830_v19 = vld [vmem:[%s951_s24 + $0x64] sm:$0xf] }
  0x19   : > { %v847_v16 = vld [vmem:[%s951_s24 + $0xe4] sm:$0xf0]  ;;  %490 = vmatpush.bf16.msra.mxu1 %v807_v8  ;;  %503 = vmatpush.bf16.msra.mxu2 %v747_v9  ;;  %v735_v17 = vor.u32 %v831_v14, %v734_v12  ;;  %v736_v20 = vld [vmem:[%s951_s24 + $0x68] sm:$0xf0]  ;;  %v846_v21 = vld [vmem:[%s951_s24 + $0xe4] sm:$0xf] }
  0x1a   : > { %v799_v18 = vor.u32 %v847_v16, %v798_v15  ;;  %516 = vmatpush.bf16.msra.mxu3 %v811_v13  ;;  %v739_v22 = vor.u32 %v830_v19, %v736_v20  ;;  %v800_v23 = vld [vmem:[%s951_s24 + $0xe8] sm:$0xf0]  ;;  %v726_v24 = vld [vmem:[%s951_s24 + $0x50] sm:$0xf]  ;;  %v829_v25 = vld [vmem:[%s951_s24 + $0x54] sm:$0xf0] }
  0x1b   : > { %v803_v26 = vor.u32 %v846_v21, %v800_v23  ;;  %v790_v27 = vld [vmem:[%s951_s24 + $0xd0] sm:$0xf]  ;;  %v845_v28 = vld [vmem:[%s951_s24 + $0xd4] sm:$0xf0]  ;;  %v828_v29 = vld [vmem:[%s951_s24 + $0x54] sm:$0xf]  ;;  %v727_v30 = vor.u32 %v829_v25, %v726_v24 }
  0x1c   : > { %478 = vmatpush.bf16.msra.mxu0 %v735_v17  ;;  %v728_v31 = vld [vmem:[%s951_s24 + $0x58] sm:$0xf0]  ;;  %v844_v32 = vld [vmem:[%s951_s24 + $0xd4] sm:$0xf]  ;;  %v791_v34 = vor.u32 %v845_v28, %v790_v27  ;;  %v718_v36 = vld [vmem:[%s951_s24 + $0x40] sm:$0xf] }
  0x1d   : > { %v792_v33 = vld [vmem:[%s951_s24 + $0xd8] sm:$0xf0]  ;;  %491 = vmatpush.bf16.msra.mxu1 %v799_v18  ;;  %504 = vmatpush.bf16.msra.mxu2 %v739_v22  ;;  %v731_v35 = vor.u32 %v828_v29, %v728_v31  ;;  %v827_v37 = vld [vmem:[%s951_s24 + $0x44] sm:$0xf0]  ;;  %v782_v38 = vld [vmem:[%s951_s24 + $0xc0] sm:$0xf] }
  0x1e   : > { %517 = vmatpush.bf16.msra.mxu3 %v803_v26  ;;  %v795_v39 = vor.u32 %v844_v32, %v792_v33  ;;  %v843_v40 = vld [vmem:[%s951_s24 + $0xc4] sm:$0xf0]  ;;  %v826_v41 = vld [vmem:[%s951_s24 + $0x44] sm:$0xf]  ;;  %v720_v42 = vld [vmem:[%s951_s24 + $0x48] sm:$0xf0]  ;;  %v719_v45 = vor.u32 %v827_v37, %v718_v36 }
  0x1f   : > { %v842_v43 = vld [vmem:[%s951_s24 + $0xc4] sm:$0xf]  ;;  %v784_v44 = vld [vmem:[%s951_s24 + $0xc8] sm:$0xf0]  ;;  %v783_v46 = vor.u32 %v843_v40, %v782_v38  ;;  %v723_v47 = vor.u32 %v826_v41, %v720_v42  ;;  %v710_v48 = vld [vmem:[%s951_s24 + $0x30] sm:$0xf] }
  0x20   : > { %479 = vmatpush.bf16.msra.mxu0 %v727_v30  ;;  %v825_v49 = vld [vmem:[%s951_s24 + $0x34] sm:$0xf0]  ;;  %v774_v50 = vld [vmem:[%s951_s24 + $0xb0] sm:$0xf]  ;;  %v787_v51 = vor.u32 %v842_v43, %v784_v44  ;;  %v824_v53 = vld [vmem:[%s951_s24 + $0x34] sm:$0xf] }
  0x21   : > { %492 = vmatpush.bf16.msra.mxu1 %v791_v34  ;;  %505 = vmatpush.bf16.msra.mxu2 %v731_v35  ;;  %v841_v52 = vld [vmem:[%s951_s24 + $0xb4] sm:$0xf0]  ;;  %v712_v54 = vld [vmem:[%s951_s24 + $0x38] sm:$0xf0]  ;;  %v840_v55 = vld [vmem:[%s951_s24 + $0xb4] sm:$0xf]  ;;  %v711_v57 = vor.u32 %v825_v49, %v710_v48 }
  0x22   : > { %518 = vmatpush.bf16.msra.mxu3 %v795_v39  ;;  %v776_v56 = vld [vmem:[%s951_s24 + $0xb8] sm:$0xf0]  ;;  %v775_v58 = vor.u32 %v841_v52, %v774_v50  ;;  %v715_v59 = vor.u32 %v824_v53, %v712_v54  ;;  %v702_v60 = vld [vmem:[%s951_s24 + $0x20] sm:$0xf]  ;;  %v823_v61 = vld [vmem:[%s951_s24 + $0x24] sm:$0xf0] }
  0x23   : > { %v766_v62 = vld [vmem:[%s951_s24 + $0xa0] sm:$0xf]  ;;  %v779_v63 = vor.u32 %v840_v55, %v776_v56  ;;  %v839_v0 = vld [vmem:[%s951_s24 + $0xa4] sm:$0xf0]  ;;  %v822_v1 = vld [vmem:[%s951_s24 + $0x24] sm:$0xf]  ;;  %v703_v5 = vor.u32 %v823_v61, %v702_v60 }
  0x24   : > { %480 = vmatpush.bf16.msra.mxu0 %v719_v45  ;;  %v704_v2 = vld [vmem:[%s951_s24 + $0x28] sm:$0xf0]  ;;  %v838_v3 = vld [vmem:[%s951_s24 + $0xa4] sm:$0xf]  ;;  %v694_v6 = vld [vmem:[%s951_s24 + $0x10] sm:$0xf]  ;;  %v767_v7 = vor.u32 %v839_v0, %v766_v62 }
  0x25   : > { %493 = vmatpush.bf16.msra.mxu1 %v783_v46  ;;  %506 = vmatpush.bf16.msra.mxu2 %v723_v47  ;;  %v768_v4 = vld [vmem:[%s951_s24 + $0xa8] sm:$0xf0]  ;;  %v707_v8 = vor.u32 %v822_v1, %v704_v2  ;;  %v821_v9 = vld [vmem:[%s951_s24 + $0x14] sm:$0xf0]  ;;  %v758_v10 = vld [vmem:[%s951_s24 + $0x90] sm:$0xf] }
  0x26   : > { %519 = vmatpush.bf16.msra.mxu3 %v787_v51  ;;  %v837_v11 = vld [vmem:[%s951_s24 + $0x94] sm:$0xf0]  ;;  %v771_v12 = vor.u32 %v838_v3, %v768_v4  ;;  %v820_v13 = vld [vmem:[%s951_s24 + $0x14] sm:$0xf]  ;;  %v696_v14 = vld [vmem:[%s951_s24 + $0x18] sm:$0xf0]  ;;  %v695_v18 = vor.u32 %v821_v9, %v694_v6 }
  0x27   : > { %v278_v15 = vld [vmem:[%s244_s20] sm:$0x3]  ;;  %v836_v16 = vld [vmem:[%s951_s24 + $0x94] sm:$0xf]  ;;  %v760_v17 = vld [vmem:[%s951_s24 + $0x98] sm:$0xf0]  ;;  %v759_v19 = vor.u32 %v837_v11, %v758_v10  ;;  %v699_v20 = vor.u32 %v820_v13, %v696_v14 }
  0x28   : > { %481 = vmatpush.bf16.msra.mxu0 %v711_v57  ;;  %312 = vst [vmem:[#allocation1] ss:$9 sm:$0xff] %v278_v15  ;;  %v686_v21 = vld [vmem:[%s951_s24] sm:$0xf]  ;;  %v819_v22 = vld [vmem:[%s951_s24 + $0x4] sm:$0xf0]  ;;  %v763_v24 = vor.u32 %v836_v16, %v760_v17 }
  0x29   : > { %494 = vmatpush.bf16.msra.mxu1 %v775_v58  ;;  %507 = vmatpush.bf16.msra.mxu2 %v715_v59  ;;  %v750_v23 = vld [vmem:[%s951_s24 + $0x80] sm:$0xf]  ;;  %v835_v25 = vld [vmem:[%s951_s24 + $0x84] sm:$0xf0]  ;;  %v818_v26 = vld [vmem:[%s951_s24 + $0x4] sm:$0xf]  ;;  %v687_v30 = vor.u32 %v819_v22, %v686_v21 }
  0x2a   : > { %520 = vmatpush.bf16.msra.mxu3 %v779_v63  ;;  %v688_v27 = vld [vmem:[%s951_s24 + $0x8] sm:$0xf0]  ;;  %v834_v28 = vld [vmem:[%s951_s24 + $0x84] sm:$0xf]  ;;  %v751_v31 = vor.u32 %v835_v25, %v750_v23  ;;  %vm532_vm0 = vcmask 1041408   ;;  %p812_p7 = scmp.ne.s32.totalorder %s889_s12, 1 }
  0x2b   : > { %v752_v29 = vld [vmem:[%s951_s24 + $0x88] sm:$0xf0]  ;;  %v691_v32 = vor.u32 %v818_v26, %v688_v27  ;;  %v277_v44 = vld [vmem:[#allocation2] sm:$0xf] }
  0x2c   : > { %482 = vmatpush.bf16.msra.mxu0 %v703_v5  ;;  %v755_v33 = vor.u32 %v834_v28, %v752_v29 }
  0x2d   : > { %495 = vmatpush.bf16.msra.mxu1 %v767_v7  ;;  %508 = vmatpush.bf16.msra.mxu2 %v707_v8 }
  0x2e   : > { %521 = vmatpush.bf16.msra.mxu3 %v771_v12 }
  0x2f   : > { %v313_v34 = vld [vmem:[#allocation1] sm:$0xff]  ;;  %v314_v35 = vld [vmem:[#allocation1 + $0x9] sm:$0xff] }
  0x30   : > { %483 = vmatpush.bf16.msra.mxu0 %v695_v18 }
  0x31   : > { %496 = vmatpush.bf16.msra.mxu1 %v759_v19  ;;  %509 = vmatpush.bf16.msra.mxu2 %v699_v20 }
  0x32   : > { %522 = vmatpush.bf16.msra.mxu3 %v763_v24 }
  0x34   : > { %484 = vmatpush.bf16.msra.mxu0 %v687_v30 }
  0x35   : > { %497 = vmatpush.bf16.msra.mxu1 %v751_v31  ;;  %510 = vmatpush.bf16.msra.mxu2 %v691_v32 }
  0x36   : > { %523 = vmatpush.bf16.msra.mxu3 %v755_v33 }
  0x37   : > { %485 = vmatmul.bf16.vlgmr.msra.gmra.mxu0 %v313_v34 }
  0x38   : > { %498 = vmatmul.bf16.vlgmr.msra.gmra.mxu1 %v314_v35  ;;  %511 = vmatmul.bf16.vlgmr.msra.gmra.mxu2 %v313_v34 }
  0x39   : > { %524 = vmatmul.bf16.vlgmr.msra.gmra.mxu3 %v314_v35 }
  0xb4   : > { %v486_v36 = vpop.f32.mrf.mxu0 }
  0xb5   : > { %v499_v37 = vpop.f32.mrf.mxu1 }
  0xb6   : > { %v500_v43 = vadd.f32 %v499_v37, %v486_v36 }
  0xbb   : > { %v512_v38 = vpop.f32.mrf.mxu2 }
  0xbc   : > { %v525_v39 = vpop.f32.mrf.mxu3  ;;  %v488_v40 = vpop.f32.mrf.mxu0 }
  0xbd   : > { %v526_v41 = vadd.f32 %v525_v39, %v512_v38  ;;  %v501_v42 = vpop.f32.mrf.mxu1 }
  0xbf   : > { %v531_v45 = vrot.slane %v526_v41, 6 }
  0xc0   : > { %540 = sbr.rel (%p812_p7) target bundleno = 222 (0xde), region = 40 }
  0xc1   : > { %v533_v46 = vsel %vm532_vm0, %v500_v43, %v531_v45 }
  0xc2   : > { %v535_v47 = vadd.f32 %v533_v46, %v277_v44 }
  0xc3   : > { %v514_v48 = vpop.f32.mrf.mxu2 }
  0xc4   : > { %536 = vst [vmem:[#allocation2] sm:$0xf] %v535_v47  ;;  %v527_v49 = vpop.f32.mrf.mxu3 }
  0xc5   : > { %v542_v50 = vld [vmem:[%s1043_s2] sm:$0x3]  ;;  %vm560_vm1 = vcmask 1040384  }
  0xc6   : > { %v544_v51 = vperm.slane %v542_v50, 0  ;;  %v545_v52 = vperm.slane %v542_v50, 1 }
  0xc8   : > { %v546_v54 = vrot.slane %v545_v52, 6 }
  0xca   : > { %v547_v55 = vsel %vm532_vm0, %v544_v51, %v546_v54 }
  0xcb   : > { %v541_v53 = vld [vmem:[#allocation2] sm:$0xf] }
  0xcc   : > { %v549_v56 = vadd.f32 %v547_v55, %v541_v53 }
  0xce   : > { %v550_v57 = vmax.f32 %v549_v56, 0.0 }
  0xd0   : > { %552 = vst [vmem:[#allocation1] ss:$4 sm:$0xff] %v550_v57 }
  0xd7   : > { %v553_v58 = vld.sshfl [vmem:[#allocation1] sm:$0xff pattern:$0x73625140]  ;;  %v554_v59 = vld.sshfl [vmem:[#allocation1 + $0x8] sm:$0xff pattern:$0x73625140] }
  0xd8   : > { %v557_v60 = vpack.c.bf16 %v554_v59, %v553_v58 }
  0xda   : > { %v559_v61 = vrot.slane %v557_v60, 3 }
  0xdc   : > { %v563_v62 = vsel %vm560_vm1, %v557_v60, %v559_v61 }
  0xdd   : > { %565 = vst [vmem:[%s1044_s3] sm:$0x3] %v563_v62 }
  0xde PF: > { %s13_s14 = sadd.s32 1, %s897_s14   ;;  %s1045_s12 = smov %s893_s13 }
  0xdf   : > { %p10_p8 = scmp.ge.s32.totalorder %s13_s14, 4   ;;  %s1046_s13 = smov %s1048_s15 }
  0xe1   :  { %12 = sbr.rel (!%p10_p8) target bundleno = 2 (0x2), region = 76 }

// kernel: net_forward.13
= control target key start
LH: loop header
LB: loop body
LE: loop exit
PB: predicated region body
PF: predicated region fallthrough
CT: control target
= control target key end

     0   :  { %8 = vsyncpa [#allocation4], 0  ;;  %s716_s12 = smov 0   ;;  %s718_s13 = smov 0   ;;  %s810_s0 = inlined_call_operand.vmem [shape: bf16[2,256], index: 0, kind: input, shape index: {}]   ;;  %s811_s1 = inlined_call_operand.vmem [shape: bf16[256,136], index: 1, kind: input, shape index: {}]   ;;  %s812_s2 = inlined_call_operand.vmem [shape: f32[1,136], index: 2, kind: input, shape index: {}]   ;;  %s813_s3 = inlined_call_operand.hbm [shape: f32[2,136], index: 3, kind: output, shape index: {}]  }
   0x1   :  { %s720_s14 = smov 0  }
   0x2 LB: > { %s511_s15 = sadd.s32 4294967295, %s692_s14   ;;  %s26_s16 = sadd.s32 1, %s688_s13  ;;  %s692_s14 = sphi %s720_s14, %s14_s14   ;;  %s688_s13 = sphi %s718_s13, %s815_s13   ;;  %s684_s12 = sphi %s716_s12, %s814_s12  }
   0x3   : > { %p27_p0 = scmp.ge.s32.totalorder %s26_s16, 2  ;;  %p515_p1 = scmp.ge.s32.totalorder %s692_s14, 1 }
   0x4   : > { %p192_p2 = scmp.lt.s32.totalorder %s692_s14, 3 }
   0x5   : > { %s817_s16 = smov (%p27_p0, %s26_s16), 0 }
   0x6   : > { %p193_p3 = pnand %p515_p1, %p192_p2 }
   0x7   : > { %p229_p4 = scmp.lt.s32.totalorder (!%p193_p3), %s684_s12, 1  ;;  %s516_s17 = sshll.u32 (!%p193_p3), %s684_s12, 4 }
   0x8   : > { %196 = sbr.rel (%p193_p3) target bundleno = 206 (0xce), region = 32  ;;  %p236_p5 = scmp.lt.s32.totalorder (!%p193_p3), %s516_s17, 31 }
   0x9   : > { %p519_p6 = scmp.ne.s32.totalorder (!%p193_p3), %s684_s12, 0 }
   0xd   : > { %s740_s18 = scalar_select %p229_p4, %s684_s12, 1 }
   0xe   : > { %s819_s17 = smov (!%p236_p5, %s516_s17), 31  ;;  %255 = sbr.rel (%p519_p6) target bundleno = 22 (0x16), region = 36 }
   0xf   : > { %s233_s21 = scalar_lea.vmem %s810_s0, %s740_s18  ;;  %s589_s22 = sshll.u32 %s819_s17, 3 }
  0x10   : > { %s749_s25 = scalar_lea.vmem %s811_s1, %s589_s22 }
  0x13   : > { %vm256_vm0 = vcmask 1041408   ;;  %vm257_vm1 = vcmask 60418   ;;  %v694_v0 = vmov 0.0  }
  0x14   : > { %vm258_vm2 = vmor %vm257_vm1, %vm256_vm0 }
  0x15   : > { %259 = vst.msk [vmem:[#allocation2] sm:$0xf] %vm258_vm2, %v694_v0 }
  0x16 PF: > { %v578_v1 = vld [vmem:[%s749_s25 + $0x70] sm:$0xf]  ;;  %v605_v2 = vld [vmem:[%s749_s25 + $0x74] sm:$0xf0]  ;;  %v604_v3 = vld [vmem:[%s749_s25 + $0x74] sm:$0xf] }
  0x17   : > { %v579_v4 = vor.u32 %v605_v2, %v578_v1  ;;  %v580_v5 = vld [vmem:[%s749_s25 + $0x78] sm:$0xf0]  ;;  %v570_v6 = vld [vmem:[%s749_s25 + $0x60] sm:$0xf]  ;;  %v603_v7 = vld [vmem:[%s749_s25 + $0x64] sm:$0xf0] }
  0x18   : > { %v583_v8 = vor.u32 %v604_v3, %v580_v5  ;;  %v602_v9 = vld [vmem:[%s749_s25 + $0x64] sm:$0xf]  ;;  %v572_v10 = vld [vmem:[%s749_s25 + $0x68] sm:$0xf0]  ;;  %v571_v11 = vor.u32 %v603_v7, %v570_v6  ;;  %v562_v13 = vld [vmem:[%s749_s25 + $0x50] sm:$0xf] }
  0x19   : > { %358 = vmatpush.bf16.msra.mxu0 %v579_v4  ;;  %v575_v12 = vor.u32 %v602_v9, %v572_v10  ;;  %v601_v14 = vld [vmem:[%s749_s25 + $0x54] sm:$0xf0]  ;;  %v600_v15 = vld [vmem:[%s749_s25 + $0x54] sm:$0xf]  ;;  %v564_v16 = vld [vmem:[%s749_s25 + $0x58] sm:$0xf0] }
  0x1a   : > { %371 = vmatpush.bf16.msra.mxu1 %v583_v8  ;;  %v563_v17 = vor.u32 %v601_v14, %v562_v13  ;;  %v567_v18 = vor.u32 %v600_v15, %v564_v16  ;;  %v554_v19 = vld [vmem:[%s749_s25 + $0x40] sm:$0xf]  ;;  %v599_v20 = vld [vmem:[%s749_s25 + $0x44] sm:$0xf0]  ;;  %v598_v21 = vld [vmem:[%s749_s25 + $0x44] sm:$0xf] }
  0x1b   : > { %v556_v22 = vld [vmem:[%s749_s25 + $0x48] sm:$0xf0]  ;;  %v555_v23 = vor.u32 %v599_v20, %v554_v19  ;;  %v546_v25 = vld [vmem:[%s749_s25 + $0x30] sm:$0xf]  ;;  %v597_v26 = vld [vmem:[%s749_s25 + $0x34] sm:$0xf0] }
  0x1c   : > { %v559_v24 = vor.u32 %v598_v21, %v556_v22  ;;  %v596_v27 = vld [vmem:[%s749_s25 + $0x34] sm:$0xf]  ;;  %v548_v28 = vld [vmem:[%s749_s25 + $0x38] sm:$0xf0]  ;;  %v547_v29 = vor.u32 %v597_v26, %v546_v25  ;;  %v538_v31 = vld [vmem:[%s749_s25 + $0x20] sm:$0xf] }
  0x1d   : > { %359 = vmatpush.bf16.msra.mxu0 %v571_v11  ;;  %v551_v30 = vor.u32 %v596_v27, %v548_v28  ;;  %v595_v32 = vld [vmem:[%s749_s25 + $0x24] sm:$0xf0]  ;;  %v594_v33 = vld [vmem:[%s749_s25 + $0x24] sm:$0xf]  ;;  %v540_v34 = vld [vmem:[%s749_s25 + $0x28] sm:$0xf0] }
  0x1e   : > { %372 = vmatpush.bf16.msra.mxu1 %v575_v12  ;;  %v539_v35 = vor.u32 %v595_v32, %v538_v31  ;;  %v543_v36 = vor.u32 %v594_v33, %v540_v34  ;;  %v530_v37 = vld [vmem:[%s749_s25 + $0x10] sm:$0xf]  ;;  %v593_v38 = vld [vmem:[%s749_s25 + $0x14] sm:$0xf0]  ;;  %v592_v39 = vld [vmem:[%s749_s25 + $0x14] sm:$0xf] }
  0x1f   : > { %v532_v40 = vld [vmem:[%s749_s25 + $0x18] sm:$0xf0]  ;;  %v531_v41 = vor.u32 %v593_v38, %v530_v37  ;;  %v522_v43 = vld [vmem:[%s749_s25] sm:$0xf]  ;;  %v591_v44 = vld [vmem:[%s749_s25 + $0x4] sm:$0xf0] }
  0x20   : > { %v535_v42 = vor.u32 %v592_v39, %v532_v40  ;;  %v590_v45 = vld [vmem:[%s749_s25 + $0x4] sm:$0xf]  ;;  %v524_v46 = vld [vmem:[%s749_s25 + $0x8] sm:$0xf0]  ;;  %v523_v47 = vor.u32 %v591_v44, %v522_v43  ;;  %v261_v49 = vld [vmem:[%s233_s21] sm:$0x1] }
  0x21   : > { %360 = vmatpush.bf16.msra.mxu0 %v563_v17  ;;  %v527_v48 = vor.u32 %v590_v45, %v524_v46  ;;  %vm387_vm3 = vcmask 1041408   ;;  %vm391_vm4 = vcmask 60418   ;;  %v260_v52 = vld [vmem:[#allocation2] sm:$0xf]  ;;  %p584_p7 = scmp.ne.s32.totalorder %s684_s12, 1 }
  0x22   : > { %373 = vmatpush.bf16.msra.mxu1 %v567_v18  ;;  %vm392_vm5 = vmor %vm391_vm4, %vm387_vm3 }
  0x25   : > { %361 = vmatpush.bf16.msra.mxu0 %v555_v23 }
  0x26   : > { %374 = vmatpush.bf16.msra.mxu1 %v559_v24 }
  0x29   : > { %362 = vmatpush.bf16.msra.mxu0 %v547_v29 }
  0x2a   : > { %375 = vmatpush.bf16.msra.mxu1 %v551_v30 }
  0x2d   : > { %363 = vmatpush.bf16.msra.mxu0 %v539_v35 }
  0x2e   : > { %376 = vmatpush.bf16.msra.mxu1 %v543_v36 }
  0x31   : > { %364 = vmatpush.bf16.msra.mxu0 %v531_v41 }
  0x32   : > { %377 = vmatpush.bf16.msra.mxu1 %v535_v42 }
  0x35   : > { %365 = vmatpush.bf16.msra.mxu0 %v523_v47 }
  0x36   : > { %378 = vmatpush.bf16.msra.mxu1 %v527_v48 }
  0x38   : > { %366 = vmatmul.bf16.vlgmr.msra.gmra.mxu0 %v261_v49 }
  0x39   : > { %379 = vmatmul.bf16.vlgmr.msra.gmra.mxu1 %v261_v49 }
  0xb5   : > { %v367_v50 = vpop.f32.mrf.mxu0 }
  0xb6   : > { %v380_v51 = vpop.f32.mrf.mxu1 }
  0xb7   : > { %v386_v53 = vrot.slane %v380_v51, 6 }
  0xb9   : > { %v388_v54 = vsel %vm387_vm3, %v367_v50, %v386_v53 }
  0xba   : > { %v390_v55 = vadd.f32 %v388_v54, %v260_v52  ;;  %397 = sbr.rel (%p584_p7) target bundleno = 200 (0xc8), region = 40 }
  0xbc   : > { %393 = vst.msk [vmem:[#allocation2] sm:$0xf] %vm392_vm5, %v390_v55 }
  0xbd   : > { %v369_v56 = vpop.f32.mrf.mxu0 }
  0xbe   : > { %v382_v57 = vpop.f32.mrf.mxu1 }
  0xbf   : > { %v399_v58 = vld [vmem:[%s812_s2] sm:$0x3] }
  0xc0   : > { %v401_v59 = vperm.slane %v399_v58, 0  ;;  %v402_v60 = vperm.slane %v399_v58, 1 }
  0xc2   : > { %v403_v62 = vrot.slane %v402_v60, 6 }
  0xc3   : > { %v398_v61 = vld [vmem:[#allocation2] sm:$0xf] }
  0xc4   : > { %v404_v63 = vsel %vm387_vm3, %v401_v59, %v403_v62 }
  0xc5   : > { %v406_v0 = vadd.f32 %v404_v63, %v398_v61 }
  0xc7   : > { %407 = vst.msk [vmem:[#allocation3] sm:$0xf] %vm392_vm5, %v406_v0 }
  0xc8 PF: > { %p610_p8 = scmp.eq.s32.totalorder %s511_s15, 1  ;;  %s421_s5 = sshll.u32 %s813_s3, 4  ;;  %s422_s5 = int_to_ptr.hbm [resolvable:$true] %s421_s5 }
  0xc9   : > { %s695_s6 = smov [#allocation3]  }
  0xca   : > { %s419_s7 = sshll.u32 %s695_s6, 4  ;;  %s420_s7 = int_to_ptr.vmem [resolvable:$true] %s419_s7 }
  0xcb   : > { %607 = dma.vmem_to_hbm [thread:$0]  (%p610_p8), %s420_s7, 64, %s422_s5, [#allocation4]  }
  0xcc   : > { %679 = dma.done.wait (%p610_p8), [#allocation4], 64  }
  0xcd   : > { %681 = vsyncadd (%p610_p8), [#allocation4], 4294967232 }
  0xce PF: > { %s14_s14 = sadd.s32 1, %s692_s14   ;;  %s814_s12 = smov %s688_s13 }
  0xcf   : > { %p11_p9 = scmp.ge.s32.totalorder %s14_s14, 4   ;;  %s815_s13 = smov %s817_s16 }
  0xd1   :  { %13 = sbr.rel (!%p11_p9) target bundleno = 2 (0x2), region = 74 }
  0xd6   :  { %435 = vsyncpa [#allocation4], 1 }
  0xd7   :  { %437 = vsyncpa [#allocation4 + $0x1], 1 }

</bundles_post_ra>
